<compile_context>
chip_gen: v7x
topology: tpu7x:2x2x1
jax: 0.10.0
libtpu: 0.0.40
codegen_flags: <defaults>
</compile_context>

<pallas_src>
import functools

import numpy as np

import jax
import jax.numpy as jnp
from jax import lax
from jax.experimental import pallas as pl
from jax.experimental.pallas import tpu as pltpu

EPS = 1e-5


@functools.lru_cache(maxsize=None)
def _vmem_limit_bytes():
    # Per-generation scoped-VMEM budget: v7x has 64 MiB physical, v5e/v6e 128 MiB.
    try:
        cap = int(pltpu.get_tpu_info().vmem_capacity_bytes)
    except Exception:
        cap = 64 * 1024 * 1024
    return min((cap * 3) // 4, 100 * 1024 * 1024)


def _cparams(sem):
    return pltpu.CompilerParams(dimension_semantics=sem,
                                vmem_limit_bytes=_vmem_limit_bytes())


def _pick_td(D, target=8):
    """Largest depth-tile size <= target that divides D."""
    td = min(D, target)
    while D % td:
        td -= 1
    return td


# --------------------------------------------------------------------------
# in-kernel helpers
# --------------------------------------------------------------------------

def _row_stats(y2d):
    """(rows, W*C) f32 -> (2, W*C): per-flat-column [sum, sumsq] partials (single pass)."""
    s = jnp.sum(y2d, axis=0, keepdims=True)
    ss = jnp.sum(y2d * y2d, axis=0, keepdims=True)
    return jnp.concatenate([s, ss], axis=0)


def _banded_conv(xw, wb_ref, TD, H, W, cin, cout):
    """9 (kd, kh) banded dots over a padded window xw: (TD+2, H+2, (W+2)*cin) -> (TD*H, W*cout) f32."""
    Kb = (W + 2) * cin
    acc = jnp.zeros((TD * H, W * cout), jnp.float32)
    for kd in range(3):
        for kh in range(3):
            slab = xw[kd:kd + TD, kh:kh + H, :].reshape(TD * H, Kb).astype(jnp.bfloat16)
            acc = acc + jnp.dot(slab, wb_ref[kd * 3 + kh],
                                preferred_element_type=jnp.float32)
    return acc


# --------------------------------------------------------------------------
# Pallas kernels
# --------------------------------------------------------------------------

def conv1_kernel(xp_ref, wb_ref, y_ref, ps_ref, *, TD, H, W, cin, cout):
    """conv1 for one (n, depth-tile) block.

    xp_ref : (D+2, H+2, (W+2)*cin) bf16  full zero-padded sample (resident across depth tiles)
    wb_ref : (9, (W+2)*cin, W*cout) bf16 banded conv1 weights (resident)
    y_ref  : (TD, H, W*cout)        bf16 conv output tile (lane-dense)
    ps_ref : (2, W*cout)            f32  per-tile [sum, sumsq] partials for BatchNorm1
    """
    dblk = pl.program_id(1)
    d0 = pl.multiple_of(dblk * TD, TD)
    xw = xp_ref[pl.ds(d0, TD + 2), :, :]                 # padded-depth window for this tile
    acc = _banded_conv(xw, wb_ref, TD, H, W, cin, cout)  # (TD*H, W*cout) f32
    ps_ref[...] = _row_stats(acc)
    y_ref[...] = acc.reshape(TD, H, W * cout).astype(jnp.bfloat16)


def conv2_kernel(y1_ref, wb_ref, sc_ref, sh_ref, y2_ref, ps_ref, ap_ref,
                 *, TD, H, W, cin, cout, D):
    """Fused BN1 + ReLU + conv2 for one (n, depth-tile) block.

    y1_ref : (D, H, W*cin)  bf16  full raw conv1 output of this sample (resident)
    wb_ref : (9, (W+2)*cin, W*cout) bf16 banded conv2 weights (resident)
    sc_ref/sh_ref : (1, W*cin) f32  folded BN1 scale / shift, tiled across W
    y2_ref : (TD, H, W*cout) bf16  conv2 output tile
    ps_ref : (2, W*cout)     f32   per-tile [sum, sumsq] partials for BatchNorm2
    ap_ref : (TD+2, H+2, (W+2)*cin) f32 VMEM scratch: zero-padded POST-activation window
    """
    dblk = pl.program_id(1)
    d0 = dblk * TD

    # conv2 zero-pads AFTER BN+ReLU (relu(bn(0)) != 0), so build the padded window in VMEM:
    # pad ring stays literal zeros, BN1+ReLU only touches real rows.  y1 never round-trips HBM.
    ap_ref[...] = jnp.zeros_like(ap_ref)
    sc = sc_ref[...]
    sh = sh_ref[...]

    def _fill(pd):
        src = d0 + pd - 1                    # conv1-output depth feeding padded depth pd
        @pl.when(jnp.logical_and(src >= 0, src < D))
        def _():
            y = y1_ref[jnp.clip(src, 0, D - 1)].astype(jnp.float32)   # (H, W*cin)
            ap_ref[pd, 1:1 + H, cin:cin + W * cin] = jnp.maximum(y * sc + sh, 0.0)

    for pd in range(TD + 2):
        _fill(pd)

    acc = _banded_conv(ap_ref[...], wb_ref, TD, H, W, cin, cout)
    ps_ref[...] = _row_stats(acc)
    y2_ref[...] = acc.reshape(TD, H, W * cout).astype(jnp.bfloat16)


def bn_relu_pool_kernel(y2_ref, sc_ref, sh_ref, p_ref, *, TD, H, W, C):
    """BN2 + ReLU + per-tile spatial partial sum (global-average-pool partial)."""
    y = y2_ref[...].astype(jnp.float32)                    # (TD, H, W*C)
    a = jnp.maximum(y * sc_ref[...] + sh_ref[...], 0.0)
    p_ref[...] = jnp.sum(a.reshape(TD * H, W * C), axis=0, keepdims=True)


# --------------------------------------------------------------------------
# pallas_call wrappers
# --------------------------------------------------------------------------

def _conv1(xp, wb, N, D, H, W, cin, cout, TD, nD):
    kern = functools.partial(conv1_kernel, TD=TD, H=H, W=W, cin=cin, cout=cout)
    return pl.pallas_call(
        kern,
        grid=(N, nD),
        in_specs=[
            pl.BlockSpec((None, D + 2, H + 2, (W + 2) * cin), lambda n, d: (n, 0, 0, 0)),
            pl.BlockSpec((9, (W + 2) * cin, W * cout), lambda n, d: (0, 0, 0)),
        ],
        out_specs=[
            pl.BlockSpec((None, TD, H, W * cout), lambda n, d: (n, d, 0, 0)),
            pl.BlockSpec((None, None, 2, W * cout), lambda n, d: (n, d, 0, 0)),
        ],
        out_shape=[
            jax.ShapeDtypeStruct((N, D, H, W * cout), jnp.bfloat16),
            jax.ShapeDtypeStruct((N, nD, 2, W * cout), jnp.float32),
        ],
        compiler_params=_cparams(("parallel", "parallel")),
    )(xp, wb)


def _conv2(y1, wb, scale1_t, shift1_t, N, D, H, W, cin, cout, TD, nD):
    kern = functools.partial(conv2_kernel, TD=TD, H=H, W=W, cin=cin, cout=cout, D=D)
    return pl.pallas_call(
        kern,
        grid=(N, nD),
        in_specs=[
            pl.BlockSpec((None, D, H, W * cin), lambda n, d: (n, 0, 0, 0)),
            pl.BlockSpec((9, (W + 2) * cin, W * cout), lambda n, d: (0, 0, 0)),
            pl.BlockSpec((1, W * cin), lambda n, d: (0, 0)),
            pl.BlockSpec((1, W * cin), lambda n, d: (0, 0)),
        ],
        out_specs=[
            pl.BlockSpec((None, TD, H, W * cout), lambda n, d: (n, d, 0, 0)),
            pl.BlockSpec((None, None, 2, W * cout), lambda n, d: (n, d, 0, 0)),
        ],
        out_shape=[
            jax.ShapeDtypeStruct((N, D, H, W * cout), jnp.bfloat16),
            jax.ShapeDtypeStruct((N, nD, 2, W * cout), jnp.float32),
        ],
        scratch_shapes=[pltpu.VMEM((TD + 2, H + 2, (W + 2) * cin), jnp.float32)],
        compiler_params=_cparams(("parallel", "parallel")),
    )(y1, wb, scale1_t, shift1_t)


def _bn_relu_pool(y2, scale2_t, shift2_t, N, D, H, W, C, TD, nD):
    kern = functools.partial(bn_relu_pool_kernel, TD=TD, H=H, W=W, C=C)
    return pl.pallas_call(
        kern,
        grid=(N, nD),
        in_specs=[
            pl.BlockSpec((None, TD, H, W * C), lambda n, d: (n, d, 0, 0)),
            pl.BlockSpec((1, W * C), lambda n, d: (0, 0)),
            pl.BlockSpec((1, W * C), lambda n, d: (0, 0)),
        ],
        out_specs=pl.BlockSpec((None, None, 1, W * C), lambda n, d: (n, d, 0, 0)),
        out_shape=jax.ShapeDtypeStruct((N, nD, 1, W * C), jnp.float32),
        compiler_params=_cparams(("parallel", "parallel")),
    )(y2, scale2_t, shift2_t)


# --------------------------------------------------------------------------
# XLA glue
# --------------------------------------------------------------------------

def _band_weights(w, W):
    """(3,3,3,cin,cout) conv weights -> (9, (W+2)*cin, W*cout) bf16 block-banded matrices.

    For each (kd, kh): B[(ow+kw)*cin + ci, ow*cout + co] = w[kd, kh, kw, ci, co], so that the
    conv along W is one dense matmul whose output is already in the lane-dense (w, cout)
    interleaved layout.  Zeros outside the band are exact (cheap extra MXU MACs, no gathers).
    """
    cin, cout = int(w.shape[3]), int(w.shape[4])
    P = np.zeros((3, W, W + 2), np.float32)
    for k in range(3):
        for o in range(W):
            P[k, o, o + k] = 1.0
    band = jnp.einsum('koi,akcd->aicod', jnp.asarray(P), w.reshape(9, 3, cin, cout))
    return band.reshape(9, (W + 2) * cin, W * cout).astype(jnp.bfloat16)


def _finish_bn(ps, gamma, beta, count, W):
    """Finish BN batch stats from per-tile [sum, sumsq] partials (tiny O(N*nD*W*C) XLA glue).

    Returns folded (scale, shift) so BN + affine is just y * scale + shift in the next kernel.
    E[x^2]-E[x]^2 in f32 is fine for post-conv activations at these scales (clamped at 0).
    """
    C = gamma.shape[0]
    s = jnp.sum(ps[:, :, 0, :], axis=(0, 1)).reshape(W, C).sum(axis=0)
    ss = jnp.sum(ps[:, :, 1, :], axis=(0, 1)).reshape(W, C).sum(axis=0)
    mean = s / count
    var = jnp.maximum(ss / count - mean * mean, 0.0)       # biased var = BN training mode
    scale = gamma * lax.rsqrt(var + EPS)
    shift = beta - mean * scale
    return scale.reshape(1, C), shift.reshape(1, C)


def video_classifier_forward(params, x_ncdhw):
    """Forward pass matching VideoClassifier.forward (training-mode BatchNorm, batch stats)."""
    x = jnp.transpose(x_ncdhw, (0, 2, 3, 4, 1)).astype(jnp.float32)   # NCDHW -> NDHWC (tiny input)
    N, D, H, W, Cin = x.shape
    C1 = params["w1"].shape[-1]
    C2 = params["w2"].shape[-1]
    TD = _pick_td(D)
    nD = D // TD
    count = N * D * H * W

    # conv1 input: zero-pad once in XLA (small, Cin channels), flatten (W+2, Cin) into one
    # lane dim, cast bf16.  Conv biases are dropped: training-mode BN's mean subtraction
    # cancels a per-channel constant exactly (would break for eval-mode/running-stat BN).
    xp = jnp.pad(x, ((0, 0), (1, 1), (1, 1), (1, 1), (0, 0)))
    xp = xp.reshape(N, D + 2, H + 2, (W + 2) * Cin).astype(jnp.bfloat16)

    w1b = _band_weights(params["w1"], W)       # (9, (W+2)*Cin, W*C1) bf16, resident in kernel
    w2b = _band_weights(params["w2"], W)       # (9, (W+2)*C1,  W*C2) bf16, resident in kernel

    # ---- layer 1: conv1 (+ BN1 partial stats from the f32 accumulator)
    y1, ps1 = _conv1(xp, w1b, N, D, H, W, Cin, C1, TD, nD)
    scale1, shift1 = _finish_bn(ps1, params["g1"], params["be1"], count, W)

    # ---- layer 2: BN1 + ReLU fused into conv2 (+ BN2 partial stats); no HBM pad of y1
    y2, ps2 = _conv2(y1, w2b, jnp.tile(scale1, (1, W)), jnp.tile(shift1, (1, W)),
                     N, D, H, W, C1, C2, TD, nD)
    scale2, shift2 = _finish_bn(ps2, params["g2"], params["be2"], count, W)

    # ---- BN2 + ReLU + per-tile pool partials; pool finish + FC in plain XLA (f32)
    pool_part = _bn_relu_pool(y2, jnp.tile(scale2, (1, W)), jnp.tile(shift2, (1, W)),
                              N, D, H, W, C2, TD, nD)
    pooled = pool_part[:, :, 0, :].reshape(N, nD * W, C2).sum(axis=1) / float(D * H * W)
    logits = jnp.dot(pooled, params["wfc"], precision=lax.Precision.HIGHEST) \
        + params["bfc"][None, :]
    return logits


# --------------------------------------------------------------------------
# pure-JAX reference (faithful to the PyTorch module, f32, HIGHEST precision)
# --------------------------------------------------------------------------

def reference_forward(params, x_ncdhw):
    def conv3d(x, w, b):
        w_oidhw = jnp.transpose(w, (4, 3, 0, 1, 2))    # (Cout, Cin, 3, 3, 3)
        y = lax.conv_general_dilated(
            x, w_oidhw, window_strides=(1, 1, 1),
            padding=((1, 1), (1, 1), (1, 1)),
            dimension_numbers=("NCDHW", "OIDHW", "NCDHW"),
            precision=lax.Precision.HIGHEST)
        return y + b[None, :, None, None, None]

    def bn_relu(x, g, be):
        mean = jnp.mean(x, axis=(0, 2, 3, 4), keepdims=True)
        var = jnp.mean(jnp.square(x - mean), axis=(0, 2, 3, 4), keepdims=True)
        y = (x - mean) * lax.rsqrt(var + EPS)
        y = y * g[None, :, None, None, None] + be[None, :, None, None, None]
        return jnp.maximum(y, 0.0)

    x = bn_relu(conv3d(x_ncdhw, params["w1"], params["b1"]), params["g1"], params["be1"])
    x = bn_relu(conv3d(x, params["w2"], params["b2"]), params["g2"], params["be2"])
    pooled = jnp.mean(x, axis=(2, 3, 4))               # AdaptiveAvgPool3d((1,1,1)) + flatten
    return jnp.dot(pooled, params["wfc"], precision=lax.Precision.HIGHEST) + params["bfc"][None, :]


# --------------------------------------------------------------------------
# params
# --------------------------------------------------------------------------

def init_params(key, in_channels, hidden_dim, num_classes):
    C1, C2 = hidden_dim, hidden_dim * 2
    ks = jax.random.split(key, 10)
    return {
        # conv weights stored as (kd, kh, kw, Cin, Cout); _band_weights consumes this layout
        "w1": 0.1 * jax.random.normal(ks[0], (3, 3, 3, in_channels, C1), jnp.float32),
        "b1": 0.1 * jax.random.normal(ks[1], (C1,), jnp.float32),   # cancelled by BN in kernel path
        "g1": 1.0 + 0.1 * jax.random.normal(ks[2], (C1,), jnp.float32),
        "be1": 0.1 * jax.random.normal(ks[3], (C1,), jnp.float32),
        "w2": 0.1 * jax.random.normal(ks[4], (3, 3, 3, C1, C2), jnp.float32),
        "b2": 0.1 * jax.random.normal(ks[5], (C2,), jnp.float32),   # cancelled by BN in kernel path
        "g2": 1.0 + 0.1 * jax.random.normal(ks[6], (C2,), jnp.float32),
        "be2": 0.1 * jax.random.normal(ks[7], (C2,), jnp.float32),
        "wfc": 0.1 * jax.random.normal(ks[8], (C2, num_classes), jnp.float32),
        "bfc": 0.1 * jax.random.normal(ks[9], (num_classes,), jnp.float32),
    }
    # TODO(synk): BatchNorm running-stat (momentum) buffer updates are training-state
    # bookkeeping that do not affect the forward output; they are not reproduced here.


if __name__ == "__main__":
    key = jax.random.PRNGKey(0)
    kx, kp = jax.random.split(key)

    N, Cin, D, H, W = 2, 4, 8, 16, 16          # small NCDHW video batch
    hidden_dim, num_classes = 16, 2

    x = jax.random.normal(kx, (N, Cin, D, H, W), jnp.float32)
    params = init_params(kp, Cin, hidden_dim, num_classes)

    logits = jax.jit(video_classifier_forward)(params, x)
    jax.block_until_ready(logits)

    ref = reference_forward(params, x)
    assert logits.shape == (N, num_classes), logits.shape
    # Tolerance sized for bf16 MXU operands + bf16 HBM intermediates vs. the f32 HIGHEST reference.
    assert jnp.allclose(logits, ref, atol=3e-2, rtol=3e-2), (logits, ref)

    print("KERNEL_OK")
</pallas_src>

<mosaic_0001>
module attributes {stable_mosaic.version = 11 : i64} {
  func.func @conv1_kernel(%arg0: i32, %arg1: i32, %arg2: memref<1x10x18x72xbf16, #tpu.memory_space<vmem>>, %arg3: memref<9x72x256xbf16, #tpu.memory_space<vmem>>, %arg4: memref<1x8x16x256xbf16, #tpu.memory_space<vmem>>, %arg5: memref<1x1x2x256xf32, #tpu.memory_space<vmem>>) attributes {dimension_semantics = [#tpu.dimension_semantics<parallel>, #tpu.dimension_semantics<parallel>], iteration_bounds = array<i64: 2, 1>, scalar_prefetch = 0 : i64, scratch_operands = 0 : i64, tpu.core_type = #tpu.core_type<tc>, window_params = [{transform_indices = @transform_0, window_bounds = array<i64: 1, 10, 18, 72>}, {pipeline_mode = #tpu.pipeline_mode<synchronous>, transform_indices = @transform_1, window_bounds = array<i64: 9, 72, 256>}, {transform_indices = @transform_2, window_bounds = array<i64: 1, 8, 16, 256>}, {transform_indices = @transform_3, window_bounds = array<i64: 1, 1, 2, 256>}]} {
    %c8_i32 = arith.constant 8 : i32
    %0 = arith.muli %arg1, %c8_i32 : i32
    %1 = tpu.assume_multiple %0, 8 : i32
    %c0 = arith.constant 0 : index
    %2 = arith.index_cast %1 : i32 to index
    %c0_0 = arith.constant 0 : index
    %c0_1 = arith.constant 0 : index
    %3 = vector.load %arg2[%c0, %2, %c0_0, %c0_1] : memref<1x10x18x72xbf16, #tpu.memory_space<vmem>>, vector<1x10x18x72xbf16>
    %4 = vector.shape_cast %3 : vector<1x10x18x72xbf16> to vector<10x18x72xbf16>
    %cst = arith.constant 0.000000e+00 : f32
    %5 = vector.broadcast %cst : f32 to vector<128x256xf32>
    %6 = vector.extract_strided_slice %4 {offsets = [0, 0, 0], sizes = [8, 16, 72], strides = [1, 1, 1]} : vector<10x18x72xbf16> to vector<8x16x72xbf16>
    %7 = vector.shape_cast %6 : vector<8x16x72xbf16> to vector<128x72xbf16>
    %c0_2 = arith.constant 0 : index
    %c0_3 = arith.constant 0 : index
    %c0_4 = arith.constant 0 : index
    %8 = vector.load %arg3[%c0_2, %c0_3, %c0_4] : memref<9x72x256xbf16, #tpu.memory_space<vmem>>, vector<1x72x256xbf16>
    %9 = vector.shape_cast %8 : vector<1x72x256xbf16> to vector<72x256xbf16>
    %cst_5 = arith.constant dense<0.000000e+00> : vector<128x256xf32>
    %10 = tpu.matmul %7, %9, %cst_5 {dimension_numbers = #tpu.dot_dimension_numbers<[1], [0], [0], [1], [0, 0, 1, 1], [], []>} : vector<128x72xbf16>, vector<72x256xbf16>, vector<128x256xf32> -> vector<128x256xf32>
    %11 = arith.addf %5, %10 : vector<128x256xf32>
    %12 = vector.extract_strided_slice %4 {offsets = [0, 1, 0], sizes = [8, 16, 72], strides = [1, 1, 1]} : vector<10x18x72xbf16> to vector<8x16x72xbf16>
    %13 = vector.shape_cast %12 : vector<8x16x72xbf16> to vector<128x72xbf16>
    %c1 = arith.constant 1 : index
    %c0_6 = arith.constant 0 : index
    %c0_7 = arith.constant 0 : index
    %14 = vector.load %arg3[%c1, %c0_6, %c0_7] : memref<9x72x256xbf16, #tpu.memory_space<vmem>>, vector<1x72x256xbf16>
    %15 = vector.shape_cast %14 : vector<1x72x256xbf16> to vector<72x256xbf16>
    %cst_8 = arith.constant dense<0.000000e+00> : vector<128x256xf32>
    %16 = tpu.matmul %13, %15, %cst_8 {dimension_numbers = #tpu.dot_dimension_numbers<[1], [0], [0], [1], [0, 0, 1, 1], [], []>} : vector<128x72xbf16>, vector<72x256xbf16>, vector<128x256xf32> -> vector<128x256xf32>
    %17 = arith.addf %11, %16 : vector<128x256xf32>
    %18 = vector.extract_strided_slice %4 {offsets = [0, 2, 0], sizes = [8, 16, 72], strides = [1, 1, 1]} : vector<10x18x72xbf16> to vector<8x16x72xbf16>
    %19 = vector.shape_cast %18 : vector<8x16x72xbf16> to vector<128x72xbf16>
    %c2 = arith.constant 2 : index
    %c0_9 = arith.constant 0 : index
    %c0_10 = arith.constant 0 : index
    %20 = vector.load %arg3[%c2, %c0_9, %c0_10] : memref<9x72x256xbf16, #tpu.memory_space<vmem>>, vector<1x72x256xbf16>
    %21 = vector.shape_cast %20 : vector<1x72x256xbf16> to vector<72x256xbf16>
    %cst_11 = arith.constant dense<0.000000e+00> : vector<128x256xf32>
    %22 = tpu.matmul %19, %21, %cst_11 {dimension_numbers = #tpu.dot_dimension_numbers<[1], [0], [0], [1], [0, 0, 1, 1], [], []>} : vector<128x72xbf16>, vector<72x256xbf16>, vector<128x256xf32> -> vector<128x256xf32>
    %23 = arith.addf %17, %22 : vector<128x256xf32>
    %24 = vector.extract_strided_slice %4 {offsets = [1, 0, 0], sizes = [8, 16, 72], strides = [1, 1, 1]} : vector<10x18x72xbf16> to vector<8x16x72xbf16>
    %25 = vector.shape_cast %24 : vector<8x16x72xbf16> to vector<128x72xbf16>
    %c3 = arith.constant 3 : index
    %c0_12 = arith.constant 0 : index
    %c0_13 = arith.constant 0 : index
    %26 = vector.load %arg3[%c3, %c0_12, %c0_13] : memref<9x72x256xbf16, #tpu.memory_space<vmem>>, vector<1x72x256xbf16>
    %27 = vector.shape_cast %26 : vector<1x72x256xbf16> to vector<72x256xbf16>
    %cst_14 = arith.constant dense<0.000000e+00> : vector<128x256xf32>
    %28 = tpu.matmul %25, %27, %cst_14 {dimension_numbers = #tpu.dot_dimension_numbers<[1], [0], [0], [1], [0, 0, 1, 1], [], []>} : vector<128x72xbf16>, vector<72x256xbf16>, vector<128x256xf32> -> vector<128x256xf32>
    %29 = arith.addf %23, %28 : vector<128x256xf32>
    %30 = vector.extract_strided_slice %4 {offsets = [1, 1, 0], sizes = [8, 16, 72], strides = [1, 1, 1]} : vector<10x18x72xbf16> to vector<8x16x72xbf16>
    %31 = vector.shape_cast %30 : vector<8x16x72xbf16> to vector<128x72xbf16>
    %c4 = arith.constant 4 : index
    %c0_15 = arith.constant 0 : index
    %c0_16 = arith.constant 0 : index
    %32 = vector.load %arg3[%c4, %c0_15, %c0_16] : memref<9x72x256xbf16, #tpu.memory_space<vmem>>, vector<1x72x256xbf16>
    %33 = vector.shape_cast %32 : vector<1x72x256xbf16> to vector<72x256xbf16>
    %cst_17 = arith.constant dense<0.000000e+00> : vector<128x256xf32>
    %34 = tpu.matmul %31, %33, %cst_17 {dimension_numbers = #tpu.dot_dimension_numbers<[1], [0], [0], [1], [0, 0, 1, 1], [], []>} : vector<128x72xbf16>, vector<72x256xbf16>, vector<128x256xf32> -> vector<128x256xf32>
    %35 = arith.addf %29, %34 : vector<128x256xf32>
    %36 = vector.extract_strided_slice %4 {offsets = [1, 2, 0], sizes = [8, 16, 72], strides = [1, 1, 1]} : vector<10x18x72xbf16> to vector<8x16x72xbf16>
    %37 = vector.shape_cast %36 : vector<8x16x72xbf16> to vector<128x72xbf16>
    %c5 = arith.constant 5 : index
    %c0_18 = arith.constant 0 : index
    %c0_19 = arith.constant 0 : index
    %38 = vector.load %arg3[%c5, %c0_18, %c0_19] : memref<9x72x256xbf16, #tpu.memory_space<vmem>>, vector<1x72x256xbf16>
    %39 = vector.shape_cast %38 : vector<1x72x256xbf16> to vector<72x256xbf16>
    %cst_20 = arith.constant dense<0.000000e+00> : vector<128x256xf32>
    %40 = tpu.matmul %37, %39, %cst_20 {dimension_numbers = #tpu.dot_dimension_numbers<[1], [0], [0], [1], [0, 0, 1, 1], [], []>} : vector<128x72xbf16>, vector<72x256xbf16>, vector<128x256xf32> -> vector<128x256xf32>
    %41 = arith.addf %35, %40 : vector<128x256xf32>
    %42 = vector.extract_strided_slice %4 {offsets = [2, 0, 0], sizes = [8, 16, 72], strides = [1, 1, 1]} : vector<10x18x72xbf16> to vector<8x16x72xbf16>
    %43 = vector.shape_cast %42 : vector<8x16x72xbf16> to vector<128x72xbf16>
    %c6 = arith.constant 6 : index
    %c0_21 = arith.constant 0 : index
    %c0_22 = arith.constant 0 : index
    %44 = vector.load %arg3[%c6, %c0_21, %c0_22] : memref<9x72x256xbf16, #tpu.memory_space<vmem>>, vector<1x72x256xbf16>
    %45 = vector.shape_cast %44 : vector<1x72x256xbf16> to vector<72x256xbf16>
    %cst_23 = arith.constant dense<0.000000e+00> : vector<128x256xf32>
    %46 = tpu.matmul %43, %45, %cst_23 {dimension_numbers = #tpu.dot_dimension_numbers<[1], [0], [0], [1], [0, 0, 1, 1], [], []>} : vector<128x72xbf16>, vector<72x256xbf16>, vector<128x256xf32> -> vector<128x256xf32>
    %47 = arith.addf %41, %46 : vector<128x256xf32>
    %48 = vector.extract_strided_slice %4 {offsets = [2, 1, 0], sizes = [8, 16, 72], strides = [1, 1, 1]} : vector<10x18x72xbf16> to vector<8x16x72xbf16>
    %49 = vector.shape_cast %48 : vector<8x16x72xbf16> to vector<128x72xbf16>
    %c7 = arith.constant 7 : index
    %c0_24 = arith.constant 0 : index
    %c0_25 = arith.constant 0 : index
    %50 = vector.load %arg3[%c7, %c0_24, %c0_25] : memref<9x72x256xbf16, #tpu.memory_space<vmem>>, vector<1x72x256xbf16>
    %51 = vector.shape_cast %50 : vector<1x72x256xbf16> to vector<72x256xbf16>
    %cst_26 = arith.constant dense<0.000000e+00> : vector<128x256xf32>
    %52 = tpu.matmul %49, %51, %cst_26 {dimension_numbers = #tpu.dot_dimension_numbers<[1], [0], [0], [1], [0, 0, 1, 1], [], []>} : vector<128x72xbf16>, vector<72x256xbf16>, vector<128x256xf32> -> vector<128x256xf32>
    %53 = arith.addf %47, %52 : vector<128x256xf32>
    %54 = vector.extract_strided_slice %4 {offsets = [2, 2, 0], sizes = [8, 16, 72], strides = [1, 1, 1]} : vector<10x18x72xbf16> to vector<8x16x72xbf16>
    %55 = vector.shape_cast %54 : vector<8x16x72xbf16> to vector<128x72xbf16>
    %c8 = arith.constant 8 : index
    %c0_27 = arith.constant 0 : index
    %c0_28 = arith.constant 0 : index
    %56 = vector.load %arg3[%c8, %c0_27, %c0_28] : memref<9x72x256xbf16, #tpu.memory_space<vmem>>, vector<1x72x256xbf16>
    %57 = vector.shape_cast %56 : vector<1x72x256xbf16> to vector<72x256xbf16>
    %cst_29 = arith.constant dense<0.000000e+00> : vector<128x256xf32>
    %58 = tpu.matmul %55, %57, %cst_29 {dimension_numbers = #tpu.dot_dimension_numbers<[1], [0], [0], [1], [0, 0, 1, 1], [], []>} : vector<128x72xbf16>, vector<72x256xbf16>, vector<128x256xf32> -> vector<128x256xf32>
    %59 = arith.addf %53, %58 : vector<128x256xf32>
    %cst_30 = arith.constant dense<0.000000e+00> : vector<256xf32>
    %60 = vector.multi_reduction <add>, %59, %cst_30 [0] : vector<128x256xf32> to vector<256xf32>
    %61 = vector.shape_cast %60 : vector<256xf32> to vector<1x256xf32>
    %62 = arith.mulf %59, %59 : vector<128x256xf32>
    %cst_31 = arith.constant dense<0.000000e+00> : vector<256xf32>
    %63 = vector.multi_reduction <add>, %62, %cst_31 [0] : vector<128x256xf32> to vector<256xf32>
    %64 = vector.shape_cast %63 : vector<256xf32> to vector<1x256xf32>
    %65 = tpu.concatenate %61, %64 in 0 : vector<1x256xf32>, vector<1x256xf32> -> vector<2x256xf32>
    %c0_32 = arith.constant 0 : index
    %c0_33 = arith.constant 0 : index
    %c0_34 = arith.constant 0 : index
    %c0_35 = arith.constant 0 : index
    %66 = vector.load %arg5[%c0_32, %c0_33, %c0_34, %c0_35] : memref<1x1x2x256xf32, #tpu.memory_space<vmem>>, vector<1x1x2x256xf32>
    %67 = vector.shape_cast %66 : vector<1x1x2x256xf32> to vector<2x256xf32>
    %68 = vector.shape_cast %65 : vector<2x256xf32> to vector<1x1x2x256xf32>
    tpu.vector_store %arg5[%c0_32, %c0_33, %c0_34, %c0_35], %68 {strides = array<i32>} : memref<1x1x2x256xf32, #tpu.memory_space<vmem>>, vector<1x1x2x256xf32>,
    %69 = vector.shape_cast %59 : vector<128x256xf32> to vector<8x16x256xf32>
    %70 = arith.truncf %69 : vector<8x16x256xf32> to vector<8x16x256xbf16>
    %c0_36 = arith.constant 0 : index
    %c0_37 = arith.constant 0 : index
    %c0_38 = arith.constant 0 : index
    %c0_39 = arith.constant 0 : index
    %71 = vector.load %arg4[%c0_36, %c0_37, %c0_38, %c0_39] : memref<1x8x16x256xbf16, #tpu.memory_space<vmem>>, vector<1x8x16x256xbf16>
    %72 = vector.shape_cast %71 : vector<1x8x16x256xbf16> to vector<8x16x256xbf16>
    %73 = vector.shape_cast %70 : vector<8x16x256xbf16> to vector<1x8x16x256xbf16>
    tpu.vector_store %arg4[%c0_36, %c0_37, %c0_38, %c0_39], %73 {strides = array<i32>} : memref<1x8x16x256xbf16, #tpu.memory_space<vmem>>, vector<1x8x16x256xbf16>,
    return
  }
  func.func @transform_0(%arg0: i32, %arg1: i32) -> (i32, i32, i32, i32) {
    %c0_i32 = arith.constant 0 : i32
    %c0_i32_0 = arith.constant 0 : i32
    %c0_i32_1 = arith.constant 0 : i32
    %c0_i32_2 = arith.constant 0 : i32
    return %arg0, %c0_i32, %c0_i32_0, %c0_i32_1 : i32, i32, i32, i32
  }
  func.func @transform_1(%arg0: i32, %arg1: i32) -> (i32, i32, i32) {
    %c0_i32 = arith.constant 0 : i32
    %c0_i32_0 = arith.constant 0 : i32
    %c0_i32_1 = arith.constant 0 : i32
    %c0_i32_2 = arith.constant 0 : i32
    return %c0_i32, %c0_i32_0, %c0_i32_1 : i32, i32, i32
  }
  func.func @transform_2(%arg0: i32, %arg1: i32) -> (i32, i32, i32, i32) {
    %c0_i32 = arith.constant 0 : i32
    %c0_i32_0 = arith.constant 0 : i32
    %c0_i32_1 = arith.constant 0 : i32
    return %arg0, %arg1, %c0_i32, %c0_i32_0 : i32, i32, i32, i32
  }
  func.func @transform_3(%arg0: i32, %arg1: i32) -> (i32, i32, i32, i32) {
    %c0_i32 = arith.constant 0 : i32
    %c0_i32_0 = arith.constant 0 : i32
    %c0_i32_1 = arith.constant 0 : i32
    return %arg0, %arg1, %c0_i32, %c0_i32_0 : i32, i32, i32, i32
  }
}

module attributes {stable_mosaic.version = 11 : i64} {
  func.func @conv2_kernel(%arg0: i32, %arg1: i32, %arg2: memref<1x8x16x256xbf16, #tpu.memory_space<vmem>>, %arg3: memref<9x288x512xbf16, #tpu.memory_space<vmem>>, %arg4: memref<1x256xf32, #tpu.memory_space<vmem>>, %arg5: memref<1x256xf32, #tpu.memory_space<vmem>>, %arg6: memref<1x8x16x512xbf16, #tpu.memory_space<vmem>>, %arg7: memref<1x1x2x512xf32, #tpu.memory_space<vmem>>, %arg8: memref<10x18x288xf32, #tpu.memory_space<vmem>>) attributes {dimension_semantics = [#tpu.dimension_semantics<parallel>, #tpu.dimension_semantics<parallel>], iteration_bounds = array<i64: 2, 1>, scalar_prefetch = 0 : i64, scratch_operands = 1 : i64, tpu.core_type = #tpu.core_type<tc>, window_params = [{transform_indices = @transform_0, window_bounds = array<i64: 1, 8, 16, 256>}, {pipeline_mode = #tpu.pipeline_mode<synchronous>, transform_indices = @transform_1, window_bounds = array<i64: 9, 288, 512>}, {pipeline_mode = #tpu.pipeline_mode<synchronous>, transform_indices = @transform_2, window_bounds = array<i64: 1, 256>}, {pipeline_mode = #tpu.pipeline_mode<synchronous>, transform_indices = @transform_3, window_bounds = array<i64: 1, 256>}, {transform_indices = @transform_4, window_bounds = array<i64: 1, 8, 16, 512>}, {transform_indices = @transform_5, window_bounds = array<i64: 1, 1, 2, 512>}]} {
    %c8_i32 = arith.constant 8 : i32
    %0 = arith.muli %arg1, %c8_i32 : i32
    %cst = arith.constant 0.000000e+00 : f32
    %1 = vector.broadcast %cst : f32 to vector<10x18x288xf32>
    %c0 = arith.constant 0 : index
    %c0_0 = arith.constant 0 : index
    %c0_1 = arith.constant 0 : index
    %2 = vector.load %arg8[%c0, %c0_0, %c0_1] : memref<10x18x288xf32, #tpu.memory_space<vmem>>, vector<10x18x288xf32>
    tpu.vector_store %arg8[%c0, %c0_0, %c0_1], %1 {strides = array<i32>} : memref<10x18x288xf32, #tpu.memory_space<vmem>>, vector<10x18x288xf32>,
    %c0_2 = arith.constant 0 : index
    %c0_3 = arith.constant 0 : index
    %3 = vector.load %arg4[%c0_2, %c0_3] : memref<1x256xf32, #tpu.memory_space<vmem>>, vector<1x256xf32>
    %c0_4 = arith.constant 0 : index
    %c0_5 = arith.constant 0 : index
    %4 = vector.load %arg5[%c0_4, %c0_5] : memref<1x256xf32, #tpu.memory_space<vmem>>, vector<1x256xf32>
    %c0_i32 = arith.constant 0 : i32
    %5 = arith.addi %0, %c0_i32 : i32
    %c1_i32 = arith.constant 1 : i32
    %6 = arith.subi %5, %c1_i32 : i32
    %c0_i32_6 = arith.constant 0 : i32
    %7 = arith.cmpi sge, %6, %c0_i32_6 : i32
    %c8_i32_7 = arith.constant 8 : i32
    %8 = arith.cmpi slt, %6, %c8_i32_7 : i32
    %9 = arith.andi %7, %8 : i1
    %10 = arith.extui %9 : i1 to i32
    %c0_i32_8 = arith.constant 0 : i32
    %11 = arith.cmpi ne, %10, %c0_i32_8 : i32
    scf.if %11 {
      %c0_i32_89 = arith.constant 0 : i32
      %c7_i32_90 = arith.constant 7 : i32
      %154 = arith.maxsi %c0_i32_89, %6 : i32
      %155 = arith.minsi %c7_i32_90, %154 : i32
      %c0_91 = arith.constant 0 : index
      %156 = arith.index_cast %155 : i32 to index
      %c0_92 = arith.constant 0 : index
      %c0_93 = arith.constant 0 : index
      %157 = vector.load %arg2[%c0_91, %156, %c0_92, %c0_93] : memref<1x8x16x256xbf16, #tpu.memory_space<vmem>>, vector<1x1x16x256xbf16>
      %158 = vector.shape_cast %157 : vector<1x1x16x256xbf16> to vector<16x256xbf16>
      %159 = arith.extf %158 : vector<16x256xbf16> to vector<16x256xf32>
      %160 = vector.broadcast %3 : vector<1x256xf32> to vector<16x256xf32>
      %161 = arith.mulf %159, %160 : vector<16x256xf32>
      %162 = vector.broadcast %4 : vector<1x256xf32> to vector<16x256xf32>
      %163 = arith.addf %161, %162 : vector<16x256xf32>
      %cst_94 = arith.constant 0.000000e+00 : f32
      %164 = vector.broadcast %cst_94 : f32 to vector<16x256xf32>
      %165 = arith.maximumf %163, %164 : vector<16x256xf32>
      %c0_95 = arith.constant 0 : index
      %c1_96 = arith.constant 1 : index
      %c16 = arith.constant 16 : index
      %166 = vector.load %arg8[%c0_95, %c1_96, %c16] : memref<10x18x288xf32, #tpu.memory_space<vmem>>, vector<1x16x256xf32>
      %167 = vector.shape_cast %166 : vector<1x16x256xf32> to vector<16x256xf32>
      %168 = vector.shape_cast %165 : vector<16x256xf32> to vector<1x16x256xf32>
      tpu.vector_store %arg8[%c0_95, %c1_96, %c16], %168 {strides = array<i32>} : memref<10x18x288xf32, #tpu.memory_space<vmem>>, vector<1x16x256xf32>,
    } else {
    }
    %c1_i32_9 = arith.constant 1 : i32
    %12 = arith.addi %0, %c1_i32_9 : i32
    %c1_i32_10 = arith.constant 1 : i32
    %13 = arith.subi %12, %c1_i32_10 : i32
    %c0_i32_11 = arith.constant 0 : i32
    %14 = arith.cmpi sge, %13, %c0_i32_11 : i32
    %c8_i32_12 = arith.constant 8 : i32
    %15 = arith.cmpi slt, %13, %c8_i32_12 : i32
    %16 = arith.andi %14, %15 : i1
    %17 = arith.extui %16 : i1 to i32
    %c0_i32_13 = arith.constant 0 : i32
    %18 = arith.cmpi ne, %17, %c0_i32_13 : i32
    scf.if %18 {
      %c0_i32_89 = arith.constant 0 : i32
      %c7_i32_90 = arith.constant 7 : i32
      %154 = arith.maxsi %c0_i32_89, %13 : i32
      %155 = arith.minsi %c7_i32_90, %154 : i32
      %c0_91 = arith.constant 0 : index
      %156 = arith.index_cast %155 : i32 to index
      %c0_92 = arith.constant 0 : index
      %c0_93 = arith.constant 0 : index
      %157 = vector.load %arg2[%c0_91, %156, %c0_92, %c0_93] : memref<1x8x16x256xbf16, #tpu.memory_space<vmem>>, vector<1x1x16x256xbf16>
      %158 = vector.shape_cast %157 : vector<1x1x16x256xbf16> to vector<16x256xbf16>
      %159 = arith.extf %158 : vector<16x256xbf16> to vector<16x256xf32>
      %160 = vector.broadcast %3 : vector<1x256xf32> to vector<16x256xf32>
      %161 = arith.mulf %159, %160 : vector<16x256xf32>
      %162 = vector.broadcast %4 : vector<1x256xf32> to vector<16x256xf32>
      %163 = arith.addf %161, %162 : vector<16x256xf32>
      %cst_94 = arith.constant 0.000000e+00 : f32
      %164 = vector.broadcast %cst_94 : f32 to vector<16x256xf32>
      %165 = arith.maximumf %163, %164 : vector<16x256xf32>
      %c1_95 = arith.constant 1 : index
      %c1_96 = arith.constant 1 : index
      %c16 = arith.constant 16 : index
      %166 = vector.load %arg8[%c1_95, %c1_96, %c16] : memref<10x18x288xf32, #tpu.memory_space<vmem>>, vector<1x16x256xf32>
      %167 = vector.shape_cast %166 : vector<1x16x256xf32> to vector<16x256xf32>
      %168 = vector.shape_cast %165 : vector<16x256xf32> to vector<1x16x256xf32>
      tpu.vector_store %arg8[%c1_95, %c1_96, %c16], %168 {strides = array<i32>} : memref<10x18x288xf32, #tpu.memory_space<vmem>>, vector<1x16x256xf32>,
    } else {
    }
    %c2_i32 = arith.constant 2 : i32
    %19 = arith.addi %0, %c2_i32 : i32
    %c1_i32_14 = arith.constant 1 : i32
    %20 = arith.subi %19, %c1_i32_14 : i32
    %c0_i32_15 = arith.constant 0 : i32
    %21 = arith.cmpi sge, %20, %c0_i32_15 : i32
    %c8_i32_16 = arith.constant 8 : i32
    %22 = arith.cmpi slt, %20, %c8_i32_16 : i32
    %23 = arith.andi %21, %22 : i1
    %24 = arith.extui %23 : i1 to i32
    %c0_i32_17 = arith.constant 0 : i32
    %25 = arith.cmpi ne, %24, %c0_i32_17 : i32
    scf.if %25 {
      %c0_i32_89 = arith.constant 0 : i32
      %c7_i32_90 = arith.constant 7 : i32
      %154 = arith.maxsi %c0_i32_89, %20 : i32
      %155 = arith.minsi %c7_i32_90, %154 : i32
      %c0_91 = arith.constant 0 : index
      %156 = arith.index_cast %155 : i32 to index
      %c0_92 = arith.constant 0 : index
      %c0_93 = arith.constant 0 : index
      %157 = vector.load %arg2[%c0_91, %156, %c0_92, %c0_93] : memref<1x8x16x256xbf16, #tpu.memory_space<vmem>>, vector<1x1x16x256xbf16>
      %158 = vector.shape_cast %157 : vector<1x1x16x256xbf16> to vector<16x256xbf16>
      %159 = arith.extf %158 : vector<16x256xbf16> to vector<16x256xf32>
      %160 = vector.broadcast %3 : vector<1x256xf32> to vector<16x256xf32>
      %161 = arith.mulf %159, %160 : vector<16x256xf32>
      %162 = vector.broadcast %4 : vector<1x256xf32> to vector<16x256xf32>
      %163 = arith.addf %161, %162 : vector<16x256xf32>
      %cst_94 = arith.constant 0.000000e+00 : f32
      %164 = vector.broadcast %cst_94 : f32 to vector<16x256xf32>
      %165 = arith.maximumf %163, %164 : vector<16x256xf32>
      %c2_95 = arith.constant 2 : index
      %c1_96 = arith.constant 1 : index
      %c16 = arith.constant 16 : index
      %166 = vector.load %arg8[%c2_95, %c1_96, %c16] : memref<10x18x288xf32, #tpu.memory_space<vmem>>, vector<1x16x256xf32>
      %167 = vector.shape_cast %166 : vector<1x16x256xf32> to vector<16x256xf32>
      %168 = vector.shape_cast %165 : vector<16x256xf32> to vector<1x16x256xf32>
      tpu.vector_store %arg8[%c2_95, %c1_96, %c16], %168 {strides = array<i32>} : memref<10x18x288xf32, #tpu.memory_space<vmem>>, vector<1x16x256xf32>,
    } else {
    }
    %c3_i32 = arith.constant 3 : i32
    %26 = arith.addi %0, %c3_i32 : i32
    %c1_i32_18 = arith.constant 1 : i32
    %27 = arith.subi %26, %c1_i32_18 : i32
    %c0_i32_19 = arith.constant 0 : i32
    %28 = arith.cmpi sge, %27, %c0_i32_19 : i32
    %c8_i32_20 = arith.constant 8 : i32
    %29 = arith.cmpi slt, %27, %c8_i32_20 : i32
    %30 = arith.andi %28, %29 : i1
    %31 = arith.extui %30 : i1 to i32
    %c0_i32_21 = arith.constant 0 : i32
    %32 = arith.cmpi ne, %31, %c0_i32_21 : i32
    scf.if %32 {
      %c0_i32_89 = arith.constant 0 : i32
      %c7_i32_90 = arith.constant 7 : i32
      %154 = arith.maxsi %c0_i32_89, %27 : i32
      %155 = arith.minsi %c7_i32_90, %154 : i32
      %c0_91 = arith.constant 0 : index
      %156 = arith.index_cast %155 : i32 to index
      %c0_92 = arith.constant 0 : index
      %c0_93 = arith.constant 0 : index
      %157 = vector.load %arg2[%c0_91, %156, %c0_92, %c0_93] : memref<1x8x16x256xbf16, #tpu.memory_space<vmem>>, vector<1x1x16x256xbf16>
      %158 = vector.shape_cast %157 : vector<1x1x16x256xbf16> to vector<16x256xbf16>
      %159 = arith.extf %158 : vector<16x256xbf16> to vector<16x256xf32>
      %160 = vector.broadcast %3 : vector<1x256xf32> to vector<16x256xf32>
      %161 = arith.mulf %159, %160 : vector<16x256xf32>
      %162 = vector.broadcast %4 : vector<1x256xf32> to vector<16x256xf32>
      %163 = arith.addf %161, %162 : vector<16x256xf32>
      %cst_94 = arith.constant 0.000000e+00 : f32
      %164 = vector.broadcast %cst_94 : f32 to vector<16x256xf32>
      %165 = arith.maximumf %163, %164 : vector<16x256xf32>
      %c3_95 = arith.constant 3 : index
      %c1_96 = arith.constant 1 : index
      %c16 = arith.constant 16 : index
      %166 = vector.load %arg8[%c3_95, %c1_96, %c16] : memref<10x18x288xf32, #tpu.memory_space<vmem>>, vector<1x16x256xf32>
      %167 = vector.shape_cast %166 : vector<1x16x256xf32> to vector<16x256xf32>
      %168 = vector.shape_cast %165 : vector<16x256xf32> to vector<1x16x256xf32>
      tpu.vector_store %arg8[%c3_95, %c1_96, %c16], %168 {strides = array<i32>} : memref<10x18x288xf32, #tpu.memory_space<vmem>>, vector<1x16x256xf32>,
    } else {
    }
    %c4_i32 = arith.constant 4 : i32
    %33 = arith.addi %0, %c4_i32 : i32
    %c1_i32_22 = arith.constant 1 : i32
    %34 = arith.subi %33, %c1_i32_22 : i32
    %c0_i32_23 = arith.constant 0 : i32
    %35 = arith.cmpi sge, %34, %c0_i32_23 : i32
    %c8_i32_24 = arith.constant 8 : i32
    %36 = arith.cmpi slt, %34, %c8_i32_24 : i32
    %37 = arith.andi %35, %36 : i1
    %38 = arith.extui %37 : i1 to i32
    %c0_i32_25 = arith.constant 0 : i32
    %39 = arith.cmpi ne, %38, %c0_i32_25 : i32
    scf.if %39 {
      %c0_i32_89 = arith.constant 0 : i32
      %c7_i32_90 = arith.constant 7 : i32
      %154 = arith.maxsi %c0_i32_89, %34 : i32
      %155 = arith.minsi %c7_i32_90, %154 : i32
      %c0_91 = arith.constant 0 : index
      %156 = arith.index_cast %155 : i32 to index
      %c0_92 = arith.constant 0 : index
      %c0_93 = arith.constant 0 : index
      %157 = vector.load %arg2[%c0_91, %156, %c0_92, %c0_93] : memref<1x8x16x256xbf16, #tpu.memory_space<vmem>>, vector<1x1x16x256xbf16>
      %158 = vector.shape_cast %157 : vector<1x1x16x256xbf16> to vector<16x256xbf16>
      %159 = arith.extf %158 : vector<16x256xbf16> to vector<16x256xf32>
      %160 = vector.broadcast %3 : vector<1x256xf32> to vector<16x256xf32>
      %161 = arith.mulf %159, %160 : vector<16x256xf32>
      %162 = vector.broadcast %4 : vector<1x256xf32> to vector<16x256xf32>
      %163 = arith.addf %161, %162 : vector<16x256xf32>
      %cst_94 = arith.constant 0.000000e+00 : f32
      %164 = vector.broadcast %cst_94 : f32 to vector<16x256xf32>
      %165 = arith.maximumf %163, %164 : vector<16x256xf32>
      %c4_95 = arith.constant 4 : index
      %c1_96 = arith.constant 1 : index
      %c16 = arith.constant 16 : index
      %166 = vector.load %arg8[%c4_95, %c1_96, %c16] : memref<10x18x288xf32, #tpu.memory_space<vmem>>, vector<1x16x256xf32>
      %167 = vector.shape_cast %166 : vector<1x16x256xf32> to vector<16x256xf32>
      %168 = vector.shape_cast %165 : vector<16x256xf32> to vector<1x16x256xf32>
      tpu.vector_store %arg8[%c4_95, %c1_96, %c16], %168 {strides = array<i32>} : memref<10x18x288xf32, #tpu.memory_space<vmem>>, vector<1x16x256xf32>,
    } else {
    }
    %c5_i32 = arith.constant 5 : i32
    %40 = arith.addi %0, %c5_i32 : i32
    %c1_i32_26 = arith.constant 1 : i32
    %41 = arith.subi %40, %c1_i32_26 : i32
    %c0_i32_27 = arith.constant 0 : i32
    %42 = arith.cmpi sge, %41, %c0_i32_27 : i32
    %c8_i32_28 = arith.constant 8 : i32
    %43 = arith.cmpi slt, %41, %c8_i32_28 : i32
    %44 = arith.andi %42, %43 : i1
    %45 = arith.extui %44 : i1 to i32
    %c0_i32_29 = arith.constant 0 : i32
    %46 = arith.cmpi ne, %45, %c0_i32_29 : i32
    scf.if %46 {
      %c0_i32_89 = arith.constant 0 : i32
      %c7_i32_90 = arith.constant 7 : i32
      %154 = arith.maxsi %c0_i32_89, %41 : i32
      %155 = arith.minsi %c7_i32_90, %154 : i32
      %c0_91 = arith.constant 0 : index
      %156 = arith.index_cast %155 : i32 to index
      %c0_92 = arith.constant 0 : index
      %c0_93 = arith.constant 0 : index
      %157 = vector.load %arg2[%c0_91, %156, %c0_92, %c0_93] : memref<1x8x16x256xbf16, #tpu.memory_space<vmem>>, vector<1x1x16x256xbf16>
      %158 = vector.shape_cast %157 : vector<1x1x16x256xbf16> to vector<16x256xbf16>
      %159 = arith.extf %158 : vector<16x256xbf16> to vector<16x256xf32>
      %160 = vector.broadcast %3 : vector<1x256xf32> to vector<16x256xf32>
      %161 = arith.mulf %159, %160 : vector<16x256xf32>
      %162 = vector.broadcast %4 : vector<1x256xf32> to vector<16x256xf32>
      %163 = arith.addf %161, %162 : vector<16x256xf32>
      %cst_94 = arith.constant 0.000000e+00 : f32
      %164 = vector.broadcast %cst_94 : f32 to vector<16x256xf32>
      %165 = arith.maximumf %163, %164 : vector<16x256xf32>
      %c5_95 = arith.constant 5 : index
      %c1_96 = arith.constant 1 : index
      %c16 = arith.constant 16 : index
      %166 = vector.load %arg8[%c5_95, %c1_96, %c16] : memref<10x18x288xf32, #tpu.memory_space<vmem>>, vector<1x16x256xf32>
      %167 = vector.shape_cast %166 : vector<1x16x256xf32> to vector<16x256xf32>
      %168 = vector.shape_cast %165 : vector<16x256xf32> to vector<1x16x256xf32>
      tpu.vector_store %arg8[%c5_95, %c1_96, %c16], %168 {strides = array<i32>} : memref<10x18x288xf32, #tpu.memory_space<vmem>>, vector<1x16x256xf32>,
    } else {
    }
    %c6_i32 = arith.constant 6 : i32
    %47 = arith.addi %0, %c6_i32 : i32
    %c1_i32_30 = arith.constant 1 : i32
    %48 = arith.subi %47, %c1_i32_30 : i32
    %c0_i32_31 = arith.constant 0 : i32
    %49 = arith.cmpi sge, %48, %c0_i32_31 : i32
    %c8_i32_32 = arith.constant 8 : i32
    %50 = arith.cmpi slt, %48, %c8_i32_32 : i32
    %51 = arith.andi %49, %50 : i1
    %52 = arith.extui %51 : i1 to i32
    %c0_i32_33 = arith.constant 0 : i32
    %53 = arith.cmpi ne, %52, %c0_i32_33 : i32
    scf.if %53 {
      %c0_i32_89 = arith.constant 0 : i32
      %c7_i32_90 = arith.constant 7 : i32
      %154 = arith.maxsi %c0_i32_89, %48 : i32
      %155 = arith.minsi %c7_i32_90, %154 : i32
      %c0_91 = arith.constant 0 : index
      %156 = arith.index_cast %155 : i32 to index
      %c0_92 = arith.constant 0 : index
      %c0_93 = arith.constant 0 : index
      %157 = vector.load %arg2[%c0_91, %156, %c0_92, %c0_93] : memref<1x8x16x256xbf16, #tpu.memory_space<vmem>>, vector<1x1x16x256xbf16>
      %158 = vector.shape_cast %157 : vector<1x1x16x256xbf16> to vector<16x256xbf16>
      %159 = arith.extf %158 : vector<16x256xbf16> to vector<16x256xf32>
      %160 = vector.broadcast %3 : vector<1x256xf32> to vector<16x256xf32>
      %161 = arith.mulf %159, %160 : vector<16x256xf32>
      %162 = vector.broadcast %4 : vector<1x256xf32> to vector<16x256xf32>
      %163 = arith.addf %161, %162 : vector<16x256xf32>
      %cst_94 = arith.constant 0.000000e+00 : f32
      %164 = vector.broadcast %cst_94 : f32 to vector<16x256xf32>
      %165 = arith.maximumf %163, %164 : vector<16x256xf32>
      %c6_95 = arith.constant 6 : index
      %c1_96 = arith.constant 1 : index
      %c16 = arith.constant 16 : index
      %166 = vector.load %arg8[%c6_95, %c1_96, %c16] : memref<10x18x288xf32, #tpu.memory_space<vmem>>, vector<1x16x256xf32>
      %167 = vector.shape_cast %166 : vector<1x16x256xf32> to vector<16x256xf32>
      %168 = vector.shape_cast %165 : vector<16x256xf32> to vector<1x16x256xf32>
      tpu.vector_store %arg8[%c6_95, %c1_96, %c16], %168 {strides = array<i32>} : memref<10x18x288xf32, #tpu.memory_space<vmem>>, vector<1x16x256xf32>,
    } else {
    }
    %c7_i32 = arith.constant 7 : i32
    %54 = arith.addi %0, %c7_i32 : i32
    %c1_i32_34 = arith.constant 1 : i32
    %55 = arith.subi %54, %c1_i32_34 : i32
    %c0_i32_35 = arith.constant 0 : i32
    %56 = arith.cmpi sge, %55, %c0_i32_35 : i32
    %c8_i32_36 = arith.constant 8 : i32
    %57 = arith.cmpi slt, %55, %c8_i32_36 : i32
    %58 = arith.andi %56, %57 : i1
    %59 = arith.extui %58 : i1 to i32
    %c0_i32_37 = arith.constant 0 : i32
    %60 = arith.cmpi ne, %59, %c0_i32_37 : i32
    scf.if %60 {
      %c0_i32_89 = arith.constant 0 : i32
      %c7_i32_90 = arith.constant 7 : i32
      %154 = arith.maxsi %c0_i32_89, %55 : i32
      %155 = arith.minsi %c7_i32_90, %154 : i32
      %c0_91 = arith.constant 0 : index
      %156 = arith.index_cast %155 : i32 to index
      %c0_92 = arith.constant 0 : index
      %c0_93 = arith.constant 0 : index
      %157 = vector.load %arg2[%c0_91, %156, %c0_92, %c0_93] : memref<1x8x16x256xbf16, #tpu.memory_space<vmem>>, vector<1x1x16x256xbf16>
      %158 = vector.shape_cast %157 : vector<1x1x16x256xbf16> to vector<16x256xbf16>
      %159 = arith.extf %158 : vector<16x256xbf16> to vector<16x256xf32>
      %160 = vector.broadcast %3 : vector<1x256xf32> to vector<16x256xf32>
      %161 = arith.mulf %159, %160 : vector<16x256xf32>
      %162 = vector.broadcast %4 : vector<1x256xf32> to vector<16x256xf32>
      %163 = arith.addf %161, %162 : vector<16x256xf32>
      %cst_94 = arith.constant 0.000000e+00 : f32
      %164 = vector.broadcast %cst_94 : f32 to vector<16x256xf32>
      %165 = arith.maximumf %163, %164 : vector<16x256xf32>
      %c7_95 = arith.constant 7 : index
      %c1_96 = arith.constant 1 : index
      %c16 = arith.constant 16 : index
      %166 = vector.load %arg8[%c7_95, %c1_96, %c16] : memref<10x18x288xf32, #tpu.memory_space<vmem>>, vector<1x16x256xf32>
      %167 = vector.shape_cast %166 : vector<1x16x256xf32> to vector<16x256xf32>
      %168 = vector.shape_cast %165 : vector<16x256xf32> to vector<1x16x256xf32>
      tpu.vector_store %arg8[%c7_95, %c1_96, %c16], %168 {strides = array<i32>} : memref<10x18x288xf32, #tpu.memory_space<vmem>>, vector<1x16x256xf32>,
    } else {
    }
    %c8_i32_38 = arith.constant 8 : i32
    %61 = arith.addi %0, %c8_i32_38 : i32
    %c1_i32_39 = arith.constant 1 : i32
    %62 = arith.subi %61, %c1_i32_39 : i32
    %c0_i32_40 = arith.constant 0 : i32
    %63 = arith.cmpi sge, %62, %c0_i32_40 : i32
    %c8_i32_41 = arith.constant 8 : i32
    %64 = arith.cmpi slt, %62, %c8_i32_41 : i32
    %65 = arith.andi %63, %64 : i1
    %66 = arith.extui %65 : i1 to i32
    %c0_i32_42 = arith.constant 0 : i32
    %67 = arith.cmpi ne, %66, %c0_i32_42 : i32
    scf.if %67 {
      %c0_i32_89 = arith.constant 0 : i32
      %c7_i32_90 = arith.constant 7 : i32
      %154 = arith.maxsi %c0_i32_89, %62 : i32
      %155 = arith.minsi %c7_i32_90, %154 : i32
      %c0_91 = arith.constant 0 : index
      %156 = arith.index_cast %155 : i32 to index
      %c0_92 = arith.constant 0 : index
      %c0_93 = arith.constant 0 : index
      %157 = vector.load %arg2[%c0_91, %156, %c0_92, %c0_93] : memref<1x8x16x256xbf16, #tpu.memory_space<vmem>>, vector<1x1x16x256xbf16>
      %158 = vector.shape_cast %157 : vector<1x1x16x256xbf16> to vector<16x256xbf16>
      %159 = arith.extf %158 : vector<16x256xbf16> to vector<16x256xf32>
      %160 = vector.broadcast %3 : vector<1x256xf32> to vector<16x256xf32>
      %161 = arith.mulf %159, %160 : vector<16x256xf32>
      %162 = vector.broadcast %4 : vector<1x256xf32> to vector<16x256xf32>
      %163 = arith.addf %161, %162 : vector<16x256xf32>
      %cst_94 = arith.constant 0.000000e+00 : f32
      %164 = vector.broadcast %cst_94 : f32 to vector<16x256xf32>
      %165 = arith.maximumf %163, %164 : vector<16x256xf32>
      %c8_95 = arith.constant 8 : index
      %c1_96 = arith.constant 1 : index
      %c16 = arith.constant 16 : index
      %166 = vector.load %arg8[%c8_95, %c1_96, %c16] : memref<10x18x288xf32, #tpu.memory_space<vmem>>, vector<1x16x256xf32>
      %167 = vector.shape_cast %166 : vector<1x16x256xf32> to vector<16x256xf32>
      %168 = vector.shape_cast %165 : vector<16x256xf32> to vector<1x16x256xf32>
      tpu.vector_store %arg8[%c8_95, %c1_96, %c16], %168 {strides = array<i32>} : memref<10x18x288xf32, #tpu.memory_space<vmem>>, vector<1x16x256xf32>,
    } else {
    }
    %c9_i32 = arith.constant 9 : i32
    %68 = arith.addi %0, %c9_i32 : i32
    %c1_i32_43 = arith.constant 1 : i32
    %69 = arith.subi %68, %c1_i32_43 : i32
    %c0_i32_44 = arith.constant 0 : i32
    %70 = arith.cmpi sge, %69, %c0_i32_44 : i32
    %c8_i32_45 = arith.constant 8 : i32
    %71 = arith.cmpi slt, %69, %c8_i32_45 : i32
    %72 = arith.andi %70, %71 : i1
    %73 = arith.extui %72 : i1 to i32
    %c0_i32_46 = arith.constant 0 : i32
    %74 = arith.cmpi ne, %73, %c0_i32_46 : i32
    scf.if %74 {
      %c0_i32_89 = arith.constant 0 : i32
      %c7_i32_90 = arith.constant 7 : i32
      %154 = arith.maxsi %c0_i32_89, %69 : i32
      %155 = arith.minsi %c7_i32_90, %154 : i32
      %c0_91 = arith.constant 0 : index
      %156 = arith.index_cast %155 : i32 to index
      %c0_92 = arith.constant 0 : index
      %c0_93 = arith.constant 0 : index
      %157 = vector.load %arg2[%c0_91, %156, %c0_92, %c0_93] : memref<1x8x16x256xbf16, #tpu.memory_space<vmem>>, vector<1x1x16x256xbf16>
      %158 = vector.shape_cast %157 : vector<1x1x16x256xbf16> to vector<16x256xbf16>
      %159 = arith.extf %158 : vector<16x256xbf16> to vector<16x256xf32>
      %160 = vector.broadcast %3 : vector<1x256xf32> to vector<16x256xf32>
      %161 = arith.mulf %159, %160 : vector<16x256xf32>
      %162 = vector.broadcast %4 : vector<1x256xf32> to vector<16x256xf32>
      %163 = arith.addf %161, %162 : vector<16x256xf32>
      %cst_94 = arith.constant 0.000000e+00 : f32
      %164 = vector.broadcast %cst_94 : f32 to vector<16x256xf32>
      %165 = arith.maximumf %163, %164 : vector<16x256xf32>
      %c9 = arith.constant 9 : index
      %c1_95 = arith.constant 1 : index
      %c16 = arith.constant 16 : index
      %166 = vector.load %arg8[%c9, %c1_95, %c16] : memref<10x18x288xf32, #tpu.memory_space<vmem>>, vector<1x16x256xf32>
      %167 = vector.shape_cast %166 : vector<1x16x256xf32> to vector<16x256xf32>
      %168 = vector.shape_cast %165 : vector<16x256xf32> to vector<1x16x256xf32>
      tpu.vector_store %arg8[%c9, %c1_95, %c16], %168 {strides = array<i32>} : memref<10x18x288xf32, #tpu.memory_space<vmem>>, vector<1x16x256xf32>,
    } else {
    }
    %c0_47 = arith.constant 0 : index
    %c0_48 = arith.constant 0 : index
    %c0_49 = arith.constant 0 : index
    %75 = vector.load %arg8[%c0_47, %c0_48, %c0_49] : memref<10x18x288xf32, #tpu.memory_space<vmem>>, vector<10x18x288xf32>
    %cst_50 = arith.constant 0.000000e+00 : f32
    %76 = vector.broadcast %cst_50 : f32 to vector<128x512xf32>
    %77 = vector.extract_strided_slice %75 {offsets = [0, 0, 0], sizes = [8, 16, 288], strides = [1, 1, 1]} : vector<10x18x288xf32> to vector<8x16x288xf32>
    %78 = vector.shape_cast %77 : vector<8x16x288xf32> to vector<128x288xf32>
    %79 = arith.truncf %78 : vector<128x288xf32> to vector<128x288xbf16>
    %c0_51 = arith.constant 0 : index
    %c0_52 = arith.constant 0 : index
    %c0_53 = arith.constant 0 : index
    %80 = vector.load %arg3[%c0_51, %c0_52, %c0_53] : memref<9x288x512xbf16, #tpu.memory_space<vmem>>, vector<1x288x512xbf16>
    %81 = vector.shape_cast %80 : vector<1x288x512xbf16> to vector<288x512xbf16>
    %cst_54 = arith.constant dense<0.000000e+00> : vector<128x512xf32>
    %82 = tpu.matmul %79, %81, %cst_54 {dimension_numbers = #tpu.dot_dimension_numbers<[1], [0], [0], [1], [0, 0, 1, 1], [], []>} : vector<128x288xbf16>, vector<288x512xbf16>, vector<128x512xf32> -> vector<128x512xf32>
    %83 = arith.addf %76, %82 : vector<128x512xf32>
    %84 = vector.extract_strided_slice %75 {offsets = [0, 1, 0], sizes = [8, 16, 288], strides = [1, 1, 1]} : vector<10x18x288xf32> to vector<8x16x288xf32>
    %85 = vector.shape_cast %84 : vector<8x16x288xf32> to vector<128x288xf32>
    %86 = arith.truncf %85 : vector<128x288xf32> to vector<128x288xbf16>
    %c1 = arith.constant 1 : index
    %c0_55 = arith.constant 0 : index
    %c0_56 = arith.constant 0 : index
    %87 = vector.load %arg3[%c1, %c0_55, %c0_56] : memref<9x288x512xbf16, #tpu.memory_space<vmem>>, vector<1x288x512xbf16>
    %88 = vector.shape_cast %87 : vector<1x288x512xbf16> to vector<288x512xbf16>
    %cst_57 = arith.constant dense<0.000000e+00> : vector<128x512xf32>
    %89 = tpu.matmul %86, %88, %cst_57 {dimension_numbers = #tpu.dot_dimension_numbers<[1], [0], [0], [1], [0, 0, 1, 1], [], []>} : vector<128x288xbf16>, vector<288x512xbf16>, vector<128x512xf32> -> vector<128x512xf32>
    %90 = arith.addf %83, %89 : vector<128x512xf32>
    %91 = vector.extract_strided_slice %75 {offsets = [0, 2, 0], sizes = [8, 16, 288], strides = [1, 1, 1]} : vector<10x18x288xf32> to vector<8x16x288xf32>
    %92 = vector.shape_cast %91 : vector<8x16x288xf32> to vector<128x288xf32>
    %93 = arith.truncf %92 : vector<128x288xf32> to vector<128x288xbf16>
    %c2 = arith.constant 2 : index
    %c0_58 = arith.constant 0 : index
    %c0_59 = arith.constant 0 : index
    %94 = vector.load %arg3[%c2, %c0_58, %c0_59] : memref<9x288x512xbf16, #tpu.memory_space<vmem>>, vector<1x288x512xbf16>
    %95 = vector.shape_cast %94 : vector<1x288x512xbf16> to vector<288x512xbf16>
    %cst_60 = arith.constant dense<0.000000e+00> : vector<128x512xf32>
    %96 = tpu.matmul %93, %95, %cst_60 {dimension_numbers = #tpu.dot_dimension_numbers<[1], [0], [0], [1], [0, 0, 1, 1], [], []>} : vector<128x288xbf16>, vector<288x512xbf16>, vector<128x512xf32> -> vector<128x512xf32>
    %97 = arith.addf %90, %96 : vector<128x512xf32>
    %98 = vector.extract_strided_slice %75 {offsets = [1, 0, 0], sizes = [8, 16, 288], strides = [1, 1, 1]} : vector<10x18x288xf32> to vector<8x16x288xf32>
    %99 = vector.shape_cast %98 : vector<8x16x288xf32> to vector<128x288xf32>
    %100 = arith.truncf %99 : vector<128x288xf32> to vector<128x288xbf16>
    %c3 = arith.constant 3 : index
    %c0_61 = arith.constant 0 : index
    %c0_62 = arith.constant 0 : index
    %101 = vector.load %arg3[%c3, %c0_61, %c0_62] : memref<9x288x512xbf16, #tpu.memory_space<vmem>>, vector<1x288x512xbf16>
    %102 = vector.shape_cast %101 : vector<1x288x512xbf16> to vector<288x512xbf16>
    %cst_63 = arith.constant dense<0.000000e+00> : vector<128x512xf32>
    %103 = tpu.matmul %100, %102, %cst_63 {dimension_numbers = #tpu.dot_dimension_numbers<[1], [0], [0], [1], [0, 0, 1, 1], [], []>} : vector<128x288xbf16>, vector<288x512xbf16>, vector<128x512xf32> -> vector<128x512xf32>
    %104 = arith.addf %97, %103 : vector<128x512xf32>
    %105 = vector.extract_strided_slice %75 {offsets = [1, 1, 0], sizes = [8, 16, 288], strides = [1, 1, 1]} : vector<10x18x288xf32> to vector<8x16x288xf32>
    %106 = vector.shape_cast %105 : vector<8x16x288xf32> to vector<128x288xf32>
    %107 = arith.truncf %106 : vector<128x288xf32> to vector<128x288xbf16>
    %c4 = arith.constant 4 : index
    %c0_64 = arith.constant 0 : index
    %c0_65 = arith.constant 0 : index
    %108 = vector.load %arg3[%c4, %c0_64, %c0_65] : memref<9x288x512xbf16, #tpu.memory_space<vmem>>, vector<1x288x512xbf16>
    %109 = vector.shape_cast %108 : vector<1x288x512xbf16> to vector<288x512xbf16>
    %cst_66 = arith.constant dense<0.000000e+00> : vector<128x512xf32>
    %110 = tpu.matmul %107, %109, %cst_66 {dimension_numbers = #tpu.dot_dimension_numbers<[1], [0], [0], [1], [0, 0, 1, 1], [], []>} : vector<128x288xbf16>, vector<288x512xbf16>, vector<128x512xf32> -> vector<128x512xf32>
    %111 = arith.addf %104, %110 : vector<128x512xf32>
    %112 = vector.extract_strided_slice %75 {offsets = [1, 2, 0], sizes = [8, 16, 288], strides = [1, 1, 1]} : vector<10x18x288xf32> to vector<8x16x288xf32>
    %113 = vector.shape_cast %112 : vector<8x16x288xf32> to vector<128x288xf32>
    %114 = arith.truncf %113 : vector<128x288xf32> to vector<128x288xbf16>
    %c5 = arith.constant 5 : index
    %c0_67 = arith.constant 0 : index
    %c0_68 = arith.constant 0 : index
    %115 = vector.load %arg3[%c5, %c0_67, %c0_68] : memref<9x288x512xbf16, #tpu.memory_space<vmem>>, vector<1x288x512xbf16>
    %116 = vector.shape_cast %115 : vector<1x288x512xbf16> to vector<288x512xbf16>
    %cst_69 = arith.constant dense<0.000000e+00> : vector<128x512xf32>
    %117 = tpu.matmul %114, %116, %cst_69 {dimension_numbers = #tpu.dot_dimension_numbers<[1], [0], [0], [1], [0, 0, 1, 1], [], []>} : vector<128x288xbf16>, vector<288x512xbf16>, vector<128x512xf32> -> vector<128x512xf32>
    %118 = arith.addf %111, %117 : vector<128x512xf32>
    %119 = vector.extract_strided_slice %75 {offsets = [2, 0, 0], sizes = [8, 16, 288], strides = [1, 1, 1]} : vector<10x18x288xf32> to vector<8x16x288xf32>
    %120 = vector.shape_cast %119 : vector<8x16x288xf32> to vector<128x288xf32>
    %121 = arith.truncf %120 : vector<128x288xf32> to vector<128x288xbf16>
    %c6 = arith.constant 6 : index
    %c0_70 = arith.constant 0 : index
    %c0_71 = arith.constant 0 : index
    %122 = vector.load %arg3[%c6, %c0_70, %c0_71] : memref<9x288x512xbf16, #tpu.memory_space<vmem>>, vector<1x288x512xbf16>
    %123 = vector.shape_cast %122 : vector<1x288x512xbf16> to vector<288x512xbf16>
    %cst_72 = arith.constant dense<0.000000e+00> : vector<128x512xf32>
    %124 = tpu.matmul %121, %123, %cst_72 {dimension_numbers = #tpu.dot_dimension_numbers<[1], [0], [0], [1], [0, 0, 1, 1], [], []>} : vector<128x288xbf16>, vector<288x512xbf16>, vector<128x512xf32> -> vector<128x512xf32>
    %125 = arith.addf %118, %124 : vector<128x512xf32>
    %126 = vector.extract_strided_slice %75 {offsets = [2, 1, 0], sizes = [8, 16, 288], strides = [1, 1, 1]} : vector<10x18x288xf32> to vector<8x16x288xf32>
    %127 = vector.shape_cast %126 : vector<8x16x288xf32> to vector<128x288xf32>
    %128 = arith.truncf %127 : vector<128x288xf32> to vector<128x288xbf16>
    %c7 = arith.constant 7 : index
    %c0_73 = arith.constant 0 : index
    %c0_74 = arith.constant 0 : index
    %129 = vector.load %arg3[%c7, %c0_73, %c0_74] : memref<9x288x512xbf16, #tpu.memory_space<vmem>>, vector<1x288x512xbf16>
    %130 = vector.shape_cast %129 : vector<1x288x512xbf16> to vector<288x512xbf16>
    %cst_75 = arith.constant dense<0.000000e+00> : vector<128x512xf32>
    %131 = tpu.matmul %128, %130, %cst_75 {dimension_numbers = #tpu.dot_dimension_numbers<[1], [0], [0], [1], [0, 0, 1, 1], [], []>} : vector<128x288xbf16>, vector<288x512xbf16>, vector<128x512xf32> -> vector<128x512xf32>
    %132 = arith.addf %125, %131 : vector<128x512xf32>
    %133 = vector.extract_strided_slice %75 {offsets = [2, 2, 0], sizes = [8, 16, 288], strides = [1, 1, 1]} : vector<10x18x288xf32> to vector<8x16x288xf32>
    %134 = vector.shape_cast %133 : vector<8x16x288xf32> to vector<128x288xf32>
    %135 = arith.truncf %134 : vector<128x288xf32> to vector<128x288xbf16>
    %c8 = arith.constant 8 : index
    %c0_76 = arith.constant 0 : index
    %c0_77 = arith.constant 0 : index
    %136 = vector.load %arg3[%c8, %c0_76, %c0_77] : memref<9x288x512xbf16, #tpu.memory_space<vmem>>, vector<1x288x512xbf16>
    %137 = vector.shape_cast %136 : vector<1x288x512xbf16> to vector<288x512xbf16>
    %cst_78 = arith.constant dense<0.000000e+00> : vector<128x512xf32>
    %138 = tpu.matmul %135, %137, %cst_78 {dimension_numbers = #tpu.dot_dimension_numbers<[1], [0], [0], [1], [0, 0, 1, 1], [], []>} : vector<128x288xbf16>, vector<288x512xbf16>, vector<128x512xf32> -> vector<128x512xf32>
    %139 = arith.addf %132, %138 : vector<128x512xf32>
    %cst_79 = arith.constant dense<0.000000e+00> : vector<512xf32>
    %140 = vector.multi_reduction <add>, %139, %cst_79 [0] : vector<128x512xf32> to vector<512xf32>
    %141 = vector.shape_cast %140 : vector<512xf32> to vector<1x512xf32>
    %142 = arith.mulf %139, %139 : vector<128x512xf32>
    %cst_80 = arith.constant dense<0.000000e+00> : vector<512xf32>
    %143 = vector.multi_reduction <add>, %142, %cst_80 [0] : vector<128x512xf32> to vector<512xf32>
    %144 = vector.shape_cast %143 : vector<512xf32> to vector<1x512xf32>
    %145 = tpu.concatenate %141, %144 in 0 : vector<1x512xf32>, vector<1x512xf32> -> vector<2x512xf32>
    %c0_81 = arith.constant 0 : index
    %c0_82 = arith.constant 0 : index
    %c0_83 = arith.constant 0 : index
    %c0_84 = arith.constant 0 : index
    %146 = vector.load %arg7[%c0_81, %c0_82, %c0_83, %c0_84] : memref<1x1x2x512xf32, #tpu.memory_space<vmem>>, vector<1x1x2x512xf32>
    %147 = vector.shape_cast %146 : vector<1x1x2x512xf32> to vector<2x512xf32>
    %148 = vector.shape_cast %145 : vector<2x512xf32> to vector<1x1x2x512xf32>
    tpu.vector_store %arg7[%c0_81, %c0_82, %c0_83, %c0_84], %148 {strides = array<i32>} : memref<1x1x2x512xf32, #tpu.memory_space<vmem>>, vector<1x1x2x512xf32>,
    %149 = vector.shape_cast %139 : vector<128x512xf32> to vector<8x16x512xf32>
    %150 = arith.truncf %149 : vector<8x16x512xf32> to vector<8x16x512xbf16>
    %c0_85 = arith.constant 0 : index
    %c0_86 = arith.constant 0 : index
    %c0_87 = arith.constant 0 : index
    %c0_88 = arith.constant 0 : index
    %151 = vector.load %arg6[%c0_85, %c0_86, %c0_87, %c0_88] : memref<1x8x16x512xbf16, #tpu.memory_space<vmem>>, vector<1x8x16x512xbf16>
    %152 = vector.shape_cast %151 : vector<1x8x16x512xbf16> to vector<8x16x512xbf16>
    %153 = vector.shape_cast %150 : vector<8x16x512xbf16> to vector<1x8x16x512xbf16>
    tpu.vector_store %arg6[%c0_85, %c0_86, %c0_87, %c0_88], %153 {strides = array<i32>} : memref<1x8x16x512xbf16, #tpu.memory_space<vmem>>, vector<1x8x16x512xbf16>,
    return
  }
  func.func @transform_0(%arg0: i32, %arg1: i32) -> (i32, i32, i32, i32) {
    %c0_i32 = arith.constant 0 : i32
    %c0_i32_0 = arith.constant 0 : i32
    %c0_i32_1 = arith.constant 0 : i32
    %c0_i32_2 = arith.constant 0 : i32
    return %arg0, %c0_i32, %c0_i32_0, %c0_i32_1 : i32, i32, i32, i32
  }
  func.func @transform_1(%arg0: i32, %arg1: i32) -> (i32, i32, i32) {
    %c0_i32 = arith.constant 0 : i32
    %c0_i32_0 = arith.constant 0 : i32
    %c0_i32_1 = arith.constant 0 : i32
    %c0_i32_2 = arith.constant 0 : i32
    return %c0_i32, %c0_i32_0, %c0_i32_1 : i32, i32, i32
  }
  func.func @transform_2(%arg0: i32, %arg1: i32) -> (i32, i32) {
    %c0_i32 = arith.constant 0 : i32
    %c0_i32_0 = arith.constant 0 : i32
    %c0_i32_1 = arith.constant 0 : i32
    return %c0_i32, %c0_i32_0 : i32, i32
  }
  func.func @transform_3(%arg0: i32, %arg1: i32) -> (i32, i32) {
    %c0_i32 = arith.constant 0 : i32
    %c0_i32_0 = arith.constant 0 : i32
    %c0_i32_1 = arith.constant 0 : i32
    return %c0_i32, %c0_i32_0 : i32, i32
  }
  func.func @transform_4(%arg0: i32, %arg1: i32) -> (i32, i32, i32, i32) {
    %c0_i32 = arith.constant 0 : i32
    %c0_i32_0 = arith.constant 0 : i32
    %c0_i32_1 = arith.constant 0 : i32
    return %arg0, %arg1, %c0_i32, %c0_i32_0 : i32, i32, i32, i32
  }
  func.func @transform_5(%arg0: i32, %arg1: i32) -> (i32, i32, i32, i32) {
    %c0_i32 = arith.constant 0 : i32
    %c0_i32_0 = arith.constant 0 : i32
    %c0_i32_1 = arith.constant 0 : i32
    return %arg0, %arg1, %c0_i32, %c0_i32_0 : i32, i32, i32, i32
  }
}

module attributes {stable_mosaic.version = 11 : i64} {
  func.func @bn_relu_pool_kernel(%arg0: i32, %arg1: i32, %arg2: memref<1x8x16x512xbf16, #tpu.memory_space<vmem>>, %arg3: memref<1x512xf32, #tpu.memory_space<vmem>>, %arg4: memref<1x512xf32, #tpu.memory_space<vmem>>, %arg5: memref<1x1x1x512xf32, #tpu.memory_space<vmem>>) attributes {dimension_semantics = [#tpu.dimension_semantics<parallel>, #tpu.dimension_semantics<parallel>], iteration_bounds = array<i64: 2, 1>, scalar_prefetch = 0 : i64, scratch_operands = 0 : i64, tpu.core_type = #tpu.core_type<tc>, window_params = [{transform_indices = @transform_0, window_bounds = array<i64: 1, 8, 16, 512>}, {pipeline_mode = #tpu.pipeline_mode<synchronous>, transform_indices = @transform_1, window_bounds = array<i64: 1, 512>}, {pipeline_mode = #tpu.pipeline_mode<synchronous>, transform_indices = @transform_2, window_bounds = array<i64: 1, 512>}, {transform_indices = @transform_3, window_bounds = array<i64: 1, 1, 1, 512>}]} {
    %c0 = arith.constant 0 : index
    %c0_0 = arith.constant 0 : index
    %c0_1 = arith.constant 0 : index
    %c0_2 = arith.constant 0 : index
    %0 = vector.load %arg2[%c0, %c0_0, %c0_1, %c0_2] : memref<1x8x16x512xbf16, #tpu.memory_space<vmem>>, vector<1x8x16x512xbf16>
    %1 = vector.shape_cast %0 : vector<1x8x16x512xbf16> to vector<8x16x512xbf16>
    %2 = arith.extf %1 : vector<8x16x512xbf16> to vector<8x16x512xf32>
    %c0_3 = arith.constant 0 : index
    %c0_4 = arith.constant 0 : index
    %3 = vector.load %arg3[%c0_3, %c0_4] : memref<1x512xf32, #tpu.memory_space<vmem>>, vector<1x512xf32>
    %4 = vector.shape_cast %3 : vector<1x512xf32> to vector<1x1x512xf32>
    %5 = vector.broadcast %4 : vector<1x1x512xf32> to vector<8x16x512xf32>
    %6 = arith.mulf %2, %5 : vector<8x16x512xf32>
    %c0_5 = arith.constant 0 : index
    %c0_6 = arith.constant 0 : index
    %7 = vector.load %arg4[%c0_5, %c0_6] : memref<1x512xf32, #tpu.memory_space<vmem>>, vector<1x512xf32>
    %8 = vector.shape_cast %7 : vector<1x512xf32> to vector<1x1x512xf32>
    %9 = vector.broadcast %8 : vector<1x1x512xf32> to vector<8x16x512xf32>
    %10 = arith.addf %6, %9 : vector<8x16x512xf32>
    %cst = arith.constant 0.000000e+00 : f32
    %11 = vector.broadcast %cst : f32 to vector<8x16x512xf32>
    %12 = arith.maximumf %10, %11 : vector<8x16x512xf32>
    %13 = vector.shape_cast %12 : vector<8x16x512xf32> to vector<128x512xf32>
    %cst_7 = arith.constant dense<0.000000e+00> : vector<512xf32>
    %14 = vector.multi_reduction <add>, %13, %cst_7 [0] : vector<128x512xf32> to vector<512xf32>
    %15 = vector.shape_cast %14 : vector<512xf32> to vector<1x512xf32>
    %c0_8 = arith.constant 0 : index
    %c0_9 = arith.constant 0 : index
    %c0_10 = arith.constant 0 : index
    %c0_11 = arith.constant 0 : index
    %16 = vector.load %arg5[%c0_8, %c0_9, %c0_10, %c0_11] : memref<1x1x1x512xf32, #tpu.memory_space<vmem>>, vector<1x1x1x512xf32>
    %17 = vector.shape_cast %16 : vector<1x1x1x512xf32> to vector<1x512xf32>
    %18 = vector.shape_cast %15 : vector<1x512xf32> to vector<1x1x1x512xf32>
    tpu.vector_store %arg5[%c0_8, %c0_9, %c0_10, %c0_11], %18 {strides = array<i32>} : memref<1x1x1x512xf32, #tpu.memory_space<vmem>>, vector<1x1x1x512xf32>,
    return
  }
  func.func @transform_0(%arg0: i32, %arg1: i32) -> (i32, i32, i32, i32) {
    %c0_i32 = arith.constant 0 : i32
    %c0_i32_0 = arith.constant 0 : i32
    %c0_i32_1 = arith.constant 0 : i32
    return %arg0, %arg1, %c0_i32, %c0_i32_0 : i32, i32, i32, i32
  }
  func.func @transform_1(%arg0: i32, %arg1: i32) -> (i32, i32) {
    %c0_i32 = arith.constant 0 : i32
    %c0_i32_0 = arith.constant 0 : i32
    %c0_i32_1 = arith.constant 0 : i32
    return %c0_i32, %c0_i32_0 : i32, i32
  }
  func.func @transform_2(%arg0: i32, %arg1: i32) -> (i32, i32) {
    %c0_i32 = arith.constant 0 : i32
    %c0_i32_0 = arith.constant 0 : i32
    %c0_i32_1 = arith.constant 0 : i32
    return %c0_i32, %c0_i32_0 : i32, i32
  }
  func.func @transform_3(%arg0: i32, %arg1: i32) -> (i32, i32, i32, i32) {
    %c0_i32 = arith.constant 0 : i32
    %c0_i32_0 = arith.constant 0 : i32
    %c0_i32_1 = arith.constant 0 : i32
    return %arg0, %arg1, %c0_i32, %c0_i32_0 : i32, i32, i32, i32
  }
}

</mosaic_0001>

<bundles_post_ra>
// kernel: video_classifier_forward.3
= control target key start
LH: loop header
LB: loop body
LE: loop exit
PB: predicated region body
PF: predicated region fallthrough
CT: control target
= control target key end

     0   :  { %s3767_s12 = smov 0   ;;  %s3769_s13 = smov 0   ;;  %s4689_s0 = inlined_call_operand.vmem [shape: bf16[2,10,18,72], index: 0, kind: input, shape index: {}]   ;;  %s4690_s1 = inlined_call_operand.vmem [shape: bf16[9,72,256], index: 1, kind: input, shape index: {}]   ;;  %s4691_s2 = inlined_call_operand.vmem [shape: bf16[2,8,16,256], index: 2, kind: output, shape index: {0}]   ;;  %s4692_s3 = inlined_call_operand.vmem [shape: f32[2,1,2,256], index: 3, kind: output, shape index: {1}]  }
   0x1   :  { %s3771_s14 = smov 0  }
   0x2 LB: > { %s26_s15 = sadd.s32 1, %s3740_s13  ;;  %p2960_p0 = scmp.ge.s32.totalorder %s3744_s14, 1  ;;  %s3744_s14 = sphi %s3771_s14, %s14_s14   ;;  %s3740_s13 = sphi %s3769_s13, %s4698_s13   ;;  %s3736_s12 = sphi %s3767_s12, %s4697_s12  }
   0x3   : > { %p28_p1 = scmp.ge.s32.totalorder %s26_s15, 2  ;;  %p156_p2 = scmp.lt.s32.totalorder %s3744_s14, 3 }
   0x5   : > { %s4700_s15 = smov (%p28_p1, %s26_s15), 0  ;;  %p157_p3 = pnand %p2960_p0, %p156_p2 }
   0x6   : > { %v3578_v0 = vld [vmem:[%s4690_s1 + $0x4c] ss:$8 sps:$4 sm:$0xff] (!%p157_p3)   ;;  %v3746_v2 = vmov (!%p157_p3), 0   ;;  %p194_p4 = scmp.lt.s32.totalorder (!%p157_p3), %s3736_s12, 1  ;;  %v3582_v3 = vld [vmem:[%s4690_s1 + $0x48] ss:$8 sps:$4 sm:$0xff] (!%p157_p3)  }
   0x7   : > { %160 = sbr.rel (%p157_p3) target bundleno = 550 (0x226), region = 28  ;;  %v3580_v1 = vld [vmem:[%s4690_s1 + $0x124] ss:$8 sps:$4 sm:$0xff] (!%p157_p3)   ;;  %601 = vmatprep.mubr.bf16.mxu1 (!%p157_p3), %v3746_v2  ;;  %1568 = vmatprep.mubr.bf16.mxu0 (!%p157_p3), %v3746_v2  ;;  %v3583_v4 = vld [vmem:[%s4690_s1 + $0x120] ss:$8 sps:$4 sm:$0xff] (!%p157_p3)   ;;  %vm562_vm1 = vcmask (!%p157_p3), 1043456  }
   0x8   : > { %569 = vmatprep.subr.bf16.mxu1 (!%p157_p3), %v3578_v0  ;;  %1536 = vmatprep.subr.bf16.mxu0 (!%p157_p3), %v3580_v1  ;;  %v3584_v5 = vld [vmem:[%s4690_s1 + $0x5c] ss:$8 sps:$4 sm:$0xff] (!%p157_p3)   ;;  %v3588_v7 = vld [vmem:[%s4690_s1 + $0x58] ss:$8 sps:$4 sm:$0xff] (!%p157_p3)   ;;  %v3590_v9 = vld [vmem:[%s4690_s1 + $0x6c] ss:$8 sps:$4 sm:$0xff] (!%p157_p3)  }
   0x9   : > { %570 = vmatpush1.bf16.msra.mxu1 (!%p157_p3), %v3582_v3  ;;  %1537 = vmatpush1.bf16.msra.mxu0 (!%p157_p3), %v3583_v4  ;;  %v3586_v6 = vld [vmem:[%s4690_s1 + $0x134] ss:$8 sps:$4 sm:$0xff] (!%p157_p3)   ;;  %v3589_v8 = vld [vmem:[%s4690_s1 + $0x130] ss:$8 sps:$4 sm:$0xff] (!%p157_p3)   ;;  %v3592_v10 = vld [vmem:[%s4690_s1 + $0x144] ss:$8 sps:$4 sm:$0xff] (!%p157_p3)  }
   0xa   : > { %571 = vmatprep.subr.bf16.mxu1 (!%p157_p3), %v3584_v5  ;;  %1538 = vmatprep.subr.bf16.mxu0 (!%p157_p3), %v3586_v6  ;;  %v3594_v11 = vld [vmem:[%s4690_s1 + $0x68] ss:$8 sps:$4 sm:$0xff] (!%p157_p3)   ;;  %v3596_v13 = vld [vmem:[%s4690_s1 + $0x7c] ss:$8 sps:$4 sm:$0xff] (!%p157_p3)   ;;  %vm263_vm0 = vsmask.f32 (!%p157_p3), 3328 }
   0xb   : > { %v3595_v12 = vld [vmem:[%s4690_s1 + $0x140] ss:$8 sps:$4 sm:$0xff] (!%p157_p3)   ;;  %v3598_v14 = vld [vmem:[%s4690_s1 + $0x154] ss:$8 sps:$4 sm:$0xff] (!%p157_p3)   ;;  %v3601_v16 = vld [vmem:[%s4690_s1 + $0x150] ss:$8 sps:$4 sm:$0xff] (!%p157_p3)  }
   0xc   : > { %v3600_v15 = vld [vmem:[%s4690_s1 + $0x78] ss:$8 sps:$4 sm:$0xff] (!%p157_p3)   ;;  %v2974_v17 = vld [vmem:[%s4690_s1 + $0x88] sm:$0xff] (!%p157_p3)  ;;  %vm264_vm2 = vsmask.f32 (!%p157_p3), 7440  ;;  %vm537_vm4 = vcmask (!%p157_p3), 588800  }
   0xd   : > { %572 = vmatpush1.bf16.msra.mxu1 (!%p157_p3), %v3588_v7  ;;  %1539 = vmatpush1.bf16.msra.mxu0 (!%p157_p3), %v3589_v8  ;;  %v3110_v18 = vld [vmem:[%s4690_s1 + $0x160] sm:$0xff] (!%p157_p3)  ;;  %v2991_v19 = vcombine.low (!%p157_p3), %v2974_v17, %v2974_v17  ;;  %v2992_v22 = vcombine.high (!%p157_p3), %v2974_v17, %v2974_v17  ;;  %vm3885_vm3 = vmor (!%p157_p3), %vm263_vm0, %vm264_vm2  ;;  %v3611_v52 = vld [vmem:[%s4690_s1 + $0x16c] ss:$8 sps:$4 sm:$0xff] (!%p157_p3)   ;;  %vm918_vm5 = vcmask (!%p157_p3), 1042432   ;;  %vm919_vm6 = vcmask (!%p157_p3), 1046532  }
   0xe   : > { %s4702_s12 = smov (!%p194_p4, %s3736_s12), 1  ;;  %573 = vmatprep.subr.bf16.mxu1 %v3590_v9  ;;  %1540 = vmatprep.subr.bf16.mxu0 %v3592_v10  ;;  %v3120_v23 = vcombine.low %v3110_v18, %v3110_v18  ;;  %v3860_v27 = vcombine.high %v3110_v18, %v3110_v18  ;;  %v3608_v45 = vld [vmem:[%s4690_s1 + $0x4] ss:$8 sps:$4 sm:$0xff]   ;;  %v3606_v58 = vld [vmem:[%s4690_s1] ss:$8 sps:$4 sm:$0xff]   ;;  %vm4082_vm7 = vmor %vm918_vm5, %vm919_vm6  ;;  %vm2687_vm8 = vcmask 1040384  }
   0xf   : > { %s3552_s5 = smul.u32 120, %s4702_s12  ;;  %v564_v31 = vsel %vm562_vm1, %v2991_v19, 0  ;;  %v3614_v19 = vld [vmem:[%s4690_s1 + $0x17c] ss:$8 sps:$4 sm:$0xff]   ;;  %s3269_s24 = sshll.u32 %s4702_s12, 2 }
  0x10   : > { %v3867_v34 = vsel %vm562_vm1, %v3120_v23, 0  ;;  %s218_s27 = scalar_lea.vmem %s4692_s3, %s3269_s24 }
  0x11   : > { %s3832_s22 = scalar_lea.vmem %s4689_s0, %s3552_s5  ;;  %574 = vmatpush1.bf16.msra.mxu1 %v3594_v11  ;;  %1541 = vmatpush1.bf16.msra.mxu0 %v3595_v12 }
  0x12   : > { %v3850_v20 = vld [vmem:[%s3832_s22] sm:$0xf]  ;;  %v3853_v21 = vld [vmem:[%s3832_s22 + $0x4] sm:$0xf]  ;;  %v3856_v24 = vld [vmem:[%s3832_s22 + $0x8] sm:$0x1]  ;;  %575 = vmatprep.subr.bf16.mxu1 %v3596_v13  ;;  %1542 = vmatprep.subr.bf16.mxu0 %v3598_v14 }
  0x13   : > { %v267_v25 = vshrl.u32 %v3850_v20, 16  ;;  %v270_v26 = vshll.u32 %v3850_v20, 16  ;;  %v276_v28 = vshll.u32 %v3853_v21, 16  ;;  %v280_v29 = vshrl.u32 %v3853_v21, 16  ;;  %v3870_v39 = vld [vmem:[%s3832_s22 + $0xc] sm:$0xf] }
  0x14   : > { %v286_v30 = vshll.u32 %v3856_v24, 16  ;;  %v3873_v40 = vld [vmem:[%s3832_s22 + $0x10] sm:$0xf]  ;;  %v3876_v41 = vld [vmem:[%s3832_s22 + $0x14] sm:$0x1]  ;;  %v3002_v42 = vcombine.low %v3850_v20, %v3853_v21  ;;  %v291_v46 = vshrl.u32 %v3870_v39, 16 }
  0x15   : > { %v269_v32 = vrot.slane %v267_v25, 4  ;;  %v272_v33 = vrot.slane %v270_v26, 5  ;;  %v278_v35 = vrot.slane %v276_v28, 5  ;;  %v282_v36 = vrot.slane %v280_v29, 4  ;;  %576 = vmatpush1.bf16.msra.mxu1 %v3600_v15  ;;  %1543 = vmatpush1.bf16.msra.mxu0 %v3601_v16  ;;  %v3909_v63 = vld [vmem:[%s3832_s22 + $0x18] sm:$0xf] }
  0x16   : > { %v288_v37 = vrot.slane %v286_v30, 5  ;;  %2993 = vmatprep.subr.msk.bf16.mxu1 %vm562_vm1, %v2992_v22  ;;  %3122 = vmatprep.subr.msk.bf16.mxu0 %vm562_vm1, %v3860_v27  ;;  %v294_v47 = vshll.u32 %v3870_v39, 16  ;;  %v300_v48 = vshll.u32 %v3873_v40, 16  ;;  %v304_v50 = vshrl.u32 %v3873_v40, 16  ;;  %v3912_v0 = vld [vmem:[%s3832_s22 + $0x1c] sm:$0xf] }
  0x17   : > { %v273_v38 = vor.u32 %v272_v33, %v269_v32  ;;  %v283_v44 = vor.u32 %v282_v36, %v278_v35  ;;  %v310_v51 = vshll.u32 %v3876_v41, 16  ;;  %v293_v54 = vrot.slane %v291_v46, 4  ;;  %v3919_v5 = vld [vmem:[%s3832_s22 + $0x20] sm:$0x1]  ;;  %v3609_v13 = vld [vmem:[%s4690_s1 + $0x168] ss:$8 sps:$4 sm:$0xff]  }
  0x18   : > { %v296_v55 = vrot.slane %v294_v47, 5  ;;  %v302_v56 = vrot.slane %v300_v48, 5  ;;  %v306_v59 = vrot.slane %v304_v50, 4  ;;  %v3916_v1 = vcombine.low %v3870_v39, %v3873_v40  ;;  %v3617_v16 = vld [vmem:[%s4690_s1 + $0x14] ss:$8 sps:$4 sm:$0xff]  }
  0x19   : > { %v274_v49 = vrot.slane %v273_v38, 4  ;;  %v284_v53 = vrot.slane %v283_v44, 4  ;;  %578 = vmatpush1.bf16.msra.mxu1 %v564_v31  ;;  %1545 = vmatpush1.bf16.msra.mxu0 %v3867_v34  ;;  %v312_v62 = vrot.slane %v310_v51, 5  ;;  %v315_v6 = vshrl.u32 %v3909_v63, 16  ;;  %v3615_v25 = vld [vmem:[%s4690_s1 + $0x10] ss:$8 sps:$4 sm:$0xff]  }
  0x1a   : > { %797 = vmatprep.subr.bf16.mxu1 %v3608_v45  ;;  %v297_v61 = vor.u32 %v296_v55, %v293_v54  ;;  %1756 = vmatprep.subr.bf16.mxu0 %v3611_v52  ;;  %v307_v4 = vor.u32 %v306_v59, %v302_v56  ;;  %v318_v7 = vshll.u32 %v3909_v63, 16  ;;  %v324_v9 = vshll.u32 %v3912_v0, 16  ;;  %v3949_v30 = vld [vmem:[%s3832_s22 + $0x24] sm:$0xf]  ;;  %v3952_v31 = vld [vmem:[%s3832_s22 + $0x28] sm:$0xf] }
  0x1b   : > { %v279_v57 = vsel %vm3885_vm3, %v274_v49, %v278_v35  ;;  %v289_v60 = vsel %vm3885_vm3, %v284_v53, %v288_v37  ;;  %v328_v10 = vshrl.u32 %v3912_v0, 16  ;;  %v334_v11 = vshll.u32 %v3919_v5, 16  ;;  %v3955_v35 = vld [vmem:[%s3832_s22 + $0x2c] sm:$0x1]  ;;  %v3612_v51 = vld [vmem:[%s4690_s1 + $0x178] ss:$8 sps:$4 sm:$0xff]  }
  0x1c   : > { %v2975_v3 = vcombine.low %v279_v57, %v289_v60  ;;  %v298_v8 = vrot.slane %v297_v61, 4  ;;  %v308_v12 = vrot.slane %v307_v4, 4  ;;  %v317_v14 = vrot.slane %v315_v6, 4  ;;  %v3974_v55 = vld [vmem:[%s3832_s22 + $0x30] sm:$0xf] }
  0x1d   : > { %v320_v15 = vrot.slane %v318_v7, 5  ;;  %v3935_v17 = vcombine.low %v3909_v63, %v3912_v0  ;;  %v326_v22 = vrot.slane %v324_v9, 5  ;;  %v330_v23 = vrot.slane %v328_v10, 4  ;;  %v3620_v57 = vld [vmem:[%s4690_s1 + $0x18c] ss:$8 sps:$4 sm:$0xff]  }
  0x1e   : > { %2994 = vmatmul.mubr.msk.bf16.vlgmr.msra.gmra.mrb[0].mxu1 %vm537_vm4, %v2975_v3  ;;  %v303_v18 = vsel %vm3885_vm3, %v298_v8, %v302_v56  ;;  %v313_v26 = vsel %vm3885_vm3, %v308_v12, %v312_v62  ;;  %v336_v29 = vrot.slane %v334_v11, 5  ;;  %v339_v36 = vshrl.u32 %v3949_v30, 16  ;;  %v3982_v59 = vld [vmem:[%s3832_s22 + $0x34] sm:$0xf]  ;;  %v3618_v62 = vld [vmem:[%s4690_s1 + $0x188] ss:$8 sps:$4 sm:$0xff]  }
  0x1f   : > { %798 = vmatpush1.bf16.msra.mxu1 %v3606_v58  ;;  %611 = vmatprep.mubr.bf16.mxu1 %v3746_v2  ;;  %v321_v28 = vor.u32 %v320_v15, %v317_v14  ;;  %v2976_v32 = vcombine.low %v303_v18, %v313_v26  ;;  %v331_v33 = vor.u32 %v330_v23, %v326_v22  ;;  %v342_v37 = vshll.u32 %v3949_v30, 16  ;;  %v3624_v7 = vld [vmem:[%s4690_s1 + $0x20] ss:$8 sps:$4 sm:$0xff]   ;;  %v3626_v8 = vld [vmem:[%s4690_s1 + $0x24] ss:$8 sps:$4 sm:$0xff]  }
  0x20   : > { %799 = vmatprep.subr.bf16.mxu1 %v3617_v16  ;;  %v348_v44 = vshll.u32 %v3952_v31, 16  ;;  %v352_v45 = vshrl.u32 %v3952_v31, 16  ;;  %v358_v46 = vshll.u32 %v3955_v35, 16  ;;  %v341_v48 = vrot.slane %v339_v36, 4  ;;  %v3623_v18 = vld [vmem:[%s4690_s1 + $0x19c] ss:$8 sps:$4 sm:$0xff]  }
  0x21   : > { %v322_v38 = vrot.slane %v321_v28, 4  ;;  %3123 = vmatmul.mubr.msk.bf16.vlgmr.msra.gmra.mrb[0].mxu0 %vm537_vm4, %v2976_v32  ;;  %v332_v47 = vrot.slane %v331_v33, 4  ;;  %v344_v49 = vrot.slane %v342_v37, 5  ;;  %v3965_v50 = vcombine.low %v3949_v30, %v3952_v31  ;;  %v3634_v23 = vld [vmem:[%s4690_s1 + $0x34] ss:$8 sps:$4 sm:$0xff]  }
  0x22   : > { %1757 = vmatpush1.bf16.msra.mxu0 %v3609_v13  ;;  %1578 = vmatprep.mubr.bf16.mxu0 %v3746_v2  ;;  %v350_v53 = vrot.slane %v348_v44, 5  ;;  %v354_v54 = vrot.slane %v352_v45, 4  ;;  %v363_v60 = vshrl.u32 %v3974_v55, 16  ;;  %v366_v61 = vshll.u32 %v3974_v55, 16  ;;  %v3632_v28 = vld [vmem:[%s4690_s1 + $0x30] ss:$8 sps:$4 sm:$0xff]  }
  0x23   : > { %800 = vmatpush1.bf16.msra.mxu1 %v3615_v25  ;;  %v327_v52 = vsel %vm3885_vm3, %v322_v38, %v326_v22  ;;  %1758 = vmatprep.subr.bf16.mxu0 %v3614_v19  ;;  %v337_v56 = vsel %vm3885_vm3, %v332_v47, %v336_v29  ;;  %v345_v58 = vor.u32 %v344_v49, %v341_v48  ;;  %v372_v4 = vshll.u32 %v3982_v59, 16  ;;  %v4007_v19 = vld [vmem:[%s3832_s22 + $0x38] sm:$0x1]  ;;  %v3140_v22 = vld [vmem:[%s4690_s1 + $0x1a8] sm:$0xff]  ;;  %v4016_v25 = vld [vmem:[%s3832_s22 + $0x3c] sm:$0xf] }
  0x24   : > { %v355_v3 = vor.u32 %v354_v54, %v350_v53  ;;  %v376_v6 = vshrl.u32 %v3982_v59, 16  ;;  %v3998_v9 = vcombine.low %v327_v52, %v337_v56  ;;  %v360_v11 = vrot.slane %v358_v46, 5  ;;  %801 = vmatprep.subr.bf16.mxu1 %v3626_v8  ;;  %v4026_v29 = vld [vmem:[%s3832_s22 + $0x40] sm:$0xf] }
  0x25   : > { %v346_v10 = vrot.slane %v345_v58, 4  ;;  %v365_v12 = vrot.slane %v363_v60, 4  ;;  %v368_v14 = vrot.slane %v366_v61, 5  ;;  %v4001_v15 = vrot.slane %v372_v4, 5  ;;  %v3621_v36 = vld [vmem:[%s4690_s1 + $0x198] ss:$8 sps:$4 sm:$0xff]  }
  0x26   : > { %2995 = vmatmul.mubr.msk.bf16.gmra.mrb[4].mxu1 %vm537_vm4, %v2976_v32  ;;  %1759 = vmatpush1.bf16.msra.mxu0 %v3612_v51  ;;  %v356_v13 = vrot.slane %v355_v3, 4  ;;  %v378_v16 = vrot.slane %v376_v6, 4  ;;  %v4030_v32 = vcombine.low %v3974_v55, %v3982_v59  ;;  %v382_v44 = vshll.u32 %v4007_v19, 16  ;;  %v3631_v58 = vld [vmem:[%s4690_s1 + $0x1b4] ss:$8 sps:$4 sm:$0xff]  }
  0x27   : > { %621 = vmatprep.mubr.bf16.mxu1 %v3746_v2  ;;  %1760 = vmatprep.subr.bf16.mxu0 %v3620_v57  ;;  %v351_v26 = vsel %vm3885_vm3, %v346_v10, %v350_v53  ;;  %v369_v37 = vor.u32 %v368_v14, %v365_v12  ;;  %v3151_v45 = vcombine.high %v3140_v22, %v3140_v22  ;;  %v387_v47 = vshrl.u32 %v4016_v25, 16  ;;  %v4056_v61 = vld [vmem:[%s3832_s22 + $0x44] sm:$0x1]  ;;  %v4061_v6 = vld [vmem:[%s3832_s22 + $0x48] sm:$0xf] }
  0x28   : > { %802 = vmatpush1.bf16.msra.mxu1 %v3624_v7  ;;  %v361_v33 = vsel %vm3885_vm3, %v356_v13, %v360_v11  ;;  %v379_v38 = vor.u32 %v378_v16, %v4001_v15  ;;  %v3150_v46 = vcombine.low %v3140_v22, %v3140_v22  ;;  %v390_v48 = vshll.u32 %v4016_v25, 16  ;;  %v4068_v10 = vld [vmem:[%s3832_s22 + $0x4c] sm:$0xf]  ;;  %v262_v11 = vld [vmem:[%s4690_s1 + $0x40] sm:$0xff] }
  0x29   : > { %3124 = vmatmul.mubr.msk.bf16.gmra.mrb[4].mxu0 %vm537_vm4, %v3998_v9  ;;  %803 = vmatprep.subr.bf16.mxu1 %v3634_v23  ;;  %v396_v49 = vshll.u32 %v4026_v29, 16  ;;  %v400_v51 = vshrl.u32 %v4026_v29, 16  ;;  %v4046_v52 = vcombine.low %v351_v26, %v361_v33  ;;  %v930_v53 = vrot.slane %v3873_v40, 5 }
  0x2a   : > { %1761 = vmatpush1.bf16.msra.mxu0 %v3618_v62  ;;  %1588 = vmatprep.mubr.bf16.mxu0 %v3746_v2  ;;  %v370_v54 = vrot.slane %v369_v37, 4  ;;  %v380_v56 = vrot.slane %v379_v38, 4  ;;  %v384_v57 = vrot.slane %v382_v44, 5  ;;  %v1751_v60 = vsel %vm562_vm1, %v3150_v46, 0 }
  0x2b   : > { %1762 = vmatprep.subr.bf16.mxu0 %v3623_v18  ;;  %v389_v62 = vrot.slane %v387_v47, 4  ;;  %v392_v3 = vrot.slane %v390_v48, 5  ;;  %v4058_v40 = vrot.slane %v396_v49, 5  ;;  %v402_v4 = vrot.slane %v400_v51, 4 }
  0x2c   : > { %804 = vmatpush1.bf16.msra.mxu1 %v3632_v28  ;;  %v933_v7 = vrot.slane %v3876_v41, 5  ;;  %v3030_v8 = vrot.slane %v3870_v39, 9  ;;  %v375_v12 = vsel %vm3885_vm3, %v370_v54, %v4001_v15  ;;  %v385_v41 = vsel %vm3885_vm3, %v380_v56, %v384_v57 }
  0x2d   : > { %v932_v13 = vrot.slane %v930_v53, 4  ;;  %v406_v14 = vshll.u32 %v4056_v61, 16  ;;  %v393_v16 = vor.u32 %v392_v3, %v389_v62  ;;  %v411_v18 = vshrl.u32 %v4061_v6, 16 }
  0x2e   : > { %2996 = vmatmul.mubr.msk.bf16.gmra.mrb[8].mxu1 %vm537_vm4, %v3998_v9  ;;  %1763 = vmatpush1.bf16.msra.mxu0 %v3621_v36  ;;  %v414_v22 = vshll.u32 %v4061_v6, 16  ;;  %v403_v15 = vor.u32 %v402_v4, %v4058_v40  ;;  %v420_v23 = vshll.u32 %v4068_v10, 16  ;;  %v424_v26 = vshrl.u32 %v4068_v10, 16 }
  0x2f   : > { %631 = vmatprep.mubr.bf16.mxu1 %v3746_v2  ;;  %3152 = vmatprep.subr.msk.bf16.mxu0 %vm562_vm1, %v3151_v45  ;;  %v4093_v28 = vcombine.low %v375_v12, %v385_v41  ;;  %v3019_v33 = vcombine.high %v262_v11, %v262_v11  ;;  %v931_v36 = vsel %vm4082_vm7, %v3030_v8, %v930_v53  ;;  %v408_v38 = vrot.slane %v406_v14, 5  ;;  %v3646_v45 = vld [vmem:[%s4690_s1 + $0x94] ss:$8 sps:$4 sm:$0xff]   ;;  %v4106_v53 = vld [vmem:[%s3832_s22 + $0x50] sm:$0x1] }
  0x30   : > { %v934_v37 = vsel %vm4082_vm7, %v932_v13, %v933_v7  ;;  %v3018_v44 = vcombine.low %v262_v11, %v262_v11  ;;  %v394_v46 = vrot.slane %v393_v16, 4  ;;  %v937_v47 = vrot.slane %v3912_v0, 5 }
  0x31   : > { %3125 = vmatmul.mubr.msk.bf16.gmra.mrb[8].mxu0 %vm537_vm4, %v4046_v52  ;;  %v413_v48 = vrot.slane %v411_v18, 4  ;;  %v416_v49 = vrot.slane %v414_v22, 5  ;;  %3020 = vmatprep.subr.msk.bf16.mxu1 %vm562_vm1, %v3019_v33  ;;  %v404_v51 = vrot.slane %v403_v15, 4  ;;  %v4108_v54 = vrot.slane %v420_v23, 5  ;;  %v3637_v22 = vld [vmem:[%s4690_s1 + $0x1c4] ss:$8 sps:$4 sm:$0xff]  }
  0x32   : > { %1598 = vmatprep.mubr.bf16.mxu0 %v3746_v2  ;;  %1765 = vmatpush1.bf16.msra.mxu0 %v1751_v60  ;;  %v426_v56 = vrot.slane %v424_v26, 4  ;;  %v792_v57 = vsel %vm562_vm1, %v3018_v44, 0  ;;  %v4117_v0 = vcombine.low %v931_v36, %v934_v37  ;;  %v4120_v60 = vld [vmem:[%s3832_s22 + $0x58] sm:$0xf]  ;;  %v3031_v62 = vrot.slane %v3909_v63, 9 }
  0x33   : > { %1970 = vmatprep.subr.bf16.mxu0 %v3631_v58  ;;  %806 = vmatpush1.bf16.msra.mxu1 %v792_v57  ;;  %v4114_v58 = vld [vmem:[%s3832_s22 + $0x54] sm:$0xf]  ;;  %v939_v3 = vrot.slane %v937_v47, 4  ;;  %v940_v4 = vrot.slane %v3919_v5, 5  ;;  %v430_v7 = vshll.u32 %v4106_v53, 16  ;;  %v399_v8 = vsel %vm3885_vm3, %v394_v46, %v4058_v40 }
  0x34   : > { %1086 = vmatprep.subr.bf16.mxu1 %v3646_v45  ;;  %v409_v11 = vsel %vm3885_vm3, %v404_v51, %v408_v38  ;;  %v417_v12 = vor.u32 %v416_v49, %v413_v48  ;;  %v427_v41 = vor.u32 %v426_v56, %v4108_v54  ;;  %v435_v63 = vshrl.u32 %v4114_v58, 16  ;;  %v3629_v40 = vld [vmem:[%s4690_s1 + $0x1b0] ss:$8 sps:$4 sm:$0xff]   ;;  %v4153_v36 = vld [vmem:[%s3832_s22 + $0x5c] sm:$0x1] }
  0x35   : > { %v438_v5 = vshll.u32 %v4114_v58, 16  ;;  %v444_v13 = vshll.u32 %v4120_v60, 16  ;;  %v448_v14 = vshrl.u32 %v4120_v60, 16  ;;  %v938_v16 = vsel %vm4082_vm7, %v3031_v62, %v937_v47  ;;  %v3635_v46 = vld [vmem:[%s4690_s1 + $0x1c0] ss:$8 sps:$4 sm:$0xff]  }
  0x36   : > { %2997 = vmatmul.mubr.msk.bf16.gmra.mrb[12].mxu1 %vm537_vm4, %v4046_v52  ;;  %v941_v18 = vsel %vm4082_vm7, %v939_v3, %v940_v4  ;;  %v4148_v15 = vcombine.low %v399_v8, %v409_v11  ;;  %v418_v23 = vrot.slane %v417_v12, 4  ;;  %v428_v26 = vrot.slane %v427_v41, 4  ;;  %v3642_v51 = vld [vmem:[%s4690_s1 + $0x1d4] ss:$8 sps:$4 sm:$0xff]   ;;  %v3640_v12 = vld [vmem:[%s4690_s1 + $0x1d0] ss:$8 sps:$4 sm:$0xff]  }
  0x37   : > { %641 = vmatprep.mubr.bf16.mxu1 %v3746_v2  ;;  %v432_v33 = vrot.slane %v430_v7, 5  ;;  %v437_v37 = vrot.slane %v435_v63, 4  ;;  %v440_v38 = vrot.slane %v438_v5, 5  ;;  %v446_v44 = vrot.slane %v444_v13, 5  ;;  %v3649_v63 = vld [vmem:[%s4690_s1 + $0x1e4] ss:$8 sps:$4 sm:$0xff]  }
  0x38   : > { %v450_v45 = vrot.slane %v448_v14, 4  ;;  %v944_v47 = vrot.slane %v3952_v31, 5  ;;  %v923_v48 = vrot.slane %v3853_v21, 5  ;;  %v926_v49 = vrot.slane %v3856_v24, 5 }
  0x39   : > { %3126 = vmatmul.mubr.msk.bf16.gmra.mrb[12].mxu0 %vm537_vm4, %v4093_v28  ;;  %v4167_v56 = vcombine.low %v938_v16, %v941_v18  ;;  %v423_v57 = vsel %vm3885_vm3, %v418_v23, %v4108_v54  ;;  %v454_v31 = vshll.u32 %v4153_v36, 16  ;;  %v4175_v62 = vcombine.low %v4016_v25, %v4026_v29  ;;  %v3647_v18 = vld [vmem:[%s4690_s1 + $0x1e0] ss:$8 sps:$4 sm:$0xff]  }
  0x3a   : > { %1788 = vmatprep.mubr.bf16.mxu0 %v3746_v2  ;;  %v433_v24 = vsel %vm3885_vm3, %v428_v26, %v432_v33  ;;  %v441_v3 = vor.u32 %v440_v38, %v437_v37  ;;  %v451_v4 = vor.u32 %v450_v45, %v446_v44  ;;  %v4182_v7 = vcombine.low %v4061_v6, %v4068_v10 }
  0x3b   : > { %v3032_v54 = vrot.slane %v3949_v30, 9  ;;  %v946_v8 = vrot.slane %v944_v47, 4  ;;  %v947_v11 = vrot.slane %v3955_v35, 5  ;;  %v4191_v41 = vcombine.low %v4114_v58, %v4120_v60  ;;  %v3169_v35 = vld [vmem:[%s4690_s1 + $0x1f0] sm:$0xff] }
  0x3c   : > { %v3029_v5 = vrot.slane %v3850_v20, 9  ;;  %v925_v13 = vrot.slane %v923_v48, 4  ;;  %v4197_v30 = vcombine.low %v423_v57, %v433_v24  ;;  %v456_v14 = vrot.slane %v454_v31, 5  ;;  %v3664_v24 = vld [vmem:[%s4690_s1 + $0x1fc] ss:$8 sps:$4 sm:$0xff]  }
  0x3d   : > { %v452_v16 = vrot.slane %v451_v4, 4  ;;  %v945_v26 = vsel %vm4082_vm7, %v3032_v54, %v944_v47  ;;  %v948_v33 = vsel %vm4082_vm7, %v946_v8, %v947_v11  ;;  %v951_v37 = vrot.slane %v3982_v59, 5  ;;  %v3660_v20 = vld [vmem:[%s4690_s1 + $0xb4] ss:$8 sps:$4 sm:$0xff]  }
  0x3e   : > { %2998 = vmatmul.mubr.msk.bf16.gmra.mrb[16].mxu1 %vm537_vm4, %v4093_v28  ;;  %v4213_v23 = vsel %vm4082_vm7, %v925_v13, %v926_v49  ;;  %v3180_v45 = vcombine.high %v3169_v35, %v3169_v35  ;;  %v3033_v49 = vrot.slane %v3974_v55, 9  ;;  %v954_v57 = vrot.slane %v4007_v19, 5  ;;  %v3651_v13 = vld [vmem:[%s4690_s1 + $0xa0] ss:$8 sps:$4 sm:$0xff]  }
  0x3f   : > { %651 = vmatprep.mubr.bf16.mxu1 %v3746_v2  ;;  %v457_v59 = vsel %vm3885_vm3, %v452_v16, %v456_v14  ;;  %v3034_v54 = vrot.slane %v4016_v25, 9  ;;  %v961_v11 = vrot.slane %v4056_v61, 5  ;;  %v965_v25 = vrot.slane %v4068_v10, 5  ;;  %v3653_v61 = vld [vmem:[%s4690_s1 + $0xa4] ss:$8 sps:$4 sm:$0xff]  }
  0x40   : > { %v952_v55 = vsel %vm4082_vm7, %v3033_v49, %v951_v37  ;;  %v3035_v10 = vrot.slane %v4061_v6, 9  ;;  %v972_v21 = vrot.slane %v4120_v60, 5  ;;  %v3045_v60 = vld [vmem:[%s4690_s1 + $0xd0] sm:$0xff]  ;;  %v3036_v16 = vrot.slane %v4114_v58, 9 }
  0x41   : > { %3153 = vmatmul.mubr.msk.bf16.vlgmr.msra.gmra.mrb[0].mxu0 %vm537_vm4, %v4117_v0  ;;  %v967_v14 = vrot.slane %v965_v25, 4 }
  0x42   : > { %1971 = vmatpush1.bf16.msra.mxu0 %v3629_v40  ;;  %1798 = vmatprep.mubr.bf16.mxu0 %v3746_v2  ;;  %v442_v40 = vrot.slane %v441_v3, 4  ;;  %v966_v6 = vsel %vm4082_vm7, %v3035_v10, %v965_v25 }
  0x43   : > { %1972 = vmatprep.subr.bf16.mxu0 %v3637_v22  ;;  %v4209_v22 = vsel %vm4082_vm7, %v3029_v5, %v923_v48  ;;  %v4225_v48 = vcombine.low %v945_v26, %v948_v33  ;;  %v4307_v26 = vld [vmem:[%s3832_s22 + $0x60] sm:$0xf] }
  0x44   : > { %v3046_v38 = vcombine.low %v4209_v22, %v4213_v23  ;;  %v447_v47 = vsel %vm3885_vm3, %v442_v40, %v446_v44  ;;  %v958_v44 = vrot.slane %v4026_v29, 5  ;;  %v3644_v29 = vld [vmem:[%s4690_s1 + $0x90] ss:$8 sps:$4 sm:$0xff]   ;;  %v3667_v40 = vld [vmem:[%s4690_s1 + $0xc4] ss:$8 sps:$4 sm:$0xff]   ;;  %v1446_v58 = vshrl.u32 %v4307_v26, 16 }
  0x45   : > { %v4239_v3 = vcombine.low %v447_v47, %v457_v59  ;;  %v3063_v47 = vcombine.high %v3045_v60, %v3045_v60  ;;  %v3062_v59 = vcombine.low %v3045_v60, %v3045_v60  ;;  %v3692_v22 = vld [vmem:[%s4690_s1 + $0xf8] ss:$8 sps:$4 sm:$0xff]   ;;  %v3700_v23 = vld [vmem:[%s4690_s1 + $0x10c] ss:$8 sps:$4 sm:$0xff]  }
  0x46   : > { %2999 = vmatmul.mubr.msk.bf16.gmra.mrb[20].mxu1 %vm537_vm4, %v4148_v15  ;;  %1973 = vmatpush1.bf16.msra.mxu0 %v3635_v46  ;;  %v3179_v46 = vcombine.low %v3169_v35, %v3169_v35  ;;  %v960_v8 = vrot.slane %v958_v44, 4  ;;  %v968_v35 = vrot.slane %v4106_v53, 5 }
  0x47   : > { %661 = vmatprep.mubr.bf16.mxu1 %v3746_v2  ;;  %1974 = vmatprep.subr.bf16.mxu0 %v3642_v51  ;;  %v953_v51 = vrot.slane %v951_v37, 4  ;;  %v974_v37 = vrot.slane %v972_v21, 4 }
  0x48   : > { %v1965_v31 = vsel %vm562_vm1, %v3179_v46, 0  ;;  %v969_v53 = vsel %vm4082_vm7, %v967_v14, %v968_v35  ;;  %v3665_v46 = vld [vmem:[%s4690_s1 + $0xc0] ss:$8 sps:$4 sm:$0xff]   ;;  %v3131_v35 = vrot.slane %v4307_v26, 9 }
  0x49   : > { %3154 = vmatmul.mubr.msk.bf16.gmra.mrb[4].mxu0 %vm537_vm4, %v4167_v56  ;;  %v955_v19 = vsel %vm4082_vm7, %v953_v51, %v954_v57  ;;  %v4309_v33 = vcombine.low %v966_v6, %v969_v53  ;;  %v1448_v57 = vrot.slane %v1446_v58, 4  ;;  %v3684_v58 = vld [vmem:[%s4690_s1 + $0x22c] ss:$8 sps:$4 sm:$0xff]  }
  0x4a   : > { %1808 = vmatprep.mubr.bf16.mxu0 %v3746_v2  ;;  %1975 = vmatpush1.bf16.msra.mxu0 %v3640_v12  ;;  %v4251_v4 = vcombine.low %v952_v55, %v955_v19  ;;  %v959_v12 = vsel %vm4082_vm7, %v3034_v54, %v958_v44  ;;  %v973_v19 = vsel %vm4082_vm7, %v3036_v16, %v972_v21  ;;  %v250_v54 = vld [vmem:[%s3832_s22 + $0x68] sm:$0x1] }
  0x4b   : > { %1976 = vmatprep.subr.bf16.mxu0 %v3649_v63  ;;  %v962_v63 = vsel %vm4082_vm7, %v960_v8, %v961_v11  ;;  %v1081_v11 = vsel %vm562_vm1, %v3062_v59, 0  ;;  %v1465_v25 = vshll.u32 %v250_v54, 16  ;;  %v1687_v21 = vrot.slane %v250_v54, 5  ;;  %v3676_v59 = vld [vmem:[%s4690_s1 + $0x218] ss:$8 sps:$4 sm:$0xff]  }
  0x4c   : > { %v4274_v5 = vcombine.low %v959_v12, %v962_v63  ;;  %v3694_v54 = vld [vmem:[%s4690_s1 + $0xfc] ss:$8 sps:$4 sm:$0xff]  }
  0x4d   : > { %v1467_v10 = vrot.slane %v1465_v25, 5  ;;  %v4470_v25 = vld [vmem:[%s3832_s22 + $0x6c] sm:$0xf] }
  0x4e   : > { %3000 = vmatmul.mubr.msk.bf16.gmra.mrb[24].mxu1 %vm537_vm4, %v4197_v30  ;;  %1977 = vmatpush1.bf16.msra.mxu0 %v3647_v18  ;;  %v975_v18 = vrot.slane %v4153_v36, 5  ;;  %v1449_v36 = vshll.u32 %v4307_v26, 16  ;;  %v3219_v43 = vrot.slane %v4470_v25, 9 }
  0x4f   : > { %671 = vmatprep.mubr.bf16.mxu1 %v3746_v2  ;;  %3181 = vmatprep.subr.msk.bf16.mxu0 %vm562_vm1, %v3180_v45  ;;  %v4313_v45 = vld [vmem:[%s3832_s22 + $0x64] sm:$0xf] }
  0x50   : > { %v1455_v49 = vshll.u32 %v4313_v45, 16  ;;  %v1459_v51 = vshrl.u32 %v4313_v45, 16  ;;  %v976_v44 = vsel %vm4082_vm7, %v974_v37, %v975_v18  ;;  %v1684_v8 = vrot.slane %v4313_v45, 5  ;;  %v3662_v18 = vld [vmem:[%s4690_s1 + $0x1f8] ss:$8 sps:$4 sm:$0xff]  }
  0x51   : > { %3155 = vmatmul.mubr.msk.bf16.gmra.mrb[8].mxu0 %vm537_vm4, %v4225_v48  ;;  %v4338_v14 = vcombine.low %v973_v19, %v976_v44  ;;  %v3671_v37 = vld [vmem:[%s4690_s1 + $0x20c] ss:$8 sps:$4 sm:$0xff]   ;;  %v3685_v44 = vld [vmem:[%s4690_s1 + $0xe8] ss:$8 sps:$4 sm:$0xff]  }
  0x52   : > { %1818 = vmatprep.mubr.bf16.mxu0 %v3746_v2  ;;  %1979 = vmatpush1.bf16.msra.mxu0 %v1965_v31  ;;  %v1451_v31 = vrot.slane %v1449_v36, 5  ;;  %v1461_v55 = vrot.slane %v1459_v51, 4  ;;  %v3198_v36 = vld [vmem:[%s4690_s1 + $0x238] sm:$0xff]  ;;  %v3687_v19 = vld [vmem:[%s4690_s1 + $0xec] ss:$8 sps:$4 sm:$0xff]  }
  0x53   : > { %2206 = vmatprep.subr.bf16.mxu0 %v3664_v24  ;;  %v1457_v24 = vrot.slane %v1455_v49, 5  ;;  %v3682_v49 = vld [vmem:[%s4690_s1 + $0x228] ss:$8 sps:$4 sm:$0xff]   ;;  %v3209_v51 = vcombine.high %v3198_v36, %v3198_v36 }
  0x54   : > { %v1452_v12 = vor.u32 %v1451_v31, %v1448_v57  ;;  %v3208_v57 = vcombine.low %v3198_v36, %v3198_v36 }
  0x55   : > { %v1462_v63 = vor.u32 %v1461_v55, %v1457_v24  ;;  %v3679_v55 = vld [vmem:[%s4690_s1 + $0xd8] ss:$8 sps:$4 sm:$0xff]  }
  0x56   : > { %3001 = vmatmul.mubr.msk.bf16.gmra.mrb[28].mxu1 %vm537_vm4, %v4239_v3  ;;  %v2201_v31 = vsel %vm562_vm1, %v3208_v57, 0 }
  0x57   : > { %829 = vmatprep.mubr.bf16.mxu1 %v3746_v2 }
  0x59   : > { %3156 = vmatmul.mubr.msk.bf16.gmra.mrb[12].mxu0 %vm537_vm4, %v4251_v4 }
  0x5a   : > { %1828 = vmatprep.mubr.bf16.mxu0 %v3746_v2 }
  0x5e   : > { %3021 = vmatmul.mubr.msk.bf16.vlgmr.msra.gmra.mrb[0].mxu1 %vm537_vm4, %v3002_v42  ;;  %v3658_v42 = vld [vmem:[%s4690_s1 + $0xb0] ss:$8 sps:$4 sm:$0xff]  }
  0x5f   : > { %1087 = vmatpush1.bf16.msra.mxu1 %v3644_v29  ;;  %839 = vmatprep.mubr.bf16.mxu1 %v3746_v2  ;;  %v3681_v29 = vld [vmem:[%s4690_s1 + $0xdc] ss:$8 sps:$4 sm:$0xff]  }
  0x60   : > { %1088 = vmatprep.subr.bf16.mxu1 %v3653_v61  ;;  %v1453_v61 = vrot.slane %v1452_v12, 4  ;;  %v4460_v12 = vcombine.low %v4307_v26, %v4313_v45  ;;  %v3695_v45 = vld [vmem:[%s4690_s1 + $0x240] ss:$8 sps:$4 sm:$0xff]  }
  0x61   : > { %3157 = vmatmul.mubr.msk.bf16.gmra.mrb[16].mxu0 %vm537_vm4, %v4274_v5 }
  0x62   : > { %1838 = vmatprep.mubr.bf16.mxu0 %v3746_v2 }
  0x63   : > { %1089 = vmatpush1.bf16.msra.mxu1 %v3651_v13  ;;  %v1463_v13 = vrot.slane %v1462_v63, 4  ;;  %v3714_v63 = vld [vmem:[%s4690_s1 + $0x124] ss:$8 sps:$4 sm:$0xff]  }
  0x64   : > { %1090 = vmatprep.subr.bf16.mxu1 %v3660_v20  ;;  %v1686_v20 = vrot.slane %v1684_v8, 4 }
  0x65   : > { %v1468_v6 = vsel %vm3885_vm3, %v1463_v13, %v1467_v10  ;;  %v3703_v13 = vld [vmem:[%s4690_s1 + $0x254] ss:$8 sps:$4 sm:$0xff]   ;;  %v3701_v10 = vld [vmem:[%s4690_s1 + $0x250] ss:$8 sps:$4 sm:$0xff]  }
  0x66   : > { %3022 = vmatmul.mubr.msk.bf16.gmra.mrb[4].mxu1 %vm537_vm4, %v3916_v1  ;;  %v1688_v60 = vsel %vm4082_vm7, %v1686_v20, %v1687_v21  ;;  %v3711_v20 = vld [vmem:[%s4690_s1 + $0x274] ss:$8 sps:$4 sm:$0xff]   ;;  %v3228_v21 = vld [vmem:[%s4690_s1 + $0x280] sm:$0xff] }
  0x67   : > { %849 = vmatprep.mubr.bf16.mxu1 %v3746_v2  ;;  %1091 = vmatpush1.bf16.msra.mxu1 %v3658_v42  ;;  %v1458_v42 = vsel %vm3885_vm3, %v1453_v61, %v1457_v24  ;;  %v3697_v24 = vld [vmem:[%s4690_s1 + $0x244] ss:$8 sps:$4 sm:$0xff]   ;;  %v4473_v61 = vld [vmem:[%s3832_s22 + $0x70] sm:$0xf] }
  0x68   : > { %1092 = vmatprep.subr.bf16.mxu1 %v3667_v40  ;;  %v4346_v53 = vcombine.low %v1458_v42, %v1468_v6  ;;  %v1685_v40 = vsel %vm4082_vm7, %v3131_v35, %v1684_v8  ;;  %v3698_v8 = vld [vmem:[%s4690_s1 + $0x108] ss:$8 sps:$4 sm:$0xff]   ;;  %v3170_v26 = vcombine.low %v4470_v25, %v4473_v61  ;;  %v3708_v35 = vld [vmem:[%s4690_s1 + $0x264] ss:$8 sps:$4 sm:$0xff]   ;;  %v3239_v6 = vcombine.high %v3228_v21, %v3228_v21 }
  0x69   : > { %3158 = vmatmul.mubr.msk.bf16.gmra.mrb[20].mxu0 %vm537_vm4, %v4309_v33  ;;  %v4357_v16 = vcombine.low %v1685_v40, %v1688_v60  ;;  %v3709_v42 = vld [vmem:[%s4690_s1 + $0x270] ss:$8 sps:$4 sm:$0xff]   ;;  %v3238_v40 = vcombine.low %v3228_v21, %v3228_v21  ;;  %v3716_v60 = vld [vmem:[%s4690_s1 + $0x134] ss:$8 sps:$4 sm:$0xff]  }
  0x6a   : > { %1848 = vmatprep.mubr.bf16.mxu0 %v3746_v2 }
  0x6b   : > { %1093 = vmatpush1.bf16.msra.mxu1 %v3665_v46  ;;  %v3669_v46 = vld [vmem:[%s4690_s1 + $0x208] ss:$8 sps:$4 sm:$0xff]  }
  0x6c   : > { %3064 = vmatprep.subr.msk.bf16.mxu1 %vm562_vm1, %v3063_v47  ;;  %v3678_v47 = vld [vmem:[%s4690_s1 + $0x21c] ss:$8 sps:$4 sm:$0xff]  }
  0x6e   : > { %3023 = vmatmul.mubr.msk.bf16.gmra.mrb[8].mxu1 %vm537_vm4, %v3935_v17 }
  0x6f   : > { %859 = vmatprep.mubr.bf16.mxu1 %v3746_v2  ;;  %1095 = vmatpush1.bf16.msra.mxu1 %v1081_v11 }
  0x70   : > { %1300 = vmatprep.subr.bf16.mxu1 %v3681_v29 }
  0x71   : > { %3159 = vmatmul.mubr.msk.bf16.gmra.mrb[24].mxu0 %vm537_vm4, %v4338_v14 }
  0x72   : > { %1858 = vmatprep.mubr.bf16.mxu0 %v3746_v2 }
  0x76   : > { %3024 = vmatmul.mubr.msk.bf16.gmra.mrb[12].mxu1 %vm537_vm4, %v3965_v50 }
  0x77   : > { %869 = vmatprep.mubr.bf16.mxu1 %v3746_v2 }
  0x79   : > { %3160 = vmatmul.mubr.msk.bf16.gmra.mrb[28].mxu0 %vm537_vm4, %v4357_v16 }
  0x7a   : > { %2002 = vmatprep.mubr.bf16.mxu0 %v3746_v2 }
  0x7e   : > { %3025 = vmatmul.mubr.msk.bf16.gmra.mrb[16].mxu1 %vm537_vm4, %v4030_v32 }
  0x7f   : > { %879 = vmatprep.mubr.bf16.mxu1 %v3746_v2 }
  0x81   : > { %3182 = vmatmul.mubr.msk.bf16.vlgmr.msra.gmra.mrb[0].mxu0 %vm537_vm4, %v3935_v17 }
  0x82   : > { %2207 = vmatpush1.bf16.msra.mxu0 %v3662_v18  ;;  %2012 = vmatprep.mubr.bf16.mxu0 %v3746_v2  ;;  %v3717_v18 = vld [vmem:[%s4690_s1 + $0x130] ss:$8 sps:$4 sm:$0xff]  }
  0x83   : > { %2208 = vmatprep.subr.bf16.mxu0 %v3671_v37  ;;  %v2119_v37 = vshll.u32 %v4470_v25, 16 }
  0x86   : > { %3026 = vmatmul.mubr.msk.bf16.gmra.mrb[20].mxu1 %vm537_vm4, %v4175_v62  ;;  %2209 = vmatpush1.bf16.msra.mxu0 %v3669_v46  ;;  %v2129_v46 = vshrl.u32 %v4473_v61, 16 }
  0x87   : > { %889 = vmatprep.mubr.bf16.mxu1 %v3746_v2  ;;  %2210 = vmatprep.subr.bf16.mxu0 %v3678_v47  ;;  %v2125_v47 = vshll.u32 %v4473_v61, 16 }
  0x88   : > { %v2131_v57 = vrot.slane %v2129_v46, 4 }
  0x89   : > { %3183 = vmatmul.mubr.msk.bf16.gmra.mrb[4].mxu0 %vm537_vm4, %v3965_v50 }
  0x8a   : > { %2022 = vmatprep.mubr.bf16.mxu0 %v3746_v2  ;;  %2211 = vmatpush1.bf16.msra.mxu0 %v3676_v59  ;;  %v3718_v59 = vld [vmem:[%s4690_s1 + $0x144] ss:$8 sps:$4 sm:$0xff]  }
  0x8b   : > { %2212 = vmatprep.subr.bf16.mxu0 %v3684_v58  ;;  %v3719_v58 = vld [vmem:[%s4690_s1 + $0x140] ss:$8 sps:$4 sm:$0xff]  }
  0x8e   : > { %3027 = vmatmul.mubr.msk.bf16.gmra.mrb[24].mxu1 %vm537_vm4, %v4182_v7  ;;  %2213 = vmatpush1.bf16.msra.mxu0 %v3682_v49  ;;  %v2121_v49 = vrot.slane %v2119_v37, 5 }
  0x8f   : > { %899 = vmatprep.mubr.bf16.mxu1 %v3746_v2  ;;  %3210 = vmatprep.subr.msk.bf16.mxu0 %vm562_vm1, %v3209_v51  ;;  %v2127_v51 = vrot.slane %v2125_v47, 5 }
  0x91   : > { %3184 = vmatmul.mubr.msk.bf16.gmra.mrb[8].mxu0 %vm537_vm4, %v4030_v32 }
  0x92   : > { %2032 = vmatprep.mubr.bf16.mxu0 %v3746_v2  ;;  %2215 = vmatpush1.bf16.msra.mxu0 %v2201_v31  ;;  %v3720_v31 = vld [vmem:[%s4690_s1 + $0x154] ss:$8 sps:$4 sm:$0xff]  }
  0x93   : > { %2426 = vmatprep.subr.bf16.mxu0 %v3697_v24  ;;  %v253_v24 = vld [vmem:[%s3832_s22 + $0x74] sm:$0x1]  ;;  %s3268_s22 = sshll.u32 %s4702_s12, 7 }
  0x94   : > { %s4653_s23 = scalar_lea.vmem %s4691_s2, %s3268_s22 }
  0x96   : > { %3028 = vmatmul.mubr.msk.bf16.gmra.mrb[28].mxu1 %vm537_vm4, %v4191_v41 }
  0x97   : > { %1118 = vmatprep.mubr.bf16.mxu1 %v3746_v2 }
  0x99   : > { %3185 = vmatmul.mubr.msk.bf16.gmra.mrb[12].mxu0 %vm537_vm4, %v4175_v62 }
  0x9a   : > { %2042 = vmatprep.mubr.bf16.mxu0 %v3746_v2 }
  0x9e   : > { %3065 = vmatmul.mubr.msk.bf16.vlgmr.msra.gmra.mrb[0].mxu1 %vm537_vm4, %v3046_v38  ;;  %v3081_v38 = vld [vmem:[%s4690_s1 + $0x118] sm:$0xff] }
  0x9f   : > { %1301 = vmatpush1.bf16.msra.mxu1 %v3679_v55  ;;  %1128 = vmatprep.mubr.bf16.mxu1 %v3746_v2  ;;  %v3092_v11 = vcombine.high %v3081_v38, %v3081_v38  ;;  %v3091_v29 = vcombine.low %v3081_v38, %v3081_v38 }
  0xa0   : > { %1302 = vmatprep.subr.bf16.mxu1 %v3687_v19  ;;  %v2132_v19 = vor.u32 %v2131_v57, %v2127_v51 }
  0xa1   : > { %3186 = vmatmul.mubr.msk.bf16.gmra.mrb[16].mxu0 %vm537_vm4, %v4182_v7 }
  0xa2   : > { %2052 = vmatprep.mubr.bf16.mxu0 %v3746_v2 }
  0xa3   : > { %1303 = vmatpush1.bf16.msra.mxu1 %v3685_v44  ;;  %v2135_v44 = vshll.u32 %v253_v24, 16 }
  0xa4   : > { %1304 = vmatprep.subr.bf16.mxu1 %v3694_v54 }
  0xa6   : > { %3066 = vmatmul.mubr.msk.bf16.gmra.mrb[4].mxu1 %vm537_vm4, %v4117_v0  ;;  %v1295_v0 = vsel %vm562_vm1, %v3091_v29, 0 }
  0xa7   : > { %1138 = vmatprep.mubr.bf16.mxu1 %v3746_v2  ;;  %1305 = vmatpush1.bf16.msra.mxu1 %v3692_v22  ;;  %v2133_v22 = vrot.slane %v2132_v19, 4 }
  0xa8   : > { %1306 = vmatprep.subr.bf16.mxu1 %v3700_v23  ;;  %v2137_v23 = vrot.slane %v2135_v44, 5 }
  0xa9   : > { %3187 = vmatmul.mubr.msk.bf16.gmra.mrb[20].mxu0 %vm537_vm4, %v4191_v41 }
  0xaa   : > { %2062 = vmatprep.mubr.bf16.mxu0 %v3746_v2 }
  0xab   : > { %1307 = vmatpush1.bf16.msra.mxu1 %v3698_v8 }
  0xac   : > { %3093 = vmatprep.subr.msk.bf16.mxu1 %vm562_vm1, %v3092_v11 }
  0xae   : > { %3067 = vmatmul.mubr.msk.bf16.gmra.mrb[8].mxu1 %vm537_vm4, %v4167_v56 }
  0xaf   : > { %1148 = vmatprep.mubr.bf16.mxu1 %v3746_v2  ;;  %1309 = vmatpush1.bf16.msra.mxu1 %v1295_v0 }
  0xb0   : > { %3286 = vmatprep.subr.bf16.mxu1 %v3714_v63 }
  0xb1   : > { %3188 = vmatmul.mubr.msk.bf16.gmra.mrb[24].mxu0 %vm537_vm4, %v4460_v12 }
  0xb2   : > { %2072 = vmatprep.mubr.bf16.mxu0 %v3746_v2 }
  0xb6   : > { %3068 = vmatmul.mubr.msk.bf16.gmra.mrb[12].mxu1 %vm537_vm4, %v4225_v48 }
  0xb7   : > { %1158 = vmatprep.mubr.bf16.mxu1 %v3746_v2 }
  0xb9   : > { %3189 = vmatmul.mubr.msk.bf16.gmra.mrb[28].mxu0 %vm537_vm4, %v3170_v26 }
  0xba   : > { %2238 = vmatprep.mubr.bf16.mxu0 %v3746_v2 }
  0xbe   : > { %3069 = vmatmul.mubr.msk.bf16.gmra.mrb[16].mxu1 %vm537_vm4, %v4251_v4 }
  0xbf   : > { %1168 = vmatprep.mubr.bf16.mxu1 %v3746_v2 }
  0xc1   : > { %3211 = vmatmul.mubr.msk.bf16.vlgmr.msra.gmra.mrb[0].mxu0 %vm537_vm4, %v3998_v9  ;;  %v3706_v9 = vld [vmem:[%s4690_s1 + $0x260] ss:$8 sps:$4 sm:$0xff]  }
  0xc2   : > { %2427 = vmatpush1.bf16.msra.mxu0 %v3695_v45  ;;  %2248 = vmatprep.mubr.bf16.mxu0 %v3746_v2 }
  0xc3   : > { %2428 = vmatprep.subr.bf16.mxu0 %v3703_v13 }
  0xc6   : > { %3070 = vmatmul.mubr.msk.bf16.gmra.mrb[20].mxu1 %vm537_vm4, %v4274_v5  ;;  %2429 = vmatpush1.bf16.msra.mxu0 %v3701_v10 }
  0xc7   : > { %1178 = vmatprep.mubr.bf16.mxu1 %v3746_v2  ;;  %2430 = vmatprep.subr.bf16.mxu0 %v3708_v35 }
  0xc9   : > { %3212 = vmatmul.mubr.msk.bf16.gmra.mrb[4].mxu0 %vm537_vm4, %v4046_v52  ;;  %v2421_v52 = vsel %vm562_vm1, %v3238_v40, 0 }
  0xca   : > { %2258 = vmatprep.mubr.bf16.mxu0 %v3746_v2  ;;  %2431 = vmatpush1.bf16.msra.mxu0 %v3706_v9 }
  0xcb   : > { %2432 = vmatprep.subr.bf16.mxu0 %v3711_v20 }
  0xce   : > { %3071 = vmatmul.mubr.msk.bf16.gmra.mrb[24].mxu1 %vm537_vm4, %v4309_v33  ;;  %2433 = vmatpush1.bf16.msra.mxu0 %v3709_v42 }
  0xcf   : > { %1188 = vmatprep.mubr.bf16.mxu1 %v3746_v2  ;;  %3240 = vmatprep.subr.msk.bf16.mxu0 %vm562_vm1, %v3239_v6 }
  0xd1   : > { %3213 = vmatmul.mubr.msk.bf16.gmra.mrb[8].mxu0 %vm537_vm4, %v4093_v28  ;;  %v3715_v28 = vld [vmem:[%s4690_s1 + $0x120] ss:$8 sps:$4 sm:$0xff]  }
  0xd2   : > { %2268 = vmatprep.mubr.bf16.mxu0 %v3746_v2  ;;  %2435 = vmatpush1.bf16.msra.mxu0 %v2421_v52 }
  0xd6   : > { %3072 = vmatmul.mubr.msk.bf16.gmra.mrb[28].mxu1 %vm537_vm4, %v4338_v14 }
  0xd7   : > { %1332 = vmatprep.mubr.bf16.mxu1 %v3746_v2 }
  0xd9   : > { %3214 = vmatmul.mubr.msk.bf16.gmra.mrb[12].mxu0 %vm537_vm4, %v4148_v15 }
  0xda   : > { %2278 = vmatprep.mubr.bf16.mxu0 %v3746_v2 }
  0xde   : > { %3094 = vmatmul.mubr.msk.bf16.vlgmr.msra.gmra.mrb[0].mxu1 %vm537_vm4, %v3916_v1  ;;  %v2116_v1 = vshrl.u32 %v4470_v25, 16 }
  0xdf   : > { %3291 = vmatpush1.bf16.msra.mxu1 %v3715_v28  ;;  %1342 = vmatprep.mubr.bf16.mxu1 %v3746_v2 }
  0xe0   : > { %3287 = vmatprep.subr.bf16.mxu1 %v3716_v60  ;;  %v2118_v36 = vrot.slane %v2116_v1, 4 }
  0xe1   : > { %3215 = vmatmul.mubr.msk.bf16.gmra.mrb[16].mxu0 %vm537_vm4, %v4197_v30 }
  0xe2   : > { %2288 = vmatprep.mubr.bf16.mxu0 %v3746_v2  ;;  %v2122_v55 = vor.u32 %v2121_v49, %v2118_v36 }
  0xe3   : > { %3292 = vmatpush1.bf16.msra.mxu1 %v3717_v18 }
  0xe4   : > { %3288 = vmatprep.subr.bf16.mxu1 %v3718_v59  ;;  %v2123_v54 = vrot.slane %v2122_v55, 4 }
  0xe6   : > { %3095 = vmatmul.mubr.msk.bf16.gmra.mrb[4].mxu1 %vm537_vm4, %v3935_v17  ;;  %v3721_v17 = vld [vmem:[%s4690_s1 + $0x150] ss:$8 sps:$4 sm:$0xff]   ;;  %v2128_v38 = vsel %vm3885_vm3, %v2123_v54, %v2127_v51 }
  0xe7   : > { %1352 = vmatprep.mubr.bf16.mxu1 %v3746_v2  ;;  %3293 = vmatpush1.bf16.msra.mxu1 %v3719_v58 }
  0xe8   : > { %3289 = vmatprep.subr.bf16.mxu1 %v3720_v31 }
  0xe9   : > { %3216 = vmatmul.mubr.msk.bf16.gmra.mrb[20].mxu0 %vm537_vm4, %v4239_v3 }
  0xea   : > { %2298 = vmatprep.mubr.bf16.mxu0 %v3746_v2 }
  0xeb   : > { %3294 = vmatpush1.bf16.msra.mxu1 %v3721_v17 }
  0xec   : > { %3290 = vmatprep.subr.msk.bf16.mxu1 %vm562_vm1, %v3860_v27  ;;  %v2138_v27 = vsel %vm3885_vm3, %v2133_v22, %v2137_v23 }
  0xee   : > { %3096 = vmatmul.mubr.msk.bf16.gmra.mrb[8].mxu1 %vm537_vm4, %v3965_v50  ;;  %v3199_v50 = vcombine.low %v2128_v38, %v2138_v27 }
  0xef   : > { %1362 = vmatprep.mubr.bf16.mxu1 %v3746_v2  ;;  %3295 = vmatpush1.bf16.msra.mxu1 %v3867_v34  ;;  %v2354_v34 = vrot.slane %v4473_v61, 5 }
  0xf1   : > { %3217 = vmatmul.mubr.msk.bf16.gmra.mrb[24].mxu0 %vm537_vm4, %v4346_v53 }
  0xf2   : > { %2308 = vmatprep.mubr.bf16.mxu0 %v3746_v2 }
  0xf6   : > { %3097 = vmatmul.mubr.msk.bf16.gmra.mrb[12].mxu1 %vm537_vm4, %v4030_v32  ;;  %v2356_v32 = vrot.slane %v2354_v34, 4 }
  0xf7   : > { %1372 = vmatprep.mubr.bf16.mxu1 %v3746_v2 }
  0xf9   : > { %3218 = vmatmul.mubr.msk.bf16.gmra.mrb[28].mxu0 %vm537_vm4, %v3199_v50 }
  0xfa   : > { %2458 = vmatprep.mubr.bf16.mxu0 %v3746_v2 }
  0xfe   : > { %3098 = vmatmul.mubr.msk.bf16.gmra.mrb[16].mxu1 %vm537_vm4, %v4175_v62 }
  0xff   : > { %1382 = vmatprep.mubr.bf16.mxu1 %v3746_v2 }
 0x101   : > { %3241 = vmatmul.mubr.msk.bf16.vlgmr.msra.gmra.mrb[0].mxu0 %vm537_vm4, %v4167_v56  ;;  %v2355_v56 = vsel %vm4082_vm7, %v3219_v43, %v2354_v34 }
 0x102   : > { %2468 = vmatprep.mubr.bf16.mxu0 %v3746_v2 }
 0x106   : > { %3099 = vmatmul.mubr.msk.bf16.gmra.mrb[20].mxu1 %vm537_vm4, %v4182_v7 }
 0x107   : > { %1392 = vmatprep.mubr.bf16.mxu1 %v3746_v2 }
 0x109   : > { %3242 = vmatmul.mubr.msk.bf16.gmra.mrb[4].mxu0 %vm537_vm4, %v4225_v48 }
 0x10a   : > { %2478 = vmatprep.mubr.bf16.mxu0 %v3746_v2 }
 0x10e   : > { %3100 = vmatmul.mubr.msk.bf16.gmra.mrb[24].mxu1 %vm537_vm4, %v4191_v41 }
 0x10f   : > { %1402 = vmatprep.mubr.bf16.mxu1 %v3746_v2 }
 0x111   : > { %3243 = vmatmul.mubr.msk.bf16.gmra.mrb[8].mxu0 %vm537_vm4, %v4251_v4 }
 0x112   : > { %2488 = vmatprep.mubr.bf16.mxu0 %v3746_v2 }
 0x116   : > { %3101 = vmatmul.mubr.msk.bf16.gmra.mrb[28].mxu1 %vm537_vm4, %v4460_v12 }
 0x117   : > { %1608 = vmatprep.mubr.bf16.mxu1 %v3746_v2 }
 0x119   : > { %3244 = vmatmul.mubr.msk.bf16.gmra.mrb[12].mxu0 %vm537_vm4, %v4274_v5 }
 0x11a   : > { %2498 = vmatprep.mubr.bf16.mxu0 %v3746_v2 }
 0x11e   : > { %3127 = vmatmul.mubr.msk.bf16.vlgmr.msra.gmra.mrb[16].mxu1 %vm537_vm4, %v4148_v15  ;;  %v2357_v15 = vrot.slane %v253_v24, 5 }
 0x11f   : > { %1618 = vmatprep.mubr.bf16.mxu1 %v3746_v2 }
 0x120   : > { %v2358_v62 = vsel %vm4082_vm7, %v2356_v32, %v2357_v15 }
 0x121   : > { %3245 = vmatmul.mubr.msk.bf16.gmra.mrb[16].mxu0 %vm537_vm4, %v4309_v33  ;;  %v3229_v7 = vcombine.low %v2355_v56, %v2358_v62 }
 0x122   : > { %2508 = vmatprep.mubr.bf16.mxu0 %v3746_v2 }
 0x126   : > { %3128 = vmatmul.mubr.msk.bf16.gmra.mrb[20].mxu1 %vm537_vm4, %v4197_v30 }
 0x127   : > { %1628 = vmatprep.mubr.bf16.mxu1 %v3746_v2 }
 0x129   : > { %3246 = vmatmul.mubr.msk.bf16.gmra.mrb[20].mxu0 %vm537_vm4, %v4338_v14 }
 0x12a   : > { %2518 = vmatprep.mubr.bf16.mxu0 %v3746_v2 }
 0x12e   : > { %3129 = vmatmul.mubr.msk.bf16.gmra.mrb[24].mxu1 %vm537_vm4, %v4239_v3 }
 0x12f   : > { %1638 = vmatprep.mubr.bf16.mxu1 %v3746_v2 }
 0x131   : > { %3247 = vmatmul.mubr.msk.bf16.gmra.mrb[24].mxu0 %vm537_vm4, %v4357_v16 }
 0x132   : > { %2528 = vmatprep.mubr.bf16.mxu0 %v3746_v2 }
 0x136   : > { %3130 = vmatmul.mubr.msk.bf16.gmra.mrb[28].mxu1 %vm537_vm4, %v4346_v53 }
 0x139   : > { %3248 = vmatmul.mubr.msk.bf16.gmra.mrb[28].mxu0 %vm537_vm4, %v3229_v7 }
 0x1b1   : > { %v1334_v41 = vpop.f32.mrb[0].mxu1 }
 0x1b2   : > { %v1336_v30 = vpop.f32.mrb[1].mxu1 }
 0x1b3   : > { %v1338_v48 = vpop.f32.mrb[2].mxu1 }
 0x1b4   : > { %v1340_v3 = vpop.f32.mrb[3].mxu1 }
 0x1b9   : > { %v1344_v4 = vpop.f32.mrb[4].mxu1 }
 0x1ba   : > { %v1346_v5 = vpop.f32.mrb[5].mxu1 }
 0x1bb   : > { %v1348_v2 = vpop.f32.mrb[6].mxu1 }
 0x1bc   : > { %v1350_v33 = vpop.f32.mrb[7].mxu1 }
 0x1c1   : > { %v1354_v14 = vpop.f32.mrb[8].mxu1 }
 0x1c2   : > { %v1356_v16 = vpop.f32.mrb[9].mxu1 }
 0x1c3   : > { %v1358_v8 = vpop.f32.mrb[10].mxu1 }
 0x1c4   : > { %v4639_v39 = vpop.f32.mrb[11].mxu1 }
 0x1c9   : > { %v4641_v11 = vpop.f32.mrb[12].mxu1 }
 0x1ca   : > { %v4643_v53 = vpop.f32.mrb[13].mxu1 }
 0x1cb   : > { %v4645_v29 = vpop.f32.mrb[14].mxu1 }
 0x1cc   : > { %v4647_v0 = vpop.f32.mrb[15].mxu1 }
 0x1d4   : > { %v2460_v12 = vpop.f32.mrb[0].mxu0 }
 0x1d5   : > { %v3296_v63 = vadd.f32 %v2460_v12, %v1334_v41  ;;  %v2462_v25 = vpop.f32.mrb[1].mxu0 }
 0x1d6   : > { %v3297_v61 = vadd.f32 %v2462_v25, %v1336_v30  ;;  %v2464_v26 = vpop.f32.mrb[2].mxu0 }
 0x1d7   : > { %v3298_v45 = vadd.f32 %v2464_v26, %v1338_v48  ;;  %v2466_v13 = vpop.f32.mrb[3].mxu0  ;;  %v2613_v9 = vmul.f32 %v3296_v63, %v3296_v63 }
 0x1d8   : > { %v3270_v10 = vpack.c.bf16 %v3297_v61, %v3296_v63  ;;  %v3299_v35 = vadd.f32 %v2466_v13, %v1340_v3  ;;  %v2614_v42 = vmul.f32 %v3297_v61, %v3297_v61 }
 0x1d9   : > { %v2571_v20 = vadd.f32 %v3298_v45, %v3296_v63  ;;  %v2615_v21 = vmul.f32 %v3298_v45, %v3298_v45 }
 0x1da   : > { %2798 = vst [vmem:[%s4653_s23] sm:$0xff] %v3270_v10  ;;  %v2592_v6 = vadd.f32 %v3299_v35, %v3297_v61  ;;  %v2616_v40 = vmul.f32 %v3299_v35, %v3299_v35  ;;  %v3271_v52 = vpack.c.bf16 %v3299_v35, %v3298_v45 }
 0x1db   : > { %v2645_v28 = vadd.f32 %v2615_v21, %v2613_v9 }
 0x1dc   : > { %v2666_v60 = vadd.f32 %v2616_v40, %v2614_v42  ;;  %2799 = vst [vmem:[%s4653_s23 + $0x8] sm:$0xff] %v3271_v52  ;;  %v2470_v18 = vpop.f32.mrb[4].mxu0 }
 0x1dd   : > { %v3300_v1 = vadd.f32 %v2470_v18, %v1344_v4  ;;  %v2472_v37 = vpop.f32.mrb[5].mxu0 }
 0x1de   : > { %v3301_v46 = vadd.f32 %v2472_v37, %v1346_v5  ;;  %v2474_v47 = vpop.f32.mrb[6].mxu0 }
 0x1df   : > { %v2572_v59 = vadd.f32 %v3300_v1, %v2571_v20  ;;  %v2617_v58 = vmul.f32 %v3300_v1, %v3300_v1  ;;  %v3302_v36 = vadd.f32 %v2474_v47, %v1348_v2  ;;  %v2476_v49 = vpop.f32.mrb[7].mxu0 }
 0x1e0   : > { %v2593_v51 = vadd.f32 %v3301_v46, %v2592_v6  ;;  %v2618_v57 = vmul.f32 %v3301_v46, %v3301_v46  ;;  %v3272_v31 = vpack.c.bf16 %v3301_v46, %v3300_v1  ;;  %v3303_v24 = vadd.f32 %v2476_v49, %v1350_v33 }
 0x1e1   : > { %v2646_v17 = vadd.f32 %v2645_v28, %v2617_v58  ;;  %v2573_v55 = vadd.f32 %v3302_v36, %v2572_v59  ;;  %v2619_v19 = vmul.f32 %v3302_v36, %v3302_v36 }
 0x1e2   : > { %v2667_v44 = vadd.f32 %v2666_v60, %v2618_v57  ;;  %2800 = vst [vmem:[%s4653_s23 + $0x10] sm:$0xff] %v3272_v31  ;;  %v2594_v54 = vadd.f32 %v3303_v24, %v2593_v51  ;;  %v2620_v22 = vmul.f32 %v3303_v24, %v3303_v24  ;;  %v3273_v23 = vpack.c.bf16 %v3303_v24, %v3302_v36 }
 0x1e3   : > { %v2647_v38 = vadd.f32 %v2646_v17, %v2619_v19 }
 0x1e4   : > { %v2668_v27 = vadd.f32 %v2667_v44, %v2620_v22  ;;  %2801 = vst [vmem:[%s4653_s23 + $0x18] sm:$0xff] %v3273_v23  ;;  %v2480_v50 = vpop.f32.mrb[8].mxu0 }
 0x1e5   : > { %v3304_v34 = vadd.f32 %v2480_v50, %v1354_v14  ;;  %v2482_v43 = vpop.f32.mrb[9].mxu0 }
 0x1e6   : > { %v3305_v32 = vadd.f32 %v2482_v43, %v1356_v16  ;;  %v2484_v15 = vpop.f32.mrb[10].mxu0 }
 0x1e7   : > { %v2574_v56 = vadd.f32 %v3304_v34, %v2573_v55  ;;  %v2621_v62 = vmul.f32 %v3304_v34, %v3304_v34  ;;  %v3306_v7 = vadd.f32 %v2484_v15, %v1358_v8  ;;  %v2486_v41 = vpop.f32.mrb[11].mxu0 }
 0x1e8   : > { %v2595_v30 = vadd.f32 %v3305_v32, %v2594_v54  ;;  %v2622_v48 = vmul.f32 %v3305_v32, %v3305_v32  ;;  %v3274_v3 = vpack.c.bf16 %v3305_v32, %v3304_v34  ;;  %v3307_v4 = vadd.f32 %v2486_v41, %v4639_v39 }
 0x1e9   : > { %v2648_v5 = vadd.f32 %v2647_v38, %v2621_v62  ;;  %v2575_v2 = vadd.f32 %v3306_v7, %v2574_v56  ;;  %v2623_v33 = vmul.f32 %v3306_v7, %v3306_v7 }
 0x1ea   : > { %v2669_v12 = vadd.f32 %v2668_v27, %v2622_v48  ;;  %2802 = vst [vmem:[%s4653_s23 + $0x20] sm:$0xff] %v3274_v3  ;;  %v2596_v14 = vadd.f32 %v3307_v4, %v2595_v30  ;;  %v2624_v63 = vmul.f32 %v3307_v4, %v3307_v4  ;;  %v3275_v25 = vpack.c.bf16 %v3307_v4, %v3306_v7 }
 0x1eb   : > { %v2649_v16 = vadd.f32 %v2648_v5, %v2623_v33 }
 0x1ec   : > { %v2670_v61 = vadd.f32 %v2669_v12, %v2624_v63  ;;  %2803 = vst [vmem:[%s4653_s23 + $0x28] sm:$0xff] %v3275_v25  ;;  %v2490_v26 = vpop.f32.mrb[12].mxu0 }
 0x1ed   : > { %v3308_v8 = vadd.f32 %v2490_v26, %v4641_v11  ;;  %v2492_v45 = vpop.f32.mrb[13].mxu0 }
 0x1ee   : > { %v3309_v13 = vadd.f32 %v2492_v45, %v4643_v53  ;;  %v2494_v10 = vpop.f32.mrb[14].mxu0 }
 0x1ef   : > { %v2576_v39 = vadd.f32 %v3308_v8, %v2575_v2  ;;  %v2625_v35 = vmul.f32 %v3308_v8, %v3308_v8  ;;  %v3310_v9 = vadd.f32 %v2494_v10, %v4645_v29  ;;  %v2496_v20 = vpop.f32.mrb[15].mxu0 }
 0x1f0   : > { %v2597_v42 = vadd.f32 %v3309_v13, %v2596_v14  ;;  %v2626_v6 = vmul.f32 %v3309_v13, %v3309_v13  ;;  %v3276_v40 = vpack.c.bf16 %v3309_v13, %v3308_v8  ;;  %v3311_v52 = vadd.f32 %v2496_v20, %v4647_v0 }
 0x1f1   : > { %v1610_v21 = vpop.f32.mrb[16].mxu1  ;;  %v2650_v60 = vadd.f32 %v2649_v16, %v2625_v35  ;;  %v2577_v11 = vadd.f32 %v3310_v9, %v2576_v39  ;;  %v2627_v18 = vmul.f32 %v3310_v9, %v3310_v9 }
 0x1f2   : > { %v1612_v28 = vpop.f32.mrb[17].mxu1  ;;  %v2671_v53 = vadd.f32 %v2670_v61, %v2626_v6  ;;  %2804 = vst [vmem:[%s4653_s23 + $0x30] sm:$0xff] %v3276_v40  ;;  %v2598_v37 = vadd.f32 %v3311_v52, %v2597_v42  ;;  %v2628_v46 = vmul.f32 %v3311_v52, %v3311_v52  ;;  %v3277_v47 = vpack.c.bf16 %v3311_v52, %v3310_v9 }
 0x1f3   : > { %v1614_v1 = vpop.f32.mrb[18].mxu1  ;;  %v2651_v29 = vadd.f32 %v2650_v60, %v2627_v18 }
 0x1f4   : > { %v1616_v59 = vpop.f32.mrb[19].mxu1  ;;  %v2672_v58 = vadd.f32 %v2671_v53, %v2628_v46  ;;  %2805 = vst [vmem:[%s4653_s23 + $0x38] sm:$0xff] %v3277_v47  ;;  %v2500_v36 = vpop.f32.mrb[16].mxu0 }
 0x1f5   : > { %v3312_v49 = vadd.f32 %v2500_v36, %v1610_v21  ;;  %v2502_v51 = vpop.f32.mrb[17].mxu0 }
 0x1f6   : > { %v3313_v57 = vadd.f32 %v2502_v51, %v1612_v28  ;;  %v2504_v31 = vpop.f32.mrb[18].mxu0 }
 0x1f7   : > { %v2578_v0 = vadd.f32 %v3312_v49, %v2577_v11  ;;  %v2629_v24 = vmul.f32 %v3312_v49, %v3312_v49  ;;  %v3314_v17 = vadd.f32 %v2504_v31, %v1614_v1  ;;  %v2506_v55 = vpop.f32.mrb[19].mxu0 }
 0x1f8   : > { %v2599_v44 = vadd.f32 %v3313_v57, %v2598_v37  ;;  %v2630_v54 = vmul.f32 %v3313_v57, %v3313_v57  ;;  %v3278_v22 = vpack.c.bf16 %v3313_v57, %v3312_v49  ;;  %v3315_v23 = vadd.f32 %v2506_v55, %v1616_v59 }
 0x1f9   : > { %v1620_v19 = vpop.f32.mrb[20].mxu1  ;;  %v2652_v27 = vadd.f32 %v2651_v29, %v2629_v24  ;;  %v2579_v50 = vadd.f32 %v3314_v17, %v2578_v0  ;;  %v2631_v34 = vmul.f32 %v3314_v17, %v3314_v17 }
 0x1fa   : > { %v1622_v38 = vpop.f32.mrb[21].mxu1  ;;  %v2673_v32 = vadd.f32 %v2672_v58, %v2630_v54  ;;  %2806 = vst [vmem:[%s4653_s23 + $0x40] sm:$0xff] %v3278_v22  ;;  %v2600_v15 = vadd.f32 %v3315_v23, %v2599_v44  ;;  %v2632_v56 = vmul.f32 %v3315_v23, %v3315_v23  ;;  %v3279_v62 = vpack.c.bf16 %v3315_v23, %v3314_v17 }
 0x1fb   : > { %v1624_v43 = vpop.f32.mrb[22].mxu1  ;;  %v2653_v41 = vadd.f32 %v2652_v27, %v2631_v34 }
 0x1fc   : > { %v1626_v7 = vpop.f32.mrb[23].mxu1  ;;  %v2674_v30 = vadd.f32 %v2673_v32, %v2632_v56  ;;  %2807 = vst [vmem:[%s4653_s23 + $0x48] sm:$0xff] %v3279_v62  ;;  %v2510_v48 = vpop.f32.mrb[20].mxu0 }
 0x1fd   : > { %v3316_v3 = vadd.f32 %v2510_v48, %v1620_v19  ;;  %v2512_v4 = vpop.f32.mrb[21].mxu0 }
 0x1fe   : > { %v3317_v5 = vadd.f32 %v2512_v4, %v1622_v38  ;;  %v2514_v2 = vpop.f32.mrb[22].mxu0 }
 0x1ff   : > { %v2580_v33 = vadd.f32 %v3316_v3, %v2579_v50  ;;  %v2633_v12 = vmul.f32 %v3316_v3, %v3316_v3  ;;  %v3318_v14 = vadd.f32 %v2514_v2, %v1624_v43  ;;  %v2516_v63 = vpop.f32.mrb[23].mxu0 }
 0x200   : > { %v2601_v16 = vadd.f32 %v3317_v5, %v2600_v15  ;;  %v2634_v61 = vmul.f32 %v3317_v5, %v3317_v5  ;;  %v3280_v26 = vpack.c.bf16 %v3317_v5, %v3316_v3  ;;  %v3319_v8 = vadd.f32 %v2516_v63, %v1626_v7 }
 0x201   : > { %v1630_v25 = vpop.f32.mrb[24].mxu1  ;;  %v2654_v13 = vadd.f32 %v2653_v41, %v2633_v12  ;;  %v2581_v10 = vadd.f32 %v3318_v14, %v2580_v33  ;;  %v2635_v39 = vmul.f32 %v3318_v14, %v3318_v14 }
 0x202   : > { %v1632_v45 = vpop.f32.mrb[25].mxu1  ;;  %v2675_v9 = vadd.f32 %v2674_v30, %v2634_v61  ;;  %2808 = vst [vmem:[%s4653_s23 + $0x50] sm:$0xff] %v3280_v26  ;;  %v2602_v20 = vadd.f32 %v3319_v8, %v2601_v16  ;;  %v2636_v21 = vmul.f32 %v3319_v8, %v3319_v8  ;;  %v3281_v42 = vpack.c.bf16 %v3319_v8, %v3318_v14 }
 0x203   : > { %v1634_v35 = vpop.f32.mrb[26].mxu1  ;;  %v2655_v40 = vadd.f32 %v2654_v13, %v2635_v39 }
 0x204   : > { %v1636_v6 = vpop.f32.mrb[27].mxu1  ;;  %v2676_v52 = vadd.f32 %v2675_v9, %v2636_v21  ;;  %2809 = vst [vmem:[%s4653_s23 + $0x58] sm:$0xff] %v3281_v42  ;;  %v2520_v28 = vpop.f32.mrb[24].mxu0 }
 0x205   : > { %v3320_v60 = vadd.f32 %v2520_v28, %v1630_v25  ;;  %v2522_v11 = vpop.f32.mrb[25].mxu0 }
 0x206   : > { %v3321_v18 = vadd.f32 %v2522_v11, %v1632_v45  ;;  %v2524_v1 = vpop.f32.mrb[26].mxu0 }
 0x207   : > { %v2582_v53 = vadd.f32 %v3320_v60, %v2581_v10  ;;  %v2637_v37 = vmul.f32 %v3320_v60, %v3320_v60  ;;  %v3322_v46 = vadd.f32 %v2524_v1, %v1634_v35  ;;  %v2526_v47 = vpop.f32.mrb[27].mxu0 }
 0x208   : > { %v2603_v29 = vadd.f32 %v3321_v18, %v2602_v20  ;;  %v2638_v58 = vmul.f32 %v3321_v18, %v3321_v18  ;;  %v3282_v36 = vpack.c.bf16 %v3321_v18, %v3320_v60  ;;  %v3323_v49 = vadd.f32 %v2526_v47, %v1636_v6 }
 0x209   : > { %v1640_v59 = vpop.f32.mrb[28].mxu1  ;;  %v2656_v57 = vadd.f32 %v2655_v40, %v2637_v37  ;;  %v2583_v31 = vadd.f32 %v3322_v46, %v2582_v53  ;;  %v2639_v0 = vmul.f32 %v3322_v46, %v3322_v46 }
 0x20a   : > { %v1642_v51 = vpop.f32.mrb[29].mxu1  ;;  %v2677_v17 = vadd.f32 %v2676_v52, %v2638_v58  ;;  %2810 = vst [vmem:[%s4653_s23 + $0x60] sm:$0xff] %v3282_v36  ;;  %v2604_v55 = vadd.f32 %v3323_v49, %v2603_v29  ;;  %v2640_v19 = vmul.f32 %v3323_v49, %v3323_v49  ;;  %v3283_v44 = vpack.c.bf16 %v3323_v49, %v3322_v46 }
 0x20b   : > { %v1644_v24 = vpop.f32.mrb[30].mxu1  ;;  %v2657_v22 = vadd.f32 %v2656_v57, %v2639_v0 }
 0x20c   : > { %v1646_v54 = vpop.f32.mrb[31].mxu1  ;;  %v2678_v23 = vadd.f32 %v2677_v17, %v2640_v19  ;;  %2811 = vst [vmem:[%s4653_s23 + $0x68] sm:$0xff] %v3283_v44  ;;  %v2530_v38 = vpop.f32.mrb[28].mxu0 }
 0x20d   : > { %v3324_v27 = vadd.f32 %v2530_v38, %v1640_v59  ;;  %v2532_v50 = vpop.f32.mrb[29].mxu0 }
 0x20e   : > { %v3325_v34 = vadd.f32 %v2532_v50, %v1642_v51  ;;  %v2534_v43 = vpop.f32.mrb[30].mxu0 }
 0x20f   : > { %v2584_v32 = vadd.f32 %v3324_v27, %v2583_v31  ;;  %v2641_v15 = vmul.f32 %v3324_v27, %v3324_v27  ;;  %v3326_v56 = vadd.f32 %v2534_v43, %v1644_v24  ;;  %v2536_v62 = vpop.f32.mrb[31].mxu0 }
 0x210   : > { %v2605_v7 = vadd.f32 %v3325_v34, %v2604_v55  ;;  %v2642_v41 = vmul.f32 %v3325_v34, %v3325_v34  ;;  %v3284_v30 = vpack.c.bf16 %v3325_v34, %v3324_v27  ;;  %v3327_v48 = vadd.f32 %v2536_v62, %v1646_v54 }
 0x211   : > { %v2658_v3 = vadd.f32 %v2657_v22, %v2641_v15  ;;  %v2585_v4 = vadd.f32 %v3326_v56, %v2584_v32  ;;  %v2643_v5 = vmul.f32 %v3326_v56, %v3326_v56 }
 0x212   : > { %v2679_v2 = vadd.f32 %v2678_v23, %v2642_v41  ;;  %2812 = vst [vmem:[%s4653_s23 + $0x70] sm:$0xff] %v3284_v30  ;;  %v2606_v33 = vadd.f32 %v3327_v48, %v2605_v7  ;;  %v2644_v12 = vmul.f32 %v3327_v48, %v3327_v48  ;;  %v3285_v14 = vpack.c.bf16 %v3327_v48, %v3326_v56 }
 0x213   : > { %v2586_v63 = vrot.slane %v2585_v4, 4  ;;  %v2659_v25 = vadd.f32 %v2658_v3, %v2643_v5 }
 0x214   : > { %v2607_v16 = vrot.slane %v2606_v33, 4  ;;  %v2680_v61 = vadd.f32 %v2679_v2, %v2644_v12  ;;  %2813 = vst [vmem:[%s4653_s23 + $0x78] sm:$0xff] %v3285_v14 }
 0x215   : > { %v2587_v26 = vadd.f32 %v2586_v63, %v2585_v4  ;;  %v2660_v8 = vrot.slane %v2659_v25, 4 }
 0x216   : > { %v2608_v45 = vadd.f32 %v2607_v16, %v2606_v33  ;;  %v2681_v13 = vrot.slane %v2680_v61, 4 }
 0x217   : > { %v2588_v10 = vrot.slane %v2587_v26, 2  ;;  %v2661_v39 = vadd.f32 %v2660_v8, %v2659_v25 }
 0x218   : > { %v2609_v35 = vrot.slane %v2608_v45, 2  ;;  %v2682_v9 = vadd.f32 %v2681_v13, %v2680_v61 }
 0x219   : > { %v2589_v20 = vadd.f32 %v2588_v10, %v2587_v26  ;;  %v2662_v21 = vrot.slane %v2661_v39, 2 }
 0x21a   : > { %v2610_v42 = vadd.f32 %v2609_v35, %v2608_v45  ;;  %v2683_v6 = vrot.slane %v2682_v9, 2 }
 0x21b   : > { %v2590_v40 = vrot.slane %v2589_v20, 1  ;;  %v2663_v52 = vadd.f32 %v2662_v21, %v2661_v39 }
 0x21c   : > { %v2611_v28 = vrot.slane %v2610_v42, 1  ;;  %v2684_v60 = vadd.f32 %v2683_v6, %v2682_v9 }
 0x21d   : > { %v2664_v11 = vrot.slane %v2663_v52, 1  ;;  %v2591_v1 = vadd.f32 %v2590_v40, %v2589_v20 }
 0x21e   : > { %v2685_v18 = vrot.slane %v2684_v60, 1  ;;  %v2612_v37 = vadd.f32 %v2611_v28, %v2610_v42 }
 0x21f   : > { %v2665_v53 = vadd.f32 %v2664_v11, %v2663_v52 }
 0x220   : > { %v2686_v46 = vadd.f32 %v2685_v18, %v2684_v60 }
 0x221   : > { %v2688_v47 = vsel %vm2687_vm8, %v2591_v1, %v2665_v53 }
 0x222   : > { %v2689_v59 = vsel %vm2687_vm8, %v2612_v37, %v2686_v46 }
 0x223   : > { %v2692_v29 = vcombine.low %v2688_v47, %v2689_v59 }
 0x225   : > { %3249 = vst.sshfl [vmem:[%s218_s27] sm:$0x33 pattern:$0x76325410] %v2692_v29 }
 0x226 PF: > { %s14_s14 = sadd.s32 1, %s3744_s14   ;;  %s4697_s12 = smov %s3740_s13 }
 0x227   : > { %p11_p5 = scmp.ge.s32.totalorder %s14_s14, 4   ;;  %s4698_s13 = smov %s4700_s15 }
 0x229   :  { %13 = sbr.rel (!%p11_p5) target bundleno = 2 (0x2), region = 79 }

// kernel: video_classifier_forward.5
= control target key start
LH: loop header
LB: loop body
LE: loop exit
PB: predicated region body
PF: predicated region fallthrough
CT: control target
= control target key end

     0   :  { %s827_s12 = smov 0   ;;  %s829_s13 = smov 0   ;;  %s1713_s0 = inlined_call_operand.vmem [shape: bf16[2,8,16,512], index: 0, kind: input, shape index: {}]   ;;  %s1714_s1 = inlined_call_operand.vmem [shape: f32[1,512], index: 1, kind: input, shape index: {}]   ;;  %s1715_s2 = inlined_call_operand.vmem [shape: f32[1,512], index: 2, kind: input, shape index: {}]   ;;  %s1716_s3 = inlined_call_operand.vmem [shape: f32[2,1,1,512], index: 3, kind: output, shape index: {}]  }
   0x1   :  { %s831_s14 = smov 0  }
   0x2 LB: > { %s25_s15 = sadd.s32 1, %s800_s13  ;;  %p750_p0 = scmp.ge.s32.totalorder %s804_s14, 1  ;;  %s804_s14 = sphi %s831_s14, %s13_s14   ;;  %s800_s13 = sphi %s829_s13, %s1836_s13   ;;  %s796_s12 = sphi %s827_s12, %s1835_s12  }
   0x3   : > { %p27_p1 = scmp.ge.s32.totalorder %s25_s15, 2  ;;  %p159_p2 = scmp.lt.s32.totalorder %s804_s14, 3 }
   0x5   : > { %s1838_s15 = smov (%p27_p1, %s25_s15), 0  ;;  %p160_p3 = pnand %p750_p0, %p159_p2 }
   0x7   : > { %163 = sbr.rel (%p160_p3) target bundleno = 130 (0x82), region = 32 }
   0xe   : > { %p192_p4 = scmp.lt.s32.totalorder %s796_s12, 1  ;;  %v1717_v0 = vlaneseq  ;;  %v306_v6 = vld [vmem:[%s1714_s1] sm:$0xf] }
  0x10   : > { %s1840_s12 = smov (!%p192_p4, %s796_s12), 1  ;;  %v849_v1 = vshrl.u32 %v1717_v0, 7 }
  0x11   : > { %s756_s16 = sshll.u32 %s1840_s12, 8  ;;  %s753_s24 = sshll.u32 %s1840_s12, 2 }
  0x12   : > { %1723 = vst [vmem:[#allocation2_spill] sm:$0xff] %v849_v1  ;;  %s854_s19 = scalar_lea.vmem %s1713_s0, %s756_s16  ;;  %v1721_v2 = vsub.s32 0, %v849_v1  ;;  %v1720_v3 = vsub.s32 1, %v849_v1  ;;  %v1719_v4 = vsub.s32 2, %v849_v1  ;;  %v1718_v5 = vsub.s32 3, %v849_v1  ;;  %s209_s27 = scalar_lea.vmem %s1716_s3, %s753_s24 }
  0x13   : > { %v864_v7 = vld [vmem:[%s854_s19] sm:$0xff]  ;;  %v867_v8 = vld [vmem:[%s854_s19 + $0x8] sm:$0xff]  ;;  %v870_v9 = vld [vmem:[%s854_s19 + $0x10] sm:$0xff] }
  0x14   : > { %v873_v10 = vld [vmem:[%s854_s19 + $0x18] sm:$0xff]  ;;  %v876_v11 = vld [vmem:[%s854_s19 + $0x20] sm:$0xff]  ;;  %v879_v12 = vld [vmem:[%s854_s19 + $0x28] sm:$0xff]  ;;  %v883_v13 = vrot.slane %v306_v6, %v1721_v2  ;;  %v887_v14 = vrot.slane %v306_v6, %v1720_v3  ;;  %v891_v15 = vrot.slane %v306_v6, %v1719_v4  ;;  %v895_v16 = vrot.slane %v306_v6, %v1718_v5 }
  0x15   : > { %v898_v17 = vld [vmem:[%s854_s19 + $0x30] sm:$0xff]  ;;  %v901_v18 = vld [vmem:[%s854_s19 + $0x38] sm:$0xff]  ;;  %v242_v19 = vunpack.c.l.bf16 %v864_v7  ;;  %v243_v20 = vunpack.c.h.bf16 %v864_v7  ;;  %v244_v21 = vunpack.c.l.bf16 %v867_v8  ;;  %v245_v22 = vunpack.c.h.bf16 %v867_v8  ;;  %v908_v23 = vld [vmem:[%s854_s19 + $0x40] sm:$0xff] }
  0x16   : > { %v911_v24 = vld [vmem:[%s854_s19 + $0x48] sm:$0xff]  ;;  %v246_v25 = vunpack.c.l.bf16 %v870_v9  ;;  %v247_v26 = vunpack.c.h.bf16 %v870_v9  ;;  %v248_v27 = vunpack.c.l.bf16 %v873_v10  ;;  %v249_v28 = vunpack.c.h.bf16 %v873_v10  ;;  %v918_v29 = vld [vmem:[%s854_s19 + $0x50] sm:$0xff]  ;;  %v921_v30 = vld [vmem:[%s854_s19 + $0x58] sm:$0xff] }
  0x17   : > { %v250_v31 = vunpack.c.l.bf16 %v876_v11  ;;  %v251_v32 = vunpack.c.h.bf16 %v876_v11  ;;  %v252_v33 = vunpack.c.l.bf16 %v879_v12  ;;  %v253_v34 = vunpack.c.h.bf16 %v879_v12  ;;  %v928_v35 = vld [vmem:[%s854_s19 + $0x60] sm:$0xff]  ;;  %v931_v36 = vld [vmem:[%s854_s19 + $0x68] sm:$0xff]  ;;  %v938_v41 = vld [vmem:[%s854_s19 + $0x70] sm:$0xff] }
  0x18   : > { %v254_v37 = vunpack.c.l.bf16 %v898_v17  ;;  %v255_v38 = vunpack.c.h.bf16 %v898_v17  ;;  %v256_v39 = vunpack.c.l.bf16 %v901_v18  ;;  %v257_v40 = vunpack.c.h.bf16 %v901_v18  ;;  %v941_v42 = vld [vmem:[%s854_s19 + $0x78] sm:$0xff]  ;;  %v948_v47 = vld [vmem:[%s854_s19 + $0x80] sm:$0xff]  ;;  %v951_v48 = vld [vmem:[%s854_s19 + $0x88] sm:$0xff] }
  0x19   : > { %v258_v43 = vunpack.c.l.bf16 %v908_v23  ;;  %v958_v53 = vld [vmem:[%s854_s19 + $0x90] sm:$0xff]  ;;  %v961_v54 = vld [vmem:[%s854_s19 + $0x98] sm:$0xff]  ;;  %v968_v59 = vld [vmem:[%s854_s19 + $0xa0] sm:$0xff]  ;;  %v1042_v50 = vmul.f32 %v883_v13, %v242_v19  ;;  %v1047_v44 = vmul.f32 %v887_v14, %v243_v20  ;;  %v1052_v2 = vmul.f32 %v891_v15, %v244_v21 }
  0x1a   : > { %v971_v60 = vld [vmem:[%s854_s19 + $0xa8] sm:$0xff]  ;;  %v978_v0 = vld [vmem:[%s854_s19 + $0xb0] sm:$0xff]  ;;  %v981_v5 = vld [vmem:[%s854_s19 + $0xb8] sm:$0xff]  ;;  %v1057_v4 = vmul.f32 %v895_v16, %v245_v22  ;;  %v1062_v19 = vmul.f32 %v883_v13, %v246_v25  ;;  %v1067_v7 = vmul.f32 %v887_v14, %v247_v26  ;;  %v1072_v20 = vmul.f32 %v891_v15, %v248_v27 }
  0x1b   : > { %v988_v62 = vld [vmem:[%s854_s19 + $0xc0] sm:$0xff]  ;;  %v991_v58 = vld [vmem:[%s854_s19 + $0xc8] sm:$0xff]  ;;  %v998_v3 = vld [vmem:[%s854_s19 + $0xd0] sm:$0xff]  ;;  %v1077_v8 = vmul.f32 %v895_v16, %v249_v28  ;;  %v1082_v21 = vmul.f32 %v883_v13, %v250_v31  ;;  %v1087_v9 = vmul.f32 %v887_v14, %v251_v32  ;;  %v1092_v22 = vmul.f32 %v891_v15, %v252_v33 }
  0x1c   : > { %v1001_v56 = vld [vmem:[%s854_s19 + $0xd8] sm:$0xff]  ;;  %v1008_v52 = vld [vmem:[%s854_s19 + $0xe0] sm:$0xff]  ;;  %v1011_v63 = vld [vmem:[%s854_s19 + $0xe8] sm:$0xff]  ;;  %v1097_v10 = vmul.f32 %v895_v16, %v253_v34  ;;  %v1102_v25 = vmul.f32 %v883_v13, %v254_v37  ;;  %v1107_v11 = vmul.f32 %v887_v14, %v255_v38  ;;  %v1112_v26 = vmul.f32 %v891_v15, %v256_v39 }
  0x1d   : > { %v1018_v49 = vld [vmem:[%s854_s19 + $0xf0] sm:$0xff]  ;;  %v1021_v61 = vld [vmem:[%s854_s19 + $0xf8] sm:$0xff]  ;;  %v1117_v12 = vmul.f32 %v895_v16, %v257_v40  ;;  %v1122_v27 = vmul.f32 %v883_v13, %v258_v43  ;;  %v1724_v17 = vunpack.c.h.bf16 %v908_v23  ;;  %v1725_v31 = vunpack.c.l.bf16 %v911_v24 }
  0x1e   : > { %v1726_v18 = vunpack.c.h.bf16 %v911_v24  ;;  %v1727_v34 = vunpack.c.l.bf16 %v918_v29  ;;  %v1728_v23 = vunpack.c.h.bf16 %v918_v29  ;;  %v1729_v39 = vunpack.c.l.bf16 %v921_v30 }
  0x1f   : > { %v1127_v28 = vmul.f32 %v887_v14, %v1724_v17  ;;  %v1132_v32 = vmul.f32 %v891_v15, %v1725_v31  ;;  %v1730_v24 = vunpack.c.h.bf16 %v921_v30  ;;  %v1731_v17 = vunpack.c.l.bf16 %v928_v35 }
  0x20   : > { %v1137_v33 = vmul.f32 %v895_v16, %v1726_v18  ;;  %v1142_v37 = vmul.f32 %v883_v13, %v1727_v34  ;;  %v1147_v38 = vmul.f32 %v887_v14, %v1728_v23  ;;  %v1152_v40 = vmul.f32 %v891_v15, %v1729_v39 }
  0x21   : > { %v1157_v43 = vmul.f32 %v895_v16, %v1730_v24  ;;  %v1162_v31 = vmul.f32 %v883_v13, %v1731_v17  ;;  %v1732_v29 = vunpack.c.h.bf16 %v928_v35  ;;  %v1733_v34 = vunpack.c.l.bf16 %v931_v36 }
  0x22   : > { %v1734_v30 = vunpack.c.h.bf16 %v931_v36  ;;  %v1735_v24 = vunpack.c.l.bf16 %v938_v41  ;;  %v1736_v35 = vunpack.c.h.bf16 %v938_v41  ;;  %v1737_v57 = vunpack.c.l.bf16 %v941_v42 }
  0x23   : > { %v1167_v18 = vmul.f32 %v887_v14, %v1732_v29  ;;  %v1172_v23 = vmul.f32 %v891_v15, %v1733_v34  ;;  %v1738_v36 = vunpack.c.h.bf16 %v941_v42  ;;  %v1739_v46 = vunpack.c.l.bf16 %v948_v47 }
  0x24   : > { %v1177_v39 = vmul.f32 %v895_v16, %v1734_v30  ;;  %v1182_v17 = vmul.f32 %v883_v13, %v1735_v24  ;;  %v1187_v29 = vmul.f32 %v887_v14, %v1736_v35  ;;  %v1192_v34 = vmul.f32 %v891_v15, %v1737_v57 }
  0x25   : > { %v1197_v30 = vmul.f32 %v895_v16, %v1738_v36  ;;  %v1202_v24 = vmul.f32 %v883_v13, %v1739_v46  ;;  %v1740_v41 = vunpack.c.h.bf16 %v948_v47  ;;  %v1741_v6 = vunpack.c.l.bf16 %v951_v48 }
  0x26   : > { %v1742_v42 = vunpack.c.h.bf16 %v951_v48  ;;  %v1743_v55 = vunpack.c.l.bf16 %v958_v53  ;;  %v1744_v47 = vunpack.c.h.bf16 %v958_v53  ;;  %v1746_v45 = vunpack.c.l.bf16 %v961_v54 }
  0x27   : > { %v1207_v35 = vmul.f32 %v887_v14, %v1740_v41  ;;  %v1212_v57 = vmul.f32 %v891_v15, %v1741_v6  ;;  %v1747_v48 = vunpack.c.h.bf16 %v961_v54  ;;  %v1748_v51 = vunpack.c.l.bf16 %v968_v59 }
  0x28   : > { %v1217_v36 = vmul.f32 %v895_v16, %v1742_v42  ;;  %v1222_v46 = vmul.f32 %v883_v13, %v1743_v55  ;;  %v1227_v41 = vmul.f32 %v887_v14, %v1744_v47  ;;  %v1232_v6 = vmul.f32 %v891_v15, %v1746_v45 }
  0x29   : > { %v1237_v42 = vmul.f32 %v895_v16, %v1747_v48  ;;  %v1242_v55 = vmul.f32 %v883_v13, %v1748_v51  ;;  %v1750_v53 = vunpack.c.h.bf16 %v968_v59  ;;  %v1754_v54 = vunpack.c.h.bf16 %v971_v60  ;;  %v392_v51 = vld [vmem:[%s1715_s2] sm:$0xf] }
  0x2a   : > { %1745 = vst [vmem:[#allocation3_spill] sm:$0xff] %v1227_v41  ;;  %v1752_v41 = vunpack.c.l.bf16 %v971_v60 }
  0x2b   : > { %1749 = vst [vmem:[#allocation4_spill] sm:$0xff] %v1242_v55  ;;  %v1247_v47 = vmul.f32 %v887_v14, %v1750_v53  ;;  %v1257_v48 = vmul.f32 %v895_v16, %v1754_v54  ;;  %v1756_v55 = vunpack.c.l.bf16 %v978_v0  ;;  %v1757_v53 = vunpack.c.h.bf16 %v978_v0 }
  0x2c   : > { %v1252_v45 = vmul.f32 %v891_v15, %v1752_v41  ;;  %v1759_v41 = vunpack.c.l.bf16 %v981_v5  ;;  %v1761_v54 = vunpack.c.h.bf16 %v981_v5  ;;  %v1765_v0 = vunpack.c.h.bf16 %v988_v62 }
  0x2d   : > { %1751 = vst [vmem:[#allocation5_spill] sm:$0xff] %v1247_v47  ;;  %1755 = vst [vmem:[#allocation7_spill] sm:$0xff] %v1257_v48  ;;  %v1265_v59 = vmul.f32 %v883_v13, %v1756_v55  ;;  %v1270_v47 = vmul.f32 %v887_v14, %v1757_v53  ;;  %v1769_v5 = vunpack.c.h.bf16 %v991_v58 }
  0x2e   : > { %1753 = vst [vmem:[#allocation6_spill] sm:$0xff] %v1252_v45  ;;  %v1275_v60 = vmul.f32 %v891_v15, %v1759_v41  ;;  %v1280_v48 = vmul.f32 %v895_v16, %v1761_v54  ;;  %v1763_v45 = vunpack.c.l.bf16 %v988_v62  ;;  %v1290_v53 = vmul.f32 %v887_v14, %v1765_v0 }
  0x2f   : > { %1758 = vst [vmem:[#allocation8_spill] sm:$0xff] %v1270_v47  ;;  %v1767_v47 = vunpack.c.l.bf16 %v991_v58  ;;  %v1300_v54 = vmul.f32 %v895_v16, %v1769_v5  ;;  %v1773_v0 = vsub.s32 2, %v849_v1  ;;  %v1775_v58 = vunpack.c.l.bf16 %v998_v3 }
  0x30   : > { %1760 = vst [vmem:[#allocation9_spill] sm:$0xff] %v1275_v60  ;;  %1762 = vst [vmem:[#allocation10_spill] sm:$0xff] %v1280_v48  ;;  %v1285_v55 = vmul.f32 %v883_v13, %v1763_v45  ;;  %v1771_v48 = vsub.s32 0, %v849_v1  ;;  %v1772_v45 = vsub.s32 1, %v849_v1 }
  0x31   : > { %1766 = vst [vmem:[#allocation12_spill] sm:$0xff] %v1290_v53  ;;  %v1295_v41 = vmul.f32 %v891_v15, %v1767_v47  ;;  %1770 = vst [vmem:[#allocation14_spill] sm:$0xff] %v1300_v54  ;;  %v1312_v53 = vrot.slane %v392_v51, %v1773_v0  ;;  %v1774_v47 = vsub.s32 3, %v849_v1  ;;  %v1321_v5 = vmul.f32 %v883_v13, %v1775_v58 }
  0x32   : > { %1764 = vst [vmem:[#allocation11_spill] sm:$0xff] %v1285_v55  ;;  %v1304_v60 = vrot.slane %v392_v51, %v1771_v48  ;;  %v1308_v62 = vrot.slane %v392_v51, %v1772_v45  ;;  %v1776_v48 = vunpack.c.h.bf16 %v998_v3  ;;  %v1777_v45 = vunpack.c.l.bf16 %v1001_v56 }
  0x33   : > { %1768 = vst [vmem:[#allocation13_spill] sm:$0xff] %v1295_v41  ;;  %v1316_v41 = vrot.slane %v392_v51, %v1774_v47  ;;  %v1778_v0 = vunpack.c.h.bf16 %v1001_v56  ;;  %v1780_v47 = vunpack.c.l.bf16 %v1008_v52  ;;  %v1781_v3 = vunpack.c.h.bf16 %v1008_v52 }
  0x34   : > { %v1326_v54 = vmul.f32 %v887_v14, %v1776_v48  ;;  %v1331_v55 = vmul.f32 %v891_v15, %v1777_v45  ;;  %v1783_v1 = vunpack.c.l.bf16 %v1011_v63  ;;  %v1784_v56 = vunpack.c.h.bf16 %v1011_v63 }
  0x35   : > { %v1336_v51 = vmul.f32 %v895_v16, %v1778_v0  ;;  %v1341_v58 = vmul.f32 %v883_v13, %v1780_v47  ;;  %v1346_v48 = vmul.f32 %v887_v14, %v1781_v3  ;;  %v1787_v52 = vunpack.c.h.bf16 %v1018_v49 }
  0x36   : > { %v1351_v45 = vmul.f32 %v891_v15, %v1783_v1  ;;  %v1356_v0 = vmul.f32 %v895_v16, %v1784_v56  ;;  %v1789_v63 = vunpack.c.h.bf16 %v1021_v61 }
  0x37   : > { %1779 = vst [vmem:[#allocation15_spill] sm:$0xff] %v1336_v51  ;;  %1782 = vst [vmem:[#allocation16_spill] sm:$0xff] %v1346_v48  ;;  %v1786_v51 = vunpack.c.l.bf16 %v1018_v49  ;;  %v1366_v3 = vmul.f32 %v887_v14, %v1787_v52  ;;  %v1788_v48 = vunpack.c.l.bf16 %v1021_v61  ;;  %v1388_v14 = vadd.f32 %v1312_v53, %v1052_v2 }
  0x38   : > { %1785 = vst [vmem:[#allocation17_spill] sm:$0xff] %v1356_v0  ;;  %v1376_v56 = vmul.f32 %v895_v16, %v1789_v63  ;;  %v1380_v0 = vadd.f32 %v1304_v60, %v1042_v50  ;;  %v1396_v16 = vadd.f32 %v1304_v60, %v1062_v19  ;;  %v1400_v49 = vadd.f32 %v1308_v62, %v1067_v7  ;;  %v1797_v63 = vld [vmem:[#allocation7_spill] sm:$0xff] }
  0x39   : > { %v1361_v47 = vmul.f32 %v883_v13, %v1786_v51  ;;  %v1371_v1 = vmul.f32 %v891_v15, %v1788_v48  ;;  %v1384_v13 = vadd.f32 %v1308_v62, %v1047_v44  ;;  %v1392_v15 = vadd.f32 %v1316_v41, %v1057_v4  ;;  %v1793_v51 = vld [vmem:[#allocation5_spill] sm:$0xff]  ;;  %v1795_v48 = vld [vmem:[#allocation6_spill] sm:$0xff] }
  0x3a   : > { %v1404_v44 = vadd.f32 %v1312_v53, %v1072_v20  ;;  %v1408_v2 = vadd.f32 %v1316_v41, %v1077_v8  ;;  %v1412_v4 = vadd.f32 %v1304_v60, %v1082_v21  ;;  %v1416_v50 = vadd.f32 %v1308_v62, %v1087_v9 }
  0x3b   : > { %v1420_v61 = vadd.f32 %v1312_v53, %v1092_v22  ;;  %v1424_v19 = vadd.f32 %v1316_v41, %v1097_v10  ;;  %v1428_v7 = vadd.f32 %v1304_v60, %v1102_v25  ;;  %v1432_v20 = vadd.f32 %v1308_v62, %v1107_v11 }
  0x3c   : > { %v1436_v8 = vadd.f32 %v1312_v53, %v1112_v26  ;;  %v1440_v21 = vadd.f32 %v1316_v41, %v1117_v12  ;;  %v1444_v9 = vadd.f32 %v1304_v60, %v1122_v27  ;;  %v1448_v22 = vadd.f32 %v1308_v62, %v1127_v28 }
  0x3d   : > { %v1452_v10 = vadd.f32 %v1312_v53, %v1132_v32  ;;  %v1456_v25 = vadd.f32 %v1316_v41, %v1137_v33  ;;  %v1460_v11 = vadd.f32 %v1304_v60, %v1142_v37  ;;  %v1464_v26 = vadd.f32 %v1308_v62, %v1147_v38 }
  0x3e   : > { %v1468_v12 = vadd.f32 %v1312_v53, %v1152_v40  ;;  %v1472_v27 = vadd.f32 %v1316_v41, %v1157_v43  ;;  %v1476_v28 = vadd.f32 %v1304_v60, %v1162_v31  ;;  %v1480_v32 = vadd.f32 %v1308_v62, %v1167_v18 }
  0x3f   : > { %v1484_v33 = vadd.f32 %v1312_v53, %v1172_v23  ;;  %v1488_v37 = vadd.f32 %v1316_v41, %v1177_v39  ;;  %v1492_v38 = vadd.f32 %v1304_v60, %v1182_v17  ;;  %v1496_v40 = vadd.f32 %v1308_v62, %v1187_v29 }
  0x40   : > { %v1500_v43 = vadd.f32 %v1312_v53, %v1192_v34  ;;  %v1504_v31 = vadd.f32 %v1316_v41, %v1197_v30  ;;  %v1508_v18 = vadd.f32 %v1304_v60, %v1202_v24  ;;  %v1512_v23 = vadd.f32 %v1308_v62, %v1207_v35  ;;  %v1790_v34 = vld [vmem:[#allocation3_spill] sm:$0xff] }
  0x41   : > { %v1516_v39 = vadd.f32 %v1312_v53, %v1212_v57  ;;  %v1520_v17 = vadd.f32 %v1316_v41, %v1217_v36  ;;  %v1524_v29 = vadd.f32 %v1304_v60, %v1222_v46  ;;  %v1528_v30 = vadd.f32 %v1308_v62, %v1790_v34  ;;  %v1791_v57 = vld [vmem:[#allocation4_spill] sm:$0xff] }
  0x42   : > { %v1532_v24 = vadd.f32 %v1312_v53, %v1232_v6  ;;  %v1536_v35 = vadd.f32 %v1316_v41, %v1237_v42  ;;  %v1540_v36 = vadd.f32 %v1304_v60, %v1791_v57  ;;  %v1544_v46 = vadd.f32 %v1308_v62, %v1793_v51  ;;  %v1800_v34 = vld [vmem:[#allocation8_spill] sm:$0xff] }
  0x43   : > { %v1548_v52 = vadd.f32 %v1312_v53, %v1795_v48  ;;  %v1552_v6 = vadd.f32 %v1316_v41, %v1797_v63  ;;  %v1556_v42 = vadd.f32 %v1304_v60, %v1265_v59  ;;  %v1560_v57 = vadd.f32 %v1308_v62, %v1800_v34 }
  0x44   : > { %1792 = vst [vmem:[#allocation3_spill] sm:$0xff] %v1540_v36  ;;  %1794 = vst [vmem:[#allocation4_spill] sm:$0xff] %v1544_v46  ;;  %v1802_v36 = vld [vmem:[#allocation9_spill] sm:$0xff]  ;;  %v1803_v46 = vld [vmem:[#allocation10_spill] sm:$0xff] }
  0x45   : > { %1796 = vst [vmem:[#allocation5_spill] sm:$0xff] %v1548_v52  ;;  %1798 = vst [vmem:[#allocation6_spill] sm:$0xff] %v1552_v6  ;;  %v1564_v51 = vadd.f32 %v1312_v53, %v1802_v36  ;;  %v1568_v48 = vadd.f32 %v1316_v41, %v1803_v46  ;;  %v1804_v52 = vld [vmem:[#allocation11_spill] sm:$0xff]  ;;  %v1805_v6 = vld [vmem:[#allocation12_spill] sm:$0xff]  ;;  %v1588_v46 = vadd.f32 %v1304_v60, %v1321_v5 }
  0x46   : > { %1799 = vst [vmem:[#allocation7_spill] sm:$0xff] %v1556_v42  ;;  %1801 = vst [vmem:[#allocation8_spill] sm:$0xff] %v1560_v57  ;;  %v1572_v63 = vadd.f32 %v1304_v60, %v1804_v52  ;;  %v1576_v59 = vadd.f32 %v1308_v62, %v1805_v6  ;;  %v1807_v42 = vld [vmem:[#allocation13_spill] sm:$0xff]  ;;  %v1808_v57 = vld [vmem:[#allocation14_spill] sm:$0xff]  ;;  %v1592_v52 = vadd.f32 %v1308_v62, %v1326_v54 }
  0x47   : > { %v1580_v34 = vadd.f32 %v1312_v53, %v1807_v42  ;;  %v1584_v36 = vadd.f32 %v1316_v41, %v1808_v57  ;;  %v1596_v6 = vadd.f32 %v1312_v53, %v1331_v55  ;;  %v1604_v57 = vadd.f32 %v1304_v60, %v1341_v58 }
  0x48   : > { %1806 = vst [vmem:[#allocation9_spill] sm:$0xff] %v1576_v59  ;;  %1810 = vst [vmem:[#allocation11_spill] sm:$0xff] %v1592_v52  ;;  %v1812_v59 = vld [vmem:[#allocation15_spill] sm:$0xff]  ;;  %v1612_v54 = vadd.f32 %v1312_v53, %v1351_v45  ;;  %v1817_v52 = vld [vmem:[#allocation17_spill] sm:$0xff]  ;;  %v481_v58 = vmax.f32 %v1392_v15, 0.0  ;;  %v485_v45 = vmax.f32 %v1408_v2, 0.0 }
  0x49   : > { %1809 = vst [vmem:[#allocation10_spill] sm:$0xff] %v1584_v36  ;;  %1811 = vst [vmem:[#allocation12_spill] sm:$0xff] %v1596_v6  ;;  %v1600_v42 = vadd.f32 %v1316_v41, %v1812_v59  ;;  %v1815_v36 = vld [vmem:[#allocation16_spill] sm:$0xff]  ;;  %v1616_v55 = vadd.f32 %v1316_v41, %v1817_v52  ;;  %v478_v6 = vmax.f32 %v1380_v0, 0.0  ;;  %v479_v59 = vmax.f32 %v1384_v13, 0.0 }
  0x4a   : > { %1814 = vst [vmem:[#allocation14_spill] sm:$0xff] %v1604_v57  ;;  %v1608_v5 = vadd.f32 %v1308_v62, %v1815_v36  ;;  %v482_v57 = vmax.f32 %v1396_v16, 0.0  ;;  %v483_v36 = vmax.f32 %v1400_v49, 0.0  ;;  %v1628_v52 = vadd.f32 %v1304_v60, %v1361_v47 }
  0x4b   : > { %1813 = vst [vmem:[#allocation13_spill] sm:$0xff] %v1600_v42  ;;  %v480_v42 = vmax.f32 %v1388_v14, 0.0  ;;  %v1632_v0 = vadd.f32 %v1308_v62, %v1366_v3  ;;  %v1636_v13 = vadd.f32 %v1312_v53, %v1371_v1  ;;  %v1640_v14 = vadd.f32 %v1316_v41, %v1376_v56 }
  0x4c   : > { %1816 = vst [vmem:[#allocation15_spill] sm:$0xff] %v1608_v5  ;;  %v484_v5 = vmax.f32 %v1404_v44, 0.0  ;;  %v486_v15 = vmax.f32 %v1412_v4, 0.0  ;;  %v487_v16 = vmax.f32 %v1416_v50, 0.0  ;;  %v488_v49 = vmax.f32 %v1420_v61, 0.0 }
  0x4d   : > { %1818 = vst [vmem:[#allocation16_spill] sm:$0xff] %v1640_v14  ;;  %v489_v60 = vmax.f32 %v1424_v19, 0.0  ;;  %v490_v47 = vmax.f32 %v1428_v7, 0.0  ;;  %v491_v62 = vmax.f32 %v1432_v20, 0.0  ;;  %v492_v3 = vmax.f32 %v1436_v8, 0.0 }
  0x4e   : > { %v493_v53 = vmax.f32 %v1440_v21, 0.0  ;;  %v542_v1 = vadd.f32 %v482_v57, %v478_v6  ;;  %v563_v44 = vadd.f32 %v483_v36, %v479_v59  ;;  %v584_v41 = vadd.f32 %v484_v5, %v480_v42 }
  0x4f   : > { %v605_v56 = vadd.f32 %v485_v45, %v481_v58  ;;  %v494_v2 = vmax.f32 %v1444_v9, 0.0  ;;  %v495_v4 = vmax.f32 %v1448_v22, 0.0  ;;  %v496_v50 = vmax.f32 %v1452_v10, 0.0 }
  0x50   : > { %v497_v61 = vmax.f32 %v1456_v25, 0.0  ;;  %v543_v19 = vadd.f32 %v542_v1, %v486_v15  ;;  %v564_v7 = vadd.f32 %v563_v44, %v487_v16  ;;  %v585_v14 = vadd.f32 %v584_v41, %v488_v49 }
  0x51   : > { %v606_v20 = vadd.f32 %v605_v56, %v489_v60  ;;  %v498_v8 = vmax.f32 %v1460_v11, 0.0  ;;  %v499_v21 = vmax.f32 %v1464_v26, 0.0  ;;  %v500_v6 = vmax.f32 %v1468_v12, 0.0  ;;  %v1819_v56 = vld [vmem:[#allocation3_spill] sm:$0xff] }
  0x52   : > { %v501_v42 = vmax.f32 %v1472_v27, 0.0  ;;  %v544_v57 = vadd.f32 %v543_v19, %v490_v47  ;;  %v565_v9 = vadd.f32 %v564_v7, %v491_v62  ;;  %v586_v5 = vadd.f32 %v585_v14, %v492_v3 }
  0x53   : > { %v607_v22 = vadd.f32 %v606_v20, %v493_v53  ;;  %v502_v10 = vmax.f32 %v1476_v28, 0.0  ;;  %v503_v25 = vmax.f32 %v1480_v32, 0.0  ;;  %v504_v59 = vmax.f32 %v1484_v33, 0.0 }
  0x54   : > { %v505_v58 = vmax.f32 %v1488_v37, 0.0  ;;  %v545_v36 = vadd.f32 %v544_v57, %v494_v2  ;;  %v566_v11 = vadd.f32 %v565_v9, %v495_v4  ;;  %v587_v45 = vadd.f32 %v586_v5, %v496_v50  ;;  %v1820_v2 = vld [vmem:[#allocation4_spill] sm:$0xff]  ;;  %v1821_v4 = vld [vmem:[#allocation5_spill] sm:$0xff] }
  0x55   : > { %v608_v26 = vadd.f32 %v607_v22, %v497_v61  ;;  %v506_v12 = vmax.f32 %v1492_v38, 0.0  ;;  %v507_v27 = vmax.f32 %v1496_v40, 0.0  ;;  %v508_v15 = vmax.f32 %v1500_v43, 0.0  ;;  %v1822_v61 = vld [vmem:[#allocation6_spill] sm:$0xff] }
  0x56   : > { %v509_v14 = vmax.f32 %v1504_v31, 0.0  ;;  %v546_v16 = vadd.f32 %v545_v36, %v498_v8  ;;  %v567_v28 = vadd.f32 %v566_v11, %v499_v21  ;;  %v588_v49 = vadd.f32 %v587_v45, %v500_v6  ;;  %v1823_v8 = vld [vmem:[#allocation7_spill] sm:$0xff]  ;;  %v1824_v21 = vld [vmem:[#allocation8_spill] sm:$0xff]  ;;  %v1826_v36 = vld [vmem:[#allocation10_spill] sm:$0xff] }
  0x57   : > { %v609_v32 = vadd.f32 %v608_v26, %v501_v42  ;;  %v510_v33 = vmax.f32 %v1508_v18, 0.0  ;;  %v511_v37 = vmax.f32 %v1512_v23, 0.0  ;;  %v512_v60 = vmax.f32 %v1516_v39, 0.0 }
  0x58   : > { %v513_v47 = vmax.f32 %v1520_v17, 0.0  ;;  %v547_v62 = vadd.f32 %v546_v16, %v502_v10  ;;  %v568_v38 = vadd.f32 %v567_v28, %v503_v25  ;;  %v589_v3 = vadd.f32 %v588_v49, %v504_v59  ;;  %v1825_v25 = vld [vmem:[#allocation9_spill] sm:$0xff] }
  0x59   : > { %v610_v40 = vadd.f32 %v609_v32, %v505_v58  ;;  %v514_v43 = vmax.f32 %v1524_v29, 0.0  ;;  %v515_v31 = vmax.f32 %v1528_v30, 0.0  ;;  %v516_v53 = vmax.f32 %v1532_v24, 0.0  ;;  %v1829_v28 = vld [vmem:[#allocation13_spill] sm:$0xff] }
  0x5a   : > { %v517_v1 = vmax.f32 %v1536_v35, 0.0  ;;  %v548_v44 = vadd.f32 %v547_v62, %v506_v12  ;;  %v569_v18 = vadd.f32 %v568_v38, %v507_v27  ;;  %v590_v41 = vadd.f32 %v589_v3, %v508_v15  ;;  %v1827_v15 = vld [vmem:[#allocation11_spill] sm:$0xff] }
  0x5b   : > { %v611_v23 = vadd.f32 %v610_v40, %v509_v14  ;;  %v518_v39 = vmax.f32 %v1819_v56, 0.0  ;;  %v519_v17 = vmax.f32 %v1820_v2, 0.0  ;;  %v520_v50 = vmax.f32 %v1821_v4, 0.0  ;;  %v1828_v14 = vld [vmem:[#allocation12_spill] sm:$0xff] }
  0x5c   : > { %v521_v19 = vmax.f32 %v1822_v61, 0.0  ;;  %v549_v7 = vadd.f32 %v548_v44, %v510_v33  ;;  %v570_v29 = vadd.f32 %v569_v18, %v511_v37  ;;  %v591_v20 = vadd.f32 %v590_v41, %v512_v60  ;;  %v1830_v60 = vld [vmem:[#allocation14_spill] sm:$0xff]  ;;  %v1832_v18 = vld [vmem:[#allocation16_spill] sm:$0xff] }
  0x5d   : > { %v612_v30 = vadd.f32 %v611_v23, %v513_v47  ;;  %v522_v24 = vmax.f32 %v1823_v8, 0.0  ;;  %v523_v35 = vmax.f32 %v1824_v21, 0.0  ;;  %v524_v6 = vmax.f32 %v1564_v51, 0.0  ;;  %v1831_v47 = vld [vmem:[#allocation15_spill] sm:$0xff] }
  0x5e   : > { %v525_v42 = vmax.f32 %v1568_v48, 0.0  ;;  %v550_v57 = vadd.f32 %v549_v7, %v514_v43  ;;  %v571_v9 = vadd.f32 %v570_v29, %v515_v31  ;;  %v592_v5 = vadd.f32 %v591_v20, %v516_v53 }
  0x5f   : > { %v613_v22 = vadd.f32 %v612_v30, %v517_v1  ;;  %v526_v10 = vmax.f32 %v1572_v63, 0.0  ;;  %v527_v59 = vmax.f32 %v1825_v25, 0.0  ;;  %v528_v58 = vmax.f32 %v1580_v34, 0.0 }
  0x60   : > { %v529_v11 = vmax.f32 %v1826_v36, 0.0  ;;  %v551_v45 = vadd.f32 %v550_v57, %v518_v39  ;;  %v572_v26 = vadd.f32 %v571_v9, %v519_v17  ;;  %v593_v12 = vadd.f32 %v592_v5, %v520_v50 }
  0x61   : > { %v614_v27 = vadd.f32 %v613_v22, %v521_v19  ;;  %v530_v51 = vmax.f32 %v1588_v46, 0.0  ;;  %v531_v48 = vmax.f32 %v1827_v15, 0.0  ;;  %v532_v16 = vmax.f32 %v1828_v14, 0.0 }
  0x62   : > { %v533_v49 = vmax.f32 %v1829_v28, 0.0  ;;  %v552_v32 = vadd.f32 %v551_v45, %v522_v24  ;;  %v573_v63 = vadd.f32 %v572_v26, %v523_v35  ;;  %v594_v33 = vadd.f32 %v593_v12, %v524_v6  ;;  %v1833_v26 = vld [vmem:[#allocation2_spill] sm:$0xff] }
  0x63   : > { %v615_v37 = vadd.f32 %v614_v27, %v525_v42  ;;  %v534_v34 = vmax.f32 %v1830_v60, 0.0  ;;  %v535_v62 = vmax.f32 %v1831_v47, 0.0  ;;  %v536_v38 = vmax.f32 %v1612_v54, 0.0 }
  0x64   : > { %v537_v3 = vmax.f32 %v1616_v55, 0.0  ;;  %v553_v40 = vadd.f32 %v552_v32, %v526_v10  ;;  %v574_v46 = vadd.f32 %v573_v63, %v527_v59  ;;  %v595_v43 = vadd.f32 %v594_v33, %v528_v58 }
  0x65   : > { %v616_v31 = vadd.f32 %v615_v37, %v529_v11  ;;  %v538_v53 = vmax.f32 %v1628_v52, 0.0  ;;  %v539_v1 = vmax.f32 %v1632_v0, 0.0  ;;  %v540_v44 = vmax.f32 %v1636_v13, 0.0 }
  0x66   : > { %v541_v41 = vmax.f32 %v1832_v18, 0.0  ;;  %v554_v23 = vadd.f32 %v553_v40, %v530_v51  ;;  %v575_v56 = vadd.f32 %v574_v46, %v531_v48  ;;  %v596_v39 = vadd.f32 %v595_v43, %v532_v16 }
  0x67   : > { %v617_v2 = vadd.f32 %v616_v31, %v533_v49  ;;  %v806_v30 = vmov 1966171168   ;;  %v1834_v63 = vlaneseq }
  0x68   : > { %v555_v17 = vadd.f32 %v554_v23, %v534_v34  ;;  %v576_v54 = vadd.f32 %v575_v56, %v535_v62  ;;  %v597_v4 = vadd.f32 %v596_v39, %v536_v38  ;;  %v633_v13 = vunpack.c.l.s4 %v806_v30 }
  0x69   : > { %v618_v55 = vadd.f32 %v617_v2, %v537_v3  ;;  %vm657_vm0 = vcmp.lt.s32.totalorder %v1834_v63, 512 }
  0x6a   : > { %v556_v50 = vadd.f32 %v555_v17, %v538_v53  ;;  %v577_v61 = vadd.f32 %v576_v54, %v539_v1  ;;  %v598_v19 = vadd.f32 %v597_v4, %v540_v44  ;;  %v634_v5 = vunpack.c.0.s8 %v633_v13 }
  0x6b   : > { %v619_v7 = vadd.f32 %v618_v55, %v541_v41 }
  0x6c   : > { %v557_v29 = vrot.slane %v556_v50, 4  ;;  %v578_v52 = vrot.slane %v577_v61, 4  ;;  %v599_v20 = vrot.slane %v598_v19, 4  ;;  %v637_v12 = vsub.s32 %v634_v5, %v1833_v26 }
  0x6d   : > { %v620_v0 = vrot.slane %v619_v7, 4 }
  0x6e   : > { %v558_v8 = vadd.f32 %v557_v29, %v556_v50  ;;  %v579_v24 = vadd.f32 %v578_v52, %v577_v61  ;;  %v600_v21 = vadd.f32 %v599_v20, %v598_v19 }
  0x6f   : > { %v621_v35 = vadd.f32 %v620_v0, %v619_v7 }
  0x70   : > { %v559_v6 = vrot.slane %v558_v8, 2  ;;  %v580_v42 = vrot.slane %v579_v24, 2  ;;  %v601_v57 = vrot.slane %v600_v21, 2 }
  0x71   : > { %v622_v9 = vrot.slane %v621_v35, 2 }
  0x72   : > { %v560_v22 = vadd.f32 %v559_v6, %v558_v8  ;;  %v581_v10 = vadd.f32 %v580_v42, %v579_v24  ;;  %v602_v25 = vadd.f32 %v601_v57, %v600_v21 }
  0x73   : > { %v623_v59 = vadd.f32 %v622_v9, %v621_v35 }
  0x74   : > { %v561_v58 = vrot.slane %v560_v22, 1  ;;  %v582_v36 = vrot.slane %v581_v10, 1  ;;  %v603_v11 = vrot.slane %v602_v25, 1 }
  0x75   : > { %v624_v45 = vrot.slane %v623_v59, 1 }
  0x76   : > { %v562_v27 = vadd.f32 %v561_v58, %v560_v22  ;;  %v583_v51 = vadd.f32 %v582_v36, %v581_v10  ;;  %v604_v15 = vadd.f32 %v603_v11, %v602_v25 }
  0x77   : > { %v625_v48 = vadd.f32 %v624_v45, %v623_v59 }
  0x78   : > { %v630_v14 = vcombine.low %v562_v27, %v583_v51 }
  0x79   : > { %v631_v16 = vcombine.low %v604_v15, %v625_v48 }
  0x7a   : > { %v638_v28 = vrot.slane %v630_v14, %v637_v12 }
  0x7b   : > { %v645_v49 = vrot.slane %v631_v16, %v637_v12 }
  0x7d   : > { %v646_v32 = vcombine.low %v638_v28, %v645_v49 }
  0x7f   : > { %v653_v33 = vrot.slane %v646_v32, %v637_v12 }
  0x81   : > { %659 = vst.msk [vmem:[%s209_s27] sm:$0xf] %vm657_vm0, %v653_v33 }
  0x82 PF: > { %s13_s14 = sadd.s32 1, %s804_s14   ;;  %s1835_s12 = smov %s800_s13 }
  0x83   : > { %p10_p5 = scmp.ge.s32.totalorder %s13_s14, 4   ;;  %s1836_s13 = smov %s1838_s15 }
  0x85   :  { %12 = sbr.rel (!%p10_p5) target bundleno = 2 (0x2), region = 62 }

// kernel: video_classifier_forward.4
= control target key start
LH: loop header
LB: loop body
LE: loop exit
PB: predicated region body
PF: predicated region fallthrough
CT: control target
= control target key end

     0   :  { %s14870_s18 = smov 0   ;;  %s14872_s19 = smov 0   ;;  %s18469_s0 = inlined_call_operand.vmem [shape: bf16[2,8,16,256], index: 0, kind: input, shape index: {}]   ;;  %s18470_s1 = inlined_call_operand.vmem [shape: bf16[9,288,512], index: 1, kind: input, shape index: {}]   ;;  %s18471_s2 = inlined_call_operand.vmem [shape: f32[1,256], index: 2, kind: input, shape index: {}]   ;;  %s18472_s3 = inlined_call_operand.vmem [shape: f32[1,256], index: 3, kind: input, shape index: {}]   ;;  %s18473_s4 = inlined_call_operand.vmem [shape: bf16[2,8,16,512], index: 4, kind: output, shape index: {0}]   ;;  %s18474_s5 = inlined_call_operand.vmem [shape: f32[2,1,2,512], index: 5, kind: output, shape index: {1}]  }
   0x1   :  { %s14874_s20 = smov 0  }
   0x2 LB: > { %s28_s21 = sadd.s32 1, %s14830_s19  ;;  %p11259_p0 = scmp.ge.s32.totalorder %s14834_s20, 1  ;;  %s14834_s20 = sphi %s14874_s20, %s16_s20   ;;  %s14830_s19 = sphi %s14872_s19, %s18647_s19   ;;  %s14826_s18 = sphi %s14870_s18, %s18646_s18  }
   0x3   : > { %p30_p1 = scmp.ge.s32.totalorder %s28_s21, 2  ;;  %p206_p2 = scmp.lt.s32.totalorder %s14834_s20, 3 }
   0x5   : > { %s18649_s21 = smov (%p30_p1, %s28_s21), 0  ;;  %p207_p3 = pnand %p11259_p0, %p206_p2 }
   0x7   : > { %210 = sbr.rel (%p207_p3) target bundleno = 1573 (0x625), region = 36 }
   0xe   : > { %p248_p4 = scmp.lt.s32.totalorder %s14826_s18, 1  ;;  %v493_v0 = vlaneseq  ;;  %v14891_v1 = vld [vmem:[%s18471_s2] sm:$0x3]  ;;  %v13835_v3 = vld [vmem:[%s18470_s1 + $0x244] ss:$16 sps:$4 sm:$0xff]   ;;  %v14836_v6 = vmov 0.0  }
   0xf   : > { %v14896_v2 = vld [vmem:[%s18472_s3] sm:$0x3]  ;;  %v13837_v5 = vld [vmem:[%s18470_s1 + $0x24c] ss:$16 sps:$4 sm:$0xff]   ;;  %275 = vst [vmem:[#allocation2] sm:$0xff] %v14836_v6  ;;  %286 = vst [vmem:[#allocation2 + $0x48] sm:$0xff] %v14836_v6  ;;  %2325 = vmatprep.subr.bf16.mxu0 %v13835_v3 }
  0x10   : > { %s18651_s18 = smov (!%p248_p4, %s14826_s18), 1  ;;  %v14903_v4 = vshrl.u32 %v493_v0, 7  ;;  %282 = vst [vmem:[#allocation2 + $0x30] sm:$0x3] %v14836_v6  ;;  %283 = vst [vmem:[#allocation2 + $0x38] sm:$0x3] %v14836_v6  ;;  %2551 = vmatprep.subr.bf16.mxu1 %v13837_v5 }
  0x11   : > { %287 = vst [vmem:[#allocation2 + $0x50] sm:$0xff] %v14836_v6  ;;  %289 = vst [vmem:[#allocation2 + $0x60] sm:$0xff] %v14836_v6  ;;  %v13839_v7 = vld [vmem:[%s18470_s1 + $0x240] ss:$16 sps:$4 sm:$0xff]   ;;  %v13840_v8 = vld [vmem:[%s18470_s1 + $0x248] ss:$16 sps:$4 sm:$0xff]  }
  0x12   : > { %18549 = vst [vmem:[#allocation3_spill] sm:$0xff] %v14903_v4  ;;  %292 = vst [vmem:[#allocation2 + $0x78] sm:$0x3] %v14836_v6  ;;  %vm284_vm0 = vcmask 254976   ;;  %s12684_s9 = sshll.u32 %s18651_s18, 7  ;;  %v499_v9 = vsub.s32 1, %v14903_v4  ;;  %2326 = vmatpush1.bf16.msra.mxu0 %v13839_v7  ;;  %2552 = vmatpush1.bf16.msra.mxu1 %v13840_v8 }
  0x13   : > { %293 = vst [vmem:[#allocation2 + $0x80] sm:$0x3] %v14836_v6  ;;  %295 = vst [vmem:[#allocation2 + $0x90] sm:$0xff] %v14836_v6  ;;  %v495_v10 = vsub.s32 0, %v14903_v4  ;;  %v13841_v11 = vld [vmem:[%s18470_s1 + $0x264] ss:$16 sps:$4 sm:$0xff]   ;;  %s14978_s14 = scalar_lea.vmem %s18469_s0, %s12684_s9 }
  0x14   : > { %296 = vst [vmem:[#allocation2 + $0x98] sm:$0xff] %v14836_v6  ;;  %298 = vst [vmem:[#allocation2 + $0xa8] sm:$0xff] %v14836_v6  ;;  %v13843_v12 = vld [vmem:[%s18470_s1 + $0x26c] ss:$16 sps:$4 sm:$0xff]   ;;  %v14985_v14 = vrot.slane %v14891_v1, %v499_v9  ;;  %v14988_v15 = vrot.slane %v14896_v2, %v499_v9  ;;  %v486_v16 = vld [vmem:[%s14978_s14] sm:$0xff]  ;;  %2327 = vmatprep.subr.bf16.mxu0 %v13841_v11  ;;  %s14837_s8 = smov 16  }
  0x15   : > { %301 = vst [vmem:[#allocation2 + $0xc0] sm:$0x3] %v14836_v6  ;;  %302 = vst [vmem:[#allocation2 + $0xc8] sm:$0x3] %v14836_v6  ;;  %v487_v13 = vld [vmem:[%s14978_s14 + $0x8] sm:$0xff]  ;;  %v14992_v17 = vrot.slane %v14891_v1, %v495_v10  ;;  %v14995_v18 = vrot.slane %v14896_v2, %v495_v10  ;;  %v11266_v19 = vld [vmem:[%s14978_s14 + $0x10] sm:$0xff]  ;;  %v488_v22 = vunpack.c.l.bf16 %v486_v16  ;;  %v489_v23 = vunpack.c.h.bf16 %v486_v16  ;;  %2553 = vmatprep.subr.bf16.mxu1 %v13843_v12 }
  0x16   : > { %304 = vst [vmem:[#allocation2 + $0xd8] sm:$0xff] %v14836_v6  ;;  %305 = vst [vmem:[#allocation2 + $0xe0] sm:$0xff] %v14836_v6  ;;  %v491_v20 = vunpack.c.h.bf16 %v487_v13  ;;  %v490_v21 = vunpack.c.l.bf16 %v487_v13  ;;  %v11267_v24 = vld [vmem:[%s14978_s14 + $0x18] sm:$0xff]  ;;  %v594_v25 = vunpack.c.h.bf16 %v11266_v19  ;;  %v593_v26 = vunpack.c.l.bf16 %v11266_v19  ;;  %v13845_v34 = vld [vmem:[%s18470_s1 + $0x260] ss:$16 sps:$4 sm:$0xff]   ;;  %s12685_s7 = sshll.u32 %s18651_s18, 8 }
  0x17   : > { %307 = vst [vmem:[#allocation2 + $0xf0] sm:$0xff] %v14836_v6  ;;  %310 = vst [vmem:[#allocation2 + $0x108] sm:$0x3] %v14836_v6  ;;  %v503_v28 = vmul.f32 %v14992_v17, %v488_v22  ;;  %v504_v29 = vmul.f32 %v14985_v14, %v489_v23  ;;  %v595_v32 = vunpack.c.l.bf16 %v11267_v24  ;;  %v596_v33 = vunpack.c.h.bf16 %v11267_v24  ;;  %v13846_v35 = vld [vmem:[%s18470_s1 + $0x268] ss:$16 sps:$4 sm:$0xff]   ;;  %2328 = vmatpush1.bf16.msra.mxu0 %v13845_v34  ;;  %v11268_v54 = vld [vmem:[%s14978_s14 + $0x20] sm:$0xff]  ;;  %s18402_s11 = scalar_lea.vmem %s18473_s4, %s12685_s7 }
  0x18   : > { %311 = vst [vmem:[#allocation2 + $0x110] sm:$0x3] %v14836_v6  ;;  %313 = vst [vmem:[#allocation2 + $0x120] sm:$0xff] %v14836_v6  ;;  %v506_v27 = vmul.f32 %v14985_v14, %v491_v20  ;;  %v505_v30 = vmul.f32 %v14992_v17, %v490_v21  ;;  %v609_v31 = vmul.f32 %v594_v25, %v14985_v14  ;;  %v13847_v41 = vld [vmem:[%s18470_s1 + $0x284] ss:$16 sps:$4 sm:$0xff]   ;;  %2554 = vmatpush1.bf16.msra.mxu1 %v13846_v35  ;;  %v11269_v56 = vld [vmem:[%s14978_s14 + $0x28] sm:$0xff] }
  0x19   : > { %314 = vst [vmem:[#allocation2 + $0x128] sm:$0xff] %v14836_v6  ;;  %316 = vst [vmem:[#allocation2 + $0x138] sm:$0xff] %v14836_v6  ;;  %v518_v37 = vadd.f32 %v14995_v18, %v503_v28  ;;  %v519_v38 = vadd.f32 %v14988_v15, %v504_v29  ;;  %v608_v45 = vmul.f32 %v593_v26, %v14992_v17  ;;  %v13849_v46 = vld [vmem:[%s18470_s1 + $0x28c] ss:$16 sps:$4 sm:$0xff]   ;;  %2329 = vmatprep.subr.bf16.mxu0 %v13847_v41  ;;  %v13851_v51 = vld [vmem:[%s18470_s1 + $0x280] ss:$16 sps:$4 sm:$0xff]  }
  0x1a   : > { %319 = vst [vmem:[#allocation2 + $0x150] sm:$0x3] %v14836_v6  ;;  %320 = vst [vmem:[#allocation2 + $0x158] sm:$0x3] %v14836_v6  ;;  %v521_v36 = vadd.f32 %v14988_v15, %v506_v27  ;;  %v520_v39 = vadd.f32 %v14995_v18, %v505_v30  ;;  %v624_v40 = vadd.f32 %v609_v31, %v14988_v15  ;;  %2555 = vmatprep.subr.bf16.mxu1 %v13849_v46  ;;  %v13852_v55 = vld [vmem:[%s18470_s1 + $0x288] ss:$16 sps:$4 sm:$0xff]  }
  0x1b   : > { %322 = vst [vmem:[#allocation2 + $0x168] sm:$0xff] %v14836_v6  ;;  %323 = vst [vmem:[#allocation2 + $0x170] sm:$0xff] %v14836_v6  ;;  %v522_v43 = vmax.f32 %v518_v37, 0.0  ;;  %v523_v44 = vmax.f32 %v519_v38, 0.0  ;;  %v610_v49 = vmul.f32 %v595_v32, %v14992_v17  ;;  %v611_v50 = vmul.f32 %v596_v33, %v14985_v14  ;;  %2330 = vmatpush1.bf16.msra.mxu0 %v13851_v51  ;;  %v13853_v60 = vld [vmem:[%s18470_s1 + $0x2a4] ss:$16 sps:$4 sm:$0xff]  }
  0x1c   : > { %325 = vst [vmem:[#allocation2 + $0x180] sm:$0xff] %v14836_v6  ;;  %328 = vst [vmem:[#allocation2 + $0x198] sm:$0x3] %v14836_v6  ;;  %v525_v42 = vmax.f32 %v521_v36, 0.0  ;;  %v628_v47 = vmax.f32 %v624_v40, 0.0  ;;  %v524_v48 = vmax.f32 %v520_v39, 0.0  ;;  %v623_v59 = vadd.f32 %v608_v45, %v14995_v18  ;;  %2556 = vmatpush1.bf16.msra.mxu1 %v13852_v55  ;;  %2331 = vmatprep.subr.bf16.mxu0 %v13853_v60 }
  0x1d   : > { %329 = vst [vmem:[#allocation2 + $0x1a0] sm:$0x3] %v14836_v6  ;;  %331 = vst [vmem:[#allocation2 + $0x1b0] sm:$0xff] %v14836_v6  ;;  %v531_v53 = vrot.slane %v522_v43, 7  ;;  %v532_v58 = vrot.slane %v523_v44, 7  ;;  %v625_v62 = vadd.f32 %v610_v49, %v14995_v18  ;;  %v626_v63 = vadd.f32 %v611_v50, %v14988_v15  ;;  %v11270_v29 = vld [vmem:[%s14978_s14 + $0x30] sm:$0xff] }
  0x1e   : > { %332 = vst [vmem:[#allocation2 + $0x1b8] sm:$0xff] %v14836_v6  ;;  %334 = vst [vmem:[#allocation2 + $0x1c8] sm:$0xff] %v14836_v6  ;;  %v535_v52 = vrot.slane %v525_v42, 7  ;;  %v15034_v57 = vrot.slane %v628_v47, 7  ;;  %v533_v61 = vrot.slane %v524_v48, 7  ;;  %vm530_vm1 = vcmask 1040384  }
  0x1f   : > { %337 = vst [vmem:[#allocation2 + $0x1e0] sm:$0x3] %v14836_v6  ;;  %338 = vst [vmem:[#allocation2 + $0x1e8] sm:$0x3] %v14836_v6  ;;  %537 = vrot.lane.b32.xlu0 %v531_v53, %s14837_s8  ;;  %v13855_v0 = vld [vmem:[%s18470_s1 + $0x2ac] ss:$16 sps:$4 sm:$0xff]   ;;  %v698_v3 = vunpack.c.l.bf16 %v11268_v54  ;;  %v699_v8 = vunpack.c.h.bf16 %v11268_v54  ;;  %v700_v9 = vunpack.c.l.bf16 %v11269_v56  ;;  %v701_v10 = vunpack.c.h.bf16 %v11269_v56 }
  0x20   : > { %340 = vst [vmem:[#allocation2 + $0x1f8] sm:$0xff] %v14836_v6  ;;  %341 = vst [vmem:[#allocation2 + $0x200] sm:$0xff] %v14836_v6  ;;  %547 = vrot.lane.b32.xlu1 %v535_v52, %s14837_s8  ;;  %v13857_v1 = vld [vmem:[%s18470_s1 + $0x2a0] ss:$16 sps:$4 sm:$0xff]   ;;  %v13858_v2 = vld [vmem:[%s18470_s1 + $0x2a8] ss:$16 sps:$4 sm:$0xff]   ;;  %2557 = vmatprep.subr.bf16.mxu1 %v13855_v0  ;;  %v534_v13 = vsel %vm530_vm1, %v531_v53, %v533_v61  ;;  %v536_v30 = vsel %vm530_vm1, %v532_v58, %v535_v52  ;;  %v803_v44 = vunpack.c.l.bf16 %v11270_v29 }
  0x21   : > { %343 = vst [vmem:[#allocation2 + $0x210] sm:$0xff] %v14836_v6  ;;  %346 = vst [vmem:[#allocation2 + $0x228] sm:$0x3] %v14836_v6  ;;  %2332 = vmatpush1.bf16.msra.mxu0 %v13857_v1  ;;  %v13859_v5 = vld [vmem:[%s18470_s1 + $0x2c4] ss:$16 sps:$4 sm:$0xff]   ;;  %v627_v7 = vmax.f32 %v623_v59, 0.0  ;;  %2558 = vmatpush1.bf16.msra.mxu1 %v13858_v2  ;;  %v713_v22 = vmul.f32 %v698_v3, %v14992_v17  ;;  %v714_v26 = vmul.f32 %v699_v8, %v14985_v14 }
  0x22   : > { %347 = vst [vmem:[#allocation2 + $0x230] sm:$0x3] %v14836_v6  ;;  %349 = vst [vmem:[#allocation2 + $0x240] sm:$0xff] %v14836_v6  ;;  %v13861_v11 = vld [vmem:[%s18470_s1 + $0x2cc] ss:$16 sps:$4 sm:$0xff]   ;;  %v629_v16 = vmax.f32 %v625_v62, 0.0  ;;  %2333 = vmatprep.subr.bf16.mxu0 %v13859_v5  ;;  %v715_v27 = vmul.f32 %v700_v9, %v14992_v17  ;;  %v716_v28 = vmul.f32 %v701_v10, %v14985_v14  ;;  %v804_v48 = vunpack.c.h.bf16 %v11270_v29 }
  0x23   : > { %350 = vst [vmem:[#allocation2 + $0x248] sm:$0xff] %v14836_v6  ;;  %352 = vst [vmem:[#allocation2 + $0x258] sm:$0xff] %v14836_v6  ;;  %539 = vrot.lane.b32.xlu0 %v532_v58, %s14837_s8  ;;  %v13863_v12 = vld [vmem:[%s18470_s1 + $0x2c0] ss:$16 sps:$4 sm:$0xff]   ;;  %v630_v19 = vmax.f32 %v626_v63, 0.0  ;;  %2559 = vmatprep.subr.bf16.mxu1 %v13861_v11  ;;  %v636_v25 = vrot.slane %v627_v7, 7  ;;  %v728_v35 = vadd.f32 %v713_v22, %v14995_v18 }
  0x24   : > { %355 = vst [vmem:[#allocation2 + $0x270] sm:$0x3] %v14836_v6  ;;  %356 = vst [vmem:[#allocation2 + $0x278] sm:$0x3] %v14836_v6  ;;  %644 = vrot.lane.b32.xlu1 %v15034_v57, %s14837_s8  ;;  %v13864_v20 = vld [vmem:[%s18470_s1 + $0x2c8] ss:$16 sps:$4 sm:$0xff]   ;;  %v729_v38 = vadd.f32 %v714_v26, %v14988_v15  ;;  %v730_v39 = vadd.f32 %v715_v27, %v14995_v18  ;;  %v731_v40 = vadd.f32 %v716_v28, %v14988_v15 }
  0x25   : > { %364 = vst [vmem:[#allocation2 + $0x2b8] sm:$0x3] %v14836_v6  ;;  %365 = vst [vmem:[#allocation2 + $0x2c0] sm:$0x3] %v14836_v6  ;;  %v13865_v21 = vld [vmem:[%s18470_s1 + $0x2e4] ss:$16 sps:$4 sm:$0xff]   ;;  %2334 = vmatpush1.bf16.msra.mxu0 %v13863_v12  ;;  %2560 = vmatpush1.bf16.msra.mxu1 %v13864_v20  ;;  %v818_v56 = vmul.f32 %v803_v44, %v14992_v17 }
  0x26   : > { %285 = vst.msk [vmem:[#allocation2 + $0x40] sm:$0x3] %vm284_vm0, %v14836_v6  ;;  %294 = vst.msk [vmem:[#allocation2 + $0x88] sm:$0x3] %vm284_vm0, %v14836_v6  ;;  %v13867_v23 = vld [vmem:[%s18470_s1 + $0x2ec] ss:$16 sps:$4 sm:$0xff]   ;;  %2335 = vmatprep.subr.bf16.mxu0 %v13865_v21 }
  0x27   : > { %303 = vst.msk [vmem:[#allocation2 + $0xd0] sm:$0x3] %vm284_vm0, %v14836_v6  ;;  %312 = vst.msk [vmem:[#allocation2 + $0x118] sm:$0x3] %vm284_vm0, %v14836_v6  ;;  %v13869_v24 = vld [vmem:[%s18470_s1 + $0x2e0] ss:$16 sps:$4 sm:$0xff]   ;;  %545 = vrot.lane.b32.xlu0 %v533_v61, %s14837_s8  ;;  %2561 = vmatprep.subr.bf16.mxu1 %v13867_v23  ;;  %v819_v61 = vmul.f32 %v804_v48, %v14985_v14  ;;  %v833_v5 = vadd.f32 %v818_v56, %v14995_v18 }
  0x28   : > { %321 = vst.msk [vmem:[#allocation2 + $0x160] sm:$0x3] %vm284_vm0, %v14836_v6  ;;  %330 = vst.msk [vmem:[#allocation2 + $0x1a8] sm:$0x3] %vm284_vm0, %v14836_v6  ;;  %541 = vrot.lane.b32.xlu1 %v534_v13, %s14837_s8  ;;  %v638_v31 = vrot.slane %v629_v16, 7  ;;  %v640_v32 = vrot.slane %v630_v19, 7 }
  0x29   : > { %339 = vst.msk [vmem:[#allocation2 + $0x1f0] sm:$0x3] %vm284_vm0, %v14836_v6  ;;  %348 = vst.msk [vmem:[#allocation2 + $0x238] sm:$0x3] %vm284_vm0, %v14836_v6  ;;  %v13870_v33 = vld [vmem:[%s18470_s1 + $0x2e8] ss:$16 sps:$4 sm:$0xff]   ;;  %2336 = vmatpush1.bf16.msra.mxu0 %v13869_v24  ;;  %v15153_v10 = vadd.f32 %v819_v61, %v14988_v15 }
  0x2a   : > { %357 = vst.msk [vmem:[#allocation2 + $0x280] sm:$0x3] %vm284_vm0, %v14836_v6  ;;  %366 = vst.msk [vmem:[#allocation2 + $0x2c8] sm:$0x3] %vm284_vm0, %v14836_v6  ;;  %v13871_v34 = vld [vmem:[%s18470_s1 + $0x304] ss:$16 sps:$4 sm:$0xff]   ;;  %v639_v42 = vsel %vm530_vm1, %v636_v25, %v638_v31  ;;  %v641_v43 = vsel %vm530_vm1, %v15034_v57, %v640_v32  ;;  %2562 = vmatpush1.bf16.msra.mxu1 %v13870_v33 }
  0x2b   : > { %v13873_v36 = vld [vmem:[%s18470_s1 + $0x30c] ss:$16 sps:$4 sm:$0xff]   ;;  %v13875_v37 = vld [vmem:[%s18470_s1 + $0x300] ss:$16 sps:$4 sm:$0xff]   ;;  %642 = vrot.lane.b32.xlu0 %v636_v25, %s14837_s8  ;;  %2337 = vmatprep.subr.bf16.mxu0 %v13871_v34  ;;  %v13876_v45 = vld [vmem:[%s18470_s1 + $0x308] ss:$16 sps:$4 sm:$0xff]  }
  0x2c   : > { %543 = vrot.lane.b32.xlu1 %v536_v30, %s14837_s8  ;;  %v11271_v41 = vld [vmem:[%s14978_s14 + $0x38] sm:$0xff]  ;;  %2563 = vmatprep.subr.bf16.mxu1 %v13873_v36  ;;  %v13877_v46 = vld [vmem:[%s18470_s1 + $0x324] ss:$16 sps:$4 sm:$0xff]   ;;  %v13881_v51 = vld [vmem:[%s18470_s1 + $0x320] ss:$16 sps:$4 sm:$0xff]   ;;  %v732_v52 = vmax.f32 %v728_v35, 0.0 }
  0x2d   : > { %v13879_v47 = vld [vmem:[%s18470_s1 + $0x32c] ss:$16 sps:$4 sm:$0xff]   ;;  %v805_v49 = vunpack.c.l.bf16 %v11271_v41  ;;  %v806_v50 = vunpack.c.h.bf16 %v11271_v41  ;;  %2338 = vmatpush1.bf16.msra.mxu0 %v13875_v37  ;;  %v733_v53 = vmax.f32 %v729_v38, 0.0  ;;  %v734_v54 = vmax.f32 %v730_v39, 0.0  ;;  %v13882_v57 = vld [vmem:[%s18470_s1 + $0x328] ss:$16 sps:$4 sm:$0xff]  }
  0x2e   : > { %v735_v55 = vmax.f32 %v731_v40, 0.0  ;;  %2564 = vmatpush1.bf16.msra.mxu1 %v13876_v45  ;;  %v13883_v58 = vld [vmem:[%s18470_s1 + $0x344] ss:$16 sps:$4 sm:$0xff]   ;;  %v13885_v59 = vld [vmem:[%s18470_s1 + $0x34c] ss:$16 sps:$4 sm:$0xff]   ;;  %2339 = vmatprep.subr.bf16.mxu0 %v13877_v46  ;;  %v741_v63 = vrot.slane %v732_v52, 7 }
  0x2f   : > { %646 = vrot.lane.b32.xlu0 %v639_v42, %s14837_s8  ;;  %2565 = vmatprep.subr.bf16.mxu1 %v13879_v47  ;;  %v13887_v60 = vld [vmem:[%s18470_s1 + $0x340] ss:$16 sps:$4 sm:$0xff]   ;;  %v820_v62 = vmul.f32 %v805_v49, %v14992_v17  ;;  %v742_v0 = vrot.slane %v733_v53, 7  ;;  %v821_v1 = vmul.f32 %v806_v50, %v14985_v14  ;;  %v15138_v2 = vrot.slane %v734_v54, 7  ;;  %v13888_v7 = vld [vmem:[%s18470_s1 + $0x348] ss:$16 sps:$4 sm:$0xff]  }
  0x30   : > { %648 = vrot.lane.b32.xlu1 %v641_v43, %s14837_s8  ;;  %v15140_v3 = vrot.slane %v735_v55, 7  ;;  %v13889_v8 = vld [vmem:[%s18470_s1 + $0x364] ss:$16 sps:$4 sm:$0xff]   ;;  %v13891_v9 = vld [vmem:[%s18470_s1 + $0x36c] ss:$16 sps:$4 sm:$0xff]   ;;  %vm277_vm2 = vcmask 261120  }
  0x31   : > { %2340 = vmatpush1.bf16.msra.mxu0 %v13881_v51  ;;  %v15156_v11 = vadd.f32 %v820_v62, %v14995_v18  ;;  %v13893_v12 = vld [vmem:[%s18470_s1 + $0x360] ss:$16 sps:$4 sm:$0xff]   ;;  %v15164_v13 = vadd.f32 %v821_v1, %v14988_v15  ;;  %v744_v19 = vsel %vm530_vm1, %v741_v63, %v15138_v2  ;;  %v837_v21 = vmax.f32 %v833_v5, 0.0  ;;  %v13894_v22 = vld [vmem:[%s18470_s1 + $0x368] ss:$16 sps:$4 sm:$0xff]   ;;  %297 = vst.msk [vmem:[#allocation2 + $0xa0] sm:$0xff] %vm277_vm2, %v14836_v6 }
  0x32   : > { %2566 = vmatpush1.bf16.msra.mxu1 %v13882_v57  ;;  %2341 = vmatprep.subr.bf16.mxu0 %v13883_v58  ;;  %v15167_v16 = vld [vmem:[%s14978_s14 + $0x40] sm:$0xff]  ;;  %v746_v20 = vsel %vm530_vm1, %v742_v0, %v15140_v3  ;;  %278 = vst.msk [vmem:[#allocation2 + $0x10] sm:$0xff] %vm277_vm2, %v14836_v6  ;;  %281 = vst.msk [vmem:[#allocation2 + $0x28] sm:$0xff] %vm277_vm2, %v14836_v6  ;;  %v11273_v24 = vld [vmem:[%s14978_s14 + $0x48] sm:$0xff]  ;;  %v838_v26 = vmax.f32 %v15153_v10, 0.0  ;;  %vm1675_vm3 = vcmask 1046528  }
  0x33   : > { %650 = vrot.lane.b32.xlu0 %v638_v31, %s14837_s8  ;;  %2567 = vmatprep.subr.bf16.mxu1 %v13885_v59  ;;  %v13895_v23 = vld [vmem:[%s18470_s1 + $0x384] ss:$16 sps:$4 sm:$0xff]   ;;  %288 = vst.msk [vmem:[#allocation2 + $0x58] sm:$0xff] %vm277_vm2, %v14836_v6  ;;  %291 = vst.msk [vmem:[#allocation2 + $0x70] sm:$0xff] %vm277_vm2, %v14836_v6  ;;  %v13897_v25 = vld [vmem:[%s18470_s1 + $0x38c] ss:$16 sps:$4 sm:$0xff]   ;;  %v908_v28 = vunpack.c.l.bf16 %v15167_v16  ;;  %v909_v31 = vunpack.c.h.bf16 %v15167_v16  ;;  %v910_v36 = vunpack.c.l.bf16 %v11273_v24  ;;  %v911_v37 = vunpack.c.h.bf16 %v11273_v24 }
  0x34   : > { %652 = vrot.lane.b32.xlu1 %v640_v32, %s14837_s8  ;;  %300 = vst.msk [vmem:[#allocation2 + $0xb8] sm:$0xff] %vm277_vm2, %v14836_v6  ;;  %306 = vst.msk [vmem:[#allocation2 + $0xe8] sm:$0xff] %vm277_vm2, %v14836_v6  ;;  %v839_v27 = vmax.f32 %v15156_v11, 0.0  ;;  %v13899_v29 = vld [vmem:[%s18470_s1 + $0x380] ss:$16 sps:$4 sm:$0xff]   ;;  %v840_v30 = vmax.f32 %v15164_v13, 0.0 }
  0x35   : > { %2342 = vmatpush1.bf16.msra.mxu0 %v13887_v60  ;;  %309 = vst.msk [vmem:[#allocation2 + $0x100] sm:$0xff] %vm277_vm2, %v14836_v6  ;;  %315 = vst.msk [vmem:[#allocation2 + $0x130] sm:$0xff] %vm277_vm2, %v14836_v6  ;;  %v11326_v32 = vld [vmem:[%s18470_s1 + $0x3a0] sm:$0xff]  ;;  %v11328_v33 = vld [vmem:[%s18470_s1 + $0x3b0] sm:$0xff]  ;;  %v846_v35 = vrot.slane %v837_v21, 7  ;;  %v15255_v43 = vrot.slane %v14836_v6, 1  ;;  %v923_v46 = vmul.f32 %v908_v28, %v14992_v17  ;;  %v924_v49 = vmul.f32 %v909_v31, %v14985_v14 }
  0x36   : > { %2568 = vmatpush1.bf16.msra.mxu1 %v13888_v7  ;;  %2343 = vmatprep.subr.bf16.mxu0 %v13889_v8  ;;  %318 = vst.msk [vmem:[#allocation2 + $0x148] sm:$0xff] %vm277_vm2, %v14836_v6  ;;  %324 = vst.msk [vmem:[#allocation2 + $0x178] sm:$0xff] %vm277_vm2, %v14836_v6  ;;  %v1424_v34 = vld [vmem:[#allocation2 + $0x38] sm:$0x3]  ;;  %v13901_v39 = vld [vmem:[%s18470_s1 + $0x3a4] ss:$16 sps:$4 sm:$0xff]   ;;  %v11398_v47 = vcombine.low %v11326_v32, %v11328_v33  ;;  %v925_v52 = vmul.f32 %v910_v36, %v14992_v17 }
  0x37   : > { %747 = vrot.lane.b32.xlu0 %v741_v63, %s14837_s8  ;;  %327 = vst.msk [vmem:[#allocation2 + $0x190] sm:$0xff] %vm277_vm2, %v14836_v6  ;;  %333 = vst.msk [vmem:[#allocation2 + $0x1c0] sm:$0xff] %vm277_vm2, %v14836_v6  ;;  %2569 = vmatprep.subr.bf16.mxu1 %v13891_v9  ;;  %v13900_v38 = vld [vmem:[%s18470_s1 + $0x388] ss:$16 sps:$4 sm:$0xff]   ;;  %v13903_v42 = vld [vmem:[%s18470_s1 + $0x3ac] ss:$16 sps:$4 sm:$0xff]   ;;  %v926_v53 = vmul.f32 %v911_v37, %v14985_v14  ;;  %v938_v63 = vadd.f32 %v923_v46, %v14995_v18 }
  0x38   : > { %749 = vrot.lane.b32.xlu1 %v742_v0, %s14837_s8  ;;  %336 = vst.msk [vmem:[#allocation2 + $0x1d8] sm:$0xff] %vm277_vm2, %v14836_v6  ;;  %342 = vst.msk [vmem:[#allocation2 + $0x208] sm:$0xff] %vm277_vm2, %v14836_v6  ;;  %v11327_v40 = vld [vmem:[%s18470_s1 + $0x3a8] sm:$0xff]  ;;  %v11329_v41 = vld [vmem:[%s18470_s1 + $0x3b8] sm:$0xff]  ;;  %v847_v44 = vrot.slane %v838_v26, 7  ;;  %v15257_v45 = vrot.slane %v839_v27, 7  ;;  %v939_v8 = vadd.f32 %v924_v49, %v14988_v15  ;;  %v940_v11 = vadd.f32 %v925_v52, %v14995_v18 }
  0x39   : > { %345 = vst.msk [vmem:[#allocation2 + $0x220] sm:$0xff] %vm277_vm2, %v14836_v6  ;;  %351 = vst.msk [vmem:[#allocation2 + $0x250] sm:$0xff] %vm277_vm2, %v14836_v6  ;;  %2344 = vmatpush1.bf16.msra.mxu0 %v13893_v12  ;;  %v15264_v48 = vrot.slane %v840_v30, 7  ;;  %v11332_v50 = vld [vmem:[%s18470_s1 + $0x3d0] sm:$0xff]  ;;  %v1687_v51 = vrot.slane %v1424_v34, 1  ;;  %v11400_v54 = vcombine.low %v11327_v40, %v11329_v41  ;;  %v11331_v56 = vld [vmem:[%s18470_s1 + $0x3c8] sm:$0xff]  ;;  %v941_v12 = vadd.f32 %v926_v53, %v14988_v15 }
  0x3a   : > { %354 = vst.msk [vmem:[#allocation2 + $0x268] sm:$0xff] %vm277_vm2, %v14836_v6  ;;  %360 = vst.msk [vmem:[#allocation2 + $0x298] sm:$0xff] %vm277_vm2, %v14836_v6  ;;  %2570 = vmatpush1.bf16.msra.mxu1 %v13894_v22  ;;  %2345 = vmatprep.subr.bf16.mxu0 %v13895_v23  ;;  %v13905_v55 = vld [vmem:[%s18470_s1 + $0x3c4] ss:$16 sps:$4 sm:$0xff]   ;;  %v11333_v57 = vld [vmem:[%s18470_s1 + $0x3d8] sm:$0xff]  ;;  %v849_v5 = vsel %vm530_vm1, %v846_v35, %v15257_v45  ;;  %v943_v26 = vmax.f32 %v939_v8, 0.0 }
  0x3b   : > { %363 = vst.msk [vmem:[#allocation2 + $0x2b0] sm:$0xff] %vm277_vm2, %v14836_v6  ;;  %751 = vrot.lane.b32.xlu0 %v744_v19, %s14837_s8  ;;  %2571 = vmatprep.subr.bf16.mxu1 %v13897_v25  ;;  %v11330_v6 = vld [vmem:[%s18470_s1 + $0x3c0] sm:$0xff]  ;;  %v11274_v58 = vld [vmem:[%s14978_s14 + $0x50] sm:$0xff]  ;;  %v13907_v59 = vld [vmem:[%s18470_s1 + $0x3cc] ss:$16 sps:$4 sm:$0xff]   ;;  %v1688_v62 = vsel %vm1675_vm3, %v15255_v43, %v1687_v51  ;;  %v851_v7 = vsel %vm530_vm1, %v847_v44, %v15264_v48  ;;  %v942_v25 = vmax.f32 %v938_v63, 0.0 }
  0x3c   : > { %753 = vrot.lane.b32.xlu1 %v746_v20, %s14837_s8  ;;  %v11334_v60 = vld [vmem:[%s18470_s1 + $0x3e0] sm:$0xff]  ;;  %v11336_v61 = vld [vmem:[%s18470_s1 + $0x3f0] sm:$0xff]  ;;  %v11275_v0 = vld [vmem:[%s14978_s14 + $0x58] sm:$0xff]  ;;  %v11402_v1 = vcombine.low %v11330_v6, %v11332_v50  ;;  %v11404_v13 = vcombine.low %v11331_v56, %v11333_v57  ;;  %v1013_v21 = vunpack.c.l.bf16 %v11274_v58  ;;  %v1014_v22 = vunpack.c.h.bf16 %v11274_v58 }
  0x3d   : > { %2346 = vmatpush1.bf16.msra.mxu0 %v13899_v29  ;;  %v11335_v9 = vld [vmem:[%s18470_s1 + $0x3e8] sm:$0xff]  ;;  %v11337_v10 = vld [vmem:[%s18470_s1 + $0x3f8] sm:$0xff]  ;;  %v11338_v19 = vld [vmem:[%s18470_s1 + $0x400] sm:$0xff]  ;;  %v11406_v23 = vcombine.low %v11334_v60, %v11336_v61  ;;  %v1015_v27 = vunpack.c.l.bf16 %v11275_v0  ;;  %v1016_v28 = vunpack.c.h.bf16 %v11275_v0  ;;  %v944_v33 = vmax.f32 %v940_v11, 0.0 }
  0x3e   : > { %2572 = vmatpush1.bf16.msra.mxu1 %v13900_v38  ;;  %2347 = vmatprep.subr.bf16.mxu0 %v13901_v39  ;;  %v13911_v16 = vld [vmem:[%s18470_s1 + $0x3ec] ss:$16 sps:$4 sm:$0xff]   ;;  %v11340_v20 = vld [vmem:[%s18470_s1 + $0x410] sm:$0xff]  ;;  %v945_v34 = vmax.f32 %v941_v12, 0.0  ;;  %v11342_v36 = vld [vmem:[%s18470_s1 + $0x420] sm:$0xff]  ;;  %v1028_v38 = vmul.f32 %v1013_v21, %v14992_v17  ;;  %v1029_v39 = vmul.f32 %v1014_v22, %v14985_v14  ;;  %v952_v46 = vrot.slane %v943_v26, 7 }
  0x3f   : > { %755 = vrot.lane.b32.xlu0 %v15138_v2, %s14837_s8  ;;  %2573 = vmatprep.subr.bf16.mxu1 %v13903_v42  ;;  %v13909_v2 = vld [vmem:[%s18470_s1 + $0x3e4] ss:$16 sps:$4 sm:$0xff]   ;;  %v11339_v29 = vld [vmem:[%s18470_s1 + $0x408] sm:$0xff]  ;;  %v11341_v30 = vld [vmem:[%s18470_s1 + $0x418] sm:$0xff]  ;;  %v11410_v40 = vcombine.low %v11338_v19, %v11340_v20  ;;  %v1031_v49 = vmul.f32 %v1016_v28, %v14985_v14  ;;  %v953_v51 = vrot.slane %v944_v33, 7  ;;  %vm575_vm4 = vcmask 122880  }
  0x40   : > { %757 = vrot.lane.b32.xlu1 %v15140_v3, %s14837_s8  ;;  %v1845_v3 = vpack.c.bf16 %v1688_v62, %v15255_v43  ;;  %v13913_v24 = vld [vmem:[%s18470_s1 + $0x404] ss:$16 sps:$4 sm:$0xff]   ;;  %v13915_v31 = vld [vmem:[%s18470_s1 + $0x40c] ss:$16 sps:$4 sm:$0xff]   ;;  %v1423_v32 = vld [vmem:[#allocation2 + $0x30] sm:$0x3]  ;;  %v11412_v52 = vcombine.low %v11339_v29, %v11341_v30  ;;  %v1044_v58 = vadd.f32 %v1029_v39, %v14988_v15 }
  0x41   : > { %2348 = vmatpush1.bf16.msra.mxu0 %v11398_v47  ;;  %v11344_v37 = vld [vmem:[%s18470_s1 + $0x430] sm:$0xff]  ;;  %v1685_v42 = vrot.slane %v1423_v32, 1  ;;  %v1030_v47 = vmul.f32 %v1015_v27, %v14992_v17  ;;  %v11343_v6 = vld [vmem:[%s18470_s1 + $0x428] sm:$0xff]  ;;  %v11345_v50 = vld [vmem:[%s18470_s1 + $0x438] sm:$0xff]  ;;  %v1046_v60 = vadd.f32 %v1031_v49, %v14988_v15  ;;  %vm563_vm5 = vcmask 1047681  }
  0x42   : > { %2574 = vmatpush1.bf16.msra.mxu1 %v11400_v54  ;;  %2349 = vmatprep.subr.bf16.mxu0 %v13905_v55  ;;  %v13917_v41 = vld [vmem:[%s18470_s1 + $0x424] ss:$16 sps:$4 sm:$0xff]   ;;  %v1043_v54 = vadd.f32 %v1028_v38, %v14995_v18  ;;  %v11414_v55 = vcombine.low %v11342_v36, %v11344_v37  ;;  %v11277_v61 = vld [vmem:[%s14978_s14 + $0x68] sm:$0xff]  ;;  %v1048_v8 = vmax.f32 %v1044_v58, 0.0  ;;  %v13927_v26 = vld [vmem:[%s18470_s1 + $0x460] ss:$16 sps:$4 sm:$0xff]  }
  0x43   : > { %852 = vrot.lane.b32.xlu0 %v846_v35, %s14837_s8  ;;  %2575 = vmatprep.subr.bf16.mxu1 %v13907_v59  ;;  %v11408_v35 = vcombine.low %v11335_v9, %v11337_v10  ;;  %v11276_v53 = vld [vmem:[%s14978_s14 + $0x60] sm:$0xff]  ;;  %v1686_v56 = vsel %vm1675_vm3, %v15255_v43, %v1685_v42  ;;  %v1045_v59 = vadd.f32 %v1030_v47, %v14995_v18  ;;  %v13926_v62 = vld [vmem:[%s18470_s1 + $0x44c] ss:$16 sps:$4 sm:$0xff]   ;;  %v1050_v10 = vmax.f32 %v1046_v60, 0.0  ;;  %v13924_v12 = vld [vmem:[%s18470_s1 + $0x448] ss:$16 sps:$4 sm:$0xff]  }
  0x44   : > { %854 = vrot.lane.b32.xlu1 %v847_v44, %s14837_s8  ;;  %2357 = vmatprep.mubr.bf16.mxu0 %v1845_v3  ;;  %v951_v44 = vrot.slane %v942_v25, 7  ;;  %v13923_v57 = vld [vmem:[%s18470_s1 + $0x444] ss:$16 sps:$4 sm:$0xff]   ;;  %v1119_v11 = vunpack.c.h.bf16 %v11276_v53  ;;  %v1057_v20 = vrot.slane %v1048_v8, 7  ;;  %v13930_v28 = vld [vmem:[%s18470_s1 + $0x468] ss:$16 sps:$4 sm:$0xff]  }
  0x45   : > { %2350 = vmatpush1.bf16.msra.mxu0 %v11402_v1  ;;  %2583 = vmatprep.mubr.bf16.mxu1 %v1845_v3  ;;  %v11416_v1 = vcombine.low %v11343_v6, %v11345_v50  ;;  %v1844_v3 = vpack.c.bf16 %v1686_v56, %v15255_v43  ;;  %v1049_v9 = vmax.f32 %v1045_v59, 0.0  ;;  %v1060_v22 = vrot.slane %v1050_v10, 7  ;;  %v13929_v27 = vld [vmem:[%s18470_s1 + $0x464] ss:$16 sps:$4 sm:$0xff]   ;;  %v13932_v29 = vld [vmem:[%s18470_s1 + $0x46c] ss:$16 sps:$4 sm:$0xff]  }
  0x46   : > { %2576 = vmatpush1.bf16.msra.mxu1 %v11404_v13  ;;  %2351 = vmatprep.subr.bf16.mxu0 %v13909_v2  ;;  %v954_v63 = vsel %vm530_vm1, %v951_v44, %v953_v51  ;;  %v13921_v2 = vld [vmem:[%s18470_s1 + $0x440] ss:$16 sps:$4 sm:$0xff]   ;;  %v1120_v13 = vunpack.c.l.bf16 %v11277_v61  ;;  %v13935_v49 = vld [vmem:[%s18470_s1 + $0x4] ss:$16 sps:$4 sm:$0xff]   ;;  %v13938_v6 = vld [vmem:[%s18470_s1 + $0xc] ss:$16 sps:$4 sm:$0xff]  }
  0x47   : > { %856 = vrot.lane.b32.xlu0 %v849_v5, %s14837_s8  ;;  %2577 = vmatprep.subr.bf16.mxu1 %v13911_v16  ;;  %v1047_v5 = vmax.f32 %v1043_v54, 0.0  ;;  %v1121_v16 = vunpack.c.h.bf16 %v11277_v61  ;;  %v1058_v21 = vrot.slane %v1049_v9, 7  ;;  %v1061_v33 = vsel %vm530_vm1, %v1057_v20, %v1060_v22 }
  0x48   : > { %858 = vrot.lane.b32.xlu1 %v851_v7, %s14837_s8  ;;  %v1118_v7 = vunpack.c.l.bf16 %v11276_v53  ;;  %vm566_vm6 = vcmask 130049   ;;  %vm549_vm7 = vcmask 130048   ;;  %vm572_vm8 = vcmask 1040512  }
  0x49   : > { %2352 = vmatpush1.bf16.msra.mxu0 %v11406_v23  ;;  %v1056_v43 = vrot.slane %v1047_v5, 7  ;;  %v1134_v23 = vmul.f32 %v1119_v11, %v14985_v14  ;;  %v1136_v25 = vmul.f32 %v1121_v16, %v14985_v14  ;;  %vm568_vm9 = vcmask 1047680  }
  0x4a   : > { %2578 = vmatpush1.bf16.msra.mxu1 %v11408_v35  ;;  %2353 = vmatprep.subr.bf16.mxu0 %v13913_v24  ;;  %v1133_v19 = vmul.f32 %v1118_v7, %v14992_v17  ;;  %v1135_v24 = vmul.f32 %v1120_v13, %v14992_v17  ;;  %vm3613_vm10 = vcmask 1045504  }
  0x4b   : > { %860 = vrot.lane.b32.xlu0 %v15257_v45, %s14837_s8  ;;  %v13919_v45 = vld [vmem:[%s18470_s1 + $0x42c] ss:$16 sps:$4 sm:$0xff]   ;;  %2579 = vmatprep.subr.bf16.mxu1 %v13915_v31  ;;  %v1059_v30 = vsel %vm530_vm1, %v1056_v43, %v1058_v21  ;;  %v1149_v32 = vadd.f32 %v1134_v23, %v14988_v15  ;;  %v1151_v35 = vadd.f32 %v1136_v25, %v14988_v15 }
  0x4c   : > { %862 = vrot.lane.b32.xlu1 %v15264_v48, %s14837_s8  ;;  %v955_v48 = vrot.slane %v945_v34, 7  ;;  %v1148_v31 = vadd.f32 %v1133_v19, %v14995_v18  ;;  %v1150_v34 = vadd.f32 %v1135_v24, %v14995_v18 }
  0x4d   : > { %2354 = vmatpush1.bf16.msra.mxu0 %v11410_v40  ;;  %v1153_v37 = vmax.f32 %v1149_v32, 0.0  ;;  %v1155_v39 = vmax.f32 %v1151_v35, 0.0 }
  0x4e   : > { %v956_v0 = vsel %vm530_vm1, %v952_v46, %v955_v48  ;;  %2580 = vmatpush1.bf16.msra.mxu1 %v11412_v52  ;;  %2355 = vmatprep.subr.bf16.mxu0 %v13917_v41  ;;  %v1152_v36 = vmax.f32 %v1148_v31, 0.0  ;;  %v1154_v38 = vmax.f32 %v1150_v34, 0.0 }
  0x4f   : > { %957 = vrot.lane.b32.xlu0 %v951_v44, %s14837_s8  ;;  %2581 = vmatprep.subr.bf16.mxu1 %v13919_v45  ;;  %v1162_v41 = vrot.slane %v1153_v37, 7  ;;  %v1165_v44 = vrot.slane %v1155_v39, 7 }
  0x50   : > { %959 = vrot.lane.b32.xlu1 %v952_v46, %s14837_s8  ;;  %v1161_v40 = vrot.slane %v1152_v36, 7  ;;  %v1163_v42 = vrot.slane %v1154_v38, 7 }
  0x51   : > { %2356 = vmatpush1.bf16.msra.mxu0 %v11414_v55  ;;  %v1166_v47 = vsel %vm530_vm1, %v1162_v41, %v1165_v44 }
  0x52   : > { %2582 = vmatpush1.bf16.msra.mxu1 %v11416_v1  ;;  %2438 = vmatprep.subr.bf16.mxu0 %v13923_v57  ;;  %v1164_v46 = vsel %vm530_vm1, %v1161_v40, %v1163_v42 }
  0x53   : > { %961 = vrot.lane.b32.xlu0 %v954_v63, %s14837_s8  ;;  %2664 = vmatprep.subr.bf16.mxu1 %v13926_v62 }
  0x54   : > { %963 = vrot.lane.b32.xlu1 %v956_v0, %s14837_s8  ;;  %2358 = vmatmul.mubr.bf16.vlgmr.msra.gmra.mrb[0].mxu0 %v1844_v3 }
  0x55   : > { %2439 = vmatpush1.bf16.msra.mxu0 %v13921_v2  ;;  %2584 = vmatmul.mubr.bf16.vlgmr.msra.gmra.mrb[0].mxu1 %v1844_v3 }
  0x56   : > { %2665 = vmatpush1.bf16.msra.mxu1 %v13924_v12  ;;  %2440 = vmatprep.subr.bf16.mxu0 %v13929_v27 }
  0x57   : > { %965 = vrot.lane.b32.xlu0 %v953_v51, %s14837_s8  ;;  %2666 = vmatprep.subr.bf16.mxu1 %v13932_v29 }
  0x58   : > { %967 = vrot.lane.b32.xlu1 %v955_v48, %s14837_s8 }
  0x59   : > { %2441 = vmatpush1.bf16.msra.mxu0 %v13927_v26 }
  0x5a   : > { %2667 = vmatpush1.bf16.msra.mxu1 %v13930_v28  ;;  %3161 = vmatprep.subr.bf16.mxu0 %v13935_v49 }
  0x5b   : > { %1062 = vrot.lane.b32.xlu0 %v1056_v43, %s14837_s8  ;;  %3387 = vmatprep.subr.bf16.mxu1 %v13938_v6 }
  0x5c   : > { %1064 = vrot.lane.b32.xlu1 %v1057_v20, %s14837_s8 }
  0x5f   : > { %1066 = vrot.lane.b32.xlu0 %v1059_v30, %s14837_s8 }
  0x60   : > { %1068 = vrot.lane.b32.xlu1 %v1061_v33, %s14837_s8 }
  0x63   : > { %1070 = vrot.lane.b32.xlu0 %v1058_v21, %s14837_s8 }
  0x64   : > { %1072 = vrot.lane.b32.xlu1 %v1060_v22, %s14837_s8 }
  0x67   : > { %1167 = vrot.lane.b32.xlu0 %v1161_v40, %s14837_s8 }
  0x68   : > { %1169 = vrot.lane.b32.xlu1 %v1162_v41, %s14837_s8 }
  0x6b   : > { %1171 = vrot.lane.b32.xlu0 %v1164_v46, %s14837_s8 }
  0x6c   : > { %1173 = vrot.lane.b32.xlu1 %v1166_v47, %s14837_s8 }
  0x6f   : > { %1175 = vrot.lane.b32.xlu0 %v1163_v42, %s14837_s8 }
  0x70   : > { %1177 = vrot.lane.b32.xlu1 %v1165_v44, %s14837_s8 }
  0x91   : > { %v538_v45 = vpop.permute.xlu0 %537 }
  0x92   : > { %v548_v50 = vpop.permute.xlu1 %547  ;;  %564 = vst.msk [vmem:[#allocation2 + $0x48] sm:$0xfe] %vm563_vm5, %v538_v45 }
  0x93   : > { %576 = vst.msk [vmem:[#allocation2 + $0x88] sm:$0x1] %vm575_vm4, %v548_v50 }
  0x95   : > { %v540_v48 = vpop.permute.xlu0 %539 }
  0x96   : > { %v645_v51 = vpop.permute.xlu1 %644  ;;  %v550_v52 = vsel %vm549_vm7, %v538_v45, %v540_v48  ;;  %567 = vst.msk [vmem:[#allocation2 + $0x58] sm:$0xfe] %vm566_vm6, %v540_v48 }
  0x97   : > { %672 = vst.msk [vmem:[#allocation2 + $0xa0] sm:$0xfe] %vm566_vm6, %v645_v51  ;;  %565 = vst [vmem:[#allocation2 + $0x50] sm:$0xfe] %v550_v52 }
  0x99   : > { %v546_v53 = vpop.permute.xlu0 %545  ;;  %v15445_v58 = vld [vmem:[#allocation2 + $0x48] sm:$0xff] }
  0x9a   : > { %v542_v54 = vpop.permute.xlu1 %541  ;;  %v552_v55 = vsel %vm549_vm7, %v546_v53, %v548_v50  ;;  %573 = vst.msk [vmem:[#allocation2 + $0x78] sm:$0x1] %vm572_vm8, %v546_v53  ;;  %v1691_v63 = vrot.slane %v15445_v58, 1  ;;  %v3629_v34 = vrot.slane %v15445_v58, 2  ;;  %v1434_v40 = vld [vmem:[#allocation2 + $0x88] sm:$0x3] }
  0x9b   : > { %569 = vst.msk [vmem:[#allocation2 + $0x60] sm:$0xff] %vm568_vm9, %v542_v54  ;;  %574 = vst [vmem:[#allocation2 + $0x80] sm:$0x1] %v552_v55 }
  0x9d   : > { %v643_v56 = vpop.permute.xlu0 %642  ;;  %v1428_v33 = vld [vmem:[#allocation2 + $0x58] sm:$0xff] }
  0x9e   : > { %v544_v57 = vpop.permute.xlu1 %543  ;;  %v655_v59 = vsel %vm549_vm7, %v643_v56, %v645_v51  ;;  %669 = vst.msk [vmem:[#allocation2 + $0x90] sm:$0xfe] %vm563_vm5, %v643_v56  ;;  %v1427_v61 = vld [vmem:[#allocation2 + $0x50] sm:$0xff]  ;;  %v1437_v51 = vld [vmem:[#allocation2 + $0xa0] sm:$0xff] }
  0x9f   : > { %v551_v60 = vsel %vm549_vm7, %v542_v54, %v544_v57  ;;  %571 = vst.msk [vmem:[#allocation2 + $0x70] sm:$0xff] %vm549_vm7, %v544_v57  ;;  %670 = vst [vmem:[#allocation2 + $0x98] sm:$0xfe] %v655_v59  ;;  %v3632_v0 = vrot.slane %v1427_v61, 2  ;;  %v1694_v5 = vrot.slane %v1427_v61, 1 }
  0xa0   : > { %v15451_v62 = vpack.c.bf16 %v551_v60, %v1427_v61  ;;  %v3633_v1 = vrot.slane %v551_v60, 2  ;;  %v1695_v7 = vrot.slane %v551_v60, 1  ;;  %v3642_v60 = vrot.slane %v1434_v40, 2 }
  0xa1   : > { %v647_v2 = vpop.permute.xlu0 %646  ;;  %v1432_v9 = vld [vmem:[#allocation2 + $0x78] sm:$0x3] }
  0xa2   : > { %v649_v3 = vpop.permute.xlu1 %648  ;;  %v1429_v8 = vld [vmem:[#allocation2 + $0x60] sm:$0xff]  ;;  %674 = vst.msk [vmem:[#allocation2 + $0xa8] sm:$0xff] %vm568_vm9, %v647_v2  ;;  %v1700_v13 = vrot.slane %v1432_v9, 1  ;;  %v3634_v19 = vsel %vm3613_vm10, %v3632_v0, %v3633_v1  ;;  %v1696_v25 = vsel %vm1675_vm3, %v1694_v5, %v1695_v7  ;;  %v3638_v39 = vrot.slane %v1432_v9, 2 }
  0xa3   : > { %v15456_v10 = vsel %vm549_vm7, %v647_v2, %v649_v3  ;;  %676 = vst.msk [vmem:[#allocation2 + $0xb8] sm:$0xff] %vm549_vm7, %v649_v3  ;;  %v1433_v11 = vld [vmem:[#allocation2 + $0x80] sm:$0x3]  ;;  %v1692_v12 = vrot.slane %v1429_v8, 1  ;;  %v15460_v16 = vpack.c.bf16 %v1429_v8, %v15445_v58  ;;  %v3630_v28 = vrot.slane %v1429_v8, 2 }
  0xa4   : > { %v1702_v43 = vrot.slane %v1433_v11, 1  ;;  %v3640_v22 = vrot.slane %v1433_v11, 2  ;;  %v3648_v50 = vrot.slane %v15456_v10, 2  ;;  %v3635_v58 = vrot.slane %v1428_v33, 2 }
  0xa5   : > { %v1693_v20 = vsel %vm1675_vm3, %v1691_v63, %v1692_v12  ;;  %v1701_v21 = vsel %vm1675_vm3, %v1692_v12, %v1700_v13  ;;  %v651_v23 = vpop.permute.xlu0 %650  ;;  %v15477_v35 = vld [vmem:[#allocation2 + $0x90] sm:$0xff]  ;;  %v3631_v6 = vsel %vm3613_vm10, %v3629_v34, %v3630_v28  ;;  %v3639_v54 = vsel %vm3613_vm10, %v3630_v28, %v3638_v39 }
  0xa6   : > { %v653_v24 = vpop.permute.xlu1 %652  ;;  %v1703_v26 = vsel %vm1675_vm3, %v1695_v7, %v1702_v43  ;;  %v1431_v27 = vld [vmem:[#allocation2 + $0x70] sm:$0xff]  ;;  %678 = vst.msk [vmem:[#allocation2 + $0xc0] sm:$0x1] %vm572_vm8, %v651_v23  ;;  %v15472_v31 = vpack.c.bf16 %v1701_v21, %v1693_v20  ;;  %v15474_v32 = vld [vmem:[#allocation2 + $0x98] sm:$0xff]  ;;  %v3641_v38 = vsel %vm3613_vm10, %v3633_v1, %v3640_v22  ;;  %v3644_v52 = vrot.slane %v15477_v35, 2 }
  0xa7   : > { %v657_v29 = vsel %vm549_vm7, %v651_v23, %v653_v24  ;;  %681 = vst.msk [vmem:[#allocation2 + $0xd0] sm:$0x1] %vm575_vm4, %v653_v24  ;;  %v15470_v30 = vpack.c.bf16 %v1703_v26, %v1696_v25  ;;  %v15481_v36 = vpack.c.bf16 %v15456_v10, %v15474_v32  ;;  %v15483_v37 = vpack.c.bf16 %v1431_v27, %v1428_v33 }
  0xa8   : > { %18551 = vst [vmem:[#allocation5_spill] sm:$0xff] %v15472_v31  ;;  %679 = vst [vmem:[#allocation2 + $0xc8] sm:$0x1] %v657_v29  ;;  %v15488_v41 = vpack.c.bf16 %v3641_v38, %v3634_v19  ;;  %v3647_v42 = vrot.slane %v15474_v32, 2  ;;  %v15509_v57 = vpack.c.bf16 %v3639_v54, %v3631_v6  ;;  %v3636_v59 = vrot.slane %v1431_v27, 2 }
  0xa9   : > { %18550 = vst [vmem:[#allocation4_spill] sm:$0xff] %v15470_v30  ;;  %2367 = vmatprep.mubr.bf16.mxu0 %v15470_v30  ;;  %2593 = vmatprep.mubr.bf16.mxu1 %v15470_v30  ;;  %v748_v44 = vpop.permute.xlu0 %747  ;;  %v1438_v47 = vld [vmem:[#allocation2 + $0xa8] sm:$0xff]  ;;  %v1709_v0 = vrot.slane %v15474_v32, 1  ;;  %v3650_v3 = vrot.slane %v1437_v51, 2  ;;  %v1710_v13 = vrot.slane %v15456_v10, 1  ;;  %v1706_v21 = vrot.slane %v15477_v35, 1 }
  0xaa   : > { %18552 = vst [vmem:[#allocation6_spill] sm:$0xff] %v15488_v41  ;;  %v750_v46 = vpop.permute.xlu1 %749  ;;  %2368 = vmatmul.mubr.bf16.gmra.mrb[4].mxu0 %v15472_v31  ;;  %2594 = vmatmul.mubr.bf16.gmra.mrb[4].mxu1 %v15472_v31  ;;  %v15493_v49 = vld [vmem:[#allocation2 + $0xb8] sm:$0xff]  ;;  %774 = vst.msk [vmem:[#allocation2 + $0xd8] sm:$0xfe] %vm563_vm5, %v748_v44  ;;  %v15501_v48 = vpack.c.bf16 %v1438_v47, %v15477_v35  ;;  %v3649_v55 = vsel %vm3613_vm10, %v3647_v42, %v3648_v50  ;;  %v3645_v56 = vrot.slane %v1438_v47, 2 }
  0xab   : > { %v760_v45 = vsel %vm549_vm7, %v748_v44, %v750_v46  ;;  %777 = vst.msk [vmem:[#allocation2 + $0xe8] sm:$0xfe] %vm566_vm6, %v750_v46  ;;  %v15505_v53 = vpack.c.bf16 %v15493_v49, %v1437_v51  ;;  %18553 = vst [vmem:[#allocation7_spill] sm:$0xff] %v15509_v57  ;;  %v3651_v5 = vrot.slane %v15493_v49, 2  ;;  %v1707_v9 = vrot.slane %v1438_v47, 1 }
  0xac   : > { %775 = vst [vmem:[#allocation2 + $0xe0] sm:$0xfe] %v760_v45  ;;  %v3646_v2 = vsel %vm3613_vm10, %v3644_v52, %v3645_v56  ;;  %v3637_v12 = vsel %vm3613_vm10, %v3635_v58, %v3636_v59  ;;  %v3643_v19 = vsel %vm3613_vm10, %v3636_v59, %v3642_v60  ;;  %v1711_v27 = vsel %vm1675_vm3, %v1709_v0, %v1710_v13 }
  0xad   : > { %v752_v61 = vpop.permute.xlu0 %751  ;;  %v1441_v1 = vld [vmem:[#allocation2 + $0xc0] sm:$0x3]  ;;  %v3652_v20 = vsel %vm3613_vm10, %v3650_v3, %v3651_v5  ;;  %v1708_v32 = vsel %vm1675_vm3, %v1706_v21, %v1707_v9  ;;  %v15555_v52 = vpack.c.bf16 %v3643_v19, %v3637_v12 }
  0xae   : > { %v754_v63 = vpop.permute.xlu1 %753  ;;  %779 = vst.msk [vmem:[#allocation2 + $0xf0] sm:$0xff] %vm568_vm9, %v752_v61  ;;  %v1715_v11 = vrot.slane %v1441_v1, 1  ;;  %v3653_v24 = vrot.slane %v1441_v1, 2  ;;  %v15533_v34 = vld [vmem:[#allocation2 + $0xd0] sm:$0x3] }
  0xaf   : > { %v15516_v7 = vsel %vm549_vm7, %v752_v61, %v754_v63  ;;  %781 = vst.msk [vmem:[#allocation2 + $0x100] sm:$0xff] %vm549_vm7, %v754_v63  ;;  %v1442_v8 = vld [vmem:[#allocation2 + $0xc8] sm:$0x3]  ;;  %18558 = vst [vmem:[#allocation12_spill] sm:$0xff] %v15555_v52  ;;  %v3657_v54 = vrot.slane %v15533_v34, 2 }
  0xb0   : > { %v1717_v43 = vrot.slane %v1442_v8, 1  ;;  %v1716_v22 = vsel %vm1675_vm3, %v1707_v9, %v1715_v11  ;;  %v3655_v23 = vrot.slane %v1442_v8, 2  ;;  %v3654_v42 = vsel %vm3613_vm10, %v3645_v56, %v3653_v24 }
  0xb1   : > { %v756_v25 = vpop.permute.xlu0 %755  ;;  %v15535_v35 = vpack.c.bf16 %v1716_v22, %v1708_v32  ;;  %v15537_v38 = vld [vmem:[#allocation2 + $0xd8] sm:$0xff]  ;;  %v15548_v46 = vpack.c.bf16 %v3654_v42, %v3646_v2  ;;  %v3658_v0 = vsel %vm3613_vm10, %v3651_v5, %v3657_v54 }
  0xb2   : > { %v758_v26 = vpop.permute.xlu1 %757  ;;  %v1718_v28 = vsel %vm1675_vm3, %v1710_v13, %v1717_v43  ;;  %783 = vst.msk [vmem:[#allocation2 + $0x108] sm:$0x1] %vm572_vm8, %v756_v25  ;;  %v3656_v40 = vsel %vm3613_vm10, %v3648_v50, %v3655_v23  ;;  %v3663_v50 = vrot.slane %v15516_v7, 2  ;;  %v1446_v56 = vld [vmem:[#allocation2 + $0xe8] sm:$0xff]  ;;  %v3659_v58 = vrot.slane %v15537_v38, 2 }
  0xb3   : > { %v762_v10 = vsel %vm549_vm7, %v756_v25, %v758_v26  ;;  %786 = vst.msk [vmem:[#allocation2 + $0x118] sm:$0x1] %vm575_vm4, %v758_v26  ;;  %v15530_v29 = vpack.c.bf16 %v1718_v28, %v1711_v27  ;;  %v1445_v33 = vld [vmem:[#allocation2 + $0xe0] sm:$0xff]  ;;  %18555 = vst [vmem:[#allocation9_spill] sm:$0xff] %v15535_v35  ;;  %v15546_v44 = vpack.c.bf16 %v3656_v40, %v3649_v55  ;;  %v3665_v13 = vrot.slane %v1446_v56, 2 }
  0xb4   : > { %784 = vst [vmem:[#allocation2 + $0x110] sm:$0x1] %v762_v10  ;;  %v15540_v39 = vpack.c.bf16 %v15516_v7, %v1445_v33  ;;  %18557 = vst [vmem:[#allocation11_spill] sm:$0xff] %v15548_v46  ;;  %v3662_v47 = vrot.slane %v1445_v33, 2  ;;  %v1724_v8 = vrot.slane %v1445_v33, 1  ;;  %v15572_v12 = vpack.c.bf16 %v3658_v0, %v3652_v20 }
  0xb5   : > { %18554 = vst [vmem:[#allocation8_spill] sm:$0xff] %v15530_v29  ;;  %2377 = vmatprep.mubr.bf16.mxu0 %v15530_v29  ;;  %2603 = vmatprep.mubr.bf16.mxu1 %v15530_v29  ;;  %18556 = vst [vmem:[#allocation10_spill] sm:$0xff] %v15546_v44  ;;  %v853_v49 = vpop.permute.xlu0 %852  ;;  %v1447_v45 = vld [vmem:[#allocation2 + $0xf0] sm:$0xff]  ;;  %v1725_v23 = vrot.slane %v15516_v7, 1  ;;  %v1721_v26 = vrot.slane %v15537_v38, 1 }
  0xb6   : > { %2378 = vmatmul.mubr.bf16.gmra.mrb[8].mxu0 %v15535_v35  ;;  %2604 = vmatmul.mubr.bf16.gmra.mrb[8].mxu1 %v15535_v35  ;;  %v855_v6 = vpop.permute.xlu1 %854  ;;  %v15552_v51 = vld [vmem:[#allocation2 + $0x100] sm:$0xff]  ;;  %879 = vst.msk [vmem:[#allocation2 + $0x120] sm:$0xfe] %vm563_vm5, %v853_v49  ;;  %v15563_v59 = vpack.c.bf16 %v1447_v45, %v15537_v38  ;;  %v3664_v61 = vsel %vm3613_vm10, %v3662_v47, %v3663_v50  ;;  %v3660_v63 = vrot.slane %v1447_v45, 2  ;;  %18559 = vst [vmem:[#allocation13_spill] sm:$0xff] %v15572_v12 }
  0xb7   : > { %v865_v55 = vsel %vm549_vm7, %v853_v49, %v855_v6  ;;  %882 = vst.msk [vmem:[#allocation2 + $0x130] sm:$0xfe] %vm566_vm6, %v855_v6  ;;  %v15566_v60 = vpack.c.bf16 %v15552_v51, %v1446_v56  ;;  %v3666_v1 = vrot.slane %v15552_v51, 2  ;;  %v1722_v5 = vrot.slane %v1447_v45, 1 }
  0xb8   : > { %880 = vst [vmem:[#allocation2 + $0x128] sm:$0xfe] %v865_v55  ;;  %v3661_v11 = vsel %vm3613_vm10, %v3659_v58, %v3660_v63  ;;  %v1726_v33 = vsel %vm1675_vm3, %v1724_v8, %v1725_v23 }
  0xb9   : > { %v857_v2 = vpop.permute.xlu0 %856  ;;  %v1450_v9 = vld [vmem:[#allocation2 + $0x108] sm:$0x3]  ;;  %v3667_v28 = vsel %vm3613_vm10, %v3665_v13, %v3666_v1  ;;  %v1723_v6 = vsel %vm1675_vm3, %v1721_v26, %v1722_v5 }
  0xba   : > { %v859_v3 = vpop.permute.xlu1 %858  ;;  %884 = vst.msk [vmem:[#allocation2 + $0x138] sm:$0xff] %vm568_vm9, %v857_v2  ;;  %v1730_v21 = vrot.slane %v1450_v9, 1  ;;  %v3668_v22 = vrot.slane %v1450_v9, 2  ;;  %v15588_v47 = vld [vmem:[#allocation2 + $0x118] sm:$0x3] }
  0xbb   : > { %v15576_v43 = vsel %vm549_vm7, %v857_v2, %v859_v3  ;;  %886 = vst.msk [vmem:[#allocation2 + $0x148] sm:$0xff] %vm549_vm7, %v859_v3  ;;  %v1451_v19 = vld [vmem:[#allocation2 + $0x110] sm:$0x3] }
  0xbc   : > { %v1732_v24 = vrot.slane %v1451_v19, 1  ;;  %v3670_v25 = vrot.slane %v1451_v19, 2  ;;  %v1731_v20 = vsel %vm1675_vm3, %v1722_v5, %v1730_v21  ;;  %v3669_v27 = vsel %vm3613_vm10, %v3660_v63, %v3668_v22 }
  0xbd   : > { %v861_v10 = vpop.permute.xlu0 %860  ;;  %v15586_v42 = vld [vmem:[#allocation2 + $0x120] sm:$0xff]  ;;  %v15597_v51 = vpack.c.bf16 %v1731_v20, %v1723_v6  ;;  %v3672_v63 = vrot.slane %v15588_v47, 2 }
  0xbe   : > { %v863_v32 = vpop.permute.xlu1 %862  ;;  %v1733_v40 = vsel %vm1675_vm3, %v1725_v23, %v1732_v24  ;;  %v3671_v7 = vsel %vm3613_vm10, %v3663_v50, %v3670_v25  ;;  %888 = vst.msk [vmem:[#allocation2 + $0x150] sm:$0x1] %vm572_vm8, %v861_v10  ;;  %v15604_v50 = vpack.c.bf16 %v3669_v27, %v3661_v11  ;;  %v1455_v56 = vld [vmem:[#allocation2 + $0x130] sm:$0xff]  ;;  %v3674_v13 = vrot.slane %v15586_v42, 2 }
  0xbf   : > { %v867_v38 = vsel %vm549_vm7, %v861_v10, %v863_v32  ;;  %891 = vst.msk [vmem:[#allocation2 + $0x160] sm:$0x1] %vm575_vm4, %v863_v32  ;;  %v15594_v49 = vpack.c.bf16 %v1733_v40, %v1726_v33  ;;  %v1454_v45 = vld [vmem:[#allocation2 + $0x128] sm:$0xff]  ;;  %18561 = vst [vmem:[#allocation15_spill] sm:$0xff] %v15597_v51  ;;  %v15602_v55 = vpack.c.bf16 %v3671_v7, %v3664_v61  ;;  %v3678_v61 = vrot.slane %v15576_v43, 2 }
  0xc0   : > { %889 = vst [vmem:[#allocation2 + $0x158] sm:$0x1] %v867_v38  ;;  %v15600_v54 = vpack.c.bf16 %v15576_v43, %v1454_v45  ;;  %18563 = vst [vmem:[#allocation17_spill] sm:$0xff] %v15604_v50  ;;  %v3677_v58 = vrot.slane %v1454_v45, 2  ;;  %v3673_v22 = vsel %vm3613_vm10, %v3666_v1, %v3672_v63  ;;  %v1739_v20 = vrot.slane %v1454_v45, 1 }
  0xc1   : > { %18560 = vst [vmem:[#allocation14_spill] sm:$0xff] %v15594_v49  ;;  %18562 = vst [vmem:[#allocation16_spill] sm:$0xff] %v15602_v55  ;;  %2387 = vmatprep.mubr.bf16.mxu0 %v15594_v49  ;;  %2613 = vmatprep.mubr.bf16.mxu1 %v15594_v49  ;;  %v958_v0 = vpop.permute.xlu0 %957  ;;  %v1456_v3 = vld [vmem:[#allocation2 + $0x138] sm:$0xff]  ;;  %v15626_v23 = vpack.c.bf16 %v3673_v22, %v3667_v28  ;;  %v3680_v32 = vrot.slane %v1455_v56, 2  ;;  %v1740_v38 = vrot.slane %v15576_v43, 1  ;;  %v1736_v45 = vrot.slane %v15586_v42, 1 }
  0xc2   : > { %2388 = vmatmul.mubr.bf16.gmra.mrb[12].mxu0 %v15597_v51  ;;  %2614 = vmatmul.mubr.bf16.gmra.mrb[12].mxu1 %v15597_v51  ;;  %v960_v2 = vpop.permute.xlu1 %959  ;;  %v15611_v8 = vld [vmem:[#allocation2 + $0x148] sm:$0xff]  ;;  %984 = vst.msk [vmem:[#allocation2 + $0x168] sm:$0xfe] %vm563_vm5, %v958_v0  ;;  %v15618_v11 = vpack.c.bf16 %v1456_v3, %v15586_v42  ;;  %v3679_v5 = vsel %vm3613_vm10, %v3677_v58, %v3678_v61  ;;  %v3675_v21 = vrot.slane %v1456_v3, 2  ;;  %v1737_v1 = vrot.slane %v1456_v3, 1 }
  0xc3   : > { %v970_v9 = vsel %vm549_vm7, %v958_v0, %v960_v2  ;;  %987 = vst.msk [vmem:[#allocation2 + $0x178] sm:$0xfe] %vm566_vm6, %v960_v2  ;;  %v15622_v19 = vpack.c.bf16 %v15611_v8, %v1455_v56  ;;  %18565 = vst [vmem:[#allocation19_spill] sm:$0xff] %v15626_v23  ;;  %v3681_v24 = vrot.slane %v15611_v8, 2 }
  0xc4   : > { %985 = vst [vmem:[#allocation2 + $0x170] sm:$0xfe] %v970_v9  ;;  %v3676_v10 = vsel %vm3613_vm10, %v3674_v13, %v3675_v21  ;;  %v1741_v13 = vsel %vm1675_vm3, %v1739_v20, %v1740_v38 }
  0xc5   : > { %18564 = vst [vmem:[#allocation18_spill] sm:$0xff] %v15622_v19  ;;  %v962_v25 = vpop.permute.xlu0 %961  ;;  %v1459_v27 = vld [vmem:[#allocation2 + $0x150] sm:$0x3]  ;;  %v3682_v0 = vsel %vm3613_vm10, %v3680_v32, %v3681_v24 }
  0xc6   : > { %v964_v26 = vpop.permute.xlu1 %963  ;;  %989 = vst.msk [vmem:[#allocation2 + $0x180] sm:$0xff] %vm568_vm9, %v962_v25  ;;  %v1745_v28 = vrot.slane %v1459_v27, 1  ;;  %v3683_v7 = vrot.slane %v1459_v27, 2 }
  0xc7   : > { %v15632_v33 = vsel %vm549_vm7, %v962_v25, %v964_v26  ;;  %991 = vst.msk [vmem:[#allocation2 + $0x190] sm:$0xff] %vm549_vm7, %v964_v26  ;;  %v1460_v40 = vld [vmem:[#allocation2 + $0x158] sm:$0x3]  ;;  %v15644_v25 = vld [vmem:[#allocation2 + $0x160] sm:$0x3]  ;;  %v1738_v26 = vsel %vm1675_vm3, %v1736_v45, %v1737_v1 }
  0xc8   : > { %v1747_v6 = vrot.slane %v1460_v40, 1  ;;  %v3685_v58 = vrot.slane %v1460_v40, 2  ;;  %v1746_v63 = vsel %vm1675_vm3, %v1737_v1, %v1745_v28  ;;  %v3684_v56 = vsel %vm3613_vm10, %v3675_v21, %v3683_v7 }
  0xc9   : > { %v966_v2 = vpop.permute.xlu0 %965  ;;  %v15642_v22 = vld [vmem:[#allocation2 + $0x168] sm:$0xff]  ;;  %v15653_v20 = vpack.c.bf16 %v1746_v63, %v1738_v26  ;;  %v3687_v1 = vrot.slane %v15644_v25, 2 }
  0xca   : > { %v968_v9 = vpop.permute.xlu1 %967  ;;  %v1748_v3 = vsel %vm1675_vm3, %v1740_v38, %v1747_v6  ;;  %v3686_v43 = vsel %vm3613_vm10, %v3678_v61, %v3685_v58  ;;  %993 = vst.msk [vmem:[#allocation2 + $0x198] sm:$0x1] %vm572_vm8, %v966_v2  ;;  %v15660_v61 = vpack.c.bf16 %v3684_v56, %v3676_v10  ;;  %v15664_v28 = vld [vmem:[#allocation2 + $0x178] sm:$0xff]  ;;  %v3693_v10 = vrot.slane %v15632_v33, 2 }
  0xcb   : > { %v972_v42 = vsel %vm549_vm7, %v966_v2, %v968_v9  ;;  %996 = vst.msk [vmem:[#allocation2 + $0x1a8] sm:$0x1] %vm575_vm4, %v968_v9  ;;  %v15650_v21 = vpack.c.bf16 %v1748_v3, %v1741_v13  ;;  %v1463_v27 = vld [vmem:[#allocation2 + $0x170] sm:$0xff]  ;;  %18567 = vst [vmem:[#allocation21_spill] sm:$0xff] %v15653_v20  ;;  %v15658_v40 = vpack.c.bf16 %v3686_v43, %v3679_v5  ;;  %v3689_v56 = vrot.slane %v15642_v22, 2 }
  0xcc   : > { %994 = vst [vmem:[#allocation2 + $0x1a0] sm:$0x1] %v972_v42  ;;  %v15656_v32 = vpack.c.bf16 %v15632_v33, %v1463_v27  ;;  %18569 = vst [vmem:[#allocation23_spill] sm:$0xff] %v15660_v61  ;;  %v3692_v7 = vrot.slane %v1463_v27, 2  ;;  %v3688_v3 = vsel %vm3613_vm10, %v3681_v24, %v3687_v1  ;;  %v3695_v42 = vrot.slane %v15664_v28, 2 }
  0xcd   : > { %18566 = vst [vmem:[#allocation20_spill] sm:$0xff] %v15650_v21  ;;  %18568 = vst [vmem:[#allocation22_spill] sm:$0xff] %v15658_v40  ;;  %2397 = vmatprep.mubr.bf16.mxu0 %v15650_v21  ;;  %2623 = vmatprep.mubr.bf16.mxu1 %v15650_v21  ;;  %v1063_v38 = vpop.permute.xlu0 %1062  ;;  %v1465_v58 = vld [vmem:[#allocation2 + $0x180] sm:$0xff]  ;;  %v15685_v43 = vpack.c.bf16 %v3688_v3, %v3682_v0  ;;  %v1754_v4 = vrot.slane %v1463_v27, 1  ;;  %v1755_v3 = vrot.slane %v15632_v33, 1  ;;  %v1751_v27 = vrot.slane %v15642_v22, 1 }
  0xce   : > { %2398 = vmatmul.mubr.bf16.gmra.mrb[16].mxu0 %v15653_v20  ;;  %2624 = vmatmul.mubr.bf16.gmra.mrb[16].mxu1 %v15653_v20  ;;  %v1065_v6 = vpop.permute.xlu1 %1064  ;;  %v15669_v5 = vld [vmem:[#allocation2 + $0x190] sm:$0xff]  ;;  %1089 = vst.msk [vmem:[#allocation2 + $0x1b0] sm:$0xfe] %vm563_vm5, %v1063_v38  ;;  %v15676_v63 = vpack.c.bf16 %v1465_v58, %v15642_v22  ;;  %v3694_v9 = vsel %vm3613_vm10, %v3692_v7, %v3693_v10  ;;  %v3690_v13 = vrot.slane %v1465_v58, 2  ;;  %v1752_v0 = vrot.slane %v1465_v58, 1 }
  0xcf   : > { %v1075_v45 = vsel %vm549_vm7, %v1063_v38, %v1065_v6  ;;  %1092 = vst.msk [vmem:[#allocation2 + $0x1c0] sm:$0xfe] %vm566_vm6, %v1065_v6  ;;  %v15681_v2 = vpack.c.bf16 %v15669_v5, %v15664_v28  ;;  %18571 = vst [vmem:[#allocation25_spill] sm:$0xff] %v15685_v43  ;;  %v3696_v26 = vrot.slane %v15669_v5, 2 }
  0xd0   : > { %1090 = vst [vmem:[#allocation2 + $0x1b8] sm:$0xfe] %v1075_v45  ;;  %v3691_v45 = vsel %vm3613_vm10, %v3689_v56, %v3690_v13 }
  0xd1   : > { %18570 = vst [vmem:[#allocation24_spill] sm:$0xff] %v15681_v2  ;;  %v1067_v38 = vpop.permute.xlu0 %1066  ;;  %v1468_v20 = vld [vmem:[#allocation2 + $0x198] sm:$0x3]  ;;  %v3697_v1 = vsel %vm3613_vm10, %v3695_v42, %v3696_v26 }
  0xd2   : > { %v1069_v6 = vpop.permute.xlu1 %1068  ;;  %1094 = vst.msk [vmem:[#allocation2 + $0x1c8] sm:$0xff] %vm568_vm9, %v1067_v38  ;;  %v1760_v7 = vrot.slane %v1468_v20, 1  ;;  %v3698_v35 = vrot.slane %v1468_v20, 2  ;;  %v15703_v58 = vld [vmem:[#allocation2 + $0x1a8] sm:$0x3]  ;;  %v1753_v20 = vsel %vm1675_vm3, %v1751_v27, %v1752_v0 }
  0xd3   : > { %v15692_v21 = vsel %vm549_vm7, %v1067_v38, %v1069_v6  ;;  %1096 = vst.msk [vmem:[#allocation2 + $0x1d8] sm:$0xff] %vm549_vm7, %v1069_v6  ;;  %v1469_v24 = vld [vmem:[#allocation2 + $0x1a0] sm:$0x3]  ;;  %v1756_v38 = vsel %vm1675_vm3, %v1754_v4, %v1755_v3 }
  0xd4   : > { %v1762_v51 = vrot.slane %v1469_v24, 1  ;;  %v1761_v49 = vsel %vm1675_vm3, %v1752_v0, %v1760_v7  ;;  %v3700_v56 = vrot.slane %v1469_v24, 2  ;;  %v3699_v7 = vsel %vm3613_vm10, %v3690_v13, %v3698_v35 }
  0xd5   : > { %v1071_v29 = vpop.permute.xlu0 %1070  ;;  %v15701_v30 = vld [vmem:[#allocation2 + $0x1b0] sm:$0xff]  ;;  %v15711_v24 = vpack.c.bf16 %v1761_v49, %v1753_v20  ;;  %v15724_v0 = vpack.c.bf16 %v3699_v7, %v3691_v45  ;;  %v3708_v35 = vrot.slane %v15692_v21, 2  ;;  %v3702_v13 = vrot.slane %v15703_v58, 2 }
  0xd6   : > { %v1073_v31 = vpop.permute.xlu1 %1072  ;;  %v1763_v6 = vsel %vm1675_vm3, %v1755_v3, %v1762_v51  ;;  %1098 = vst.msk [vmem:[#allocation2 + $0x1e0] sm:$0x1] %vm572_vm8, %v1071_v29  ;;  %v3701_v51 = vsel %vm3613_vm10, %v3693_v10, %v3700_v56  ;;  %v1770_v43 = vrot.slane %v15692_v21, 1  ;;  %v1766_v52 = vrot.slane %v15701_v30, 1 }
  0xd7   : > { %v1077_v33 = vsel %vm549_vm7, %v1071_v29, %v1073_v31  ;;  %1101 = vst.msk [vmem:[#allocation2 + $0x1f0] sm:$0x1] %vm575_vm4, %v1073_v31  ;;  %v15708_v22 = vpack.c.bf16 %v1763_v6, %v1756_v38  ;;  %v1472_v42 = vld [vmem:[#allocation2 + $0x1b8] sm:$0xff]  ;;  %18573 = vst [vmem:[#allocation27_spill] sm:$0xff] %v15711_v24  ;;  %v15720_v31 = vld [vmem:[#allocation2 + $0x1c0] sm:$0xff]  ;;  %v15722_v29 = vpack.c.bf16 %v3701_v51, %v3694_v9  ;;  %v3704_v38 = vrot.slane %v15701_v30, 2 }
  0xd8   : > { %1099 = vst [vmem:[#allocation2 + $0x1e8] sm:$0x1] %v1077_v33  ;;  %v15714_v4 = vpack.c.bf16 %v15692_v21, %v1472_v42  ;;  %18575 = vst [vmem:[#allocation29_spill] sm:$0xff] %v15724_v0  ;;  %v3707_v3 = vrot.slane %v1472_v42, 2  ;;  %v3703_v51 = vsel %vm3613_vm10, %v3696_v26, %v3702_v13  ;;  %v3710_v12 = vrot.slane %v15720_v31, 2 }
  0xd9   : > { %18572 = vst [vmem:[#allocation26_spill] sm:$0xff] %v15708_v22  ;;  %2407 = vmatprep.mubr.bf16.mxu0 %v15708_v22  ;;  %2633 = vmatprep.mubr.bf16.mxu1 %v15708_v22  ;;  %18574 = vst [vmem:[#allocation28_spill] sm:$0xff] %v15722_v29  ;;  %v1168_v49 = vpop.permute.xlu0 %1167  ;;  %v1474_v10 = vld [vmem:[#allocation2 + $0x1c8] sm:$0xff]  ;;  %v15745_v7 = vpack.c.bf16 %v3703_v51, %v3697_v1  ;;  %v1769_v22 = vrot.slane %v1472_v42, 1 }
  0xda   : > { %2408 = vmatmul.mubr.bf16.gmra.mrb[20].mxu0 %v15711_v24  ;;  %2634 = vmatmul.mubr.bf16.gmra.mrb[20].mxu1 %v15711_v24  ;;  %v1170_v27 = vpop.permute.xlu1 %1169  ;;  %v15728_v56 = vld [vmem:[#allocation2 + $0x1d8] sm:$0xff]  ;;  %1194 = vst.msk [vmem:[#allocation2 + $0x1f8] sm:$0xfe] %vm563_vm5, %v1168_v49  ;;  %v15736_v45 = vpack.c.bf16 %v1474_v10, %v15701_v30  ;;  %v3709_v33 = vsel %vm3613_vm10, %v3707_v3, %v3708_v35  ;;  %v3705_v20 = vrot.slane %v1474_v10, 2  ;;  %v1767_v1 = vrot.slane %v1474_v10, 1 }
  0xdb   : > { %v1180_v9 = vsel %vm549_vm7, %v1168_v49, %v1170_v27  ;;  %1197 = vst.msk [vmem:[#allocation2 + $0x208] sm:$0xfe] %vm566_vm6, %v1170_v27  ;;  %v15741_v6 = vpack.c.bf16 %v15728_v56, %v15720_v31  ;;  %18577 = vst [vmem:[#allocation31_spill] sm:$0xff] %v15745_v7  ;;  %v3711_v49 = vrot.slane %v15728_v56, 2 }
  0xdc   : > { %1195 = vst [vmem:[#allocation2 + $0x200] sm:$0xfe] %v1180_v9  ;;  %v3706_v9 = vsel %vm3613_vm10, %v3704_v38, %v3705_v20 }
  0xdd   : > { %18576 = vst [vmem:[#allocation30_spill] sm:$0xff] %v15741_v6  ;;  %v1172_v27 = vpop.permute.xlu0 %1171  ;;  %v1477_v23 = vld [vmem:[#allocation2 + $0x1e0] sm:$0x3]  ;;  %v3712_v29 = vsel %vm3613_vm10, %v3710_v12, %v3711_v49  ;;  %v1768_v12 = vsel %vm1675_vm3, %v1766_v52, %v1767_v1 }
  0xde   : > { %v1174_v24 = vpop.permute.xlu1 %1173  ;;  %1199 = vst.msk [vmem:[#allocation2 + $0x210] sm:$0xff] %vm568_vm9, %v1172_v27  ;;  %v1775_v13 = vrot.slane %v1477_v23, 1  ;;  %v3713_v51 = vrot.slane %v1477_v23, 2  ;;  %v15756_v42 = vld [vmem:[#allocation2 + $0x1f0] sm:$0x3] }
  0xdf   : > { %v15753_v3 = vsel %vm549_vm7, %v1172_v27, %v1174_v24  ;;  %1201 = vst.msk [vmem:[#allocation2 + $0x220] sm:$0xff] %vm549_vm7, %v1174_v24  ;;  %v1478_v26 = vld [vmem:[#allocation2 + $0x1e8] sm:$0x3]  ;;  %v1771_v24 = vsel %vm1675_vm3, %v1769_v22, %v1770_v43  ;;  %v3717_v52 = vrot.slane %v15756_v42, 2 }
  0xe0   : > { %v1777_v7 = vrot.slane %v1478_v26, 1  ;;  %v3715_v21 = vrot.slane %v1478_v26, 2  ;;  %v1776_v38 = vsel %vm1675_vm3, %v1767_v1, %v1775_v13  ;;  %v3714_v0 = vsel %vm3613_vm10, %v3705_v20, %v3713_v51 }
  0xe1   : > { %v1176_v27 = vpop.permute.xlu0 %1175  ;;  %v1480_v40 = vld [vmem:[#allocation2 + $0x1f8] sm:$0xff]  ;;  %v15773_v22 = vpack.c.bf16 %v1776_v38, %v1768_v12 }
  0xe2   : > { %v1178_v61 = vpop.permute.xlu1 %1177  ;;  %v1778_v10 = vsel %vm1675_vm3, %v1770_v43, %v1777_v7  ;;  %v15764_v23 = vld [vmem:[#allocation2 + $0x208] sm:$0xff]  ;;  %v3716_v50 = vsel %vm3613_vm10, %v3708_v35, %v3715_v21  ;;  %1203 = vst.msk [vmem:[#allocation2 + $0x228] sm:$0x1] %vm572_vm8, %v1176_v27  ;;  %v1419_v43 = vld [vmem:[#allocation2 + $0x10] sm:$0xff]  ;;  %v15780_v35 = vpack.c.bf16 %v3714_v0, %v3706_v9  ;;  %v3719_v9 = vrot.slane %v1480_v40, 2 }
  0xe3   : > { %v1182_v30 = vsel %vm549_vm7, %v1176_v27, %v1178_v61  ;;  %1206 = vst.msk [vmem:[#allocation2 + $0x238] sm:$0x1] %vm575_vm4, %v1178_v61  ;;  %v15770_v20 = vpack.c.bf16 %v1778_v10, %v1771_v24  ;;  %v1481_v26 = vld [vmem:[#allocation2 + $0x200] sm:$0xff]  ;;  %18579 = vst [vmem:[#allocation33_spill] sm:$0xff] %v15773_v22  ;;  %v15778_v13 = vpack.c.bf16 %v3716_v50, %v3709_v33  ;;  %v1422_v61 = vld [vmem:[#allocation2 + $0x28] sm:$0xff]  ;;  %v3723_v50 = vrot.slane %v15753_v3, 2 }
  0xe4   : > { %1204 = vst [vmem:[#allocation2 + $0x230] sm:$0x1] %v1182_v30  ;;  %v15776_v7 = vpack.c.bf16 %v15753_v3, %v1481_v26  ;;  %18581 = vst [vmem:[#allocation35_spill] sm:$0xff] %v15780_v35  ;;  %v3722_v51 = vrot.slane %v1481_v26, 2  ;;  %v3725_v38 = vrot.slane %v15764_v23, 2  ;;  %v3718_v30 = vsel %vm3613_vm10, %v3711_v49, %v3717_v52 }
  0xe5   : > { %18578 = vst [vmem:[#allocation32_spill] sm:$0xff] %v15770_v20  ;;  %18580 = vst [vmem:[#allocation34_spill] sm:$0xff] %v15778_v13  ;;  %2417 = vmatprep.mubr.bf16.mxu0 %v15770_v20  ;;  %2643 = vmatprep.mubr.bf16.mxu1 %v15770_v20  ;;  %v1483_v1 = vld [vmem:[#allocation2 + $0x210] sm:$0xff]  ;;  %v1425_v27 = vld [vmem:[#allocation2 + $0x40] sm:$0x3]  ;;  %v1682_v20 = vrot.slane %v1419_v43, 1  ;;  %v15800_v13 = vpack.c.bf16 %v3718_v30, %v3712_v29 }
  0xe6   : > { %2418 = vmatmul.mubr.bf16.gmra.mrb[24].mxu0 %v15773_v22  ;;  %2644 = vmatmul.mubr.bf16.gmra.mrb[24].mxu1 %v15773_v22  ;;  %v15787_v21 = vld [vmem:[#allocation2 + $0x220] sm:$0xff]  ;;  %v15790_v33 = vpack.c.bf16 %v1483_v1, %v1480_v40  ;;  %v3724_v24 = vsel %vm3613_vm10, %v3722_v51, %v3723_v50  ;;  %v3720_v10 = vrot.slane %v1483_v1, 2  ;;  %v1784_v22 = vrot.slane %v1481_v26, 1 }
  0xe7   : > { %v15794_v0 = vpack.c.bf16 %v15787_v21, %v15764_v23  ;;  %v3726_v12 = vrot.slane %v15787_v21, 2  ;;  %v1683_v35 = vrot.slane %v1422_v61, 1  ;;  %18583 = vst [vmem:[#allocation37_spill] sm:$0xff] %v15800_v13  ;;  %v1782_v46 = vrot.slane %v1483_v1, 1 }
  0xe8   : > { %v3721_v57 = vsel %vm3613_vm10, %v3719_v9, %v3720_v10  ;;  %v1785_v51 = vrot.slane %v15753_v3, 1  ;;  %v1781_v43 = vrot.slane %v1480_v40, 1  ;;  %v1689_v30 = vrot.slane %v1425_v27, 1  ;;  %v13941_v27 = vld [vmem:[%s18470_s1 + $0x24] ss:$16 sps:$4 sm:$0xff]  }
  0xe9   : > { %18582 = vst [vmem:[#allocation36_spill] sm:$0xff] %v15794_v0  ;;  %v1486_v55 = vld [vmem:[#allocation2 + $0x228] sm:$0x3]  ;;  %v3727_v41 = vsel %vm3613_vm10, %v3725_v38, %v3726_v12 }
  0xea   : > { %v15802_v44 = vld [vmem:[#allocation2 + $0x238] sm:$0x3]  ;;  %v1790_v6 = vrot.slane %v1486_v55, 1  ;;  %v3728_v49 = vrot.slane %v1486_v55, 2  ;;  %v1786_v9 = vsel %vm1675_vm3, %v1784_v22, %v1785_v51  ;;  %v1783_v3 = vsel %vm1675_vm3, %v1781_v43, %v1782_v46  ;;  %v13933_v22 = vld [vmem:[%s18470_s1] ss:$16 sps:$4 sm:$0xff]  }
  0xeb   : > { %v1487_v0 = vld [vmem:[#allocation2 + $0x230] sm:$0x3]  ;;  %v3732_v52 = vrot.slane %v15802_v44, 2  ;;  %v13947_v43 = vld [vmem:[%s18470_s1 + $0x44] ss:$16 sps:$4 sm:$0xff]  }
  0xec   : > { %v1792_v26 = vrot.slane %v1487_v0, 1  ;;  %v3730_v61 = vrot.slane %v1487_v0, 2  ;;  %v1791_v29 = vsel %vm1675_vm3, %v1782_v46, %v1790_v6  ;;  %v3729_v1 = vsel %vm3613_vm10, %v3720_v10, %v3728_v49 }
  0xed   : > { %v3733_v13 = vsel %vm3613_vm10, %v3726_v12, %v3732_v52  ;;  %v15819_v40 = vpack.c.bf16 %v3729_v1, %v3721_v57  ;;  %v15823_v0 = vpack.c.bf16 %v1791_v29, %v1783_v3  ;;  %v18522_v46 = vmov 0   ;;  %v13942_v12 = vld [vmem:[%s18470_s1 + $0x28] ss:$16 sps:$4 sm:$0xff]   ;;  %v13945_v1 = vld [vmem:[%s18470_s1 + $0x40] ss:$16 sps:$4 sm:$0xff]  }
  0xee   : > { %v1793_v38 = vsel %vm1675_vm3, %v1785_v51, %v1792_v26  ;;  %v3731_v55 = vsel %vm3613_vm10, %v3723_v50, %v3730_v61  ;;  %v15821_v6 = vpack.c.bf16 %v3733_v13, %v3727_v41  ;;  %v1684_v57 = vsel %vm1675_vm3, %v1682_v20, %v1683_v35  ;;  %v13936_v13 = vld [vmem:[%s18470_s1 + $0x8] ss:$16 sps:$4 sm:$0xff]   ;;  %v13939_v20 = vld [vmem:[%s18470_s1 + $0x20] ss:$16 sps:$4 sm:$0xff]   ;;  %v13950_v61 = vld [vmem:[%s18470_s1 + $0x4c] ss:$16 sps:$4 sm:$0xff]  }
  0xef   : > { %v15815_v2 = vpack.c.bf16 %v1793_v38, %v1786_v9  ;;  %v15817_v19 = vpack.c.bf16 %v3731_v55, %v3724_v24  ;;  %18585 = vst [vmem:[#allocation39_spill] sm:$0xff] %v15819_v40  ;;  %v1690_v41 = vsel %vm1675_vm3, %v1683_v35, %v1689_v30  ;;  %v13944_v24 = vld [vmem:[%s18470_s1 + $0x2c] ss:$16 sps:$4 sm:$0xff]   ;;  %v14797_v35 = vld [vmem:[#allocation2 + $0x70] sm:$0xff]  ;;  %v14799_v52 = vld [vmem:[#allocation2 + $0x88] sm:$0x3] }
  0xf0   : > { %v1846_v50 = vpack.c.bf16 %v1690_v41, %v1684_v57  ;;  %v1698_v10 = vrot.slane %v14797_v35, 1  ;;  %v14798_v51 = vld [vmem:[#allocation2 + $0x58] sm:$0xff]  ;;  %v1704_v26 = vrot.slane %v14799_v52, 1  ;;  %v13953_v3 = vld [vmem:[%s18470_s1 + $0x64] ss:$16 sps:$4 sm:$0xff]   ;;  %v1719_v57 = vrot.slane %v15533_v34, 1 }
  0xf1   : > { %18584 = vst [vmem:[#allocation38_spill] sm:$0xff] %v15817_v19  ;;  %2427 = vmatprep.mubr.bf16.mxu0 %v15815_v2  ;;  %2653 = vmatprep.mubr.bf16.mxu1 %v15815_v2  ;;  %v1697_v49 = vrot.slane %v14798_v51, 1  ;;  %v13948_v9 = vld [vmem:[%s18470_s1 + $0x48] ss:$16 sps:$4 sm:$0xff]   ;;  %v13956_v55 = vld [vmem:[%s18470_s1 + $0x6c] ss:$16 sps:$4 sm:$0xff]  }
  0xf2   : > { %2428 = vmatmul.mubr.bf16.gmra.mrb[28].mxu0 %v15823_v0  ;;  %2654 = vmatmul.mubr.bf16.gmra.mrb[28].mxu1 %v15823_v0  ;;  %v1705_v30 = vsel %vm1675_vm3, %v1698_v10, %v1704_v26  ;;  %v13951_v41 = vld [vmem:[%s18470_s1 + $0x60] ss:$16 sps:$4 sm:$0xff]   ;;  %v13959_v34 = vld [vmem:[%s18470_s1 + $0x84] ss:$16 sps:$4 sm:$0xff]   ;;  %v13968_v26 = vld [vmem:[%s18470_s1 + $0xac] ss:$16 sps:$4 sm:$0xff]  }
  0xf3   : > { %2470 = vmatprep.mubr.bf16.mxu0 %v18522_v46  ;;  %2696 = vmatprep.mubr.bf16.mxu1 %v18522_v46  ;;  %v1699_v29 = vsel %vm1675_vm3, %v1697_v49, %v1698_v10  ;;  %v13957_v10 = vld [vmem:[%s18470_s1 + $0x80] ss:$16 sps:$4 sm:$0xff]   ;;  %v13965_v52 = vld [vmem:[%s18470_s1 + $0xa4] ss:$16 sps:$4 sm:$0xff]  }
  0xf4   : > { %v15869_v38 = vpack.c.bf16 %v1705_v30, %v1699_v29  ;;  %v13966_v29 = vld [vmem:[%s18470_s1 + $0xa8] ss:$16 sps:$4 sm:$0xff]   ;;  %v14802_v30 = vld [vmem:[#allocation2 + $0x100] sm:$0xff] }
  0xfa   : > { %11426 = vmatmul.mubr.msk.bf16.vlgmr.msra.gmra.mrb[0].mxu0 %vm277_vm2, %v1846_v50  ;;  %11434 = vmatmul.mubr.msk.bf16.vlgmr.msra.gmra.mrb[0].mxu1 %vm277_vm2, %v1846_v50 }
  0xfb   : > { %3162 = vmatpush1.bf16.msra.mxu0 %v13933_v22  ;;  %3388 = vmatpush1.bf16.msra.mxu1 %v13936_v13  ;;  %v13954_v22 = vld [vmem:[%s18470_s1 + $0x68] ss:$16 sps:$4 sm:$0xff]  }
  0xfc   : > { %3163 = vmatprep.subr.bf16.mxu0 %v13941_v27  ;;  %3389 = vmatprep.subr.bf16.mxu1 %v13944_v24  ;;  %v14800_v13 = vld [vmem:[#allocation2 + $0xb8] sm:$0xff]  ;;  %v14801_v24 = vld [vmem:[#allocation2 + $0xa0] sm:$0xff] }
  0xfd   : > { %2480 = vmatprep.mubr.bf16.mxu0 %v18522_v46  ;;  %2706 = vmatprep.mubr.bf16.mxu1 %v18522_v46  ;;  %v1713_v50 = vrot.slane %v14800_v13, 1  ;;  %v13962_v27 = vld [vmem:[%s18470_s1 + $0x8c] ss:$16 sps:$4 sm:$0xff]  }
  0xff   : > { %3164 = vmatpush1.bf16.msra.mxu0 %v13939_v20  ;;  %3390 = vmatpush1.bf16.msra.mxu1 %v13942_v12  ;;  %v1712_v20 = vrot.slane %v14801_v24, 1  ;;  %v1720_v35 = vsel %vm1675_vm3, %v1713_v50, %v1719_v57  ;;  %v13960_v12 = vld [vmem:[%s18470_s1 + $0x88] ss:$16 sps:$4 sm:$0xff]   ;;  %v1749_v24 = vrot.slane %v15644_v25, 1  ;;  %v13983_v25 = vld [vmem:[%s18470_s1 + $0x104] ss:$16 sps:$4 sm:$0xff]  }
 0x100   : > { %3165 = vmatprep.subr.bf16.mxu0 %v13947_v43  ;;  %3391 = vmatprep.subr.bf16.mxu1 %v13950_v61  ;;  %v1734_v43 = vrot.slane %v15588_v47, 1  ;;  %v13963_v61 = vld [vmem:[%s18470_s1 + $0xa0] ss:$16 sps:$4 sm:$0xff]   ;;  %v13971_v47 = vld [vmem:[%s18470_s1 + $0xc4] ss:$16 sps:$4 sm:$0xff]  }
 0x101   : > { %v1714_v51 = vsel %vm1675_vm3, %v1712_v20, %v1713_v50  ;;  %v13975_v20 = vld [vmem:[%s18470_s1 + $0xe0] ss:$16 sps:$4 sm:$0xff]  }
 0x102   : > { %11427 = vmatmul.mubr.msk.bf16.gmra.mrb[4].mxu0 %vm277_vm2, %v15869_v38  ;;  %11435 = vmatmul.mubr.msk.bf16.gmra.mrb[4].mxu1 %vm277_vm2, %v15869_v38  ;;  %v15904_v49 = vpack.c.bf16 %v1720_v35, %v1714_v51  ;;  %v13978_v35 = vld [vmem:[%s18470_s1 + $0xe8] ss:$16 sps:$4 sm:$0xff]   ;;  %v14804_v51 = vld [vmem:[#allocation2 + $0x130] sm:$0xff] }
 0x103   : > { %3166 = vmatpush1.bf16.msra.mxu0 %v13945_v1  ;;  %3392 = vmatpush1.bf16.msra.mxu1 %v13948_v9  ;;  %v1728_v1 = vrot.slane %v14802_v30, 1  ;;  %v13974_v9 = vld [vmem:[%s18470_s1 + $0xcc] ss:$16 sps:$4 sm:$0xff]   ;;  %v13989_v30 = vld [vmem:[%s18470_s1 + $0x124] ss:$16 sps:$4 sm:$0xff]  }
 0x104   : > { %3167 = vmatprep.subr.bf16.mxu0 %v13953_v3  ;;  %3393 = vmatprep.subr.bf16.mxu1 %v13956_v55  ;;  %v14803_v3 = vld [vmem:[#allocation2 + $0xe8] sm:$0xff] }
 0x105   : > { %2490 = vmatprep.mubr.bf16.mxu0 %v18522_v46  ;;  %2716 = vmatprep.mubr.bf16.mxu1 %v18522_v46  ;;  %v1727_v55 = vrot.slane %v14803_v3, 1  ;;  %v1735_v57 = vsel %vm1675_vm3, %v1728_v1, %v1734_v43  ;;  %v13984_v43 = vld [vmem:[%s18470_s1 + $0x108] ss:$16 sps:$4 sm:$0xff]  }
 0x106   : > { %v13990_v3 = vld [vmem:[%s18470_s1 + $0x128] ss:$16 sps:$4 sm:$0xff]  }
 0x107   : > { %3168 = vmatpush1.bf16.msra.mxu0 %v13951_v41  ;;  %3394 = vmatpush1.bf16.msra.mxu1 %v13954_v22  ;;  %v13969_v41 = vld [vmem:[%s18470_s1 + $0xc0] ss:$16 sps:$4 sm:$0xff]   ;;  %v13972_v22 = vld [vmem:[%s18470_s1 + $0xc8] ss:$16 sps:$4 sm:$0xff]   ;;  %v1729_v13 = vsel %vm1675_vm3, %v1727_v55, %v1728_v1  ;;  %v13992_v1 = vld [vmem:[%s18470_s1 + $0x12c] ss:$16 sps:$4 sm:$0xff]  }
 0x108   : > { %3169 = vmatprep.subr.bf16.mxu0 %v13959_v34  ;;  %3395 = vmatprep.subr.bf16.mxu1 %v13962_v27  ;;  %v15939_v50 = vpack.c.bf16 %v1735_v57, %v1729_v13  ;;  %v13977_v34 = vld [vmem:[%s18470_s1 + $0xe4] ss:$16 sps:$4 sm:$0xff]   ;;  %v13980_v27 = vld [vmem:[%s18470_s1 + $0xec] ss:$16 sps:$4 sm:$0xff]   ;;  %v1758_v55 = vrot.slane %v15669_v5, 1 }
 0x109   : > { %v13998_v57 = vld [vmem:[%s18470_s1 + $0x14c] ss:$16 sps:$4 sm:$0xff]   ;;  %v13993_v5 = vld [vmem:[%s18470_s1 + $0x140] ss:$16 sps:$4 sm:$0xff]   ;;  %v13996_v13 = vld [vmem:[%s18470_s1 + $0x148] ss:$16 sps:$4 sm:$0xff]  }
 0x10a   : > { %11428 = vmatmul.mubr.msk.bf16.gmra.mrb[8].mxu0 %vm277_vm2, %v15904_v49  ;;  %11436 = vmatmul.mubr.msk.bf16.gmra.mrb[8].mxu1 %vm277_vm2, %v15904_v49 }
 0x10b   : > { %3170 = vmatpush1.bf16.msra.mxu0 %v13957_v10  ;;  %3396 = vmatpush1.bf16.msra.mxu1 %v13960_v12  ;;  %v1743_v10 = vrot.slane %v15611_v8, 1  ;;  %v13986_v12 = vld [vmem:[%s18470_s1 + $0x10c] ss:$16 sps:$4 sm:$0xff]   ;;  %v13981_v8 = vld [vmem:[%s18470_s1 + $0x100] ss:$16 sps:$4 sm:$0xff]  }
 0x10c   : > { %3171 = vmatprep.subr.bf16.mxu0 %v13965_v52  ;;  %3397 = vmatprep.subr.bf16.mxu1 %v13968_v26  ;;  %v1742_v52 = vrot.slane %v14804_v51, 1  ;;  %v1772_v51 = vrot.slane %v15720_v31, 1  ;;  %v14013_v31 = vld [vmem:[%s18470_s1 + $0x1a4] ss:$16 sps:$4 sm:$0xff]  }
 0x10d   : > { %2500 = vmatprep.mubr.bf16.mxu0 %v18522_v46  ;;  %2726 = vmatprep.mubr.bf16.mxu1 %v18522_v46  ;;  %v1750_v26 = vsel %vm1675_vm3, %v1743_v10, %v1749_v24  ;;  %v14004_v24 = vld [vmem:[%s18470_s1 + $0x16c] ss:$16 sps:$4 sm:$0xff]  }
 0x10f   : > { %3172 = vmatpush1.bf16.msra.mxu0 %v13963_v61  ;;  %3398 = vmatpush1.bf16.msra.mxu1 %v13966_v29  ;;  %v1744_v61 = vsel %vm1675_vm3, %v1742_v52, %v1743_v10  ;;  %v14002_v10 = vld [vmem:[%s18470_s1 + $0x168] ss:$16 sps:$4 sm:$0xff]  }
 0x110   : > { %3173 = vmatprep.subr.bf16.mxu0 %v13971_v47  ;;  %3399 = vmatprep.subr.bf16.mxu1 %v13974_v9  ;;  %v15975_v29 = vpack.c.bf16 %v1750_v26, %v1744_v61  ;;  %v1764_v47 = vrot.slane %v15703_v58, 1  ;;  %v13987_v9 = vld [vmem:[%s18470_s1 + $0x120] ss:$16 sps:$4 sm:$0xff]   ;;  %v13995_v58 = vld [vmem:[%s18470_s1 + $0x144] ss:$16 sps:$4 sm:$0xff]  }
 0x111   : > { %v14008_v26 = vld [vmem:[%s18470_s1 + $0x188] ss:$16 sps:$4 sm:$0xff]   ;;  %v14016_v61 = vld [vmem:[%s18470_s1 + $0x1ac] ss:$16 sps:$4 sm:$0xff]  }
 0x112   : > { %11429 = vmatmul.mubr.msk.bf16.gmra.mrb[12].mxu0 %vm277_vm2, %v15939_v50  ;;  %11437 = vmatmul.mubr.msk.bf16.gmra.mrb[12].mxu1 %vm277_vm2, %v15939_v50 }
 0x113   : > { %3174 = vmatpush1.bf16.msra.mxu0 %v13969_v41  ;;  %3400 = vmatpush1.bf16.msra.mxu1 %v13972_v22  ;;  %v1757_v41 = vrot.slane %v15664_v28, 1  ;;  %v1765_v22 = vsel %vm1675_vm3, %v1758_v55, %v1764_v47  ;;  %v14001_v28 = vld [vmem:[%s18470_s1 + $0x164] ss:$16 sps:$4 sm:$0xff]   ;;  %v14014_v47 = vld [vmem:[%s18470_s1 + $0x1a8] ss:$16 sps:$4 sm:$0xff]  }
 0x114   : > { %3175 = vmatprep.subr.bf16.mxu0 %v13977_v34  ;;  %3401 = vmatprep.subr.bf16.mxu1 %v13980_v27 }
 0x115   : > { %2510 = vmatprep.mubr.bf16.mxu0 %v18522_v46  ;;  %2736 = vmatprep.mubr.bf16.mxu1 %v18522_v46  ;;  %v1759_v34 = vsel %vm1675_vm3, %v1757_v41, %v1758_v55  ;;  %v1787_v55 = vrot.slane %v15764_v23, 1  ;;  %v14025_v23 = vld [vmem:[%s18470_s1 + $0x1e4] ss:$16 sps:$4 sm:$0xff]  }
 0x116   : > { %v16012_v27 = vpack.c.bf16 %v1765_v22, %v1759_v34 }
 0x117   : > { %3176 = vmatpush1.bf16.msra.mxu0 %v13975_v20  ;;  %3402 = vmatpush1.bf16.msra.mxu1 %v13978_v35  ;;  %v1779_v20 = vrot.slane %v15756_v42, 1  ;;  %v13999_v35 = vld [vmem:[%s18470_s1 + $0x160] ss:$16 sps:$4 sm:$0xff]   ;;  %v14007_v42 = vld [vmem:[%s18470_s1 + $0x184] ss:$16 sps:$4 sm:$0xff]  }
 0x118   : > { %3177 = vmatprep.subr.bf16.mxu0 %v13983_v25  ;;  %3403 = vmatprep.subr.bf16.mxu1 %v13986_v12  ;;  %v1773_v25 = vrot.slane %v15728_v56, 1  ;;  %v14010_v12 = vld [vmem:[%s18470_s1 + $0x18c] ss:$16 sps:$4 sm:$0xff]   ;;  %v14005_v56 = vld [vmem:[%s18470_s1 + $0x180] ss:$16 sps:$4 sm:$0xff]  }
 0x11a   : > { %11430 = vmatmul.mubr.msk.bf16.gmra.mrb[16].mxu0 %vm277_vm2, %v15975_v29  ;;  %11438 = vmatmul.mubr.msk.bf16.gmra.mrb[16].mxu1 %vm277_vm2, %v15975_v29  ;;  %v1780_v52 = vsel %vm1675_vm3, %v1773_v25, %v1779_v20  ;;  %v14031_v20 = vld [vmem:[%s18470_s1 + $0x204] ss:$16 sps:$4 sm:$0xff]  }
 0x11b   : > { %3178 = vmatpush1.bf16.msra.mxu0 %v13981_v8  ;;  %3404 = vmatpush1.bf16.msra.mxu1 %v13984_v43  ;;  %v1774_v8 = vsel %vm1675_vm3, %v1772_v51, %v1773_v25  ;;  %v14032_v25 = vld [vmem:[%s18470_s1 + $0x208] ss:$16 sps:$4 sm:$0xff]   ;;  %v14035_v51 = vld [vmem:[%s18470_s1 + $0x220] ss:$16 sps:$4 sm:$0xff]  }
 0x11c   : > { %3179 = vmatprep.subr.bf16.mxu0 %v13989_v30  ;;  %3405 = vmatprep.subr.bf16.mxu1 %v13992_v1  ;;  %v16049_v43 = vpack.c.bf16 %v1780_v52, %v1774_v8  ;;  %v1794_v30 = vrot.slane %v15802_v44, 1  ;;  %v14011_v1 = vld [vmem:[%s18470_s1 + $0x1a0] ss:$16 sps:$4 sm:$0xff]   ;;  %v14019_v44 = vld [vmem:[%s18470_s1 + $0x1c4] ss:$16 sps:$4 sm:$0xff]  }
 0x11d   : > { %2520 = vmatprep.mubr.bf16.mxu0 %v18522_v46  ;;  %2746 = vmatprep.mubr.bf16.mxu1 %v18522_v46  ;;  %v14038_v52 = vld [vmem:[%s18470_s1 + $0x228] ss:$16 sps:$4 sm:$0xff]   ;;  %v11278_v8 = vld [vmem:[%s14978_s14 + $0x70] sm:$0xff] }
 0x11f   : > { %3180 = vmatpush1.bf16.msra.mxu0 %v13987_v9  ;;  %3406 = vmatpush1.bf16.msra.mxu1 %v13990_v3  ;;  %v1788_v9 = vrot.slane %v15787_v21, 1  ;;  %v14022_v3 = vld [vmem:[%s18470_s1 + $0x1cc] ss:$16 sps:$4 sm:$0xff]   ;;  %v14017_v21 = vld [vmem:[%s18470_s1 + $0x1c0] ss:$16 sps:$4 sm:$0xff]  }
 0x120   : > { %3181 = vmatprep.subr.bf16.mxu0 %v13995_v58  ;;  %3407 = vmatprep.subr.bf16.mxu1 %v13998_v57  ;;  %v14020_v57 = vld [vmem:[%s18470_s1 + $0x1c8] ss:$16 sps:$4 sm:$0xff]  }
 0x121   : > { %v1795_v58 = vsel %vm1675_vm3, %v1788_v9, %v1794_v30  ;;  %v1789_v41 = vsel %vm1675_vm3, %v1787_v55, %v1788_v9 }
 0x122   : > { %11431 = vmatmul.mubr.msk.bf16.gmra.mrb[20].mxu0 %vm277_vm2, %v16012_v27  ;;  %11439 = vmatmul.mubr.msk.bf16.gmra.mrb[20].mxu1 %vm277_vm2, %v16012_v27  ;;  %v16086_v22 = vpack.c.bf16 %v1795_v58, %v1789_v41 }
 0x123   : > { %3182 = vmatpush1.bf16.msra.mxu0 %v13993_v5  ;;  %3408 = vmatpush1.bf16.msra.mxu1 %v13996_v13  ;;  %v14028_v5 = vld [vmem:[%s18470_s1 + $0x1ec] ss:$16 sps:$4 sm:$0xff]   ;;  %v16094_v13 = vld [vmem:[#allocation2] sm:$0xff] }
 0x124   : > { %3183 = vmatprep.subr.bf16.mxu0 %v14001_v28  ;;  %3409 = vmatprep.subr.bf16.mxu1 %v14004_v24  ;;  %v1508_v34 = vpack.c.bf16 %v16094_v13, %v16094_v13  ;;  %v14023_v28 = vld [vmem:[%s18470_s1 + $0x1e0] ss:$16 sps:$4 sm:$0xff]   ;;  %v14026_v24 = vld [vmem:[%s18470_s1 + $0x1e8] ss:$16 sps:$4 sm:$0xff]  }
 0x125   : > { %2530 = vmatprep.mubr.bf16.mxu0 %v18522_v46  ;;  %2756 = vmatprep.mubr.bf16.mxu1 %v18522_v46 }
 0x127   : > { %3184 = vmatpush1.bf16.msra.mxu0 %v13999_v35  ;;  %3410 = vmatpush1.bf16.msra.mxu1 %v14002_v10  ;;  %v14034_v35 = vld [vmem:[%s18470_s1 + $0x20c] ss:$16 sps:$4 sm:$0xff]   ;;  %v14029_v10 = vld [vmem:[%s18470_s1 + $0x200] ss:$16 sps:$4 sm:$0xff]  }
 0x128   : > { %3185 = vmatprep.subr.bf16.mxu0 %v14007_v42  ;;  %3411 = vmatprep.subr.bf16.mxu1 %v14010_v12  ;;  %v14037_v42 = vld [vmem:[%s18470_s1 + $0x224] ss:$16 sps:$4 sm:$0xff]   ;;  %v14040_v12 = vld [vmem:[%s18470_s1 + $0x22c] ss:$16 sps:$4 sm:$0xff]  }
 0x12a   : > { %11432 = vmatmul.mubr.msk.bf16.gmra.mrb[24].mxu0 %vm277_vm2, %v16049_v43  ;;  %11440 = vmatmul.mubr.msk.bf16.gmra.mrb[24].mxu1 %vm277_vm2, %v16049_v43 }
 0x12b   : > { %3186 = vmatpush1.bf16.msra.mxu0 %v14005_v56  ;;  %3412 = vmatpush1.bf16.msra.mxu1 %v14008_v26  ;;  %v14043_v56 = vld [vmem:[%s18470_s1 + $0x484] ss:$16 sps:$4 sm:$0xff]   ;;  %v14046_v26 = vld [vmem:[%s18470_s1 + $0x48c] ss:$16 sps:$4 sm:$0xff]  }
 0x12c   : > { %3187 = vmatprep.subr.bf16.mxu0 %v14013_v31  ;;  %3413 = vmatprep.subr.bf16.mxu1 %v14016_v61  ;;  %v1223_v31 = vunpack.c.l.bf16 %v11278_v8  ;;  %v1224_v61 = vunpack.c.h.bf16 %v11278_v8  ;;  %v14055_v8 = vld [vmem:[%s18470_s1 + $0x4c4] ss:$16 sps:$4 sm:$0xff]  }
 0x12d   : > { %2540 = vmatprep.mubr.bf16.mxu0 %v18522_v46  ;;  %2766 = vmatprep.mubr.bf16.mxu1 %v18522_v46 }
 0x12e   : > { %v1238_v30 = vmul.f32 %v1223_v31, %v14992_v17  ;;  %v14058_v31 = vld [vmem:[%s18470_s1 + $0x4cc] ss:$16 sps:$4 sm:$0xff]  }
 0x12f   : > { %3188 = vmatpush1.bf16.msra.mxu0 %v14011_v1  ;;  %3414 = vmatpush1.bf16.msra.mxu1 %v14014_v47  ;;  %v1239_v1 = vmul.f32 %v1224_v61, %v14985_v14  ;;  %v11279_v47 = vld [vmem:[%s14978_s14 + $0x78] sm:$0xff]  ;;  %v14053_v61 = vld [vmem:[%s18470_s1 + $0x4c0] ss:$16 sps:$4 sm:$0xff]   ;;  %s12686_s14 = sshll.u32 %s18651_s18, 3 }
 0x130   : > { %3189 = vmatprep.subr.bf16.mxu0 %v14019_v44  ;;  %3415 = vmatprep.subr.bf16.mxu1 %v14022_v3  ;;  %v1225_v9 = vunpack.c.l.bf16 %v11279_v47  ;;  %v1226_v44 = vunpack.c.h.bf16 %v11279_v47  ;;  %v1253_v3 = vadd.f32 %v1238_v30, %v14995_v18  ;;  %v14056_v30 = vld [vmem:[%s18470_s1 + $0x4c8] ss:$16 sps:$4 sm:$0xff]   ;;  %v14064_v47 = vld [vmem:[%s18470_s1 + $0x4ec] ss:$16 sps:$4 sm:$0xff]   ;;  %s272_s15 = scalar_lea.vmem %s18474_s5, %s12686_s14 }
 0x131   : > { %v1254_v55 = vadd.f32 %v1239_v1, %v14988_v15  ;;  %v14061_v1 = vld [vmem:[%s18470_s1 + $0x4e4] ss:$16 sps:$4 sm:$0xff]  }
 0x132   : > { %11433 = vmatmul.mubr.msk.bf16.gmra.mrb[28].mxu0 %vm277_vm2, %v16086_v22  ;;  %11441 = vmatmul.mubr.msk.bf16.gmra.mrb[28].mxu1 %vm277_vm2, %v16086_v22  ;;  %v1240_v58 = vmul.f32 %v1225_v9, %v14992_v17  ;;  %v14059_v9 = vld [vmem:[%s18470_s1 + $0x4e0] ss:$16 sps:$4 sm:$0xff]  }
 0x133   : > { %3190 = vmatpush1.bf16.msra.mxu0 %v14017_v21  ;;  %3416 = vmatpush1.bf16.msra.mxu1 %v14020_v57  ;;  %v1241_v21 = vmul.f32 %v1226_v44, %v14985_v14  ;;  %v1257_v57 = vmax.f32 %v1253_v3, 0.0  ;;  %v1258_v41 = vmax.f32 %v1254_v55, 0.0  ;;  %v14062_v44 = vld [vmem:[%s18470_s1 + $0x4e8] ss:$16 sps:$4 sm:$0xff]   ;;  %v14067_v3 = vld [vmem:[%s18470_s1 + $0x504] ss:$16 sps:$4 sm:$0xff]  }
 0x134   : > { %3191 = vmatprep.subr.bf16.mxu0 %v14025_v23  ;;  %3417 = vmatprep.subr.bf16.mxu1 %v14028_v5  ;;  %v1255_v23 = vadd.f32 %v1240_v58, %v14995_v18  ;;  %v14070_v55 = vld [vmem:[%s18470_s1 + $0x50c] ss:$16 sps:$4 sm:$0xff]   ;;  %v14065_v58 = vld [vmem:[%s18470_s1 + $0x500] ss:$16 sps:$4 sm:$0xff]  }
 0x135   : > { %3193 = vmatprep.mubr.bf16.mxu0 %v1508_v34  ;;  %3419 = vmatprep.mubr.bf16.mxu1 %v1508_v34  ;;  %v1256_v5 = vadd.f32 %v1241_v21, %v14988_v15  ;;  %v14068_v21 = vld [vmem:[%s18470_s1 + $0x508] ss:$16 sps:$4 sm:$0xff]  }
 0x137   : > { %3192 = vmatpush1.bf16.msra.mxu0 %v14023_v28  ;;  %3418 = vmatpush1.bf16.msra.mxu1 %v14026_v24  ;;  %v1267_v28 = vrot.slane %v1258_v41, 7  ;;  %v1259_v24 = vmax.f32 %v1255_v23, 0.0  ;;  %v1260_v17 = vmax.f32 %v1256_v5, 0.0  ;;  %v14076_v41 = vld [vmem:[%s18470_s1 + $0x52c] ss:$16 sps:$4 sm:$0xff]  }
 0x138   : > { %3274 = vmatprep.subr.bf16.mxu0 %v14031_v20  ;;  %3500 = vmatprep.subr.bf16.mxu1 %v14034_v35  ;;  %v16186_v35 = vld [vmem:[#allocation2 + $0x10] sm:$0xff]  ;;  %v14074_v5 = vld [vmem:[%s18470_s1 + $0x528] ss:$16 sps:$4 sm:$0xff]  }
 0x139   : > { %1274 = vrot.lane.b32.xlu1 %v1267_v28, %s14837_s8  ;;  %v1268_v14 = vrot.slane %v1259_v24, 7  ;;  %v1270_v18 = vrot.slane %v1260_v17, 7  ;;  %v14071_v23 = vld [vmem:[%s18470_s1 + $0x520] ss:$16 sps:$4 sm:$0xff]   ;;  %v14080_v17 = vld [vmem:[%s18470_s1 + $0x548] ss:$16 sps:$4 sm:$0xff]  }
 0x13a   : > { %3194 = vmatmul.mubr.bf16.vlgmr.msra.gmra.mrb[0].mxu0 %v1508_v34  ;;  %3420 = vmatmul.mubr.bf16.vlgmr.msra.gmra.mrb[0].mxu1 %v1508_v34  ;;  %v1266_v34 = vrot.slane %v1257_v57, 7  ;;  %v14073_v57 = vld [vmem:[%s18470_s1 + $0x524] ss:$16 sps:$4 sm:$0xff]   ;;  %v14077_v24 = vld [vmem:[%s18470_s1 + $0x540] ss:$16 sps:$4 sm:$0xff]  }
 0x13b   : > { %3275 = vmatpush1.bf16.msra.mxu0 %v14029_v10  ;;  %3501 = vmatpush1.bf16.msra.mxu1 %v14032_v25  ;;  %v1271_v20 = vsel %vm530_vm1, %v1267_v28, %v1270_v18  ;;  %v16188_v10 = vld [vmem:[#allocation2 + $0x28] sm:$0xff] }
 0x13c   : > { %3203 = vmatprep.mubr.bf16.mxu0 %v15451_v62  ;;  %3429 = vmatprep.mubr.bf16.mxu1 %v15451_v62  ;;  %v1269_v15 = vsel %vm530_vm1, %v1266_v34, %v1268_v14  ;;  %v1509_v25 = vpack.c.bf16 %v16188_v10, %v16186_v35  ;;  %v14082_v28 = vld [vmem:[%s18470_s1 + $0x54c] ss:$16 sps:$4 sm:$0xff]  }
 0x13d   : > { %3276 = vmatprep.subr.bf16.mxu0 %v14037_v42  ;;  %3502 = vmatprep.subr.bf16.mxu1 %v14040_v12  ;;  %v14041_v42 = vld [vmem:[%s18470_s1 + $0x480] ss:$16 sps:$4 sm:$0xff]   ;;  %v14044_v12 = vld [vmem:[%s18470_s1 + $0x488] ss:$16 sps:$4 sm:$0xff]  }
 0x13e   : > { %1272 = vrot.lane.b32.xlu0 %v1266_v34, %s14837_s8  ;;  %1278 = vrot.lane.b32.xlu1 %v1271_v20, %s14837_s8  ;;  %v14079_v34 = vld [vmem:[%s18470_s1 + $0x544] ss:$16 sps:$4 sm:$0xff]   ;;  %v14086_v20 = vld [vmem:[%s18470_s1 + $0x568] ss:$16 sps:$4 sm:$0xff]  }
 0x13f   : > { %3277 = vmatpush1.bf16.msra.mxu0 %v14035_v51  ;;  %3503 = vmatpush1.bf16.msra.mxu1 %v14038_v52  ;;  %v14049_v51 = vld [vmem:[%s18470_s1 + $0x4a4] ss:$16 sps:$4 sm:$0xff]   ;;  %v14052_v52 = vld [vmem:[%s18470_s1 + $0x4ac] ss:$16 sps:$4 sm:$0xff]  }
 0x140   : > { %4263 = vmatprep.subr.bf16.mxu0 %v14043_v56  ;;  %4489 = vmatprep.subr.bf16.mxu1 %v14046_v26  ;;  %v14047_v56 = vld [vmem:[%s18470_s1 + $0x4a0] ss:$16 sps:$4 sm:$0xff]   ;;  %v14050_v26 = vld [vmem:[%s18470_s1 + $0x4a8] ss:$16 sps:$4 sm:$0xff]  }
 0x142   : > { %3204 = vmatmul.mubr.bf16.gmra.mrb[4].mxu0 %v15460_v16  ;;  %3430 = vmatmul.mubr.bf16.gmra.mrb[4].mxu1 %v15460_v16 }
 0x143   : > { %3213 = vmatprep.mubr.bf16.mxu0 %v15481_v36  ;;  %3439 = vmatprep.mubr.bf16.mxu1 %v15481_v36 }
 0x144   : > { %1276 = vrot.lane.b32.xlu0 %v1269_v15, %s14837_s8  ;;  %1282 = vrot.lane.b32.xlu1 %v1270_v18, %s14837_s8  ;;  %v14088_v18 = vld [vmem:[%s18470_s1 + $0x56c] ss:$16 sps:$4 sm:$0xff]   ;;  %v14083_v15 = vld [vmem:[%s18470_s1 + $0x560] ss:$16 sps:$4 sm:$0xff]  }
 0x148   : > { %1280 = vrot.lane.b32.xlu0 %v1268_v14, %s14837_s8  ;;  %v14085_v14 = vld [vmem:[%s18470_s1 + $0x564] ss:$16 sps:$4 sm:$0xff]  }
 0x14a   : > { %3214 = vmatmul.mubr.bf16.gmra.mrb[8].mxu0 %v15501_v48  ;;  %3440 = vmatmul.mubr.bf16.gmra.mrb[8].mxu1 %v15501_v48 }
 0x14b   : > { %3223 = vmatprep.mubr.bf16.mxu0 %v15540_v39  ;;  %3449 = vmatprep.mubr.bf16.mxu1 %v15540_v39 }
 0x152   : > { %3224 = vmatmul.mubr.bf16.gmra.mrb[12].mxu0 %v15563_v59  ;;  %3450 = vmatmul.mubr.bf16.gmra.mrb[12].mxu1 %v15563_v59 }
 0x153   : > { %3233 = vmatprep.mubr.bf16.mxu0 %v15600_v54  ;;  %3459 = vmatprep.mubr.bf16.mxu1 %v15600_v54 }
 0x15a   : > { %3234 = vmatmul.mubr.bf16.gmra.mrb[16].mxu0 %v15618_v11  ;;  %3460 = vmatmul.mubr.bf16.gmra.mrb[16].mxu1 %v15618_v11 }
 0x15b   : > { %3243 = vmatprep.mubr.bf16.mxu0 %v15656_v32  ;;  %3469 = vmatprep.mubr.bf16.mxu1 %v15656_v32 }
 0x162   : > { %3244 = vmatmul.mubr.bf16.gmra.mrb[20].mxu0 %v15676_v63  ;;  %3470 = vmatmul.mubr.bf16.gmra.mrb[20].mxu1 %v15676_v63 }
 0x163   : > { %3253 = vmatprep.mubr.bf16.mxu0 %v15714_v4  ;;  %3479 = vmatprep.mubr.bf16.mxu1 %v15714_v4 }
 0x16a   : > { %3254 = vmatmul.mubr.bf16.gmra.mrb[24].mxu0 %v15736_v45  ;;  %3480 = vmatmul.mubr.bf16.gmra.mrb[24].mxu1 %v15736_v45 }
 0x16b   : > { %3263 = vmatprep.mubr.bf16.mxu0 %v15776_v7  ;;  %3489 = vmatprep.mubr.bf16.mxu1 %v15776_v7 }
 0x172   : > { %3264 = vmatmul.mubr.bf16.gmra.mrb[28].mxu0 %v15790_v33  ;;  %3490 = vmatmul.mubr.bf16.gmra.mrb[28].mxu1 %v15790_v33 }
 0x173   : > { %3306 = vmatprep.mubr.bf16.mxu0 %v18522_v46  ;;  %3532 = vmatprep.mubr.bf16.mxu1 %v18522_v46 }
 0x17a   : > { %11514 = vmatmul.mubr.msk.bf16.vlgmr.msra.gmra.mrb[0].mxu0 %vm277_vm2, %v1509_v25  ;;  %11522 = vmatmul.mubr.msk.bf16.vlgmr.msra.gmra.mrb[0].mxu1 %vm277_vm2, %v1509_v25  ;;  %v14091_v25 = vld [vmem:[%s18470_s1 + $0x584] ss:$16 sps:$4 sm:$0xff]  }
 0x17b   : > { %4264 = vmatpush1.bf16.msra.mxu0 %v14041_v42  ;;  %4490 = vmatpush1.bf16.msra.mxu1 %v14044_v12  ;;  %v14094_v42 = vld [vmem:[%s18470_s1 + $0x58c] ss:$16 sps:$4 sm:$0xff]   ;;  %v14089_v12 = vld [vmem:[%s18470_s1 + $0x580] ss:$16 sps:$4 sm:$0xff]  }
 0x17c   : > { %4265 = vmatprep.subr.bf16.mxu0 %v14049_v51  ;;  %4491 = vmatprep.subr.bf16.mxu1 %v14052_v52  ;;  %v14092_v51 = vld [vmem:[%s18470_s1 + $0x588] ss:$16 sps:$4 sm:$0xff]   ;;  %v14097_v52 = vld [vmem:[%s18470_s1 + $0x5a4] ss:$16 sps:$4 sm:$0xff]  }
 0x17d   : > { %3316 = vmatprep.mubr.bf16.mxu0 %v18522_v46  ;;  %3542 = vmatprep.mubr.bf16.mxu1 %v18522_v46 }
 0x17f   : > { %4266 = vmatpush1.bf16.msra.mxu0 %v14047_v56  ;;  %4492 = vmatpush1.bf16.msra.mxu1 %v14050_v26  ;;  %v14100_v56 = vld [vmem:[%s18470_s1 + $0x5ac] ss:$16 sps:$4 sm:$0xff]  }
 0x180   : > { %4267 = vmatprep.subr.bf16.mxu0 %v14055_v8  ;;  %4493 = vmatprep.subr.bf16.mxu1 %v14058_v31  ;;  %v18586_v26 = vld [vmem:[#allocation18_spill] sm:$0xff]  ;;  %v14095_v8 = vld [vmem:[%s18470_s1 + $0x5a0] ss:$16 sps:$4 sm:$0xff]  }
 0x181   : > { %v14098_v31 = vld [vmem:[%s18470_s1 + $0x5a8] ss:$16 sps:$4 sm:$0xff]  }
 0x182   : > { %11515 = vmatmul.mubr.msk.bf16.gmra.mrb[4].mxu0 %vm277_vm2, %v15483_v37  ;;  %11523 = vmatmul.mubr.msk.bf16.gmra.mrb[4].mxu1 %vm277_vm2, %v15483_v37 }
 0x183   : > { %4268 = vmatpush1.bf16.msra.mxu0 %v14053_v61  ;;  %4494 = vmatpush1.bf16.msra.mxu1 %v14056_v30  ;;  %v14103_v61 = vld [vmem:[%s18470_s1 + $0x5c4] ss:$16 sps:$4 sm:$0xff]   ;;  %v14106_v30 = vld [vmem:[%s18470_s1 + $0x5cc] ss:$16 sps:$4 sm:$0xff]  }
 0x184   : > { %4269 = vmatprep.subr.bf16.mxu0 %v14061_v1  ;;  %4495 = vmatprep.subr.bf16.mxu1 %v14064_v47  ;;  %v14101_v1 = vld [vmem:[%s18470_s1 + $0x5c0] ss:$16 sps:$4 sm:$0xff]   ;;  %v14104_v47 = vld [vmem:[%s18470_s1 + $0x5c8] ss:$16 sps:$4 sm:$0xff]  }
 0x185   : > { %3326 = vmatprep.mubr.bf16.mxu0 %v18522_v46  ;;  %3552 = vmatprep.mubr.bf16.mxu1 %v18522_v46 }
 0x187   : > { %4270 = vmatpush1.bf16.msra.mxu0 %v14059_v9  ;;  %4496 = vmatpush1.bf16.msra.mxu1 %v14062_v44  ;;  %v14109_v9 = vld [vmem:[%s18470_s1 + $0x5e4] ss:$16 sps:$4 sm:$0xff]   ;;  %v14112_v44 = vld [vmem:[%s18470_s1 + $0x5ec] ss:$16 sps:$4 sm:$0xff]  }
 0x188   : > { %4271 = vmatprep.subr.bf16.mxu0 %v14067_v3  ;;  %4497 = vmatprep.subr.bf16.mxu1 %v14070_v55  ;;  %v18587_v3 = vld [vmem:[#allocation24_spill] sm:$0xff]  ;;  %v14107_v55 = vld [vmem:[%s18470_s1 + $0x5e0] ss:$16 sps:$4 sm:$0xff]  }
 0x18a   : > { %11516 = vmatmul.mubr.msk.bf16.gmra.mrb[8].mxu0 %vm277_vm2, %v15505_v53  ;;  %11524 = vmatmul.mubr.msk.bf16.gmra.mrb[8].mxu1 %vm277_vm2, %v15505_v53 }
 0x18b   : > { %4272 = vmatpush1.bf16.msra.mxu0 %v14065_v58  ;;  %4498 = vmatpush1.bf16.msra.mxu1 %v14068_v21  ;;  %v14110_v58 = vld [vmem:[%s18470_s1 + $0x5e8] ss:$16 sps:$4 sm:$0xff]   ;;  %v14115_v21 = vld [vmem:[%s18470_s1 + $0x604] ss:$16 sps:$4 sm:$0xff]  }
 0x18c   : > { %4273 = vmatprep.subr.bf16.mxu0 %v14073_v57  ;;  %4499 = vmatprep.subr.bf16.mxu1 %v14076_v41  ;;  %v14118_v57 = vld [vmem:[%s18470_s1 + $0x60c] ss:$16 sps:$4 sm:$0xff]   ;;  %v14113_v41 = vld [vmem:[%s18470_s1 + $0x600] ss:$16 sps:$4 sm:$0xff]  }
 0x18d   : > { %3336 = vmatprep.mubr.bf16.mxu0 %v18522_v46  ;;  %3562 = vmatprep.mubr.bf16.mxu1 %v18522_v46 }
 0x18f   : > { %4274 = vmatpush1.bf16.msra.mxu0 %v14071_v23  ;;  %4500 = vmatpush1.bf16.msra.mxu1 %v14074_v5  ;;  %v14116_v23 = vld [vmem:[%s18470_s1 + $0x608] ss:$16 sps:$4 sm:$0xff]   ;;  %v14121_v5 = vld [vmem:[%s18470_s1 + $0x624] ss:$16 sps:$4 sm:$0xff]  }
 0x190   : > { %4275 = vmatprep.subr.bf16.mxu0 %v14079_v34  ;;  %4501 = vmatprep.subr.bf16.mxu1 %v14082_v28  ;;  %v14124_v34 = vld [vmem:[%s18470_s1 + $0x62c] ss:$16 sps:$4 sm:$0xff]   ;;  %v14808_v28 = vld [vmem:[#allocation2 + $0x38] sm:$0x3] }
 0x192   : > { %11517 = vmatmul.mubr.msk.bf16.gmra.mrb[12].mxu0 %vm277_vm2, %v15566_v60  ;;  %11525 = vmatmul.mubr.msk.bf16.gmra.mrb[12].mxu1 %vm277_vm2, %v15566_v60 }
 0x193   : > { %4276 = vmatpush1.bf16.msra.mxu0 %v14077_v24  ;;  %4502 = vmatpush1.bf16.msra.mxu1 %v14080_v17  ;;  %v3625_v24 = vrot.slane %v14808_v28, 2  ;;  %v18588_v17 = vld [vmem:[#allocation30_spill] sm:$0xff]  ;;  %v14151_v28 = vld [vmem:[%s18470_s1 + $0x6c4] ss:$16 sps:$4 sm:$0xff]  }
 0x194   : > { %4277 = vmatprep.subr.bf16.mxu0 %v14085_v14  ;;  %4503 = vmatprep.subr.bf16.mxu1 %v14088_v18  ;;  %v3617_v14 = vrot.slane %v16094_v13, 2  ;;  %v14119_v18 = vld [vmem:[%s18470_s1 + $0x620] ss:$16 sps:$4 sm:$0xff]   ;;  %v14130_v13 = vld [vmem:[%s18470_s1 + $0x64c] ss:$16 sps:$4 sm:$0xff]  }
 0x195   : > { %3346 = vmatprep.mubr.bf16.mxu0 %v18522_v46  ;;  %3572 = vmatprep.mubr.bf16.mxu1 %v18522_v46 }
 0x197   : > { %4278 = vmatpush1.bf16.msra.mxu0 %v14083_v15  ;;  %4504 = vmatpush1.bf16.msra.mxu1 %v14086_v20  ;;  %v14122_v15 = vld [vmem:[%s18470_s1 + $0x628] ss:$16 sps:$4 sm:$0xff]   ;;  %v14127_v20 = vld [vmem:[%s18470_s1 + $0x644] ss:$16 sps:$4 sm:$0xff]  }
 0x198   : > { %4279 = vmatprep.subr.bf16.mxu0 %v14091_v25  ;;  %4505 = vmatprep.subr.bf16.mxu1 %v14094_v42  ;;  %v3626_v25 = vsel %vm3613_vm10, %v3617_v14, %v3625_v24  ;;  %v14809_v42 = vld [vmem:[#allocation2 + $0x30] sm:$0x3]  ;;  %v14154_v24 = vld [vmem:[%s18470_s1 + $0x6cc] ss:$16 sps:$4 sm:$0xff]  }
 0x19a   : > { %11518 = vmatmul.mubr.msk.bf16.gmra.mrb[16].mxu0 %vm277_vm2, %v18586_v26  ;;  %11526 = vmatmul.mubr.msk.bf16.gmra.mrb[16].mxu1 %vm277_vm2, %v18586_v26 }
 0x19b   : > { %4280 = vmatpush1.bf16.msra.mxu0 %v14089_v12  ;;  %4506 = vmatpush1.bf16.msra.mxu1 %v14092_v51  ;;  %v3623_v12 = vrot.slane %v14809_v42, 2  ;;  %v14125_v51 = vld [vmem:[%s18470_s1 + $0x640] ss:$16 sps:$4 sm:$0xff]  }
 0x19c   : > { %4281 = vmatprep.subr.bf16.mxu0 %v14097_v52  ;;  %4507 = vmatprep.subr.bf16.mxu1 %v14100_v56  ;;  %v14128_v52 = vld [vmem:[%s18470_s1 + $0x648] ss:$16 sps:$4 sm:$0xff]   ;;  %v14133_v56 = vld [vmem:[%s18470_s1 + $0x664] ss:$16 sps:$4 sm:$0xff]  }
 0x19d   : > { %3356 = vmatprep.mubr.bf16.mxu0 %v18522_v46  ;;  %3582 = vmatprep.mubr.bf16.mxu1 %v18522_v46  ;;  %v18597_v42 = vld [vmem:[#allocation23_spill] sm:$0xff] }
 0x19f   : > { %4282 = vmatpush1.bf16.msra.mxu0 %v14095_v8  ;;  %4508 = vmatpush1.bf16.msra.mxu1 %v14098_v31  ;;  %v14136_v8 = vld [vmem:[%s18470_s1 + $0x66c] ss:$16 sps:$4 sm:$0xff]   ;;  %v3783_v31 = vpack.c.bf16 %v3626_v25, %v3617_v14 }
 0x1a0   : > { %4283 = vmatprep.subr.bf16.mxu0 %v14103_v61  ;;  %4509 = vmatprep.subr.bf16.mxu1 %v14106_v30  ;;  %v18589_v61 = vld [vmem:[#allocation36_spill] sm:$0xff]  ;;  %v14131_v30 = vld [vmem:[%s18470_s1 + $0x660] ss:$16 sps:$4 sm:$0xff]   ;;  %v18596_v25 = vld [vmem:[#allocation22_spill] sm:$0xff] }
 0x1a2   : > { %11519 = vmatmul.mubr.msk.bf16.gmra.mrb[20].mxu0 %vm277_vm2, %v18587_v3  ;;  %11527 = vmatmul.mubr.msk.bf16.gmra.mrb[20].mxu1 %vm277_vm2, %v18587_v3 }
 0x1a3   : > { %4284 = vmatpush1.bf16.msra.mxu0 %v14101_v1  ;;  %4510 = vmatpush1.bf16.msra.mxu1 %v14104_v47  ;;  %v14134_v1 = vld [vmem:[%s18470_s1 + $0x668] ss:$16 sps:$4 sm:$0xff]   ;;  %v3624_v47 = vsel %vm3613_vm10, %v3617_v14, %v3623_v12 }
 0x1a4   : > { %4285 = vmatprep.subr.bf16.mxu0 %v14109_v9  ;;  %4511 = vmatprep.subr.bf16.mxu1 %v14112_v44  ;;  %v14139_v9 = vld [vmem:[%s18470_s1 + $0x684] ss:$16 sps:$4 sm:$0xff]   ;;  %v14142_v44 = vld [vmem:[%s18470_s1 + $0x68c] ss:$16 sps:$4 sm:$0xff]  }
 0x1a5   : > { %3366 = vmatprep.mubr.bf16.mxu0 %v18522_v46  ;;  %3592 = vmatprep.mubr.bf16.mxu1 %v18522_v46  ;;  %v18598_v12 = vld [vmem:[#allocation28_spill] sm:$0xff] }
 0x1a7   : > { %4286 = vmatpush1.bf16.msra.mxu0 %v14107_v55  ;;  %4512 = vmatpush1.bf16.msra.mxu1 %v14110_v58  ;;  %v3782_v55 = vpack.c.bf16 %v3624_v47, %v3617_v14  ;;  %v14137_v58 = vld [vmem:[%s18470_s1 + $0x680] ss:$16 sps:$4 sm:$0xff]  }
 0x1a8   : > { %4287 = vmatprep.subr.bf16.mxu0 %v14115_v21  ;;  %4513 = vmatprep.subr.bf16.mxu1 %v14118_v57  ;;  %v14140_v21 = vld [vmem:[%s18470_s1 + $0x688] ss:$16 sps:$4 sm:$0xff]   ;;  %v14145_v57 = vld [vmem:[%s18470_s1 + $0x6a4] ss:$16 sps:$4 sm:$0xff]  }
 0x1a9   : > { %v18591_v14 = vld [vmem:[#allocation7_spill] sm:$0xff] }
 0x1aa   : > { %11520 = vmatmul.mubr.msk.bf16.gmra.mrb[24].mxu0 %vm277_vm2, %v18588_v17  ;;  %11528 = vmatmul.mubr.msk.bf16.gmra.mrb[24].mxu1 %vm277_vm2, %v18588_v17 }
 0x1ab   : > { %4288 = vmatpush1.bf16.msra.mxu0 %v14113_v41  ;;  %4514 = vmatpush1.bf16.msra.mxu1 %v14116_v23  ;;  %v14148_v41 = vld [vmem:[%s18470_s1 + $0x6ac] ss:$16 sps:$4 sm:$0xff]   ;;  %v14143_v23 = vld [vmem:[%s18470_s1 + $0x6a0] ss:$16 sps:$4 sm:$0xff]  }
 0x1ac   : > { %4289 = vmatprep.subr.bf16.mxu0 %v14121_v5  ;;  %4515 = vmatprep.subr.bf16.mxu1 %v14124_v34  ;;  %v14146_v5 = vld [vmem:[%s18470_s1 + $0x6a8] ss:$16 sps:$4 sm:$0xff]  }
 0x1ad   : > { %3376 = vmatprep.mubr.bf16.mxu0 %v18522_v46  ;;  %3602 = vmatprep.mubr.bf16.mxu1 %v18522_v46  ;;  %v18590_v34 = vld [vmem:[#allocation6_spill] sm:$0xff] }
 0x1af   : > { %4290 = vmatpush1.bf16.msra.mxu0 %v14119_v18  ;;  %4516 = vmatpush1.bf16.msra.mxu1 %v14122_v15  ;;  %v18592_v18 = vld [vmem:[#allocation10_spill] sm:$0xff]  ;;  %v18593_v15 = vld [vmem:[#allocation11_spill] sm:$0xff] }
 0x1b0   : > { %4291 = vmatprep.subr.bf16.mxu0 %v14127_v20  ;;  %4517 = vmatprep.subr.bf16.mxu1 %v14130_v13  ;;  %v18594_v20 = vld [vmem:[#allocation16_spill] sm:$0xff]  ;;  %v18595_v13 = vld [vmem:[#allocation17_spill] sm:$0xff] }
 0x1b2   : > { %11521 = vmatmul.mubr.msk.bf16.gmra.mrb[28].mxu0 %vm277_vm2, %v18589_v61  ;;  %11529 = vmatmul.mubr.msk.bf16.gmra.mrb[28].mxu1 %vm277_vm2, %v18589_v61 }
 0x1b3   : > { %4292 = vmatpush1.bf16.msra.mxu0 %v14125_v51  ;;  %4518 = vmatpush1.bf16.msra.mxu1 %v14128_v52  ;;  %v1273_v51 = vpop.permute.xlu0 %1272  ;;  %v1275_v52 = vpop.permute.xlu1 %1274 }
 0x1b4   : > { %4293 = vmatprep.subr.bf16.mxu0 %v14133_v56  ;;  %4519 = vmatprep.subr.bf16.mxu1 %v14136_v8  ;;  %1299 = vst.msk [vmem:[#allocation2 + $0x240] sm:$0xfe] %vm563_vm5, %v1273_v51  ;;  %v1285_v56 = vsel %vm549_vm7, %v1273_v51, %v1275_v52  ;;  %v18599_v8 = vld [vmem:[#allocation29_spill] sm:$0xff] }
 0x1b5   : > { %4295 = vmatprep.mubr.bf16.mxu0 %v3783_v31  ;;  %4521 = vmatprep.mubr.bf16.mxu1 %v3783_v31  ;;  %1302 = vst.msk [vmem:[#allocation2 + $0x250] sm:$0xfe] %vm566_vm6, %v1275_v52  ;;  %1300 = vst [vmem:[#allocation2 + $0x248] sm:$0xfe] %v1285_v56 }
 0x1b7   : > { %4294 = vmatpush1.bf16.msra.mxu0 %v14131_v30  ;;  %4520 = vmatpush1.bf16.msra.mxu1 %v14134_v1  ;;  %v1277_v31 = vpop.permute.xlu0 %1276  ;;  %v1279_v30 = vpop.permute.xlu1 %1278  ;;  %v18600_v1 = vld [vmem:[#allocation34_spill] sm:$0xff] }
 0x1b8   : > { %4376 = vmatprep.subr.bf16.mxu0 %v14139_v9  ;;  %4602 = vmatprep.subr.bf16.mxu1 %v14142_v44  ;;  %1304 = vst.msk [vmem:[#allocation2 + $0x258] sm:$0xff] %vm568_vm9, %v1277_v31  ;;  %v16482_v47 = vsel %vm549_vm7, %v1277_v31, %v1279_v30 }
 0x1b9   : > { %1306 = vst.msk [vmem:[#allocation2 + $0x268] sm:$0xff] %vm549_vm7, %v1279_v30  ;;  %v6723_v52 = vrot.slane %v16482_v47, 2 }
 0x1ba   : > { %4296 = vmatmul.mubr.bf16.vlgmr.msra.gmra.mrb[0].mxu0 %v3782_v55  ;;  %4522 = vmatmul.mubr.bf16.vlgmr.msra.gmra.mrb[0].mxu1 %v3782_v55 }
 0x1bb   : > { %4377 = vmatpush1.bf16.msra.mxu0 %v14137_v58  ;;  %4603 = vmatpush1.bf16.msra.mxu1 %v14140_v21  ;;  %v1281_v9 = vpop.permute.xlu0 %1280  ;;  %v1283_v44 = vpop.permute.xlu1 %1282  ;;  %v18601_v58 = vld [vmem:[#allocation35_spill] sm:$0xff]  ;;  %v3620_v21 = vrot.slane %v16186_v35, 2  ;;  %v16506_v56 = vld [vmem:[#allocation2 + $0x240] sm:$0xff] }
 0x1bc   : > { %4305 = vmatprep.mubr.bf16.mxu0 %v18590_v34  ;;  %4531 = vmatprep.mubr.bf16.mxu1 %v18590_v34  ;;  %1308 = vst.msk [vmem:[#allocation2 + $0x270] sm:$0x1] %vm572_vm8, %v1281_v9  ;;  %v1287_v55 = vsel %vm549_vm7, %v1281_v9, %v1283_v44 }
 0x1bd   : > { %4378 = vmatprep.subr.bf16.mxu0 %v14145_v57  ;;  %4604 = vmatprep.subr.bf16.mxu1 %v14148_v41  ;;  %1311 = vst.msk [vmem:[#allocation2 + $0x280] sm:$0x1] %vm575_vm4, %v1283_v44  ;;  %1309 = vst [vmem:[#allocation2 + $0x278] sm:$0x1] %v1287_v55  ;;  %v3621_v57 = vrot.slane %v16188_v10, 2  ;;  %v5747_v10 = vrot.slane %v16482_v47, 1 }
 0x1be   : > { %v14810_v41 = vld [vmem:[#allocation2 + $0x40] sm:$0x3] }
 0x1bf   : > { %4379 = vmatpush1.bf16.msra.mxu0 %v14143_v23  ;;  %4605 = vmatpush1.bf16.msra.mxu1 %v14146_v5  ;;  %v3627_v23 = vrot.slane %v14810_v41, 2  ;;  %v16494_v5 = vld [vmem:[#allocation2 + $0x248] sm:$0xff]  ;;  %v16508_v31 = vld [vmem:[#allocation2 + $0x258] sm:$0xff]  ;;  %v6719_v41 = vrot.slane %v16506_v56, 2 }
 0x1c0   : > { %5218 = vmatprep.subr.bf16.mxu0 %v14151_v28  ;;  %5444 = vmatprep.subr.bf16.mxu1 %v14154_v24  ;;  %v3622_v28 = vsel %vm3613_vm10, %v3620_v21, %v3621_v57  ;;  %v5746_v35 = vrot.slane %v16494_v5, 1  ;;  %v6722_v51 = vrot.slane %v16494_v5, 2  ;;  %v5743_v21 = vrot.slane %v16506_v56, 1 }
 0x1c1   : > { %v3628_v24 = vsel %vm3613_vm10, %v3621_v57, %v3627_v23  ;;  %v5744_v57 = vrot.slane %v16508_v31, 1  ;;  %v14149_v23 = vld [vmem:[%s18470_s1 + $0x6c0] ss:$16 sps:$4 sm:$0xff]  }
 0x1c2   : > { %4306 = vmatmul.mubr.bf16.gmra.mrb[4].mxu0 %v18591_v14  ;;  %4532 = vmatmul.mubr.bf16.gmra.mrb[4].mxu1 %v18591_v14  ;;  %v3784_v55 = vpack.c.bf16 %v3628_v24, %v3622_v28  ;;  %v6724_v28 = vsel %vm3613_vm10, %v6722_v51, %v6723_v52  ;;  %v16536_v51 = vld [vmem:[#allocation2 + $0x268] sm:$0xff] }
 0x1c3   : > { %4315 = vmatprep.mubr.bf16.mxu0 %v18592_v18  ;;  %4541 = vmatprep.mubr.bf16.mxu1 %v18592_v18  ;;  %v18603_v18 = vmov 0  }
 0x1c4   : > { %v1496_v30 = vld [vmem:[#allocation2 + $0x278] sm:$0x3] }
 0x1c5   : > { %v5754_v9 = vrot.slane %v1496_v30, 1  ;;  %v6730_v44 = vrot.slane %v1496_v30, 2  ;;  %v1495_v30 = vld [vmem:[#allocation2 + $0x270] sm:$0x3] }
 0x1c7   : > { %v6731_v24 = vsel %vm3613_vm10, %v6723_v52, %v6730_v44  ;;  %v1497_v52 = vld [vmem:[#allocation2 + $0x280] sm:$0x3] }
 0x1ca   : > { %4316 = vmatmul.mubr.bf16.gmra.mrb[8].mxu0 %v18593_v15  ;;  %4542 = vmatmul.mubr.bf16.gmra.mrb[8].mxu1 %v18593_v15 }
 0x1cb   : > { %4325 = vmatprep.mubr.bf16.mxu0 %v18594_v20  ;;  %4551 = vmatprep.mubr.bf16.mxu1 %v18594_v20 }
 0x1d2   : > { %4326 = vmatmul.mubr.bf16.gmra.mrb[12].mxu0 %v18595_v13  ;;  %4552 = vmatmul.mubr.bf16.gmra.mrb[12].mxu1 %v18595_v13 }
 0x1d3   : > { %4335 = vmatprep.mubr.bf16.mxu0 %v18596_v25  ;;  %4561 = vmatprep.mubr.bf16.mxu1 %v18596_v25  ;;  %v5750_v25 = vrot.slane %v16536_v51, 1 }
 0x1da   : > { %4336 = vmatmul.mubr.bf16.gmra.mrb[16].mxu0 %v18597_v42  ;;  %4562 = vmatmul.mubr.bf16.gmra.mrb[16].mxu1 %v18597_v42  ;;  %v16532_v42 = vpack.c.bf16 %v6731_v24, %v6724_v28  ;;  %v6726_v28 = vrot.slane %v16536_v51, 2 }
 0x1db   : > { %4345 = vmatprep.mubr.bf16.mxu0 %v18598_v12  ;;  %4571 = vmatprep.mubr.bf16.mxu1 %v18598_v12 }
 0x1dc   : > { %18602 = vst [vmem:[#allocation18_spill] sm:$0xff] %v16532_v42  ;;  %v5756_v42 = vrot.slane %v1497_v52, 1 }
 0x1e2   : > { %4346 = vmatmul.mubr.bf16.gmra.mrb[20].mxu0 %v18599_v8  ;;  %4572 = vmatmul.mubr.bf16.gmra.mrb[20].mxu1 %v18599_v8  ;;  %v6720_v8 = vrot.slane %v16508_v31, 2 }
 0x1e3   : > { %4355 = vmatprep.mubr.bf16.mxu0 %v18600_v1  ;;  %4581 = vmatprep.mubr.bf16.mxu1 %v18600_v1  ;;  %v14160_v1 = vld [vmem:[%s18470_s1 + $0x6ec] ss:$16 sps:$4 sm:$0xff]  }
 0x1e4   : > { %v6721_v15 = vsel %vm3613_vm10, %v6719_v41, %v6720_v8  ;;  %v14161_v41 = vld [vmem:[%s18470_s1 + $0x700] ss:$16 sps:$4 sm:$0xff]  }
 0x1ea   : > { %4356 = vmatmul.mubr.bf16.gmra.mrb[24].mxu0 %v18601_v58  ;;  %4582 = vmatmul.mubr.bf16.gmra.mrb[24].mxu1 %v18601_v58  ;;  %v14157_v58 = vld [vmem:[%s18470_s1 + $0x6e4] ss:$16 sps:$4 sm:$0xff]  }
 0x1eb   : > { %4365 = vmatprep.mubr.bf16.mxu0 %v15817_v19  ;;  %4591 = vmatprep.mubr.bf16.mxu1 %v15817_v19  ;;  %v5755_v19 = vsel %vm1675_vm3, %v5747_v10, %v5754_v9  ;;  %v6728_v9 = vrot.slane %v1495_v30, 2 }
 0x1f2   : > { %4366 = vmatmul.mubr.bf16.gmra.mrb[28].mxu0 %v15819_v40  ;;  %4592 = vmatmul.mubr.bf16.gmra.mrb[28].mxu1 %v15819_v40  ;;  %v5748_v40 = vsel %vm1675_vm3, %v5746_v35, %v5747_v10  ;;  %v5752_v35 = vrot.slane %v1495_v30, 1  ;;  %v16534_v10 = vld [vmem:[#allocation2 + $0x250] sm:$0xff]  ;;  %v14158_v30 = vld [vmem:[%s18470_s1 + $0x6e8] ss:$16 sps:$4 sm:$0xff]  }
 0x1f3   : > { %4408 = vmatprep.mubr.bf16.mxu0 %v18522_v46  ;;  %4634 = vmatprep.mubr.bf16.mxu1 %v18522_v46  ;;  %v14152_v46 = vld [vmem:[%s18470_s1 + $0x6c8] ss:$16 sps:$4 sm:$0xff]   ;;  %v16530_v12 = vpack.c.bf16 %v5755_v19, %v5748_v40  ;;  %v5749_v44 = vrot.slane %v16534_v10, 1  ;;  %v6725_v19 = vrot.slane %v16534_v10, 2  ;;  %v14155_v40 = vld [vmem:[%s18470_s1 + $0x6e0] ss:$16 sps:$4 sm:$0xff]  }
 0x1f4   : > { %v5753_v24 = vsel %vm1675_vm3, %v5744_v57, %v5752_v35 }
 0x1f5   : > { %v5751_v20 = vsel %vm1675_vm3, %v5749_v44, %v5750_v25  ;;  %v14175_v44 = vld [vmem:[%s18470_s1 + $0x744] ss:$16 sps:$4 sm:$0xff]  }
 0x1fa   : > { %11674 = vmatmul.mubr.msk.bf16.vlgmr.msra.gmra.mrb[0].mxu0 %vm277_vm2, %v3784_v55  ;;  %11682 = vmatmul.mubr.msk.bf16.vlgmr.msra.gmra.mrb[0].mxu1 %vm277_vm2, %v3784_v55  ;;  %v5745_v55 = vsel %vm1675_vm3, %v5743_v21, %v5744_v57  ;;  %v6732_v21 = vrot.slane %v1497_v52, 2  ;;  %v6727_v57 = vsel %vm3613_vm10, %v6725_v19, %v6726_v28  ;;  %v14167_v52 = vld [vmem:[%s18470_s1 + $0x720] ss:$16 sps:$4 sm:$0xff]   ;;  %v14178_v19 = vld [vmem:[%s18470_s1 + $0x74c] ss:$16 sps:$4 sm:$0xff]  }
 0x1fb   : > { %5219 = vmatpush1.bf16.msra.mxu0 %v14149_v23  ;;  %5445 = vmatpush1.bf16.msra.mxu1 %v14152_v46  ;;  %v14163_v46 = vld [vmem:[%s18470_s1 + $0x704] ss:$16 sps:$4 sm:$0xff]   ;;  %v14166_v23 = vld [vmem:[%s18470_s1 + $0x70c] ss:$16 sps:$4 sm:$0xff]   ;;  %v16558_v13 = vpack.c.bf16 %v5753_v24, %v5745_v55 }
 0x1fc   : > { %5220 = vmatprep.subr.bf16.mxu0 %v14157_v58  ;;  %5446 = vmatprep.subr.bf16.mxu1 %v14160_v1  ;;  %v5757_v1 = vsel %vm1675_vm3, %v5750_v25, %v5756_v42  ;;  %v6729_v58 = vsel %vm3613_vm10, %v6720_v8, %v6728_v9  ;;  %v6733_v55 = vsel %vm3613_vm10, %v6726_v28, %v6732_v21  ;;  %v14164_v25 = vld [vmem:[%s18470_s1 + $0x708] ss:$16 sps:$4 sm:$0xff]   ;;  %v14181_v28 = vld [vmem:[%s18470_s1 + $0x764] ss:$16 sps:$4 sm:$0xff]   ;;  %v14184_v24 = vld [vmem:[%s18470_s1 + $0x76c] ss:$16 sps:$4 sm:$0xff]  }
 0x1fd   : > { %4418 = vmatprep.mubr.bf16.mxu0 %v18603_v18  ;;  %4644 = vmatprep.mubr.bf16.mxu1 %v18603_v18  ;;  %v16567_v35 = vpack.c.bf16 %v5757_v1, %v5751_v20  ;;  %v16569_v14 = vpack.c.bf16 %v6729_v58, %v6721_v15  ;;  %v16578_v42 = vpack.c.bf16 %v6733_v55, %v6727_v57  ;;  %v14169_v15 = vld [vmem:[%s18470_s1 + $0x724] ss:$16 sps:$4 sm:$0xff]   ;;  %v14172_v20 = vld [vmem:[%s18470_s1 + $0x72c] ss:$16 sps:$4 sm:$0xff]   ;;  %v14170_v9 = vld [vmem:[%s18470_s1 + $0x728] ss:$16 sps:$4 sm:$0xff]  }
 0x1fe   : > { %v18605_v8 = vld [vmem:[#allocation12_spill] sm:$0xff]  ;;  %v14187_v1 = vld [vmem:[%s18470_s1 + $0x784] ss:$16 sps:$4 sm:$0xff]   ;;  %v14185_v57 = vld [vmem:[%s18470_s1 + $0x780] ss:$16 sps:$4 sm:$0xff]  }
 0x1ff   : > { %18604 = vst [vmem:[#allocation24_spill] sm:$0xff] %v16569_v14  ;;  %5221 = vmatpush1.bf16.msra.mxu0 %v14155_v40  ;;  %5447 = vmatpush1.bf16.msra.mxu1 %v14158_v30  ;;  %v14173_v40 = vld [vmem:[%s18470_s1 + $0x740] ss:$16 sps:$4 sm:$0xff]   ;;  %v14176_v30 = vld [vmem:[%s18470_s1 + $0x748] ss:$16 sps:$4 sm:$0xff]  }
 0x200   : > { %5222 = vmatprep.subr.bf16.mxu0 %v14163_v46  ;;  %5448 = vmatprep.subr.bf16.mxu1 %v14166_v23  ;;  %v18606_v46 = vld [vmem:[#allocation13_spill] sm:$0xff]  ;;  %v14182_v21 = vld [vmem:[%s18470_s1 + $0x768] ss:$16 sps:$4 sm:$0xff]   ;;  %v14190_v58 = vld [vmem:[%s18470_s1 + $0x78c] ss:$16 sps:$4 sm:$0xff]  }
 0x201   : > { %v14179_v23 = vld [vmem:[%s18470_s1 + $0x760] ss:$16 sps:$4 sm:$0xff]   ;;  %v14188_v55 = vld [vmem:[%s18470_s1 + $0x788] ss:$16 sps:$4 sm:$0xff]  }
 0x202   : > { %11675 = vmatmul.mubr.msk.bf16.gmra.mrb[4].mxu0 %vm277_vm2, %v18605_v8  ;;  %11683 = vmatmul.mubr.msk.bf16.gmra.mrb[4].mxu1 %vm277_vm2, %v18605_v8 }
 0x203   : > { %5223 = vmatpush1.bf16.msra.mxu0 %v14161_v41  ;;  %5449 = vmatpush1.bf16.msra.mxu1 %v14164_v25  ;;  %v14193_v41 = vld [vmem:[%s18470_s1 + $0x7a4] ss:$16 sps:$4 sm:$0xff]   ;;  %v14196_v25 = vld [vmem:[%s18470_s1 + $0x7ac] ss:$16 sps:$4 sm:$0xff]  }
 0x204   : > { %5224 = vmatprep.subr.bf16.mxu0 %v14169_v15  ;;  %5450 = vmatprep.subr.bf16.mxu1 %v14172_v20  ;;  %v18607_v15 = vld [vmem:[#allocation19_spill] sm:$0xff] }
 0x205   : > { %4428 = vmatprep.mubr.bf16.mxu0 %v18603_v18  ;;  %4654 = vmatprep.mubr.bf16.mxu1 %v18603_v18  ;;  %v14191_v20 = vld [vmem:[%s18470_s1 + $0x7a0] ss:$16 sps:$4 sm:$0xff]  }
 0x207   : > { %5225 = vmatpush1.bf16.msra.mxu0 %v14167_v52  ;;  %5451 = vmatpush1.bf16.msra.mxu1 %v14170_v9  ;;  %v14194_v52 = vld [vmem:[%s18470_s1 + $0x7a8] ss:$16 sps:$4 sm:$0xff]   ;;  %v14199_v9 = vld [vmem:[%s18470_s1 + $0x7c4] ss:$16 sps:$4 sm:$0xff]  }
 0x208   : > { %5226 = vmatprep.subr.bf16.mxu0 %v14175_v44  ;;  %5452 = vmatprep.subr.bf16.mxu1 %v14178_v19  ;;  %v14202_v44 = vld [vmem:[%s18470_s1 + $0x7cc] ss:$16 sps:$4 sm:$0xff]   ;;  %v14197_v19 = vld [vmem:[%s18470_s1 + $0x7c0] ss:$16 sps:$4 sm:$0xff]  }
 0x20a   : > { %11676 = vmatmul.mubr.msk.bf16.gmra.mrb[8].mxu0 %vm277_vm2, %v18606_v46  ;;  %11684 = vmatmul.mubr.msk.bf16.gmra.mrb[8].mxu1 %vm277_vm2, %v18606_v46 }
 0x20b   : > { %5227 = vmatpush1.bf16.msra.mxu0 %v14173_v40  ;;  %5453 = vmatpush1.bf16.msra.mxu1 %v14176_v30  ;;  %v14200_v40 = vld [vmem:[%s18470_s1 + $0x7c8] ss:$16 sps:$4 sm:$0xff]   ;;  %v14205_v30 = vld [vmem:[%s18470_s1 + $0x7e4] ss:$16 sps:$4 sm:$0xff]  }
 0x20c   : > { %5228 = vmatprep.subr.bf16.mxu0 %v14181_v28  ;;  %5454 = vmatprep.subr.bf16.mxu1 %v14184_v24  ;;  %v14208_v28 = vld [vmem:[%s18470_s1 + $0x7ec] ss:$16 sps:$4 sm:$0xff]   ;;  %v18608_v24 = vld [vmem:[#allocation25_spill] sm:$0xff] }
 0x20d   : > { %4438 = vmatprep.mubr.bf16.mxu0 %v18603_v18  ;;  %4664 = vmatprep.mubr.bf16.mxu1 %v18603_v18 }
 0x20f   : > { %5229 = vmatpush1.bf16.msra.mxu0 %v14179_v23  ;;  %5455 = vmatpush1.bf16.msra.mxu1 %v14182_v21  ;;  %v14203_v23 = vld [vmem:[%s18470_s1 + $0x7e0] ss:$16 sps:$4 sm:$0xff]   ;;  %v14206_v21 = vld [vmem:[%s18470_s1 + $0x7e8] ss:$16 sps:$4 sm:$0xff]  }
 0x210   : > { %5230 = vmatprep.subr.bf16.mxu0 %v14187_v1  ;;  %5456 = vmatprep.subr.bf16.mxu1 %v14190_v58  ;;  %v14211_v1 = vld [vmem:[%s18470_s1 + $0x804] ss:$16 sps:$4 sm:$0xff]   ;;  %v14214_v58 = vld [vmem:[%s18470_s1 + $0x80c] ss:$16 sps:$4 sm:$0xff]  }
 0x212   : > { %11677 = vmatmul.mubr.msk.bf16.gmra.mrb[12].mxu0 %vm277_vm2, %v18607_v15  ;;  %11685 = vmatmul.mubr.msk.bf16.gmra.mrb[12].mxu1 %vm277_vm2, %v18607_v15 }
 0x213   : > { %5231 = vmatpush1.bf16.msra.mxu0 %v14185_v57  ;;  %5457 = vmatpush1.bf16.msra.mxu1 %v14188_v55  ;;  %v14209_v57 = vld [vmem:[%s18470_s1 + $0x800] ss:$16 sps:$4 sm:$0xff]   ;;  %v14212_v55 = vld [vmem:[%s18470_s1 + $0x808] ss:$16 sps:$4 sm:$0xff]  }
 0x214   : > { %5232 = vmatprep.subr.bf16.mxu0 %v14193_v41  ;;  %5458 = vmatprep.subr.bf16.mxu1 %v14196_v25  ;;  %v14217_v41 = vld [vmem:[%s18470_s1 + $0x824] ss:$16 sps:$4 sm:$0xff]   ;;  %v14220_v25 = vld [vmem:[%s18470_s1 + $0x82c] ss:$16 sps:$4 sm:$0xff]  }
 0x215   : > { %4448 = vmatprep.mubr.bf16.mxu0 %v18603_v18  ;;  %4674 = vmatprep.mubr.bf16.mxu1 %v18603_v18 }
 0x217   : > { %5233 = vmatpush1.bf16.msra.mxu0 %v14191_v20  ;;  %5459 = vmatpush1.bf16.msra.mxu1 %v14194_v52  ;;  %v18609_v20 = vld [vmem:[#allocation31_spill] sm:$0xff] }
 0x218   : > { %5234 = vmatprep.subr.bf16.mxu0 %v14199_v9  ;;  %5460 = vmatprep.subr.bf16.mxu1 %v14202_v44  ;;  %v14215_v52 = vld [vmem:[%s18470_s1 + $0x820] ss:$16 sps:$4 sm:$0xff]   ;;  %v14218_v9 = vld [vmem:[%s18470_s1 + $0x828] ss:$16 sps:$4 sm:$0xff]   ;;  %v14223_v44 = vld [vmem:[%s18470_s1 + $0x844] ss:$16 sps:$4 sm:$0xff]  }
 0x21a   : > { %11678 = vmatmul.mubr.msk.bf16.gmra.mrb[16].mxu0 %vm277_vm2, %v18608_v24  ;;  %11686 = vmatmul.mubr.msk.bf16.gmra.mrb[16].mxu1 %vm277_vm2, %v18608_v24 }
 0x21b   : > { %5235 = vmatpush1.bf16.msra.mxu0 %v14197_v19  ;;  %5461 = vmatpush1.bf16.msra.mxu1 %v14200_v40  ;;  %v14226_v19 = vld [vmem:[%s18470_s1 + $0x84c] ss:$16 sps:$4 sm:$0xff]   ;;  %v14221_v40 = vld [vmem:[%s18470_s1 + $0x840] ss:$16 sps:$4 sm:$0xff]  }
 0x21c   : > { %5236 = vmatprep.subr.bf16.mxu0 %v14205_v30  ;;  %5462 = vmatprep.subr.bf16.mxu1 %v14208_v28  ;;  %v14224_v30 = vld [vmem:[%s18470_s1 + $0x848] ss:$16 sps:$4 sm:$0xff]   ;;  %v14229_v28 = vld [vmem:[%s18470_s1 + $0x864] ss:$16 sps:$4 sm:$0xff]  }
 0x21d   : > { %4458 = vmatprep.mubr.bf16.mxu0 %v18603_v18  ;;  %4684 = vmatprep.mubr.bf16.mxu1 %v18603_v18 }
 0x21f   : > { %5237 = vmatpush1.bf16.msra.mxu0 %v14203_v23  ;;  %5463 = vmatpush1.bf16.msra.mxu1 %v14206_v21  ;;  %v14232_v23 = vld [vmem:[%s18470_s1 + $0x86c] ss:$16 sps:$4 sm:$0xff]   ;;  %v18610_v21 = vld [vmem:[#allocation37_spill] sm:$0xff] }
 0x220   : > { %5238 = vmatprep.subr.bf16.mxu0 %v14211_v1  ;;  %5464 = vmatprep.subr.bf16.mxu1 %v14214_v58  ;;  %v14227_v1 = vld [vmem:[%s18470_s1 + $0x860] ss:$16 sps:$4 sm:$0xff]   ;;  %v14230_v58 = vld [vmem:[%s18470_s1 + $0x868] ss:$16 sps:$4 sm:$0xff]  }
 0x222   : > { %11679 = vmatmul.mubr.msk.bf16.gmra.mrb[20].mxu0 %vm277_vm2, %v18609_v20  ;;  %11687 = vmatmul.mubr.msk.bf16.gmra.mrb[20].mxu1 %vm277_vm2, %v18609_v20 }
 0x223   : > { %5239 = vmatpush1.bf16.msra.mxu0 %v14209_v57  ;;  %5465 = vmatpush1.bf16.msra.mxu1 %v14212_v55  ;;  %v14235_v57 = vld [vmem:[%s18470_s1 + $0x884] ss:$16 sps:$4 sm:$0xff]   ;;  %v14238_v55 = vld [vmem:[%s18470_s1 + $0x88c] ss:$16 sps:$4 sm:$0xff]  }
 0x224   : > { %5240 = vmatprep.subr.bf16.mxu0 %v14217_v41  ;;  %5466 = vmatprep.subr.bf16.mxu1 %v14220_v25  ;;  %v14233_v41 = vld [vmem:[%s18470_s1 + $0x880] ss:$16 sps:$4 sm:$0xff]   ;;  %v14236_v25 = vld [vmem:[%s18470_s1 + $0x888] ss:$16 sps:$4 sm:$0xff]  }
 0x225   : > { %4468 = vmatprep.mubr.bf16.mxu0 %v18603_v18  ;;  %4694 = vmatprep.mubr.bf16.mxu1 %v18603_v18 }
 0x227   : > { %5241 = vmatpush1.bf16.msra.mxu0 %v14215_v52  ;;  %5467 = vmatpush1.bf16.msra.mxu1 %v14218_v9  ;;  %v14241_v52 = vld [vmem:[%s18470_s1 + $0x8a4] ss:$16 sps:$4 sm:$0xff]   ;;  %v14244_v9 = vld [vmem:[%s18470_s1 + $0x8ac] ss:$16 sps:$4 sm:$0xff]  }
 0x228   : > { %5242 = vmatprep.subr.bf16.mxu0 %v14223_v44  ;;  %5468 = vmatprep.subr.bf16.mxu1 %v14226_v19  ;;  %v14239_v44 = vld [vmem:[%s18470_s1 + $0x8a0] ss:$16 sps:$4 sm:$0xff]   ;;  %v14242_v19 = vld [vmem:[%s18470_s1 + $0x8a8] ss:$16 sps:$4 sm:$0xff]  }
 0x22a   : > { %11680 = vmatmul.mubr.msk.bf16.gmra.mrb[24].mxu0 %vm277_vm2, %v18610_v21  ;;  %11688 = vmatmul.mubr.msk.bf16.gmra.mrb[24].mxu1 %vm277_vm2, %v18610_v21 }
 0x22b   : > { %5243 = vmatpush1.bf16.msra.mxu0 %v14221_v40  ;;  %5469 = vmatpush1.bf16.msra.mxu1 %v14224_v30  ;;  %v14247_v40 = vld [vmem:[%s18470_s1 + $0x8c4] ss:$16 sps:$4 sm:$0xff]   ;;  %v14250_v30 = vld [vmem:[%s18470_s1 + $0x8cc] ss:$16 sps:$4 sm:$0xff]  }
 0x22c   : > { %5244 = vmatprep.subr.bf16.mxu0 %v14229_v28  ;;  %5470 = vmatprep.subr.bf16.mxu1 %v14232_v23  ;;  %v14245_v28 = vld [vmem:[%s18470_s1 + $0x8c0] ss:$16 sps:$4 sm:$0xff]   ;;  %v14253_v23 = vld [vmem:[%s18470_s1 + $0x8e4] ss:$16 sps:$4 sm:$0xff]  }
 0x22d   : > { %4478 = vmatprep.mubr.bf16.mxu0 %v18603_v18  ;;  %4704 = vmatprep.mubr.bf16.mxu1 %v18603_v18 }
 0x22f   : > { %5245 = vmatpush1.bf16.msra.mxu0 %v14227_v1  ;;  %5471 = vmatpush1.bf16.msra.mxu1 %v14230_v58  ;;  %v14256_v1 = vld [vmem:[%s18470_s1 + $0x8ec] ss:$16 sps:$4 sm:$0xff]   ;;  %v14251_v58 = vld [vmem:[%s18470_s1 + $0x8e0] ss:$16 sps:$4 sm:$0xff]  }
 0x230   : > { %5246 = vmatprep.subr.bf16.mxu0 %v14235_v57  ;;  %5472 = vmatprep.subr.bf16.mxu1 %v14238_v55  ;;  %v14254_v57 = vld [vmem:[%s18470_s1 + $0x8e8] ss:$16 sps:$4 sm:$0xff]   ;;  %v14259_v55 = vld [vmem:[%s18470_s1 + $0x904] ss:$16 sps:$4 sm:$0xff]  }
 0x232   : > { %11681 = vmatmul.mubr.msk.bf16.gmra.mrb[28].mxu0 %vm277_vm2, %v15821_v6  ;;  %11689 = vmatmul.mubr.msk.bf16.gmra.mrb[28].mxu1 %vm277_vm2, %v15821_v6 }
 0x233   : > { %5247 = vmatpush1.bf16.msra.mxu0 %v14233_v41  ;;  %5473 = vmatpush1.bf16.msra.mxu1 %v14236_v25  ;;  %v16834_v41 = vpack.c.bf16 %v16482_v47, %v16494_v5  ;;  %v16842_v25 = vpack.c.bf16 %v16508_v31, %v16506_v56  ;;  %v14257_v47 = vld [vmem:[%s18470_s1 + $0x900] ss:$16 sps:$4 sm:$0xff]   ;;  %v14260_v5 = vld [vmem:[%s18470_s1 + $0x908] ss:$16 sps:$4 sm:$0xff]   ;;  %v14265_v56 = vld [vmem:[%s18470_s1 + $0x924] ss:$16 sps:$4 sm:$0xff]  }
 0x234   : > { %5250 = vmatprep.mubr.bf16.mxu0 %v15451_v62  ;;  %5476 = vmatprep.mubr.bf16.mxu1 %v15451_v62  ;;  %v14248_v62 = vld [vmem:[%s18470_s1 + $0x8c8] ss:$16 sps:$4 sm:$0xff]   ;;  %v14268_v31 = vld [vmem:[%s18470_s1 + $0x92c] ss:$16 sps:$4 sm:$0xff]  }
 0x235   : > { %5248 = vmatprep.subr.bf16.mxu0 %v14241_v52  ;;  %5474 = vmatprep.subr.bf16.mxu1 %v14244_v9  ;;  %v14263_v52 = vld [vmem:[%s18470_s1 + $0x920] ss:$16 sps:$4 sm:$0xff]   ;;  %v14266_v9 = vld [vmem:[%s18470_s1 + $0x928] ss:$16 sps:$4 sm:$0xff]  }
 0x237   : > { %5249 = vmatpush1.bf16.msra.mxu0 %v14239_v44  ;;  %5475 = vmatpush1.bf16.msra.mxu1 %v14242_v19  ;;  %v14271_v44 = vld [vmem:[%s18470_s1 + $0x944] ss:$16 sps:$4 sm:$0xff]   ;;  %v14269_v19 = vld [vmem:[%s18470_s1 + $0x940] ss:$16 sps:$4 sm:$0xff]  }
 0x238   : > { %5331 = vmatprep.subr.bf16.mxu0 %v14247_v40  ;;  %5557 = vmatprep.subr.bf16.mxu1 %v14250_v30  ;;  %v14272_v40 = vld [vmem:[%s18470_s1 + $0x948] ss:$16 sps:$4 sm:$0xff]   ;;  %v14277_v30 = vld [vmem:[%s18470_s1 + $0x964] ss:$16 sps:$4 sm:$0xff]  }
 0x23a   : > { %5251 = vmatmul.mubr.bf16.vlgmr.msra.gmra.mrb[0].mxu0 %v15460_v16  ;;  %5477 = vmatmul.mubr.bf16.vlgmr.msra.gmra.mrb[0].mxu1 %v15460_v16  ;;  %v14262_v16 = vld [vmem:[%s18470_s1 + $0x90c] ss:$16 sps:$4 sm:$0xff]  }
 0x23b   : > { %5332 = vmatpush1.bf16.msra.mxu0 %v14245_v28  ;;  %5558 = vmatpush1.bf16.msra.mxu1 %v14248_v62  ;;  %v14280_v28 = vld [vmem:[%s18470_s1 + $0x96c] ss:$16 sps:$4 sm:$0xff]   ;;  %v14275_v62 = vld [vmem:[%s18470_s1 + $0x960] ss:$16 sps:$4 sm:$0xff]  }
 0x23c   : > { %5260 = vmatprep.mubr.bf16.mxu0 %v15481_v36  ;;  %5486 = vmatprep.mubr.bf16.mxu1 %v15481_v36 }
 0x23d   : > { %5333 = vmatprep.subr.bf16.mxu0 %v14253_v23  ;;  %5559 = vmatprep.subr.bf16.mxu1 %v14256_v1  ;;  %v14278_v23 = vld [vmem:[%s18470_s1 + $0x968] ss:$16 sps:$4 sm:$0xff]   ;;  %v14283_v1 = vld [vmem:[%s18470_s1 + $0x984] ss:$16 sps:$4 sm:$0xff]  }
 0x23f   : > { %5334 = vmatpush1.bf16.msra.mxu0 %v14251_v58  ;;  %5560 = vmatpush1.bf16.msra.mxu1 %v14254_v57  ;;  %v14286_v58 = vld [vmem:[%s18470_s1 + $0x98c] ss:$16 sps:$4 sm:$0xff]   ;;  %v14281_v57 = vld [vmem:[%s18470_s1 + $0x980] ss:$16 sps:$4 sm:$0xff]  }
 0x240   : > { %6203 = vmatprep.subr.bf16.mxu0 %v14259_v55  ;;  %6429 = vmatprep.subr.bf16.mxu1 %v14262_v16  ;;  %v14284_v55 = vld [vmem:[%s18470_s1 + $0x988] ss:$16 sps:$4 sm:$0xff]   ;;  %v14289_v16 = vld [vmem:[%s18470_s1 + $0x9a4] ss:$16 sps:$4 sm:$0xff]  }
 0x242   : > { %5261 = vmatmul.mubr.bf16.gmra.mrb[4].mxu0 %v15501_v48  ;;  %5487 = vmatmul.mubr.bf16.gmra.mrb[4].mxu1 %v15501_v48 }
 0x243   : > { %5270 = vmatprep.mubr.bf16.mxu0 %v15540_v39  ;;  %5496 = vmatprep.mubr.bf16.mxu1 %v15540_v39 }
 0x24a   : > { %5271 = vmatmul.mubr.bf16.gmra.mrb[8].mxu0 %v15563_v59  ;;  %5497 = vmatmul.mubr.bf16.gmra.mrb[8].mxu1 %v15563_v59 }
 0x24b   : > { %5280 = vmatprep.mubr.bf16.mxu0 %v15600_v54  ;;  %5506 = vmatprep.mubr.bf16.mxu1 %v15600_v54 }
 0x252   : > { %5281 = vmatmul.mubr.bf16.gmra.mrb[12].mxu0 %v15618_v11  ;;  %5507 = vmatmul.mubr.bf16.gmra.mrb[12].mxu1 %v15618_v11 }
 0x253   : > { %5290 = vmatprep.mubr.bf16.mxu0 %v15656_v32  ;;  %5516 = vmatprep.mubr.bf16.mxu1 %v15656_v32 }
 0x25a   : > { %5291 = vmatmul.mubr.bf16.gmra.mrb[16].mxu0 %v15676_v63  ;;  %5517 = vmatmul.mubr.bf16.gmra.mrb[16].mxu1 %v15676_v63 }
 0x25b   : > { %5300 = vmatprep.mubr.bf16.mxu0 %v15714_v4  ;;  %5526 = vmatprep.mubr.bf16.mxu1 %v15714_v4 }
 0x262   : > { %5301 = vmatmul.mubr.bf16.gmra.mrb[20].mxu0 %v15736_v45  ;;  %5527 = vmatmul.mubr.bf16.gmra.mrb[20].mxu1 %v15736_v45 }
 0x263   : > { %5310 = vmatprep.mubr.bf16.mxu0 %v15776_v7  ;;  %5536 = vmatprep.mubr.bf16.mxu1 %v15776_v7 }
 0x26a   : > { %5311 = vmatmul.mubr.bf16.gmra.mrb[24].mxu0 %v15790_v33  ;;  %5537 = vmatmul.mubr.bf16.gmra.mrb[24].mxu1 %v15790_v33 }
 0x26b   : > { %5320 = vmatprep.mubr.bf16.mxu0 %v16834_v41  ;;  %5546 = vmatprep.mubr.bf16.mxu1 %v16834_v41 }
 0x272   : > { %5321 = vmatmul.mubr.bf16.gmra.mrb[28].mxu0 %v16842_v25  ;;  %5547 = vmatmul.mubr.bf16.gmra.mrb[28].mxu1 %v16842_v25 }
 0x273   : > { %5363 = vmatprep.mubr.bf16.mxu0 %v18603_v18  ;;  %5589 = vmatprep.mubr.bf16.mxu1 %v18603_v18 }
 0x27a   : > { %11834 = vmatmul.mubr.msk.bf16.vlgmr.msra.gmra.mrb[0].mxu0 %vm277_vm2, %v15483_v37  ;;  %11842 = vmatmul.mubr.msk.bf16.vlgmr.msra.gmra.mrb[0].mxu1 %vm277_vm2, %v15483_v37  ;;  %v14274_v37 = vld [vmem:[%s18470_s1 + $0x94c] ss:$16 sps:$4 sm:$0xff]  }
 0x27b   : > { %6204 = vmatpush1.bf16.msra.mxu0 %v14257_v47  ;;  %6430 = vmatpush1.bf16.msra.mxu1 %v14260_v5  ;;  %v14292_v47 = vld [vmem:[%s18470_s1 + $0x9ac] ss:$16 sps:$4 sm:$0xff]   ;;  %v14287_v5 = vld [vmem:[%s18470_s1 + $0x9a0] ss:$16 sps:$4 sm:$0xff]  }
 0x27c   : > { %6205 = vmatprep.subr.bf16.mxu0 %v14265_v56  ;;  %6431 = vmatprep.subr.bf16.mxu1 %v14268_v31  ;;  %v14290_v56 = vld [vmem:[%s18470_s1 + $0x9a8] ss:$16 sps:$4 sm:$0xff]   ;;  %v14295_v31 = vld [vmem:[%s18470_s1 + $0x9c4] ss:$16 sps:$4 sm:$0xff]  }
 0x27d   : > { %5373 = vmatprep.mubr.bf16.mxu0 %v18603_v18  ;;  %5599 = vmatprep.mubr.bf16.mxu1 %v18603_v18 }
 0x27f   : > { %6206 = vmatpush1.bf16.msra.mxu0 %v14263_v52  ;;  %6432 = vmatpush1.bf16.msra.mxu1 %v14266_v9  ;;  %v14298_v52 = vld [vmem:[%s18470_s1 + $0x9cc] ss:$16 sps:$4 sm:$0xff]   ;;  %v14293_v9 = vld [vmem:[%s18470_s1 + $0x9c0] ss:$16 sps:$4 sm:$0xff]  }
 0x280   : > { %6207 = vmatprep.subr.bf16.mxu0 %v14271_v44  ;;  %6433 = vmatprep.subr.bf16.mxu1 %v14274_v37  ;;  %v14296_v44 = vld [vmem:[%s18470_s1 + $0x9c8] ss:$16 sps:$4 sm:$0xff]   ;;  %v14301_v37 = vld [vmem:[%s18470_s1 + $0x9e4] ss:$16 sps:$4 sm:$0xff]  }
 0x282   : > { %11835 = vmatmul.mubr.msk.bf16.gmra.mrb[4].mxu0 %vm277_vm2, %v15505_v53  ;;  %11843 = vmatmul.mubr.msk.bf16.gmra.mrb[4].mxu1 %vm277_vm2, %v15505_v53 }
 0x283   : > { %6208 = vmatpush1.bf16.msra.mxu0 %v14269_v19  ;;  %6434 = vmatpush1.bf16.msra.mxu1 %v14272_v40  ;;  %v14304_v19 = vld [vmem:[%s18470_s1 + $0x9ec] ss:$16 sps:$4 sm:$0xff]   ;;  %v14299_v40 = vld [vmem:[%s18470_s1 + $0x9e0] ss:$16 sps:$4 sm:$0xff]  }
 0x284   : > { %6209 = vmatprep.subr.bf16.mxu0 %v14277_v30  ;;  %6435 = vmatprep.subr.bf16.mxu1 %v14280_v28  ;;  %v14302_v30 = vld [vmem:[%s18470_s1 + $0x9e8] ss:$16 sps:$4 sm:$0xff]   ;;  %v14307_v28 = vld [vmem:[%s18470_s1 + $0xa04] ss:$16 sps:$4 sm:$0xff]  }
 0x285   : > { %5383 = vmatprep.mubr.bf16.mxu0 %v18603_v18  ;;  %5609 = vmatprep.mubr.bf16.mxu1 %v18603_v18 }
 0x287   : > { %6210 = vmatpush1.bf16.msra.mxu0 %v14275_v62  ;;  %6436 = vmatpush1.bf16.msra.mxu1 %v14278_v23  ;;  %v14310_v62 = vld [vmem:[%s18470_s1 + $0xa0c] ss:$16 sps:$4 sm:$0xff]   ;;  %v14305_v23 = vld [vmem:[%s18470_s1 + $0xa00] ss:$16 sps:$4 sm:$0xff]  }
 0x288   : > { %6211 = vmatprep.subr.bf16.mxu0 %v14283_v1  ;;  %6437 = vmatprep.subr.bf16.mxu1 %v14286_v58  ;;  %v14308_v1 = vld [vmem:[%s18470_s1 + $0xa08] ss:$16 sps:$4 sm:$0xff]   ;;  %v14313_v58 = vld [vmem:[%s18470_s1 + $0xa24] ss:$16 sps:$4 sm:$0xff]  }
 0x28a   : > { %11836 = vmatmul.mubr.msk.bf16.gmra.mrb[8].mxu0 %vm277_vm2, %v15566_v60  ;;  %11844 = vmatmul.mubr.msk.bf16.gmra.mrb[8].mxu1 %vm277_vm2, %v15566_v60 }
 0x28b   : > { %6212 = vmatpush1.bf16.msra.mxu0 %v14281_v57  ;;  %6438 = vmatpush1.bf16.msra.mxu1 %v14284_v55  ;;  %v14316_v57 = vld [vmem:[%s18470_s1 + $0xa2c] ss:$16 sps:$4 sm:$0xff]   ;;  %v14311_v55 = vld [vmem:[%s18470_s1 + $0xa20] ss:$16 sps:$4 sm:$0xff]  }
 0x28c   : > { %6213 = vmatprep.subr.bf16.mxu0 %v14289_v16  ;;  %6439 = vmatprep.subr.bf16.mxu1 %v14292_v47  ;;  %v14314_v16 = vld [vmem:[%s18470_s1 + $0xa28] ss:$16 sps:$4 sm:$0xff]   ;;  %v14319_v47 = vld [vmem:[%s18470_s1 + $0xa44] ss:$16 sps:$4 sm:$0xff]  }
 0x28d   : > { %5393 = vmatprep.mubr.bf16.mxu0 %v18603_v18  ;;  %5619 = vmatprep.mubr.bf16.mxu1 %v18603_v18 }
 0x28f   : > { %6214 = vmatpush1.bf16.msra.mxu0 %v14287_v5  ;;  %6440 = vmatpush1.bf16.msra.mxu1 %v14290_v56  ;;  %v14322_v5 = vld [vmem:[%s18470_s1 + $0xa4c] ss:$16 sps:$4 sm:$0xff]   ;;  %v14317_v56 = vld [vmem:[%s18470_s1 + $0xa40] ss:$16 sps:$4 sm:$0xff]  }
 0x290   : > { %6215 = vmatprep.subr.bf16.mxu0 %v14295_v31  ;;  %6441 = vmatprep.subr.bf16.mxu1 %v14298_v52  ;;  %v14320_v31 = vld [vmem:[%s18470_s1 + $0xa48] ss:$16 sps:$4 sm:$0xff]   ;;  %v14325_v52 = vld [vmem:[%s18470_s1 + $0xa64] ss:$16 sps:$4 sm:$0xff]  }
 0x292   : > { %11837 = vmatmul.mubr.msk.bf16.gmra.mrb[12].mxu0 %vm277_vm2, %v18586_v26  ;;  %11845 = vmatmul.mubr.msk.bf16.gmra.mrb[12].mxu1 %vm277_vm2, %v18586_v26 }
 0x293   : > { %6216 = vmatpush1.bf16.msra.mxu0 %v14293_v9  ;;  %6442 = vmatpush1.bf16.msra.mxu1 %v14296_v44  ;;  %v14328_v9 = vld [vmem:[%s18470_s1 + $0xa6c] ss:$16 sps:$4 sm:$0xff]   ;;  %v14323_v44 = vld [vmem:[%s18470_s1 + $0xa60] ss:$16 sps:$4 sm:$0xff]  }
 0x294   : > { %6217 = vmatprep.subr.bf16.mxu0 %v14301_v37  ;;  %6443 = vmatprep.subr.bf16.mxu1 %v14304_v19  ;;  %v14326_v37 = vld [vmem:[%s18470_s1 + $0xa68] ss:$16 sps:$4 sm:$0xff]   ;;  %v14331_v19 = vld [vmem:[%s18470_s1 + $0xa84] ss:$16 sps:$4 sm:$0xff]  }
 0x295   : > { %5403 = vmatprep.mubr.bf16.mxu0 %v18603_v18  ;;  %5629 = vmatprep.mubr.bf16.mxu1 %v18603_v18 }
 0x297   : > { %6218 = vmatpush1.bf16.msra.mxu0 %v14299_v40  ;;  %6444 = vmatpush1.bf16.msra.mxu1 %v14302_v30  ;;  %v14334_v40 = vld [vmem:[%s18470_s1 + $0xa8c] ss:$16 sps:$4 sm:$0xff]   ;;  %v14329_v30 = vld [vmem:[%s18470_s1 + $0xa80] ss:$16 sps:$4 sm:$0xff]  }
 0x298   : > { %6219 = vmatprep.subr.bf16.mxu0 %v14307_v28  ;;  %6445 = vmatprep.subr.bf16.mxu1 %v14310_v62  ;;  %v14332_v28 = vld [vmem:[%s18470_s1 + $0xa88] ss:$16 sps:$4 sm:$0xff]   ;;  %v14337_v62 = vld [vmem:[%s18470_s1 + $0xaa4] ss:$16 sps:$4 sm:$0xff]  }
 0x29a   : > { %11838 = vmatmul.mubr.msk.bf16.gmra.mrb[16].mxu0 %vm277_vm2, %v18587_v3  ;;  %11846 = vmatmul.mubr.msk.bf16.gmra.mrb[16].mxu1 %vm277_vm2, %v18587_v3 }
 0x29b   : > { %6220 = vmatpush1.bf16.msra.mxu0 %v14305_v23  ;;  %6446 = vmatpush1.bf16.msra.mxu1 %v14308_v1  ;;  %v14340_v23 = vld [vmem:[%s18470_s1 + $0xaac] ss:$16 sps:$4 sm:$0xff]   ;;  %v14335_v1 = vld [vmem:[%s18470_s1 + $0xaa0] ss:$16 sps:$4 sm:$0xff]  }
 0x29c   : > { %6221 = vmatprep.subr.bf16.mxu0 %v14313_v58  ;;  %6447 = vmatprep.subr.bf16.mxu1 %v14316_v57  ;;  %v14338_v58 = vld [vmem:[%s18470_s1 + $0xaa8] ss:$16 sps:$4 sm:$0xff]   ;;  %v14343_v57 = vld [vmem:[%s18470_s1 + $0xac4] ss:$16 sps:$4 sm:$0xff]  }
 0x29d   : > { %5413 = vmatprep.mubr.bf16.mxu0 %v18603_v18  ;;  %5639 = vmatprep.mubr.bf16.mxu1 %v18603_v18 }
 0x29f   : > { %6222 = vmatpush1.bf16.msra.mxu0 %v14311_v55  ;;  %6448 = vmatpush1.bf16.msra.mxu1 %v14314_v16  ;;  %v14346_v55 = vld [vmem:[%s18470_s1 + $0xacc] ss:$16 sps:$4 sm:$0xff]   ;;  %v14341_v16 = vld [vmem:[%s18470_s1 + $0xac0] ss:$16 sps:$4 sm:$0xff]  }
 0x2a0   : > { %6223 = vmatprep.subr.bf16.mxu0 %v14319_v47  ;;  %6449 = vmatprep.subr.bf16.mxu1 %v14322_v5  ;;  %v14344_v47 = vld [vmem:[%s18470_s1 + $0xac8] ss:$16 sps:$4 sm:$0xff]   ;;  %v17066_v5 = vpack.c.bf16 %v16536_v51, %v16534_v10  ;;  %v14347_v10 = vld [vmem:[%s18470_s1 + $0xae0] ss:$16 sps:$4 sm:$0xff]  }
 0x2a1   : > { %v14350_v51 = vld [vmem:[%s18470_s1 + $0xae8] ss:$16 sps:$4 sm:$0xff]  }
 0x2a2   : > { %11839 = vmatmul.mubr.msk.bf16.gmra.mrb[20].mxu0 %vm277_vm2, %v18588_v17  ;;  %11847 = vmatmul.mubr.msk.bf16.gmra.mrb[20].mxu1 %vm277_vm2, %v18588_v17 }
 0x2a3   : > { %6224 = vmatpush1.bf16.msra.mxu0 %v14317_v56  ;;  %6450 = vmatpush1.bf16.msra.mxu1 %v14320_v31  ;;  %v14349_v56 = vld [vmem:[%s18470_s1 + $0xae4] ss:$16 sps:$4 sm:$0xff]   ;;  %v14352_v31 = vld [vmem:[%s18470_s1 + $0xaec] ss:$16 sps:$4 sm:$0xff]  }
 0x2a4   : > { %6225 = vmatprep.subr.bf16.mxu0 %v14325_v52  ;;  %6451 = vmatprep.subr.bf16.mxu1 %v14328_v9  ;;  %v18611_v52 = vld [vmem:[#allocation4_spill] sm:$0xff]  ;;  %v14355_v9 = vld [vmem:[%s18470_s1 + $0xb04] ss:$16 sps:$4 sm:$0xff]  }
 0x2a5   : > { %5423 = vmatprep.mubr.bf16.mxu0 %v18603_v18  ;;  %5649 = vmatprep.mubr.bf16.mxu1 %v18603_v18 }
 0x2a7   : > { %6226 = vmatpush1.bf16.msra.mxu0 %v14323_v44  ;;  %6452 = vmatpush1.bf16.msra.mxu1 %v14326_v37  ;;  %v14358_v44 = vld [vmem:[%s18470_s1 + $0xb0c] ss:$16 sps:$4 sm:$0xff]   ;;  %v14353_v37 = vld [vmem:[%s18470_s1 + $0xb00] ss:$16 sps:$4 sm:$0xff]  }
 0x2a8   : > { %6227 = vmatprep.subr.bf16.mxu0 %v14331_v19  ;;  %6453 = vmatprep.subr.bf16.mxu1 %v14334_v40  ;;  %v14356_v19 = vld [vmem:[%s18470_s1 + $0xb08] ss:$16 sps:$4 sm:$0xff]   ;;  %v14361_v40 = vld [vmem:[%s18470_s1 + $0xb24] ss:$16 sps:$4 sm:$0xff]  }
 0x2aa   : > { %11840 = vmatmul.mubr.msk.bf16.gmra.mrb[24].mxu0 %vm277_vm2, %v18589_v61  ;;  %11848 = vmatmul.mubr.msk.bf16.gmra.mrb[24].mxu1 %vm277_vm2, %v18589_v61 }
 0x2ab   : > { %6228 = vmatpush1.bf16.msra.mxu0 %v14329_v30  ;;  %6454 = vmatpush1.bf16.msra.mxu1 %v14332_v28  ;;  %v14364_v30 = vld [vmem:[%s18470_s1 + $0xb2c] ss:$16 sps:$4 sm:$0xff]   ;;  %v18612_v28 = vld [vmem:[#allocation5_spill] sm:$0xff] }
 0x2ac   : > { %6229 = vmatprep.subr.bf16.mxu0 %v14337_v62  ;;  %6455 = vmatprep.subr.bf16.mxu1 %v14340_v23  ;;  %v14359_v62 = vld [vmem:[%s18470_s1 + $0xb20] ss:$16 sps:$4 sm:$0xff]   ;;  %v14362_v23 = vld [vmem:[%s18470_s1 + $0xb28] ss:$16 sps:$4 sm:$0xff]  }
 0x2ad   : > { %5433 = vmatprep.mubr.bf16.mxu0 %v18603_v18  ;;  %5659 = vmatprep.mubr.bf16.mxu1 %v18603_v18 }
 0x2af   : > { %6230 = vmatpush1.bf16.msra.mxu0 %v14335_v1  ;;  %6456 = vmatpush1.bf16.msra.mxu1 %v14338_v58  ;;  %v18613_v1 = vld [vmem:[#allocation8_spill] sm:$0xff]  ;;  %v14367_v58 = vld [vmem:[%s18470_s1 + $0xb44] ss:$16 sps:$4 sm:$0xff]  }
 0x2b0   : > { %6231 = vmatprep.subr.bf16.mxu0 %v14343_v57  ;;  %6457 = vmatprep.subr.bf16.mxu1 %v14346_v55  ;;  %v14370_v57 = vld [vmem:[%s18470_s1 + $0xb4c] ss:$16 sps:$4 sm:$0xff]   ;;  %v18614_v55 = vld [vmem:[#allocation9_spill] sm:$0xff] }
 0x2b2   : > { %11841 = vmatmul.mubr.msk.bf16.gmra.mrb[28].mxu0 %vm277_vm2, %v17066_v5  ;;  %11849 = vmatmul.mubr.msk.bf16.gmra.mrb[28].mxu1 %vm277_vm2, %v17066_v5 }
 0x2b3   : > { %6232 = vmatpush1.bf16.msra.mxu0 %v14341_v16  ;;  %6458 = vmatpush1.bf16.msra.mxu1 %v14344_v47  ;;  %v18615_v16 = vld [vmem:[#allocation14_spill] sm:$0xff]  ;;  %v18616_v47 = vld [vmem:[#allocation15_spill] sm:$0xff] }
 0x2b4   : > { %6235 = vmatprep.mubr.bf16.mxu0 %v18611_v52  ;;  %6461 = vmatprep.mubr.bf16.mxu1 %v18611_v52  ;;  %v18621_v52 = vld [vmem:[#allocation32_spill] sm:$0xff] }
 0x2b5   : > { %6233 = vmatprep.subr.bf16.mxu0 %v14349_v56  ;;  %6459 = vmatprep.subr.bf16.mxu1 %v14352_v31  ;;  %v18617_v56 = vld [vmem:[#allocation20_spill] sm:$0xff]  ;;  %v18618_v31 = vld [vmem:[#allocation21_spill] sm:$0xff] }
 0x2b7   : > { %6234 = vmatpush1.bf16.msra.mxu0 %v14347_v10  ;;  %6460 = vmatpush1.bf16.msra.mxu1 %v14350_v51  ;;  %v18619_v10 = vld [vmem:[#allocation26_spill] sm:$0xff]  ;;  %v18620_v51 = vld [vmem:[#allocation27_spill] sm:$0xff] }
 0x2b8   : > { %6316 = vmatprep.subr.bf16.mxu0 %v14355_v9  ;;  %6542 = vmatprep.subr.bf16.mxu1 %v14358_v44  ;;  %v18622_v9 = vld [vmem:[#allocation33_spill] sm:$0xff] }
 0x2b9   : > { %v14365_v44 = vld [vmem:[%s18470_s1 + $0xb40] ss:$16 sps:$4 sm:$0xff]  }
 0x2ba   : > { %6236 = vmatmul.mubr.bf16.vlgmr.msra.gmra.mrb[0].mxu0 %v18612_v28  ;;  %6462 = vmatmul.mubr.bf16.vlgmr.msra.gmra.mrb[0].mxu1 %v18612_v28  ;;  %v14374_v28 = vld [vmem:[%s18470_s1 + $0xb68] ss:$16 sps:$4 sm:$0xff]  }
 0x2bb   : > { %6317 = vmatpush1.bf16.msra.mxu0 %v14353_v37  ;;  %6543 = vmatpush1.bf16.msra.mxu1 %v14356_v19  ;;  %v14368_v37 = vld [vmem:[%s18470_s1 + $0xb48] ss:$16 sps:$4 sm:$0xff]   ;;  %v14373_v19 = vld [vmem:[%s18470_s1 + $0xb64] ss:$16 sps:$4 sm:$0xff]  }
 0x2bc   : > { %6245 = vmatprep.mubr.bf16.mxu0 %v18613_v1  ;;  %6471 = vmatprep.mubr.bf16.mxu1 %v18613_v1 }
 0x2bd   : > { %6318 = vmatprep.subr.bf16.mxu0 %v14361_v40  ;;  %6544 = vmatprep.subr.bf16.mxu1 %v14364_v30  ;;  %v14376_v40 = vld [vmem:[%s18470_s1 + $0xb6c] ss:$16 sps:$4 sm:$0xff]   ;;  %v14371_v30 = vld [vmem:[%s18470_s1 + $0xb60] ss:$16 sps:$4 sm:$0xff]  }
 0x2bf   : > { %6319 = vmatpush1.bf16.msra.mxu0 %v14359_v62  ;;  %6545 = vmatpush1.bf16.msra.mxu1 %v14362_v23  ;;  %v14379_v62 = vld [vmem:[%s18470_s1 + $0xb84] ss:$16 sps:$4 sm:$0xff]   ;;  %v14377_v23 = vld [vmem:[%s18470_s1 + $0xb80] ss:$16 sps:$4 sm:$0xff]  }
 0x2c0   : > { %7179 = vmatprep.subr.bf16.mxu0 %v14367_v58  ;;  %7405 = vmatprep.subr.bf16.mxu1 %v14370_v57  ;;  %v14380_v58 = vld [vmem:[%s18470_s1 + $0xb88] ss:$16 sps:$4 sm:$0xff]   ;;  %v14385_v57 = vld [vmem:[%s18470_s1 + $0xba4] ss:$16 sps:$4 sm:$0xff]  }
 0x2c2   : > { %6246 = vmatmul.mubr.bf16.gmra.mrb[4].mxu0 %v18614_v55  ;;  %6472 = vmatmul.mubr.bf16.gmra.mrb[4].mxu1 %v18614_v55 }
 0x2c3   : > { %6255 = vmatprep.mubr.bf16.mxu0 %v18615_v16  ;;  %6481 = vmatprep.mubr.bf16.mxu1 %v18615_v16 }
 0x2ca   : > { %6256 = vmatmul.mubr.bf16.gmra.mrb[8].mxu0 %v18616_v47  ;;  %6482 = vmatmul.mubr.bf16.gmra.mrb[8].mxu1 %v18616_v47 }
 0x2cb   : > { %6265 = vmatprep.mubr.bf16.mxu0 %v18617_v56  ;;  %6491 = vmatprep.mubr.bf16.mxu1 %v18617_v56 }
 0x2d2   : > { %6266 = vmatmul.mubr.bf16.gmra.mrb[12].mxu0 %v18618_v31  ;;  %6492 = vmatmul.mubr.bf16.gmra.mrb[12].mxu1 %v18618_v31 }
 0x2d3   : > { %6275 = vmatprep.mubr.bf16.mxu0 %v18619_v10  ;;  %6501 = vmatprep.mubr.bf16.mxu1 %v18619_v10 }
 0x2da   : > { %6276 = vmatmul.mubr.bf16.gmra.mrb[16].mxu0 %v18620_v51  ;;  %6502 = vmatmul.mubr.bf16.gmra.mrb[16].mxu1 %v18620_v51 }
 0x2db   : > { %6285 = vmatprep.mubr.bf16.mxu0 %v18621_v52  ;;  %6511 = vmatprep.mubr.bf16.mxu1 %v18621_v52 }
 0x2e2   : > { %6286 = vmatmul.mubr.bf16.gmra.mrb[20].mxu0 %v18622_v9  ;;  %6512 = vmatmul.mubr.bf16.gmra.mrb[20].mxu1 %v18622_v9 }
 0x2e3   : > { %6295 = vmatprep.mubr.bf16.mxu0 %v15815_v2  ;;  %6521 = vmatprep.mubr.bf16.mxu1 %v15815_v2 }
 0x2ea   : > { %6296 = vmatmul.mubr.bf16.gmra.mrb[24].mxu0 %v15823_v0  ;;  %6522 = vmatmul.mubr.bf16.gmra.mrb[24].mxu1 %v15823_v0 }
 0x2eb   : > { %6305 = vmatprep.mubr.bf16.mxu0 %v16530_v12  ;;  %6531 = vmatprep.mubr.bf16.mxu1 %v16530_v12 }
 0x2f2   : > { %6306 = vmatmul.mubr.bf16.gmra.mrb[28].mxu0 %v16558_v13  ;;  %6532 = vmatmul.mubr.bf16.gmra.mrb[28].mxu1 %v16558_v13 }
 0x2f3   : > { %6348 = vmatprep.mubr.bf16.mxu0 %v18603_v18  ;;  %6574 = vmatprep.mubr.bf16.mxu1 %v18603_v18 }
 0x2fa   : > { %11994 = vmatmul.mubr.msk.bf16.vlgmr.msra.gmra.mrb[0].mxu0 %vm277_vm2, %v15869_v38  ;;  %12002 = vmatmul.mubr.msk.bf16.vlgmr.msra.gmra.mrb[0].mxu1 %vm277_vm2, %v15869_v38  ;;  %v14382_v38 = vld [vmem:[%s18470_s1 + $0xb8c] ss:$16 sps:$4 sm:$0xff]  }
 0x2fb   : > { %7180 = vmatpush1.bf16.msra.mxu0 %v14365_v44  ;;  %7406 = vmatpush1.bf16.msra.mxu1 %v14368_v37  ;;  %v14388_v44 = vld [vmem:[%s18470_s1 + $0xbac] ss:$16 sps:$4 sm:$0xff]   ;;  %v14383_v37 = vld [vmem:[%s18470_s1 + $0xba0] ss:$16 sps:$4 sm:$0xff]  }
 0x2fc   : > { %7181 = vmatprep.subr.bf16.mxu0 %v14373_v19  ;;  %7407 = vmatprep.subr.bf16.mxu1 %v14376_v40  ;;  %v14386_v19 = vld [vmem:[%s18470_s1 + $0xba8] ss:$16 sps:$4 sm:$0xff]   ;;  %v14391_v40 = vld [vmem:[%s18470_s1 + $0xbc4] ss:$16 sps:$4 sm:$0xff]  }
 0x2fd   : > { %6358 = vmatprep.mubr.bf16.mxu0 %v18603_v18  ;;  %6584 = vmatprep.mubr.bf16.mxu1 %v18603_v18 }
 0x2ff   : > { %7182 = vmatpush1.bf16.msra.mxu0 %v14371_v30  ;;  %7408 = vmatpush1.bf16.msra.mxu1 %v14374_v28  ;;  %v14394_v30 = vld [vmem:[%s18470_s1 + $0xbcc] ss:$16 sps:$4 sm:$0xff]   ;;  %v14389_v28 = vld [vmem:[%s18470_s1 + $0xbc0] ss:$16 sps:$4 sm:$0xff]  }
 0x300   : > { %7183 = vmatprep.subr.bf16.mxu0 %v14379_v62  ;;  %7409 = vmatprep.subr.bf16.mxu1 %v14382_v38  ;;  %v14392_v62 = vld [vmem:[%s18470_s1 + $0xbc8] ss:$16 sps:$4 sm:$0xff]   ;;  %v14397_v38 = vld [vmem:[%s18470_s1 + $0xbe4] ss:$16 sps:$4 sm:$0xff]  }
 0x302   : > { %11995 = vmatmul.mubr.msk.bf16.gmra.mrb[4].mxu0 %vm277_vm2, %v15904_v49  ;;  %12003 = vmatmul.mubr.msk.bf16.gmra.mrb[4].mxu1 %vm277_vm2, %v15904_v49 }
 0x303   : > { %7184 = vmatpush1.bf16.msra.mxu0 %v14377_v23  ;;  %7410 = vmatpush1.bf16.msra.mxu1 %v14380_v58  ;;  %v14400_v23 = vld [vmem:[%s18470_s1 + $0xbec] ss:$16 sps:$4 sm:$0xff]   ;;  %v14395_v58 = vld [vmem:[%s18470_s1 + $0xbe0] ss:$16 sps:$4 sm:$0xff]  }
 0x304   : > { %7185 = vmatprep.subr.bf16.mxu0 %v14385_v57  ;;  %7411 = vmatprep.subr.bf16.mxu1 %v14388_v44  ;;  %v14398_v57 = vld [vmem:[%s18470_s1 + $0xbe8] ss:$16 sps:$4 sm:$0xff]   ;;  %v14403_v44 = vld [vmem:[%s18470_s1 + $0xc04] ss:$16 sps:$4 sm:$0xff]  }
 0x305   : > { %6368 = vmatprep.mubr.bf16.mxu0 %v18603_v18  ;;  %6594 = vmatprep.mubr.bf16.mxu1 %v18603_v18 }
 0x307   : > { %7186 = vmatpush1.bf16.msra.mxu0 %v14383_v37  ;;  %7412 = vmatpush1.bf16.msra.mxu1 %v14386_v19  ;;  %v14406_v37 = vld [vmem:[%s18470_s1 + $0xc0c] ss:$16 sps:$4 sm:$0xff]   ;;  %v14401_v19 = vld [vmem:[%s18470_s1 + $0xc00] ss:$16 sps:$4 sm:$0xff]  }
 0x308   : > { %7187 = vmatprep.subr.bf16.mxu0 %v14391_v40  ;;  %7413 = vmatprep.subr.bf16.mxu1 %v14394_v30  ;;  %v14404_v40 = vld [vmem:[%s18470_s1 + $0xc08] ss:$16 sps:$4 sm:$0xff]   ;;  %v14409_v30 = vld [vmem:[%s18470_s1 + $0xc24] ss:$16 sps:$4 sm:$0xff]  }
 0x30a   : > { %11996 = vmatmul.mubr.msk.bf16.gmra.mrb[8].mxu0 %vm277_vm2, %v15939_v50  ;;  %12004 = vmatmul.mubr.msk.bf16.gmra.mrb[8].mxu1 %vm277_vm2, %v15939_v50 }
 0x30b   : > { %7188 = vmatpush1.bf16.msra.mxu0 %v14389_v28  ;;  %7414 = vmatpush1.bf16.msra.mxu1 %v14392_v62  ;;  %v14412_v28 = vld [vmem:[%s18470_s1 + $0xc2c] ss:$16 sps:$4 sm:$0xff]   ;;  %v14407_v62 = vld [vmem:[%s18470_s1 + $0xc20] ss:$16 sps:$4 sm:$0xff]  }
 0x30c   : > { %7189 = vmatprep.subr.bf16.mxu0 %v14397_v38  ;;  %7415 = vmatprep.subr.bf16.mxu1 %v14400_v23  ;;  %v14410_v38 = vld [vmem:[%s18470_s1 + $0xc28] ss:$16 sps:$4 sm:$0xff]   ;;  %v14415_v23 = vld [vmem:[%s18470_s1 + $0xc44] ss:$16 sps:$4 sm:$0xff]  }
 0x30d   : > { %6378 = vmatprep.mubr.bf16.mxu0 %v18603_v18  ;;  %6604 = vmatprep.mubr.bf16.mxu1 %v18603_v18 }
 0x30f   : > { %7190 = vmatpush1.bf16.msra.mxu0 %v14395_v58  ;;  %7416 = vmatpush1.bf16.msra.mxu1 %v14398_v57  ;;  %v14418_v58 = vld [vmem:[%s18470_s1 + $0xc4c] ss:$16 sps:$4 sm:$0xff]   ;;  %v14413_v57 = vld [vmem:[%s18470_s1 + $0xc40] ss:$16 sps:$4 sm:$0xff]  }
 0x310   : > { %7191 = vmatprep.subr.bf16.mxu0 %v14403_v44  ;;  %7417 = vmatprep.subr.bf16.mxu1 %v14406_v37  ;;  %v14416_v44 = vld [vmem:[%s18470_s1 + $0xc48] ss:$16 sps:$4 sm:$0xff]   ;;  %v14421_v37 = vld [vmem:[%s18470_s1 + $0xc64] ss:$16 sps:$4 sm:$0xff]  }
 0x312   : > { %11997 = vmatmul.mubr.msk.bf16.gmra.mrb[12].mxu0 %vm277_vm2, %v15975_v29  ;;  %12005 = vmatmul.mubr.msk.bf16.gmra.mrb[12].mxu1 %vm277_vm2, %v15975_v29 }
 0x313   : > { %7192 = vmatpush1.bf16.msra.mxu0 %v14401_v19  ;;  %7418 = vmatpush1.bf16.msra.mxu1 %v14404_v40  ;;  %v14424_v19 = vld [vmem:[%s18470_s1 + $0xc6c] ss:$16 sps:$4 sm:$0xff]   ;;  %v14419_v40 = vld [vmem:[%s18470_s1 + $0xc60] ss:$16 sps:$4 sm:$0xff]  }
 0x314   : > { %7193 = vmatprep.subr.bf16.mxu0 %v14409_v30  ;;  %7419 = vmatprep.subr.bf16.mxu1 %v14412_v28  ;;  %v14422_v30 = vld [vmem:[%s18470_s1 + $0xc68] ss:$16 sps:$4 sm:$0xff]   ;;  %v14427_v28 = vld [vmem:[%s18470_s1 + $0xc84] ss:$16 sps:$4 sm:$0xff]  }
 0x315   : > { %6388 = vmatprep.mubr.bf16.mxu0 %v18603_v18  ;;  %6614 = vmatprep.mubr.bf16.mxu1 %v18603_v18 }
 0x317   : > { %7194 = vmatpush1.bf16.msra.mxu0 %v14407_v62  ;;  %7420 = vmatpush1.bf16.msra.mxu1 %v14410_v38  ;;  %v14430_v62 = vld [vmem:[%s18470_s1 + $0xc8c] ss:$16 sps:$4 sm:$0xff]   ;;  %v14425_v38 = vld [vmem:[%s18470_s1 + $0xc80] ss:$16 sps:$4 sm:$0xff]  }
 0x318   : > { %7195 = vmatprep.subr.bf16.mxu0 %v14415_v23  ;;  %7421 = vmatprep.subr.bf16.mxu1 %v14418_v58  ;;  %v14428_v23 = vld [vmem:[%s18470_s1 + $0xc88] ss:$16 sps:$4 sm:$0xff]   ;;  %v14433_v58 = vld [vmem:[%s18470_s1 + $0xca4] ss:$16 sps:$4 sm:$0xff]  }
 0x31a   : > { %11998 = vmatmul.mubr.msk.bf16.gmra.mrb[16].mxu0 %vm277_vm2, %v16012_v27  ;;  %12006 = vmatmul.mubr.msk.bf16.gmra.mrb[16].mxu1 %vm277_vm2, %v16012_v27 }
 0x31b   : > { %7196 = vmatpush1.bf16.msra.mxu0 %v14413_v57  ;;  %7422 = vmatpush1.bf16.msra.mxu1 %v14416_v44  ;;  %v14436_v57 = vld [vmem:[%s18470_s1 + $0xcac] ss:$16 sps:$4 sm:$0xff]   ;;  %v14431_v44 = vld [vmem:[%s18470_s1 + $0xca0] ss:$16 sps:$4 sm:$0xff]  }
 0x31c   : > { %7197 = vmatprep.subr.bf16.mxu0 %v14421_v37  ;;  %7423 = vmatprep.subr.bf16.mxu1 %v14424_v19  ;;  %v14434_v37 = vld [vmem:[%s18470_s1 + $0xca8] ss:$16 sps:$4 sm:$0xff]   ;;  %v14439_v19 = vld [vmem:[%s18470_s1 + $0xcc4] ss:$16 sps:$4 sm:$0xff]  }
 0x31d   : > { %6398 = vmatprep.mubr.bf16.mxu0 %v18603_v18  ;;  %6624 = vmatprep.mubr.bf16.mxu1 %v18603_v18 }
 0x31f   : > { %7198 = vmatpush1.bf16.msra.mxu0 %v14419_v40  ;;  %7424 = vmatpush1.bf16.msra.mxu1 %v14422_v30  ;;  %v14442_v40 = vld [vmem:[%s18470_s1 + $0xccc] ss:$16 sps:$4 sm:$0xff]   ;;  %v14437_v30 = vld [vmem:[%s18470_s1 + $0xcc0] ss:$16 sps:$4 sm:$0xff]  }
 0x320   : > { %7199 = vmatprep.subr.bf16.mxu0 %v14427_v28  ;;  %7425 = vmatprep.subr.bf16.mxu1 %v14430_v62  ;;  %v14440_v28 = vld [vmem:[%s18470_s1 + $0xcc8] ss:$16 sps:$4 sm:$0xff]   ;;  %v14445_v62 = vld [vmem:[%s18470_s1 + $0xce4] ss:$16 sps:$4 sm:$0xff]  }
 0x322   : > { %11999 = vmatmul.mubr.msk.bf16.gmra.mrb[20].mxu0 %vm277_vm2, %v16049_v43  ;;  %12007 = vmatmul.mubr.msk.bf16.gmra.mrb[20].mxu1 %vm277_vm2, %v16049_v43 }
 0x323   : > { %7200 = vmatpush1.bf16.msra.mxu0 %v14425_v38  ;;  %7426 = vmatpush1.bf16.msra.mxu1 %v14428_v23  ;;  %v14448_v38 = vld [vmem:[%s18470_s1 + $0xcec] ss:$16 sps:$4 sm:$0xff]   ;;  %v14443_v23 = vld [vmem:[%s18470_s1 + $0xce0] ss:$16 sps:$4 sm:$0xff]  }
 0x324   : > { %7201 = vmatprep.subr.bf16.mxu0 %v14433_v58  ;;  %7427 = vmatprep.subr.bf16.mxu1 %v14436_v57  ;;  %v14446_v58 = vld [vmem:[%s18470_s1 + $0xce8] ss:$16 sps:$4 sm:$0xff]   ;;  %v14451_v57 = vld [vmem:[%s18470_s1 + $0xd04] ss:$16 sps:$4 sm:$0xff]  }
 0x325   : > { %6408 = vmatprep.mubr.bf16.mxu0 %v18603_v18  ;;  %6634 = vmatprep.mubr.bf16.mxu1 %v18603_v18 }
 0x327   : > { %7202 = vmatpush1.bf16.msra.mxu0 %v14431_v44  ;;  %7428 = vmatpush1.bf16.msra.mxu1 %v14434_v37  ;;  %v14454_v44 = vld [vmem:[%s18470_s1 + $0xd0c] ss:$16 sps:$4 sm:$0xff]   ;;  %v14449_v37 = vld [vmem:[%s18470_s1 + $0xd00] ss:$16 sps:$4 sm:$0xff]  }
 0x328   : > { %7203 = vmatprep.subr.bf16.mxu0 %v14439_v19  ;;  %7429 = vmatprep.subr.bf16.mxu1 %v14442_v40  ;;  %v14452_v19 = vld [vmem:[%s18470_s1 + $0xd08] ss:$16 sps:$4 sm:$0xff]   ;;  %v14457_v40 = vld [vmem:[%s18470_s1 + $0xd24] ss:$16 sps:$4 sm:$0xff]  }
 0x32a   : > { %12000 = vmatmul.mubr.msk.bf16.gmra.mrb[24].mxu0 %vm277_vm2, %v16086_v22  ;;  %12008 = vmatmul.mubr.msk.bf16.gmra.mrb[24].mxu1 %vm277_vm2, %v16086_v22 }
 0x32b   : > { %7204 = vmatpush1.bf16.msra.mxu0 %v14437_v30  ;;  %7430 = vmatpush1.bf16.msra.mxu1 %v14440_v28  ;;  %v14460_v30 = vld [vmem:[%s18470_s1 + $0xd2c] ss:$16 sps:$4 sm:$0xff]   ;;  %v14455_v28 = vld [vmem:[%s18470_s1 + $0xd20] ss:$16 sps:$4 sm:$0xff]  }
 0x32c   : > { %7205 = vmatprep.subr.bf16.mxu0 %v14445_v62  ;;  %7431 = vmatprep.subr.bf16.mxu1 %v14448_v38  ;;  %v14458_v62 = vld [vmem:[%s18470_s1 + $0xd28] ss:$16 sps:$4 sm:$0xff]   ;;  %v14463_v38 = vld [vmem:[%s18470_s1 + $0xd44] ss:$16 sps:$4 sm:$0xff]  }
 0x32d   : > { %6418 = vmatprep.mubr.bf16.mxu0 %v18603_v18  ;;  %6644 = vmatprep.mubr.bf16.mxu1 %v18603_v18 }
 0x32f   : > { %7206 = vmatpush1.bf16.msra.mxu0 %v14443_v23  ;;  %7432 = vmatpush1.bf16.msra.mxu1 %v14446_v58  ;;  %v14466_v23 = vld [vmem:[%s18470_s1 + $0xd4c] ss:$16 sps:$4 sm:$0xff]   ;;  %v14461_v58 = vld [vmem:[%s18470_s1 + $0xd40] ss:$16 sps:$4 sm:$0xff]  }
 0x330   : > { %7207 = vmatprep.subr.bf16.mxu0 %v14451_v57  ;;  %7433 = vmatprep.subr.bf16.mxu1 %v14454_v44  ;;  %v14469_v57 = vld [vmem:[%s18470_s1 + $0xd64] ss:$16 sps:$4 sm:$0xff]   ;;  %v14472_v44 = vld [vmem:[%s18470_s1 + $0xd6c] ss:$16 sps:$4 sm:$0xff]  }
 0x332   : > { %12001 = vmatmul.mubr.msk.bf16.gmra.mrb[28].mxu0 %vm277_vm2, %v16567_v35  ;;  %12009 = vmatmul.mubr.msk.bf16.gmra.mrb[28].mxu1 %vm277_vm2, %v16567_v35 }
 0x333   : > { %7208 = vmatpush1.bf16.msra.mxu0 %v14449_v37  ;;  %7434 = vmatpush1.bf16.msra.mxu1 %v14452_v19  ;;  %v18623_v37 = vld [vmem:[#allocation7_spill] sm:$0xff] }
 0x334   : > { %7211 = vmatprep.mubr.bf16.mxu0 %v18590_v34  ;;  %7437 = vmatprep.mubr.bf16.mxu1 %v18590_v34  ;;  %v14464_v34 = vld [vmem:[%s18470_s1 + $0xd48] ss:$16 sps:$4 sm:$0xff]   ;;  %v14467_v19 = vld [vmem:[%s18470_s1 + $0xd60] ss:$16 sps:$4 sm:$0xff]  }
 0x335   : > { %7209 = vmatprep.subr.bf16.mxu0 %v14457_v40  ;;  %7435 = vmatprep.subr.bf16.mxu1 %v14460_v30  ;;  %v14470_v40 = vld [vmem:[%s18470_s1 + $0xd68] ss:$16 sps:$4 sm:$0xff]  }
 0x336   : > { %v18624_v30 = vld [vmem:[#allocation10_spill] sm:$0xff] }
 0x337   : > { %7210 = vmatpush1.bf16.msra.mxu0 %v14455_v28  ;;  %7436 = vmatpush1.bf16.msra.mxu1 %v14458_v62  ;;  %v14475_v28 = vld [vmem:[%s18470_s1 + $0xd84] ss:$16 sps:$4 sm:$0xff]   ;;  %v14478_v62 = vld [vmem:[%s18470_s1 + $0xd8c] ss:$16 sps:$4 sm:$0xff]  }
 0x338   : > { %7292 = vmatprep.subr.bf16.mxu0 %v14463_v38  ;;  %7518 = vmatprep.subr.bf16.mxu1 %v14466_v23  ;;  %v18625_v38 = vld [vmem:[#allocation11_spill] sm:$0xff]  ;;  %v18626_v23 = vld [vmem:[#allocation16_spill] sm:$0xff] }
 0x33a   : > { %7212 = vmatmul.mubr.bf16.vlgmr.msra.gmra.mrb[0].mxu0 %v18623_v37  ;;  %7438 = vmatmul.mubr.bf16.vlgmr.msra.gmra.mrb[0].mxu1 %v18623_v37  ;;  %v18631_v37 = vld [vmem:[#allocation29_spill] sm:$0xff] }
 0x33b   : > { %7293 = vmatpush1.bf16.msra.mxu0 %v14461_v58  ;;  %7519 = vmatpush1.bf16.msra.mxu1 %v14464_v34  ;;  %v18627_v58 = vld [vmem:[#allocation17_spill] sm:$0xff]  ;;  %v18628_v34 = vld [vmem:[#allocation22_spill] sm:$0xff] }
 0x33c   : > { %7221 = vmatprep.mubr.bf16.mxu0 %v18624_v30  ;;  %7447 = vmatprep.mubr.bf16.mxu1 %v18624_v30 }
 0x33d   : > { %7294 = vmatprep.subr.bf16.mxu0 %v14469_v57  ;;  %7520 = vmatprep.subr.bf16.mxu1 %v14472_v44  ;;  %v18629_v57 = vld [vmem:[#allocation23_spill] sm:$0xff]  ;;  %v18630_v44 = vld [vmem:[#allocation28_spill] sm:$0xff] }
 0x33f   : > { %7295 = vmatpush1.bf16.msra.mxu0 %v14467_v19  ;;  %7521 = vmatpush1.bf16.msra.mxu1 %v14470_v40  ;;  %v18632_v19 = vld [vmem:[#allocation34_spill] sm:$0xff]  ;;  %v18633_v40 = vld [vmem:[#allocation35_spill] sm:$0xff] }
 0x340   : > { %8134 = vmatprep.subr.bf16.mxu0 %v14475_v28  ;;  %8360 = vmatprep.subr.bf16.mxu1 %v14478_v62  ;;  %v18634_v28 = vld [vmem:[#allocation38_spill] sm:$0xff]  ;;  %v18635_v62 = vld [vmem:[#allocation39_spill] sm:$0xff] }
 0x342   : > { %7222 = vmatmul.mubr.bf16.gmra.mrb[4].mxu0 %v18625_v38  ;;  %7448 = vmatmul.mubr.bf16.gmra.mrb[4].mxu1 %v18625_v38 }
 0x343   : > { %7231 = vmatprep.mubr.bf16.mxu0 %v18626_v23  ;;  %7457 = vmatprep.mubr.bf16.mxu1 %v18626_v23 }
 0x34a   : > { %7232 = vmatmul.mubr.bf16.gmra.mrb[8].mxu0 %v18627_v58  ;;  %7458 = vmatmul.mubr.bf16.gmra.mrb[8].mxu1 %v18627_v58 }
 0x34b   : > { %7241 = vmatprep.mubr.bf16.mxu0 %v18628_v34  ;;  %7467 = vmatprep.mubr.bf16.mxu1 %v18628_v34 }
 0x352   : > { %7242 = vmatmul.mubr.bf16.gmra.mrb[12].mxu0 %v18629_v57  ;;  %7468 = vmatmul.mubr.bf16.gmra.mrb[12].mxu1 %v18629_v57 }
 0x353   : > { %7251 = vmatprep.mubr.bf16.mxu0 %v18630_v44  ;;  %7477 = vmatprep.mubr.bf16.mxu1 %v18630_v44  ;;  %v18636_v44 = vld [vmem:[#allocation18_spill] sm:$0xff] }
 0x35a   : > { %7252 = vmatmul.mubr.bf16.gmra.mrb[16].mxu0 %v18631_v37  ;;  %7478 = vmatmul.mubr.bf16.gmra.mrb[16].mxu1 %v18631_v37  ;;  %v14487_v37 = vld [vmem:[%s18470_s1 + $0xdc4] ss:$16 sps:$4 sm:$0xff]  }
 0x35b   : > { %7261 = vmatprep.mubr.bf16.mxu0 %v18632_v19  ;;  %7487 = vmatprep.mubr.bf16.mxu1 %v18632_v19  ;;  %v14482_v19 = vld [vmem:[%s18470_s1 + $0xda8] ss:$16 sps:$4 sm:$0xff]  }
 0x362   : > { %7262 = vmatmul.mubr.bf16.gmra.mrb[20].mxu0 %v18633_v40  ;;  %7488 = vmatmul.mubr.bf16.gmra.mrb[20].mxu1 %v18633_v40  ;;  %v14479_v40 = vld [vmem:[%s18470_s1 + $0xda0] ss:$16 sps:$4 sm:$0xff]  }
 0x363   : > { %7271 = vmatprep.mubr.bf16.mxu0 %v18634_v28  ;;  %7497 = vmatprep.mubr.bf16.mxu1 %v18634_v28  ;;  %v14473_v28 = vld [vmem:[%s18470_s1 + $0xd80] ss:$16 sps:$4 sm:$0xff]  }
 0x36a   : > { %7272 = vmatmul.mubr.bf16.gmra.mrb[24].mxu0 %v18635_v62  ;;  %7498 = vmatmul.mubr.bf16.gmra.mrb[24].mxu1 %v18635_v62  ;;  %v14476_v62 = vld [vmem:[%s18470_s1 + $0xd88] ss:$16 sps:$4 sm:$0xff]  }
 0x36b   : > { %7281 = vmatprep.mubr.bf16.mxu0 %v18636_v44  ;;  %7507 = vmatprep.mubr.bf16.mxu1 %v18636_v44  ;;  %v14481_v44 = vld [vmem:[%s18470_s1 + $0xda4] ss:$16 sps:$4 sm:$0xff]  }
 0x372   : > { %7282 = vmatmul.mubr.bf16.gmra.mrb[28].mxu0 %v16569_v14  ;;  %7508 = vmatmul.mubr.bf16.gmra.mrb[28].mxu1 %v16569_v14  ;;  %v14484_v14 = vld [vmem:[%s18470_s1 + $0xdac] ss:$16 sps:$4 sm:$0xff]  }
 0x373   : > { %7324 = vmatprep.mubr.bf16.mxu0 %v18603_v18  ;;  %7550 = vmatprep.mubr.bf16.mxu1 %v18603_v18 }
 0x37a   : > { %12154 = vmatmul.mubr.msk.bf16.vlgmr.msra.gmra.mrb[0].mxu0 %vm277_vm2, %v18605_v8  ;;  %12162 = vmatmul.mubr.msk.bf16.vlgmr.msra.gmra.mrb[0].mxu1 %vm277_vm2, %v18605_v8  ;;  %v14490_v8 = vld [vmem:[%s18470_s1 + $0xdcc] ss:$16 sps:$4 sm:$0xff]  }
 0x37b   : > { %8135 = vmatpush1.bf16.msra.mxu0 %v14473_v28  ;;  %8361 = vmatpush1.bf16.msra.mxu1 %v14476_v62  ;;  %v14485_v28 = vld [vmem:[%s18470_s1 + $0xdc0] ss:$16 sps:$4 sm:$0xff]   ;;  %v14496_v62 = vld [vmem:[%s18470_s1 + $0xdec] ss:$16 sps:$4 sm:$0xff]  }
 0x37c   : > { %8136 = vmatprep.subr.bf16.mxu0 %v14481_v44  ;;  %8362 = vmatprep.subr.bf16.mxu1 %v14484_v14  ;;  %v14488_v14 = vld [vmem:[%s18470_s1 + $0xdc8] ss:$16 sps:$4 sm:$0xff]   ;;  %v14493_v44 = vld [vmem:[%s18470_s1 + $0xde4] ss:$16 sps:$4 sm:$0xff]  }
 0x37d   : > { %7334 = vmatprep.mubr.bf16.mxu0 %v18603_v18  ;;  %7560 = vmatprep.mubr.bf16.mxu1 %v18603_v18 }
 0x37f   : > { %8137 = vmatpush1.bf16.msra.mxu0 %v14479_v40  ;;  %8363 = vmatpush1.bf16.msra.mxu1 %v14482_v19  ;;  %v14494_v19 = vld [vmem:[%s18470_s1 + $0xde8] ss:$16 sps:$4 sm:$0xff]   ;;  %v14499_v40 = vld [vmem:[%s18470_s1 + $0xe04] ss:$16 sps:$4 sm:$0xff]  }
 0x380   : > { %8138 = vmatprep.subr.bf16.mxu0 %v14487_v37  ;;  %8364 = vmatprep.subr.bf16.mxu1 %v14490_v8  ;;  %v14491_v37 = vld [vmem:[%s18470_s1 + $0xde0] ss:$16 sps:$4 sm:$0xff]   ;;  %v14502_v8 = vld [vmem:[%s18470_s1 + $0xe0c] ss:$16 sps:$4 sm:$0xff]  }
 0x382   : > { %12155 = vmatmul.mubr.msk.bf16.gmra.mrb[4].mxu0 %vm277_vm2, %v18606_v46  ;;  %12163 = vmatmul.mubr.msk.bf16.gmra.mrb[4].mxu1 %vm277_vm2, %v18606_v46 }
 0x383   : > { %8139 = vmatpush1.bf16.msra.mxu0 %v14485_v28  ;;  %8365 = vmatpush1.bf16.msra.mxu1 %v14488_v14  ;;  %v14497_v28 = vld [vmem:[%s18470_s1 + $0xe00] ss:$16 sps:$4 sm:$0xff]   ;;  %v14500_v14 = vld [vmem:[%s18470_s1 + $0xe08] ss:$16 sps:$4 sm:$0xff]  }
 0x384   : > { %8140 = vmatprep.subr.bf16.mxu0 %v14493_v44  ;;  %8366 = vmatprep.subr.bf16.mxu1 %v14496_v62  ;;  %v14505_v44 = vld [vmem:[%s18470_s1 + $0xe24] ss:$16 sps:$4 sm:$0xff]   ;;  %v14508_v62 = vld [vmem:[%s18470_s1 + $0xe2c] ss:$16 sps:$4 sm:$0xff]  }
 0x385   : > { %7344 = vmatprep.mubr.bf16.mxu0 %v18603_v18  ;;  %7570 = vmatprep.mubr.bf16.mxu1 %v18603_v18 }
 0x387   : > { %8141 = vmatpush1.bf16.msra.mxu0 %v14491_v37  ;;  %8367 = vmatpush1.bf16.msra.mxu1 %v14494_v19  ;;  %v14503_v37 = vld [vmem:[%s18470_s1 + $0xe20] ss:$16 sps:$4 sm:$0xff]   ;;  %v14506_v19 = vld [vmem:[%s18470_s1 + $0xe28] ss:$16 sps:$4 sm:$0xff]  }
 0x388   : > { %8142 = vmatprep.subr.bf16.mxu0 %v14499_v40  ;;  %8368 = vmatprep.subr.bf16.mxu1 %v14502_v8  ;;  %v14511_v40 = vld [vmem:[%s18470_s1 + $0xe44] ss:$16 sps:$4 sm:$0xff]   ;;  %v14514_v8 = vld [vmem:[%s18470_s1 + $0xe4c] ss:$16 sps:$4 sm:$0xff]  }
 0x38a   : > { %12156 = vmatmul.mubr.msk.bf16.gmra.mrb[8].mxu0 %vm277_vm2, %v18607_v15  ;;  %12164 = vmatmul.mubr.msk.bf16.gmra.mrb[8].mxu1 %vm277_vm2, %v18607_v15 }
 0x38b   : > { %8143 = vmatpush1.bf16.msra.mxu0 %v14497_v28  ;;  %8369 = vmatpush1.bf16.msra.mxu1 %v14500_v14  ;;  %v14509_v28 = vld [vmem:[%s18470_s1 + $0xe40] ss:$16 sps:$4 sm:$0xff]   ;;  %v14512_v14 = vld [vmem:[%s18470_s1 + $0xe48] ss:$16 sps:$4 sm:$0xff]  }
 0x38c   : > { %8144 = vmatprep.subr.bf16.mxu0 %v14505_v44  ;;  %8370 = vmatprep.subr.bf16.mxu1 %v14508_v62  ;;  %v14517_v44 = vld [vmem:[%s18470_s1 + $0xe64] ss:$16 sps:$4 sm:$0xff]   ;;  %v14520_v62 = vld [vmem:[%s18470_s1 + $0xe6c] ss:$16 sps:$4 sm:$0xff]  }
 0x38d   : > { %7354 = vmatprep.mubr.bf16.mxu0 %v18603_v18  ;;  %7580 = vmatprep.mubr.bf16.mxu1 %v18603_v18 }
 0x38f   : > { %8145 = vmatpush1.bf16.msra.mxu0 %v14503_v37  ;;  %8371 = vmatpush1.bf16.msra.mxu1 %v14506_v19  ;;  %v14515_v37 = vld [vmem:[%s18470_s1 + $0xe60] ss:$16 sps:$4 sm:$0xff]   ;;  %v14518_v19 = vld [vmem:[%s18470_s1 + $0xe68] ss:$16 sps:$4 sm:$0xff]  }
 0x390   : > { %8146 = vmatprep.subr.bf16.mxu0 %v14511_v40  ;;  %8372 = vmatprep.subr.bf16.mxu1 %v14514_v8  ;;  %v14523_v40 = vld [vmem:[%s18470_s1 + $0xe84] ss:$16 sps:$4 sm:$0xff]   ;;  %v14526_v8 = vld [vmem:[%s18470_s1 + $0xe8c] ss:$16 sps:$4 sm:$0xff]  }
 0x392   : > { %12157 = vmatmul.mubr.msk.bf16.gmra.mrb[12].mxu0 %vm277_vm2, %v18608_v24  ;;  %12165 = vmatmul.mubr.msk.bf16.gmra.mrb[12].mxu1 %vm277_vm2, %v18608_v24 }
 0x393   : > { %8147 = vmatpush1.bf16.msra.mxu0 %v14509_v28  ;;  %8373 = vmatpush1.bf16.msra.mxu1 %v14512_v14  ;;  %v14521_v28 = vld [vmem:[%s18470_s1 + $0xe80] ss:$16 sps:$4 sm:$0xff]   ;;  %v14524_v14 = vld [vmem:[%s18470_s1 + $0xe88] ss:$16 sps:$4 sm:$0xff]  }
 0x394   : > { %8148 = vmatprep.subr.bf16.mxu0 %v14517_v44  ;;  %8374 = vmatprep.subr.bf16.mxu1 %v14520_v62  ;;  %v14529_v44 = vld [vmem:[%s18470_s1 + $0xea4] ss:$16 sps:$4 sm:$0xff]   ;;  %v14532_v62 = vld [vmem:[%s18470_s1 + $0xeac] ss:$16 sps:$4 sm:$0xff]  }
 0x395   : > { %7364 = vmatprep.mubr.bf16.mxu0 %v18603_v18  ;;  %7590 = vmatprep.mubr.bf16.mxu1 %v18603_v18 }
 0x397   : > { %8149 = vmatpush1.bf16.msra.mxu0 %v14515_v37  ;;  %8375 = vmatpush1.bf16.msra.mxu1 %v14518_v19  ;;  %v14527_v37 = vld [vmem:[%s18470_s1 + $0xea0] ss:$16 sps:$4 sm:$0xff]   ;;  %v14530_v19 = vld [vmem:[%s18470_s1 + $0xea8] ss:$16 sps:$4 sm:$0xff]  }
 0x398   : > { %8150 = vmatprep.subr.bf16.mxu0 %v14523_v40  ;;  %8376 = vmatprep.subr.bf16.mxu1 %v14526_v8  ;;  %v14535_v40 = vld [vmem:[%s18470_s1 + $0xec4] ss:$16 sps:$4 sm:$0xff]   ;;  %v14538_v8 = vld [vmem:[%s18470_s1 + $0xecc] ss:$16 sps:$4 sm:$0xff]  }
 0x39a   : > { %12158 = vmatmul.mubr.msk.bf16.gmra.mrb[16].mxu0 %vm277_vm2, %v18609_v20  ;;  %12166 = vmatmul.mubr.msk.bf16.gmra.mrb[16].mxu1 %vm277_vm2, %v18609_v20 }
 0x39b   : > { %8151 = vmatpush1.bf16.msra.mxu0 %v14521_v28  ;;  %8377 = vmatpush1.bf16.msra.mxu1 %v14524_v14  ;;  %v14533_v28 = vld [vmem:[%s18470_s1 + $0xec0] ss:$16 sps:$4 sm:$0xff]   ;;  %v14536_v14 = vld [vmem:[%s18470_s1 + $0xec8] ss:$16 sps:$4 sm:$0xff]  }
 0x39c   : > { %8152 = vmatprep.subr.bf16.mxu0 %v14529_v44  ;;  %8378 = vmatprep.subr.bf16.mxu1 %v14532_v62  ;;  %v14541_v44 = vld [vmem:[%s18470_s1 + $0xee4] ss:$16 sps:$4 sm:$0xff]   ;;  %v14544_v62 = vld [vmem:[%s18470_s1 + $0xeec] ss:$16 sps:$4 sm:$0xff]  }
 0x39d   : > { %7374 = vmatprep.mubr.bf16.mxu0 %v18603_v18  ;;  %7600 = vmatprep.mubr.bf16.mxu1 %v18603_v18 }
 0x39f   : > { %8153 = vmatpush1.bf16.msra.mxu0 %v14527_v37  ;;  %8379 = vmatpush1.bf16.msra.mxu1 %v14530_v19  ;;  %v14539_v37 = vld [vmem:[%s18470_s1 + $0xee0] ss:$16 sps:$4 sm:$0xff]   ;;  %v14542_v19 = vld [vmem:[%s18470_s1 + $0xee8] ss:$16 sps:$4 sm:$0xff]  }
 0x3a0   : > { %8154 = vmatprep.subr.bf16.mxu0 %v14535_v40  ;;  %8380 = vmatprep.subr.bf16.mxu1 %v14538_v8  ;;  %v14547_v40 = vld [vmem:[%s18470_s1 + $0xf04] ss:$16 sps:$4 sm:$0xff]   ;;  %v14550_v8 = vld [vmem:[%s18470_s1 + $0xf0c] ss:$16 sps:$4 sm:$0xff]  }
 0x3a2   : > { %12159 = vmatmul.mubr.msk.bf16.gmra.mrb[20].mxu0 %vm277_vm2, %v18610_v21  ;;  %12167 = vmatmul.mubr.msk.bf16.gmra.mrb[20].mxu1 %vm277_vm2, %v18610_v21 }
 0x3a3   : > { %8155 = vmatpush1.bf16.msra.mxu0 %v14533_v28  ;;  %8381 = vmatpush1.bf16.msra.mxu1 %v14536_v14  ;;  %v14545_v28 = vld [vmem:[%s18470_s1 + $0xf00] ss:$16 sps:$4 sm:$0xff]   ;;  %v14548_v14 = vld [vmem:[%s18470_s1 + $0xf08] ss:$16 sps:$4 sm:$0xff]  }
 0x3a4   : > { %8156 = vmatprep.subr.bf16.mxu0 %v14541_v44  ;;  %8382 = vmatprep.subr.bf16.mxu1 %v14544_v62  ;;  %v14553_v44 = vld [vmem:[%s18470_s1 + $0xf24] ss:$16 sps:$4 sm:$0xff]   ;;  %v14556_v62 = vld [vmem:[%s18470_s1 + $0xf2c] ss:$16 sps:$4 sm:$0xff]  }
 0x3a5   : > { %7384 = vmatprep.mubr.bf16.mxu0 %v18603_v18  ;;  %7610 = vmatprep.mubr.bf16.mxu1 %v18603_v18 }
 0x3a7   : > { %8157 = vmatpush1.bf16.msra.mxu0 %v14539_v37  ;;  %8383 = vmatpush1.bf16.msra.mxu1 %v14542_v19  ;;  %v14551_v37 = vld [vmem:[%s18470_s1 + $0xf20] ss:$16 sps:$4 sm:$0xff]   ;;  %v14554_v19 = vld [vmem:[%s18470_s1 + $0xf28] ss:$16 sps:$4 sm:$0xff]  }
 0x3a8   : > { %8158 = vmatprep.subr.bf16.mxu0 %v14547_v40  ;;  %8384 = vmatprep.subr.bf16.mxu1 %v14550_v8  ;;  %v14559_v40 = vld [vmem:[%s18470_s1 + $0xf44] ss:$16 sps:$4 sm:$0xff]   ;;  %v14562_v8 = vld [vmem:[%s18470_s1 + $0xf4c] ss:$16 sps:$4 sm:$0xff]  }
 0x3aa   : > { %12160 = vmatmul.mubr.msk.bf16.gmra.mrb[24].mxu0 %vm277_vm2, %v15821_v6  ;;  %12168 = vmatmul.mubr.msk.bf16.gmra.mrb[24].mxu1 %vm277_vm2, %v15821_v6 }
 0x3ab   : > { %8159 = vmatpush1.bf16.msra.mxu0 %v14545_v28  ;;  %8385 = vmatpush1.bf16.msra.mxu1 %v14548_v14  ;;  %v14557_v28 = vld [vmem:[%s18470_s1 + $0xf40] ss:$16 sps:$4 sm:$0xff]   ;;  %v14560_v14 = vld [vmem:[%s18470_s1 + $0xf48] ss:$16 sps:$4 sm:$0xff]  }
 0x3ac   : > { %8160 = vmatprep.subr.bf16.mxu0 %v14553_v44  ;;  %8386 = vmatprep.subr.bf16.mxu1 %v14556_v62  ;;  %v14565_v44 = vld [vmem:[%s18470_s1 + $0xf64] ss:$16 sps:$4 sm:$0xff]   ;;  %v14568_v62 = vld [vmem:[%s18470_s1 + $0xf6c] ss:$16 sps:$4 sm:$0xff]  }
 0x3ad   : > { %7394 = vmatprep.mubr.bf16.mxu0 %v18603_v18  ;;  %7620 = vmatprep.mubr.bf16.mxu1 %v18603_v18 }
 0x3af   : > { %8161 = vmatpush1.bf16.msra.mxu0 %v14551_v37  ;;  %8387 = vmatpush1.bf16.msra.mxu1 %v14554_v19  ;;  %v14563_v37 = vld [vmem:[%s18470_s1 + $0xf60] ss:$16 sps:$4 sm:$0xff]   ;;  %v14566_v19 = vld [vmem:[%s18470_s1 + $0xf68] ss:$16 sps:$4 sm:$0xff]  }
 0x3b0   : > { %8162 = vmatprep.subr.bf16.mxu0 %v14559_v40  ;;  %8388 = vmatprep.subr.bf16.mxu1 %v14562_v8  ;;  %v14571_v40 = vld [vmem:[%s18470_s1 + $0xf84] ss:$16 sps:$4 sm:$0xff]   ;;  %v14574_v8 = vld [vmem:[%s18470_s1 + $0xf8c] ss:$16 sps:$4 sm:$0xff]  }
 0x3b2   : > { %12161 = vmatmul.mubr.msk.bf16.gmra.mrb[28].mxu0 %vm277_vm2, %v16578_v42  ;;  %12169 = vmatmul.mubr.msk.bf16.gmra.mrb[28].mxu1 %vm277_vm2, %v16578_v42 }
 0x3b3   : > { %8163 = vmatpush1.bf16.msra.mxu0 %v14557_v28  ;;  %8389 = vmatpush1.bf16.msra.mxu1 %v14560_v14  ;;  %v14569_v28 = vld [vmem:[%s18470_s1 + $0xf80] ss:$16 sps:$4 sm:$0xff]   ;;  %v14577_v14 = vld [vmem:[%s18470_s1 + $0xfa4] ss:$16 sps:$4 sm:$0xff]  }
 0x3b4   : > { %8166 = vmatprep.mubr.bf16.mxu0 %v15481_v36  ;;  %8392 = vmatprep.mubr.bf16.mxu1 %v15481_v36  ;;  %v14572_v36 = vld [vmem:[%s18470_s1 + $0xf88] ss:$16 sps:$4 sm:$0xff]  }
 0x3b5   : > { %8164 = vmatprep.subr.bf16.mxu0 %v14565_v44  ;;  %8390 = vmatprep.subr.bf16.mxu1 %v14568_v62  ;;  %v14580_v44 = vld [vmem:[%s18470_s1 + $0xfac] ss:$16 sps:$4 sm:$0xff]   ;;  %v14575_v62 = vld [vmem:[%s18470_s1 + $0xfa0] ss:$16 sps:$4 sm:$0xff]  }
 0x3b7   : > { %8165 = vmatpush1.bf16.msra.mxu0 %v14563_v37  ;;  %8391 = vmatpush1.bf16.msra.mxu1 %v14566_v19  ;;  %v14578_v37 = vld [vmem:[%s18470_s1 + $0xfa8] ss:$16 sps:$4 sm:$0xff]   ;;  %v14583_v19 = vld [vmem:[%s18470_s1 + $0xfc4] ss:$16 sps:$4 sm:$0xff]  }
 0x3b8   : > { %8247 = vmatprep.subr.bf16.mxu0 %v14571_v40  ;;  %8473 = vmatprep.subr.bf16.mxu1 %v14574_v8  ;;  %v14604_v40 = vld [vmem:[%s18470_s1 + $0x102c] ss:$16 sps:$4 sm:$0xff]   ;;  %v14599_v8 = vld [vmem:[%s18470_s1 + $0x1020] ss:$16 sps:$4 sm:$0xff]  }
 0x3ba   : > { %8167 = vmatmul.mubr.bf16.vlgmr.msra.gmra.mrb[0].mxu0 %v15501_v48  ;;  %8393 = vmatmul.mubr.bf16.vlgmr.msra.gmra.mrb[0].mxu1 %v15501_v48  ;;  %v14586_v48 = vld [vmem:[%s18470_s1 + $0xfcc] ss:$16 sps:$4 sm:$0xff]  }
 0x3bb   : > { %8248 = vmatpush1.bf16.msra.mxu0 %v14569_v28  ;;  %8474 = vmatpush1.bf16.msra.mxu1 %v14572_v36  ;;  %v14602_v28 = vld [vmem:[%s18470_s1 + $0x1028] ss:$16 sps:$4 sm:$0xff]   ;;  %v14607_v36 = vld [vmem:[%s18470_s1 + $0x1044] ss:$16 sps:$4 sm:$0xff]  }
 0x3bc   : > { %8176 = vmatprep.mubr.bf16.mxu0 %v15540_v39  ;;  %8402 = vmatprep.mubr.bf16.mxu1 %v15540_v39  ;;  %v17732_v39 = vld [vmem:[#allocation2] sm:$0xff] }
 0x3bd   : > { %8249 = vmatprep.subr.bf16.mxu0 %v14577_v14  ;;  %8475 = vmatprep.subr.bf16.mxu1 %v14580_v44  ;;  %v14605_v14 = vld [vmem:[%s18470_s1 + $0x1040] ss:$16 sps:$4 sm:$0xff]   ;;  %v14608_v44 = vld [vmem:[%s18470_s1 + $0x1048] ss:$16 sps:$4 sm:$0xff]  }
 0x3bf   : > { %8250 = vmatpush1.bf16.msra.mxu0 %v14575_v62  ;;  %8476 = vmatpush1.bf16.msra.mxu1 %v14578_v37  ;;  %v14613_v62 = vld [vmem:[%s18470_s1 + $0x1064] ss:$16 sps:$4 sm:$0xff]   ;;  %v14616_v37 = vld [vmem:[%s18470_s1 + $0x106c] ss:$16 sps:$4 sm:$0xff]  }
 0x3c0   : > { %9119 = vmatprep.subr.bf16.mxu0 %v14583_v19  ;;  %9345 = vmatprep.subr.bf16.mxu1 %v14586_v48  ;;  %v14611_v19 = vld [vmem:[%s18470_s1 + $0x1060] ss:$16 sps:$4 sm:$0xff]   ;;  %v14614_v48 = vld [vmem:[%s18470_s1 + $0x1068] ss:$16 sps:$4 sm:$0xff]  }
 0x3c2   : > { %8177 = vmatmul.mubr.bf16.gmra.mrb[4].mxu0 %v15563_v59  ;;  %8403 = vmatmul.mubr.bf16.gmra.mrb[4].mxu1 %v15563_v59  ;;  %v7696_v59 = vpack.c.bf16 %v17732_v39, %v17732_v39 }
 0x3c3   : > { %8186 = vmatprep.mubr.bf16.mxu0 %v15600_v54  ;;  %8412 = vmatprep.mubr.bf16.mxu1 %v15600_v54  ;;  %v14581_v54 = vld [vmem:[%s18470_s1 + $0xfc0] ss:$16 sps:$4 sm:$0xff]  }
 0x3ca   : > { %8187 = vmatmul.mubr.bf16.gmra.mrb[8].mxu0 %v15618_v11  ;;  %8413 = vmatmul.mubr.bf16.gmra.mrb[8].mxu1 %v15618_v11  ;;  %v14584_v11 = vld [vmem:[%s18470_s1 + $0xfc8] ss:$16 sps:$4 sm:$0xff]  }
 0x3cb   : > { %8196 = vmatprep.mubr.bf16.mxu0 %v15656_v32  ;;  %8422 = vmatprep.mubr.bf16.mxu1 %v15656_v32  ;;  %v14589_v32 = vld [vmem:[%s18470_s1 + $0xfe4] ss:$16 sps:$4 sm:$0xff]  }
 0x3d2   : > { %8197 = vmatmul.mubr.bf16.gmra.mrb[12].mxu0 %v15676_v63  ;;  %8423 = vmatmul.mubr.bf16.gmra.mrb[12].mxu1 %v15676_v63  ;;  %v14592_v63 = vld [vmem:[%s18470_s1 + $0xfec] ss:$16 sps:$4 sm:$0xff]  }
 0x3d3   : > { %8206 = vmatprep.mubr.bf16.mxu0 %v15714_v4  ;;  %8432 = vmatprep.mubr.bf16.mxu1 %v15714_v4  ;;  %v14587_v4 = vld [vmem:[%s18470_s1 + $0xfe0] ss:$16 sps:$4 sm:$0xff]  }
 0x3da   : > { %8207 = vmatmul.mubr.bf16.gmra.mrb[16].mxu0 %v15736_v45  ;;  %8433 = vmatmul.mubr.bf16.gmra.mrb[16].mxu1 %v15736_v45  ;;  %v14590_v45 = vld [vmem:[%s18470_s1 + $0xfe8] ss:$16 sps:$4 sm:$0xff]  }
 0x3db   : > { %8216 = vmatprep.mubr.bf16.mxu0 %v15776_v7  ;;  %8442 = vmatprep.mubr.bf16.mxu1 %v15776_v7  ;;  %v14595_v7 = vld [vmem:[%s18470_s1 + $0x1004] ss:$16 sps:$4 sm:$0xff]  }
 0x3e2   : > { %8217 = vmatmul.mubr.bf16.gmra.mrb[20].mxu0 %v15790_v33  ;;  %8443 = vmatmul.mubr.bf16.gmra.mrb[20].mxu1 %v15790_v33  ;;  %v14593_v33 = vld [vmem:[%s18470_s1 + $0x1000] ss:$16 sps:$4 sm:$0xff]  }
 0x3e3   : > { %8226 = vmatprep.mubr.bf16.mxu0 %v16834_v41  ;;  %8452 = vmatprep.mubr.bf16.mxu1 %v16834_v41  ;;  %v14596_v41 = vld [vmem:[%s18470_s1 + $0x1008] ss:$16 sps:$4 sm:$0xff]  }
 0x3ea   : > { %8227 = vmatmul.mubr.bf16.gmra.mrb[24].mxu0 %v16842_v25  ;;  %8453 = vmatmul.mubr.bf16.gmra.mrb[24].mxu1 %v16842_v25  ;;  %v14601_v25 = vld [vmem:[%s18470_s1 + $0x1024] ss:$16 sps:$4 sm:$0xff]  }
 0x3eb   : > { %8236 = vmatprep.mubr.bf16.mxu0 %v7696_v59  ;;  %8462 = vmatprep.mubr.bf16.mxu1 %v7696_v59 }
 0x3f2   : > { %8237 = vmatmul.mubr.bf16.gmra.mrb[28].mxu0 %v7696_v59  ;;  %8463 = vmatmul.mubr.bf16.gmra.mrb[28].mxu1 %v7696_v59  ;;  %v14619_v59 = vld [vmem:[%s18470_s1 + $0x1084] ss:$16 sps:$4 sm:$0xff]  }
 0x3f3   : > { %8279 = vmatprep.mubr.bf16.mxu0 %v18603_v18  ;;  %8505 = vmatprep.mubr.bf16.mxu1 %v18603_v18 }
 0x3fa   : > { %12314 = vmatmul.mubr.msk.bf16.vlgmr.msra.gmra.mrb[0].mxu0 %vm277_vm2, %v15505_v53  ;;  %12322 = vmatmul.mubr.msk.bf16.vlgmr.msra.gmra.mrb[0].mxu1 %vm277_vm2, %v15505_v53  ;;  %v14598_v53 = vld [vmem:[%s18470_s1 + $0x100c] ss:$16 sps:$4 sm:$0xff]  }
 0x3fb   : > { %9120 = vmatpush1.bf16.msra.mxu0 %v14581_v54  ;;  %9346 = vmatpush1.bf16.msra.mxu1 %v14584_v11  ;;  %v14617_v54 = vld [vmem:[%s18470_s1 + $0x1080] ss:$16 sps:$4 sm:$0xff]   ;;  %v14620_v11 = vld [vmem:[%s18470_s1 + $0x1088] ss:$16 sps:$4 sm:$0xff]  }
 0x3fc   : > { %9121 = vmatprep.subr.bf16.mxu0 %v14589_v32  ;;  %9347 = vmatprep.subr.bf16.mxu1 %v14592_v63  ;;  %v14625_v32 = vld [vmem:[%s18470_s1 + $0x10a4] ss:$16 sps:$4 sm:$0xff]   ;;  %v14628_v63 = vld [vmem:[%s18470_s1 + $0x10ac] ss:$16 sps:$4 sm:$0xff]  }
 0x3fd   : > { %8289 = vmatprep.mubr.bf16.mxu0 %v18603_v18  ;;  %8515 = vmatprep.mubr.bf16.mxu1 %v18603_v18 }
 0x3ff   : > { %9122 = vmatpush1.bf16.msra.mxu0 %v14587_v4  ;;  %9348 = vmatpush1.bf16.msra.mxu1 %v14590_v45  ;;  %v14623_v4 = vld [vmem:[%s18470_s1 + $0x10a0] ss:$16 sps:$4 sm:$0xff]   ;;  %v14626_v45 = vld [vmem:[%s18470_s1 + $0x10a8] ss:$16 sps:$4 sm:$0xff]  }
 0x400   : > { %9123 = vmatprep.subr.bf16.mxu0 %v14595_v7  ;;  %9349 = vmatprep.subr.bf16.mxu1 %v14598_v53  ;;  %v14631_v7 = vld [vmem:[%s18470_s1 + $0x10c4] ss:$16 sps:$4 sm:$0xff]   ;;  %v14629_v53 = vld [vmem:[%s18470_s1 + $0x10c0] ss:$16 sps:$4 sm:$0xff]  }
 0x402   : > { %12315 = vmatmul.mubr.msk.bf16.gmra.mrb[4].mxu0 %vm277_vm2, %v15566_v60  ;;  %12323 = vmatmul.mubr.msk.bf16.gmra.mrb[4].mxu1 %vm277_vm2, %v15566_v60  ;;  %v14610_v60 = vld [vmem:[%s18470_s1 + $0x104c] ss:$16 sps:$4 sm:$0xff]  }
 0x403   : > { %9124 = vmatpush1.bf16.msra.mxu0 %v14593_v33  ;;  %9350 = vmatpush1.bf16.msra.mxu1 %v14596_v41  ;;  %v14632_v33 = vld [vmem:[%s18470_s1 + $0x10c8] ss:$16 sps:$4 sm:$0xff]   ;;  %v14637_v41 = vld [vmem:[%s18470_s1 + $0x10e4] ss:$16 sps:$4 sm:$0xff]  }
 0x404   : > { %9125 = vmatprep.subr.bf16.mxu0 %v14601_v25  ;;  %9351 = vmatprep.subr.bf16.mxu1 %v14604_v40  ;;  %v14640_v25 = vld [vmem:[%s18470_s1 + $0x10ec] ss:$16 sps:$4 sm:$0xff]   ;;  %v14635_v40 = vld [vmem:[%s18470_s1 + $0x10e0] ss:$16 sps:$4 sm:$0xff]  }
 0x405   : > { %8299 = vmatprep.mubr.bf16.mxu0 %v18603_v18  ;;  %8525 = vmatprep.mubr.bf16.mxu1 %v18603_v18 }
 0x407   : > { %9126 = vmatpush1.bf16.msra.mxu0 %v14599_v8  ;;  %9352 = vmatpush1.bf16.msra.mxu1 %v14602_v28  ;;  %v14638_v8 = vld [vmem:[%s18470_s1 + $0x10e8] ss:$16 sps:$4 sm:$0xff]   ;;  %v14643_v28 = vld [vmem:[%s18470_s1 + $0x1104] ss:$16 sps:$4 sm:$0xff]  }
 0x408   : > { %9127 = vmatprep.subr.bf16.mxu0 %v14607_v36  ;;  %9353 = vmatprep.subr.bf16.mxu1 %v14610_v60  ;;  %v14641_v36 = vld [vmem:[%s18470_s1 + $0x1100] ss:$16 sps:$4 sm:$0xff]   ;;  %v14644_v60 = vld [vmem:[%s18470_s1 + $0x1108] ss:$16 sps:$4 sm:$0xff]  }
 0x40a   : > { %12316 = vmatmul.mubr.msk.bf16.gmra.mrb[8].mxu0 %vm277_vm2, %v18586_v26  ;;  %12324 = vmatmul.mubr.msk.bf16.gmra.mrb[8].mxu1 %vm277_vm2, %v18586_v26  ;;  %v14622_v26 = vld [vmem:[%s18470_s1 + $0x108c] ss:$16 sps:$4 sm:$0xff]  }
 0x40b   : > { %9128 = vmatpush1.bf16.msra.mxu0 %v14605_v14  ;;  %9354 = vmatpush1.bf16.msra.mxu1 %v14608_v44  ;;  %v14649_v14 = vld [vmem:[%s18470_s1 + $0x1124] ss:$16 sps:$4 sm:$0xff]   ;;  %v14652_v44 = vld [vmem:[%s18470_s1 + $0x112c] ss:$16 sps:$4 sm:$0xff]  }
 0x40c   : > { %9129 = vmatprep.subr.bf16.mxu0 %v14613_v62  ;;  %9355 = vmatprep.subr.bf16.mxu1 %v14616_v37  ;;  %v14647_v62 = vld [vmem:[%s18470_s1 + $0x1120] ss:$16 sps:$4 sm:$0xff]   ;;  %v14650_v37 = vld [vmem:[%s18470_s1 + $0x1128] ss:$16 sps:$4 sm:$0xff]  }
 0x40d   : > { %8309 = vmatprep.mubr.bf16.mxu0 %v18603_v18  ;;  %8535 = vmatprep.mubr.bf16.mxu1 %v18603_v18 }
 0x40f   : > { %9130 = vmatpush1.bf16.msra.mxu0 %v14611_v19  ;;  %9356 = vmatpush1.bf16.msra.mxu1 %v14614_v48  ;;  %v14655_v19 = vld [vmem:[%s18470_s1 + $0x1144] ss:$16 sps:$4 sm:$0xff]   ;;  %v14653_v48 = vld [vmem:[%s18470_s1 + $0x1140] ss:$16 sps:$4 sm:$0xff]  }
 0x410   : > { %9131 = vmatprep.subr.bf16.mxu0 %v14619_v59  ;;  %9357 = vmatprep.subr.bf16.mxu1 %v14622_v26  ;;  %v14656_v59 = vld [vmem:[%s18470_s1 + $0x1148] ss:$16 sps:$4 sm:$0xff]   ;;  %v14661_v26 = vld [vmem:[%s18470_s1 + $0x1164] ss:$16 sps:$4 sm:$0xff]  }
 0x412   : > { %12317 = vmatmul.mubr.msk.bf16.gmra.mrb[12].mxu0 %vm277_vm2, %v18587_v3  ;;  %12325 = vmatmul.mubr.msk.bf16.gmra.mrb[12].mxu1 %vm277_vm2, %v18587_v3  ;;  %v14634_v3 = vld [vmem:[%s18470_s1 + $0x10cc] ss:$16 sps:$4 sm:$0xff]  }
 0x413   : > { %9132 = vmatpush1.bf16.msra.mxu0 %v14617_v54  ;;  %9358 = vmatpush1.bf16.msra.mxu1 %v14620_v11  ;;  %v14664_v54 = vld [vmem:[%s18470_s1 + $0x116c] ss:$16 sps:$4 sm:$0xff]   ;;  %v14659_v11 = vld [vmem:[%s18470_s1 + $0x1160] ss:$16 sps:$4 sm:$0xff]  }
 0x414   : > { %9133 = vmatprep.subr.bf16.mxu0 %v14625_v32  ;;  %9359 = vmatprep.subr.bf16.mxu1 %v14628_v63  ;;  %v14662_v32 = vld [vmem:[%s18470_s1 + $0x1168] ss:$16 sps:$4 sm:$0xff]  }
 0x415   : > { %8319 = vmatprep.mubr.bf16.mxu0 %v18603_v18  ;;  %8545 = vmatprep.mubr.bf16.mxu1 %v18603_v18  ;;  %v17942_v63 = vld [vmem:[#allocation2 + $0x298] sm:$0xff] }
 0x417   : > { %9134 = vmatpush1.bf16.msra.mxu0 %v14623_v4  ;;  %9360 = vmatpush1.bf16.msra.mxu1 %v14626_v45  ;;  %v17944_v4 = vld [vmem:[#allocation2 + $0x2b0] sm:$0xff]  ;;  %v14670_v45 = vld [vmem:[%s18470_s1 + $0x118c] ss:$16 sps:$4 sm:$0xff]  }
 0x418   : > { %9135 = vmatprep.subr.bf16.mxu0 %v14631_v7  ;;  %9361 = vmatprep.subr.bf16.mxu1 %v14634_v3  ;;  %v8665_v7 = vrot.slane %v17942_v63, 1  ;;  %v8666_v3 = vrot.slane %v17944_v4, 1 }
 0x41a   : > { %12318 = vmatmul.mubr.msk.bf16.gmra.mrb[16].mxu0 %vm277_vm2, %v18588_v17  ;;  %12326 = vmatmul.mubr.msk.bf16.gmra.mrb[16].mxu1 %vm277_vm2, %v18588_v17  ;;  %v14646_v17 = vld [vmem:[%s18470_s1 + $0x110c] ss:$16 sps:$4 sm:$0xff]  }
 0x41b   : > { %9136 = vmatpush1.bf16.msra.mxu0 %v14629_v53  ;;  %9362 = vmatpush1.bf16.msra.mxu1 %v14632_v33  ;;  %v7697_v53 = vpack.c.bf16 %v17944_v4, %v17942_v63  ;;  %v14665_v33 = vld [vmem:[%s18470_s1 + $0x1180] ss:$16 sps:$4 sm:$0xff]  }
 0x41c   : > { %9137 = vmatprep.subr.bf16.mxu0 %v14637_v41  ;;  %9363 = vmatprep.subr.bf16.mxu1 %v14640_v25  ;;  %v14668_v41 = vld [vmem:[%s18470_s1 + $0x1188] ss:$16 sps:$4 sm:$0xff]  }
 0x41d   : > { %8329 = vmatprep.mubr.bf16.mxu0 %v18603_v18  ;;  %8555 = vmatprep.mubr.bf16.mxu1 %v18603_v18  ;;  %v17964_v25 = vld [vmem:[#allocation2 + $0x2c8] sm:$0x3] }
 0x41f   : > { %9138 = vmatpush1.bf16.msra.mxu0 %v14635_v40  ;;  %9364 = vmatpush1.bf16.msra.mxu1 %v14638_v8  ;;  %v8667_v40 = vsel %vm1675_vm3, %v8665_v7, %v8666_v3  ;;  %v14673_v8 = vld [vmem:[%s18470_s1 + $0x11a4] ss:$16 sps:$4 sm:$0xff]   ;;  %v14701_v7 = vld [vmem:[%s18470_s1 + $0x1240] ss:$16 sps:$4 sm:$0xff]  }
 0x420   : > { %9139 = vmatprep.subr.bf16.mxu0 %v14643_v28  ;;  %9365 = vmatprep.subr.bf16.mxu1 %v14646_v17  ;;  %v14676_v28 = vld [vmem:[%s18470_s1 + $0x11ac] ss:$16 sps:$4 sm:$0xff]   ;;  %v8672_v17 = vrot.slane %v17964_v25, 1 }
 0x422   : > { %12319 = vmatmul.mubr.msk.bf16.gmra.mrb[20].mxu0 %vm277_vm2, %v18589_v61  ;;  %12327 = vmatmul.mubr.msk.bf16.gmra.mrb[20].mxu1 %vm277_vm2, %v18589_v61  ;;  %v14658_v61 = vld [vmem:[%s18470_s1 + $0x114c] ss:$16 sps:$4 sm:$0xff]  }
 0x423   : > { %9140 = vmatpush1.bf16.msra.mxu0 %v14641_v36  ;;  %9366 = vmatpush1.bf16.msra.mxu1 %v14644_v60  ;;  %v14671_v36 = vld [vmem:[%s18470_s1 + $0x11a0] ss:$16 sps:$4 sm:$0xff]   ;;  %v14674_v60 = vld [vmem:[%s18470_s1 + $0x11a8] ss:$16 sps:$4 sm:$0xff]  }
 0x424   : > { %9141 = vmatprep.subr.bf16.mxu0 %v14649_v14  ;;  %9367 = vmatprep.subr.bf16.mxu1 %v14652_v44  ;;  %v8673_v14 = vsel %vm1675_vm3, %v8666_v3, %v8672_v17  ;;  %v14679_v44 = vld [vmem:[%s18470_s1 + $0x11c4] ss:$16 sps:$4 sm:$0xff]   ;;  %v14704_v3 = vld [vmem:[%s18470_s1 + $0x1248] ss:$16 sps:$4 sm:$0xff]  }
 0x425   : > { %8339 = vmatprep.mubr.bf16.mxu0 %v18603_v18  ;;  %8565 = vmatprep.mubr.bf16.mxu1 %v18603_v18  ;;  %v14716_v17 = vld [vmem:[%s18470_s1 + $0x1288] ss:$16 sps:$4 sm:$0xff]  }
 0x427   : > { %9142 = vmatpush1.bf16.msra.mxu0 %v14647_v62  ;;  %9368 = vmatpush1.bf16.msra.mxu1 %v14650_v37  ;;  %v14682_v62 = vld [vmem:[%s18470_s1 + $0x11cc] ss:$16 sps:$4 sm:$0xff]   ;;  %v17991_v37 = vpack.c.bf16 %v8673_v14, %v8667_v40  ;;  %v14710_v40 = vld [vmem:[%s18470_s1 + $0x1268] ss:$16 sps:$4 sm:$0xff]   ;;  %v14719_v14 = vld [vmem:[%s18470_s1 + $0x12a0] ss:$16 sps:$4 sm:$0xff]  }
 0x428   : > { %9143 = vmatprep.subr.bf16.mxu0 %v14655_v19  ;;  %9369 = vmatprep.subr.bf16.mxu1 %v14658_v61  ;;  %v14677_v19 = vld [vmem:[%s18470_s1 + $0x11c0] ss:$16 sps:$4 sm:$0xff]   ;;  %v14685_v61 = vld [vmem:[%s18470_s1 + $0x11e4] ss:$16 sps:$4 sm:$0xff]  }
 0x42a   : > { %12320 = vmatmul.mubr.msk.bf16.gmra.mrb[24].mxu0 %vm277_vm2, %v17066_v5  ;;  %12328 = vmatmul.mubr.msk.bf16.gmra.mrb[24].mxu1 %vm277_vm2, %v17066_v5  ;;  %v14667_v5 = vld [vmem:[%s18470_s1 + $0x1184] ss:$16 sps:$4 sm:$0xff]  }
 0x42b   : > { %9144 = vmatpush1.bf16.msra.mxu0 %v14653_v48  ;;  %9370 = vmatpush1.bf16.msra.mxu1 %v14656_v59  ;;  %v14688_v48 = vld [vmem:[%s18470_s1 + $0x11ec] ss:$16 sps:$4 sm:$0xff]   ;;  %v14683_v59 = vld [vmem:[%s18470_s1 + $0x11e0] ss:$16 sps:$4 sm:$0xff]  }
 0x42c   : > { %9145 = vmatprep.subr.bf16.mxu0 %v14661_v26  ;;  %9371 = vmatprep.subr.bf16.mxu1 %v14664_v54  ;;  %v14686_v26 = vld [vmem:[%s18470_s1 + $0x11e8] ss:$16 sps:$4 sm:$0xff]   ;;  %v14691_v54 = vld [vmem:[%s18470_s1 + $0x1204] ss:$16 sps:$4 sm:$0xff]  }
 0x42d   : > { %8349 = vmatprep.mubr.bf16.mxu0 %v18603_v18  ;;  %8575 = vmatprep.mubr.bf16.mxu1 %v18603_v18 }
 0x42f   : > { %9146 = vmatpush1.bf16.msra.mxu0 %v14659_v11  ;;  %9372 = vmatpush1.bf16.msra.mxu1 %v14662_v32  ;;  %v14700_v11 = vld [vmem:[%s18470_s1 + $0x122c] ss:$16 sps:$4 sm:$0xff]   ;;  %v14695_v32 = vld [vmem:[%s18470_s1 + $0x1220] ss:$16 sps:$4 sm:$0xff]  }
 0x430   : > { %9147 = vmatprep.subr.bf16.mxu0 %v14667_v5  ;;  %9373 = vmatprep.subr.bf16.mxu1 %v14670_v45  ;;  %v14698_v5 = vld [vmem:[%s18470_s1 + $0x1228] ss:$16 sps:$4 sm:$0xff]   ;;  %v14703_v45 = vld [vmem:[%s18470_s1 + $0x1244] ss:$16 sps:$4 sm:$0xff]  }
 0x432   : > { %12321 = vmatmul.mubr.msk.bf16.gmra.mrb[28].mxu0 %vm277_vm2, %v7697_v53  ;;  %12329 = vmatmul.mubr.msk.bf16.gmra.mrb[28].mxu1 %vm277_vm2, %v7697_v53  ;;  %v14709_v53 = vld [vmem:[%s18470_s1 + $0x1264] ss:$16 sps:$4 sm:$0xff]  }
 0x433   : > { %9148 = vmatpush1.bf16.msra.mxu0 %v14665_v33  ;;  %9374 = vmatpush1.bf16.msra.mxu1 %v14668_v41  ;;  %v14712_v33 = vld [vmem:[%s18470_s1 + $0x126c] ss:$16 sps:$4 sm:$0xff]   ;;  %v14707_v41 = vld [vmem:[%s18470_s1 + $0x1260] ss:$16 sps:$4 sm:$0xff]  }
 0x434   : > { %9151 = vmatprep.mubr.bf16.mxu0 %v18613_v1  ;;  %9377 = vmatprep.mubr.bf16.mxu1 %v18613_v1  ;;  %v14680_v1 = vld [vmem:[%s18470_s1 + $0x11c8] ss:$16 sps:$4 sm:$0xff]  }
 0x435   : > { %9149 = vmatprep.subr.bf16.mxu0 %v14673_v8  ;;  %9375 = vmatprep.subr.bf16.mxu1 %v14676_v28  ;;  %v14715_v8 = vld [vmem:[%s18470_s1 + $0x1284] ss:$16 sps:$4 sm:$0xff]   ;;  %v14713_v28 = vld [vmem:[%s18470_s1 + $0x1280] ss:$16 sps:$4 sm:$0xff]  }
 0x437   : > { %9150 = vmatpush1.bf16.msra.mxu0 %v14671_v36  ;;  %9376 = vmatpush1.bf16.msra.mxu1 %v14674_v60  ;;  %v14721_v36 = vld [vmem:[%s18470_s1 + $0x12a4] ss:$16 sps:$4 sm:$0xff]   ;;  %v14724_v60 = vld [vmem:[%s18470_s1 + $0x12ac] ss:$16 sps:$4 sm:$0xff]  }
 0x438   : > { %9232 = vmatprep.subr.bf16.mxu0 %v14679_v44  ;;  %9458 = vmatprep.subr.bf16.mxu1 %v14682_v62  ;;  %v14722_v44 = vld [vmem:[%s18470_s1 + $0x12a8] ss:$16 sps:$4 sm:$0xff]   ;;  %v14727_v62 = vld [vmem:[%s18470_s1 + $0x12c4] ss:$16 sps:$4 sm:$0xff]  }
 0x43a   : > { %9152 = vmatmul.mubr.bf16.vlgmr.msra.gmra.mrb[0].mxu0 %v18614_v55  ;;  %9378 = vmatmul.mubr.bf16.vlgmr.msra.gmra.mrb[0].mxu1 %v18614_v55  ;;  %v14694_v55 = vld [vmem:[%s18470_s1 + $0x120c] ss:$16 sps:$4 sm:$0xff]  }
 0x43b   : > { %9233 = vmatpush1.bf16.msra.mxu0 %v14677_v19  ;;  %9459 = vmatpush1.bf16.msra.mxu1 %v14680_v1  ;;  %v14725_v19 = vld [vmem:[%s18470_s1 + $0x12c0] ss:$16 sps:$4 sm:$0xff]   ;;  %v14728_v1 = vld [vmem:[%s18470_s1 + $0x12c8] ss:$16 sps:$4 sm:$0xff]  }
 0x43c   : > { %9161 = vmatprep.mubr.bf16.mxu0 %v18615_v16  ;;  %9387 = vmatprep.mubr.bf16.mxu1 %v18615_v16  ;;  %v18037_v16 = vld [vmem:[#allocation2 + $0x2c0] sm:$0x3] }
 0x43d   : > { %9234 = vmatprep.subr.bf16.mxu0 %v14685_v61  ;;  %9460 = vmatprep.subr.bf16.mxu1 %v14688_v48  ;;  %v14733_v61 = vld [vmem:[%s18470_s1 + $0x12e4] ss:$16 sps:$4 sm:$0xff]   ;;  %v14736_v48 = vld [vmem:[%s18470_s1 + $0x12ec] ss:$16 sps:$4 sm:$0xff]  }
 0x43f   : > { %9235 = vmatpush1.bf16.msra.mxu0 %v14683_v59  ;;  %9461 = vmatpush1.bf16.msra.mxu1 %v14686_v26  ;;  %v14731_v59 = vld [vmem:[%s18470_s1 + $0x12e0] ss:$16 sps:$4 sm:$0xff]   ;;  %v14734_v26 = vld [vmem:[%s18470_s1 + $0x12e8] ss:$16 sps:$4 sm:$0xff]  }
 0x440   : > { %10095 = vmatprep.subr.bf16.mxu0 %v14691_v54  ;;  %10321 = vmatprep.subr.bf16.mxu1 %v14694_v55  ;;  %v14739_v54 = vld [vmem:[%s18470_s1 + $0x1304] ss:$16 sps:$4 sm:$0xff]   ;;  %v14737_v55 = vld [vmem:[%s18470_s1 + $0x1300] ss:$16 sps:$4 sm:$0xff]  }
 0x442   : > { %9162 = vmatmul.mubr.bf16.gmra.mrb[4].mxu0 %v18616_v47  ;;  %9388 = vmatmul.mubr.bf16.gmra.mrb[4].mxu1 %v18616_v47  ;;  %v8662_v47 = vrot.slane %v17732_v39, 1 }
 0x443   : > { %9171 = vmatprep.mubr.bf16.mxu0 %v18617_v56  ;;  %9397 = vmatprep.mubr.bf16.mxu1 %v18617_v56  ;;  %v8670_v56 = vrot.slane %v18037_v16, 1 }
 0x44a   : > { %9172 = vmatmul.mubr.bf16.gmra.mrb[8].mxu0 %v18618_v31  ;;  %9398 = vmatmul.mubr.bf16.gmra.mrb[8].mxu1 %v18618_v31  ;;  %v8671_v31 = vsel %vm1675_vm3, %v8662_v47, %v8670_v56  ;;  %v14745_v56 = vld [vmem:[%s18470_s1 + $0x1324] ss:$16 sps:$4 sm:$0xff]  }
 0x44b   : > { %9181 = vmatprep.mubr.bf16.mxu0 %v18619_v10  ;;  %9407 = vmatprep.mubr.bf16.mxu1 %v18619_v10  ;;  %v18046_v10 = vld [vmem:[#allocation2 + $0x2b8] sm:$0x3] }
 0x452   : > { %9182 = vmatmul.mubr.bf16.gmra.mrb[12].mxu0 %v18620_v51  ;;  %9408 = vmatmul.mubr.bf16.gmra.mrb[12].mxu1 %v18620_v51  ;;  %v8681_v51 = vpack.c.bf16 %v8671_v31, %v8662_v47  ;;  %v14748_v31 = vld [vmem:[%s18470_s1 + $0x132c] ss:$16 sps:$4 sm:$0xff]  }
 0x453   : > { %9191 = vmatprep.mubr.bf16.mxu0 %v18621_v52  ;;  %9417 = vmatprep.mubr.bf16.mxu1 %v18621_v52 }
 0x45a   : > { %9192 = vmatmul.mubr.bf16.gmra.mrb[16].mxu0 %v18622_v9  ;;  %9418 = vmatmul.mubr.bf16.gmra.mrb[16].mxu1 %v18622_v9  ;;  %v14692_v9 = vld [vmem:[%s18470_s1 + $0x1208] ss:$16 sps:$4 sm:$0xff]  }
 0x45b   : > { %9201 = vmatprep.mubr.bf16.mxu0 %v15815_v2  ;;  %9427 = vmatprep.mubr.bf16.mxu1 %v15815_v2  ;;  %v8668_v2 = vrot.slane %v18046_v10, 1 }
 0x45d   : > { %v8669_v52 = vsel %vm1675_vm3, %v8662_v47, %v8668_v2  ;;  %v14746_v2 = vld [vmem:[%s18470_s1 + $0x1328] ss:$16 sps:$4 sm:$0xff]  }
 0x462   : > { %9202 = vmatmul.mubr.bf16.gmra.mrb[20].mxu0 %v15823_v0  ;;  %9428 = vmatmul.mubr.bf16.gmra.mrb[20].mxu1 %v15823_v0  ;;  %v8680_v0 = vpack.c.bf16 %v8669_v52, %v8662_v47  ;;  %v14740_v47 = vld [vmem:[%s18470_s1 + $0x1308] ss:$16 sps:$4 sm:$0xff]   ;;  %v14751_v52 = vld [vmem:[%s18470_s1 + $0x1344] ss:$16 sps:$4 sm:$0xff]  }
 0x463   : > { %9211 = vmatprep.mubr.bf16.mxu0 %v16530_v12  ;;  %9437 = vmatprep.mubr.bf16.mxu1 %v16530_v12  ;;  %v14689_v12 = vld [vmem:[%s18470_s1 + $0x1200] ss:$16 sps:$4 sm:$0xff]  }
 0x46a   : > { %9212 = vmatmul.mubr.bf16.gmra.mrb[24].mxu0 %v16558_v13  ;;  %9438 = vmatmul.mubr.bf16.gmra.mrb[24].mxu1 %v16558_v13  ;;  %v14697_v13 = vld [vmem:[%s18470_s1 + $0x1224] ss:$16 sps:$4 sm:$0xff]  }
 0x46b   : > { %9221 = vmatprep.mubr.bf16.mxu0 %v8681_v51  ;;  %9447 = vmatprep.mubr.bf16.mxu1 %v8681_v51  ;;  %v14743_v51 = vld [vmem:[%s18470_s1 + $0x1320] ss:$16 sps:$4 sm:$0xff]  }
 0x472   : > { %9222 = vmatmul.mubr.bf16.gmra.mrb[28].mxu0 %v8680_v0  ;;  %9448 = vmatmul.mubr.bf16.gmra.mrb[28].mxu1 %v8680_v0  ;;  %v14749_v0 = vld [vmem:[%s18470_s1 + $0x1340] ss:$16 sps:$4 sm:$0xff]  }
 0x473   : > { %9264 = vmatprep.mubr.bf16.mxu0 %v18603_v18  ;;  %9490 = vmatprep.mubr.bf16.mxu1 %v18603_v18 }
 0x47a   : > { %12474 = vmatmul.mubr.msk.bf16.vlgmr.msra.gmra.mrb[0].mxu0 %vm277_vm2, %v15904_v49  ;;  %12482 = vmatmul.mubr.msk.bf16.vlgmr.msra.gmra.mrb[0].mxu1 %vm277_vm2, %v15904_v49  ;;  %v14706_v49 = vld [vmem:[%s18470_s1 + $0x124c] ss:$16 sps:$4 sm:$0xff]  }
 0x47b   : > { %10096 = vmatpush1.bf16.msra.mxu0 %v14689_v12  ;;  %10322 = vmatpush1.bf16.msra.mxu1 %v14692_v9  ;;  %v14752_v12 = vld [vmem:[%s18470_s1 + $0x1348] ss:$16 sps:$4 sm:$0xff]   ;;  %v14757_v9 = vld [vmem:[%s18470_s1 + $0x1364] ss:$16 sps:$4 sm:$0xff]  }
 0x47c   : > { %10097 = vmatprep.subr.bf16.mxu0 %v14697_v13  ;;  %10323 = vmatprep.subr.bf16.mxu1 %v14700_v11  ;;  %v14760_v13 = vld [vmem:[%s18470_s1 + $0x136c] ss:$16 sps:$4 sm:$0xff]   ;;  %v14755_v11 = vld [vmem:[%s18470_s1 + $0x1360] ss:$16 sps:$4 sm:$0xff]  }
 0x47d   : > { %9274 = vmatprep.mubr.bf16.mxu0 %v18603_v18  ;;  %9500 = vmatprep.mubr.bf16.mxu1 %v18603_v18 }
 0x47f   : > { %10098 = vmatpush1.bf16.msra.mxu0 %v14695_v32  ;;  %10324 = vmatpush1.bf16.msra.mxu1 %v14698_v5  ;;  %v14758_v32 = vld [vmem:[%s18470_s1 + $0x1368] ss:$16 sps:$4 sm:$0xff]   ;;  %v14763_v5 = vld [vmem:[%s18470_s1 + $0x1384] ss:$16 sps:$4 sm:$0xff]  }
 0x480   : > { %10099 = vmatprep.subr.bf16.mxu0 %v14703_v45  ;;  %10325 = vmatprep.subr.bf16.mxu1 %v14706_v49  ;;  %v9641_v45 = vrot.slane %v17942_v63, 2  ;;  %v9642_v49 = vrot.slane %v17944_v4, 2  ;;  %v14772_v63 = vld [vmem:[%s18470_s1 + $0x13ac] ss:$16 sps:$4 sm:$0xff]   ;;  %v14767_v4 = vld [vmem:[%s18470_s1 + $0x13a0] ss:$16 sps:$4 sm:$0xff]  }
 0x482   : > { %12475 = vmatmul.mubr.msk.bf16.gmra.mrb[4].mxu0 %vm277_vm2, %v15939_v50  ;;  %12483 = vmatmul.mubr.msk.bf16.gmra.mrb[4].mxu1 %vm277_vm2, %v15939_v50  ;;  %v14718_v50 = vld [vmem:[%s18470_s1 + $0x128c] ss:$16 sps:$4 sm:$0xff]  }
 0x483   : > { %10100 = vmatpush1.bf16.msra.mxu0 %v14701_v7  ;;  %10326 = vmatpush1.bf16.msra.mxu1 %v14704_v3  ;;  %v14761_v7 = vld [vmem:[%s18470_s1 + $0x1380] ss:$16 sps:$4 sm:$0xff]   ;;  %v14764_v3 = vld [vmem:[%s18470_s1 + $0x1388] ss:$16 sps:$4 sm:$0xff]  }
 0x484   : > { %10101 = vmatprep.subr.bf16.mxu0 %v14709_v53  ;;  %10327 = vmatprep.subr.bf16.mxu1 %v14712_v33  ;;  %v14769_v53 = vld [vmem:[%s18470_s1 + $0x13a4] ss:$16 sps:$4 sm:$0xff]   ;;  %v14770_v33 = vld [vmem:[%s18470_s1 + $0x13a8] ss:$16 sps:$4 sm:$0xff]  }
 0x485   : > { %9284 = vmatprep.mubr.bf16.mxu0 %v18603_v18  ;;  %9510 = vmatprep.mubr.bf16.mxu1 %v18603_v18 }
 0x487   : > { %10102 = vmatpush1.bf16.msra.mxu0 %v14707_v41  ;;  %10328 = vmatpush1.bf16.msra.mxu1 %v14710_v40  ;;  %v9643_v41 = vsel %vm3613_vm10, %v9641_v45, %v9642_v49  ;;  %v9648_v40 = vrot.slane %v17964_v25, 2  ;;  %v14773_v25 = vld [vmem:[%s18470_s1 + $0x13c0] ss:$16 sps:$4 sm:$0xff]  }
 0x488   : > { %10103 = vmatprep.subr.bf16.mxu0 %v14715_v8  ;;  %10329 = vmatprep.subr.bf16.mxu1 %v14718_v50  ;;  %v14778_v8 = vld [vmem:[%s18470_s1 + $0x13cc] ss:$16 sps:$4 sm:$0xff]  }
 0x489   : > { %v9649_v50 = vsel %vm3613_vm10, %v9642_v49, %v9648_v40 }
 0x48a   : > { %12476 = vmatmul.mubr.msk.bf16.gmra.mrb[8].mxu0 %vm277_vm2, %v15975_v29  ;;  %12484 = vmatmul.mubr.msk.bf16.gmra.mrb[8].mxu1 %vm277_vm2, %v15975_v29  ;;  %v14730_v29 = vld [vmem:[%s18470_s1 + $0x12cc] ss:$16 sps:$4 sm:$0xff]  }
 0x48b   : > { %10104 = vmatpush1.bf16.msra.mxu0 %v14713_v28  ;;  %10330 = vmatpush1.bf16.msra.mxu1 %v14716_v17  ;;  %v18269_v28 = vpack.c.bf16 %v9649_v50, %v9643_v41  ;;  %v14776_v17 = vld [vmem:[%s18470_s1 + $0x13c8] ss:$16 sps:$4 sm:$0xff]  }
 0x48c   : > { %10105 = vmatprep.subr.bf16.mxu0 %v14721_v36  ;;  %10331 = vmatprep.subr.bf16.mxu1 %v14724_v60  ;;  %v14781_v36 = vld [vmem:[%s18470_s1 + $0x13e4] ss:$16 sps:$4 sm:$0xff]   ;;  %v14784_v60 = vld [vmem:[%s18470_s1 + $0x13ec] ss:$16 sps:$4 sm:$0xff]  }
 0x48d   : > { %9294 = vmatprep.mubr.bf16.mxu0 %v18603_v18  ;;  %9520 = vmatprep.mubr.bf16.mxu1 %v18603_v18 }
 0x48f   : > { %10106 = vmatpush1.bf16.msra.mxu0 %v14719_v14  ;;  %10332 = vmatpush1.bf16.msra.mxu1 %v14722_v44  ;;  %v14779_v14 = vld [vmem:[%s18470_s1 + $0x13e0] ss:$16 sps:$4 sm:$0xff]   ;;  %v14782_v44 = vld [vmem:[%s18470_s1 + $0x13e8] ss:$16 sps:$4 sm:$0xff]  }
 0x490   : > { %10107 = vmatprep.subr.bf16.mxu0 %v14727_v62  ;;  %10333 = vmatprep.subr.bf16.mxu1 %v14730_v29  ;;  %v14787_v62 = vld [vmem:[%s18470_s1 + $0x1404] ss:$16 sps:$4 sm:$0xff]   ;;  %v14785_v29 = vld [vmem:[%s18470_s1 + $0x1400] ss:$16 sps:$4 sm:$0xff]  }
 0x492   : > { %12477 = vmatmul.mubr.msk.bf16.gmra.mrb[12].mxu0 %vm277_vm2, %v16012_v27  ;;  %12485 = vmatmul.mubr.msk.bf16.gmra.mrb[12].mxu1 %vm277_vm2, %v16012_v27  ;;  %v14742_v27 = vld [vmem:[%s18470_s1 + $0x130c] ss:$16 sps:$4 sm:$0xff]  }
 0x493   : > { %10108 = vmatpush1.bf16.msra.mxu0 %v14725_v19  ;;  %10334 = vmatpush1.bf16.msra.mxu1 %v14728_v1  ;;  %v14793_v19 = vld [vmem:[%s18470_s1 + $0x1424] ss:$16 sps:$4 sm:$0xff]   ;;  %v14796_v1 = vld [vmem:[%s18470_s1 + $0x142c] ss:$16 sps:$4 sm:$0xff]  }
 0x494   : > { %10109 = vmatprep.subr.bf16.mxu0 %v14733_v61  ;;  %10335 = vmatprep.subr.bf16.mxu1 %v14736_v48  ;;  %v14791_v61 = vld [vmem:[%s18470_s1 + $0x1420] ss:$16 sps:$4 sm:$0xff]   ;;  %v14794_v48 = vld [vmem:[%s18470_s1 + $0x1428] ss:$16 sps:$4 sm:$0xff]  }
 0x495   : > { %9304 = vmatprep.mubr.bf16.mxu0 %v18603_v18  ;;  %9530 = vmatprep.mubr.bf16.mxu1 %v18603_v18 }
 0x497   : > { %10110 = vmatpush1.bf16.msra.mxu0 %v14731_v59  ;;  %10336 = vmatpush1.bf16.msra.mxu1 %v14734_v26  ;;  %v18639_v59 = vld [vmem:[#allocation34_spill] sm:$0xff]  ;;  %v9646_v26 = vrot.slane %v18037_v16, 2 }
 0x498   : > { %10111 = vmatprep.subr.bf16.mxu0 %v14739_v54  ;;  %10337 = vmatprep.subr.bf16.mxu1 %v14742_v27  ;;  %v18642_v54 = vld [vmem:[#allocation39_spill] sm:$0xff]  ;;  %v18643_v27 = vld [vmem:[#allocation18_spill] sm:$0xff] }
 0x49a   : > { %12478 = vmatmul.mubr.msk.bf16.gmra.mrb[16].mxu0 %vm277_vm2, %v16049_v43  ;;  %12486 = vmatmul.mubr.msk.bf16.gmra.mrb[16].mxu1 %vm277_vm2, %v16049_v43  ;;  %v14754_v43 = vld [vmem:[%s18470_s1 + $0x134c] ss:$16 sps:$4 sm:$0xff]  }
 0x49b   : > { %10112 = vmatpush1.bf16.msra.mxu0 %v14737_v55  ;;  %10338 = vmatpush1.bf16.msra.mxu1 %v14740_v47 }
 0x49c   : > { %10113 = vmatprep.subr.bf16.mxu0 %v14745_v56  ;;  %10339 = vmatprep.subr.bf16.mxu1 %v14748_v31  ;;  %v9644_v56 = vrot.slane %v18046_v10, 2  ;;  %v18644_v31 = vld [vmem:[#allocation24_spill] sm:$0xff] }
 0x49d   : > { %9314 = vmatprep.mubr.bf16.mxu0 %v18603_v18  ;;  %9540 = vmatprep.mubr.bf16.mxu1 %v18603_v18 }
 0x49f   : > { %10114 = vmatpush1.bf16.msra.mxu0 %v14743_v51  ;;  %10340 = vmatpush1.bf16.msra.mxu1 %v14746_v2 }
 0x4a0   : > { %10115 = vmatprep.subr.bf16.mxu0 %v14751_v52  ;;  %10341 = vmatprep.subr.bf16.mxu1 %v14754_v43 }
 0x4a2   : > { %12479 = vmatmul.mubr.msk.bf16.gmra.mrb[20].mxu0 %vm277_vm2, %v16086_v22  ;;  %12487 = vmatmul.mubr.msk.bf16.gmra.mrb[20].mxu1 %vm277_vm2, %v16086_v22  ;;  %v14766_v22 = vld [vmem:[%s18470_s1 + $0x138c] ss:$16 sps:$4 sm:$0xff]  }
 0x4a3   : > { %10116 = vmatpush1.bf16.msra.mxu0 %v14749_v0  ;;  %10342 = vmatpush1.bf16.msra.mxu1 %v14752_v12 }
 0x4a4   : > { %10117 = vmatprep.subr.bf16.mxu0 %v14757_v9  ;;  %10343 = vmatprep.subr.bf16.mxu1 %v14760_v13 }
 0x4a5   : > { %9324 = vmatprep.mubr.bf16.mxu0 %v18603_v18  ;;  %9550 = vmatprep.mubr.bf16.mxu1 %v18603_v18 }
 0x4a7   : > { %10118 = vmatpush1.bf16.msra.mxu0 %v14755_v11  ;;  %10344 = vmatpush1.bf16.msra.mxu1 %v14758_v32 }
 0x4a8   : > { %10119 = vmatprep.subr.bf16.mxu0 %v14763_v5  ;;  %10345 = vmatprep.subr.bf16.mxu1 %v14766_v22 }
 0x4aa   : > { %12480 = vmatmul.mubr.msk.bf16.gmra.mrb[24].mxu0 %vm277_vm2, %v16567_v35  ;;  %12488 = vmatmul.mubr.msk.bf16.gmra.mrb[24].mxu1 %vm277_vm2, %v16567_v35  ;;  %v14775_v35 = vld [vmem:[%s18470_s1 + $0x13c4] ss:$16 sps:$4 sm:$0xff]  }
 0x4ab   : > { %10120 = vmatpush1.bf16.msra.mxu0 %v14761_v7  ;;  %10346 = vmatpush1.bf16.msra.mxu1 %v14764_v3 }
 0x4ac   : > { %10121 = vmatprep.subr.bf16.mxu0 %v14769_v53  ;;  %10347 = vmatprep.subr.bf16.mxu1 %v14772_v63 }
 0x4ad   : > { %9334 = vmatprep.mubr.bf16.mxu0 %v18603_v18  ;;  %9560 = vmatprep.mubr.bf16.mxu1 %v18603_v18 }
 0x4af   : > { %10122 = vmatpush1.bf16.msra.mxu0 %v14767_v4  ;;  %10348 = vmatpush1.bf16.msra.mxu1 %v14770_v33 }
 0x4b0   : > { %10123 = vmatprep.subr.bf16.mxu0 %v14775_v35  ;;  %10349 = vmatprep.subr.bf16.mxu1 %v14778_v8 }
 0x4b2   : > { %12481 = vmatmul.mubr.msk.bf16.gmra.mrb[28].mxu0 %vm277_vm2, %v17991_v37  ;;  %12489 = vmatmul.mubr.msk.bf16.gmra.mrb[28].mxu1 %vm277_vm2, %v17991_v37  ;;  %v14790_v37 = vld [vmem:[%s18470_s1 + $0x140c] ss:$16 sps:$4 sm:$0xff]  }
 0x4b3   : > { %10124 = vmatpush1.bf16.msra.mxu0 %v14773_v25  ;;  %10350 = vmatpush1.bf16.msra.mxu1 %v14776_v17 }
 0x4b4   : > { %10127 = vmatprep.mubr.bf16.mxu0 %v18624_v30  ;;  %10353 = vmatprep.mubr.bf16.mxu1 %v18624_v30  ;;  %v14788_v30 = vld [vmem:[%s18470_s1 + $0x1408] ss:$16 sps:$4 sm:$0xff]  }
 0x4b5   : > { %10125 = vmatprep.subr.bf16.mxu0 %v14781_v36  ;;  %10351 = vmatprep.subr.bf16.mxu1 %v14784_v60 }
 0x4b7   : > { %10126 = vmatpush1.bf16.msra.mxu0 %v14779_v14  ;;  %10352 = vmatpush1.bf16.msra.mxu1 %v14782_v44 }
 0x4b8   : > { %10208 = vmatprep.subr.bf16.mxu0 %v14787_v62  ;;  %10434 = vmatprep.subr.bf16.mxu1 %v14790_v37 }
 0x4ba   : > { %10128 = vmatmul.mubr.bf16.vlgmr.msra.gmra.mrb[0].mxu0 %v18625_v38  ;;  %10354 = vmatmul.mubr.bf16.vlgmr.msra.gmra.mrb[0].mxu1 %v18625_v38  ;;  %v18637_v38 = vld [vmem:[#allocation28_spill] sm:$0xff] }
 0x4bb   : > { %10209 = vmatpush1.bf16.msra.mxu0 %v14785_v29  ;;  %10435 = vmatpush1.bf16.msra.mxu1 %v14788_v30 }
 0x4bc   : > { %10137 = vmatprep.mubr.bf16.mxu0 %v18626_v23  ;;  %10363 = vmatprep.mubr.bf16.mxu1 %v18626_v23  ;;  %v18638_v23 = vld [vmem:[#allocation29_spill] sm:$0xff] }
 0x4bd   : > { %10210 = vmatprep.subr.bf16.mxu0 %v14793_v19  ;;  %10436 = vmatprep.subr.bf16.mxu1 %v14796_v1 }
 0x4bf   : > { %10211 = vmatpush1.bf16.msra.mxu0 %v14791_v61  ;;  %10437 = vmatpush1.bf16.msra.mxu1 %v14794_v48 }
 0x4c2   : > { %10138 = vmatmul.mubr.bf16.gmra.mrb[4].mxu0 %v18627_v58  ;;  %10364 = vmatmul.mubr.bf16.gmra.mrb[4].mxu1 %v18627_v58  ;;  %v18640_v58 = vld [vmem:[#allocation35_spill] sm:$0xff] }
 0x4c3   : > { %10147 = vmatprep.mubr.bf16.mxu0 %v18628_v34  ;;  %10373 = vmatprep.mubr.bf16.mxu1 %v18628_v34  ;;  %v18641_v34 = vld [vmem:[#allocation38_spill] sm:$0xff] }
 0x4ca   : > { %10148 = vmatmul.mubr.bf16.gmra.mrb[8].mxu0 %v18629_v57  ;;  %10374 = vmatmul.mubr.bf16.gmra.mrb[8].mxu1 %v18629_v57  ;;  %v9638_v57 = vrot.slane %v17732_v39, 2 }
 0x4cb   : > { %10157 = vmatprep.mubr.bf16.mxu0 %v18637_v38  ;;  %10383 = vmatprep.mubr.bf16.mxu1 %v18637_v38 }
 0x4cc   : > { %v9647_v55 = vsel %vm3613_vm10, %v9638_v57, %v9646_v26  ;;  %v9645_v39 = vsel %vm3613_vm10, %v9638_v57, %v9644_v56 }
 0x4cd   : > { %v9657_v47 = vpack.c.bf16 %v9647_v55, %v9638_v57  ;;  %v9656_v16 = vpack.c.bf16 %v9645_v39, %v9638_v57 }
 0x4d2   : > { %10158 = vmatmul.mubr.bf16.gmra.mrb[12].mxu0 %v18638_v23  ;;  %10384 = vmatmul.mubr.bf16.gmra.mrb[12].mxu1 %v18638_v23 }
 0x4d3   : > { %10167 = vmatprep.mubr.bf16.mxu0 %v18639_v59  ;;  %10393 = vmatprep.mubr.bf16.mxu1 %v18639_v59 }
 0x4da   : > { %10168 = vmatmul.mubr.bf16.gmra.mrb[16].mxu0 %v18640_v58  ;;  %10394 = vmatmul.mubr.bf16.gmra.mrb[16].mxu1 %v18640_v58 }
 0x4db   : > { %10177 = vmatprep.mubr.bf16.mxu0 %v18641_v34  ;;  %10403 = vmatprep.mubr.bf16.mxu1 %v18641_v34 }
 0x4e2   : > { %10178 = vmatmul.mubr.bf16.gmra.mrb[20].mxu0 %v18642_v54  ;;  %10404 = vmatmul.mubr.bf16.gmra.mrb[20].mxu1 %v18642_v54 }
 0x4e3   : > { %10187 = vmatprep.mubr.bf16.mxu0 %v18643_v27  ;;  %10413 = vmatprep.mubr.bf16.mxu1 %v18643_v27 }
 0x4ea   : > { %10188 = vmatmul.mubr.bf16.gmra.mrb[24].mxu0 %v18644_v31  ;;  %10414 = vmatmul.mubr.bf16.gmra.mrb[24].mxu1 %v18644_v31 }
 0x4eb   : > { %10197 = vmatprep.mubr.bf16.mxu0 %v9657_v47  ;;  %10423 = vmatprep.mubr.bf16.mxu1 %v9657_v47 }
 0x4f2   : > { %10198 = vmatmul.mubr.bf16.gmra.mrb[28].mxu0 %v9656_v16  ;;  %10424 = vmatmul.mubr.bf16.gmra.mrb[28].mxu1 %v9656_v16 }
 0x4f3   : > { %10240 = vmatprep.mubr.bf16.mxu0 %v18603_v18  ;;  %10466 = vmatprep.mubr.bf16.mxu1 %v18603_v18 }
 0x4fa   : > { %12634 = vmatmul.mubr.msk.bf16.vlgmr.msra.gmra.mrb[0].mxu0 %vm277_vm2, %v18606_v46  ;;  %12642 = vmatmul.mubr.msk.bf16.vlgmr.msra.gmra.mrb[0].mxu1 %vm277_vm2, %v18606_v46 }
 0x4fb   : > { %10250 = vmatprep.mubr.bf16.mxu0 %v18603_v18  ;;  %10476 = vmatprep.mubr.bf16.mxu1 %v18603_v18 }
 0x502   : > { %12635 = vmatmul.mubr.msk.bf16.gmra.mrb[4].mxu0 %vm277_vm2, %v18607_v15  ;;  %12643 = vmatmul.mubr.msk.bf16.gmra.mrb[4].mxu1 %vm277_vm2, %v18607_v15 }
 0x503   : > { %10260 = vmatprep.mubr.bf16.mxu0 %v18603_v18  ;;  %10486 = vmatprep.mubr.bf16.mxu1 %v18603_v18 }
 0x50a   : > { %12636 = vmatmul.mubr.msk.bf16.gmra.mrb[8].mxu0 %vm277_vm2, %v18608_v24  ;;  %12644 = vmatmul.mubr.msk.bf16.gmra.mrb[8].mxu1 %vm277_vm2, %v18608_v24 }
 0x50b   : > { %10270 = vmatprep.mubr.bf16.mxu0 %v18603_v18  ;;  %10496 = vmatprep.mubr.bf16.mxu1 %v18603_v18 }
 0x512   : > { %12637 = vmatmul.mubr.msk.bf16.gmra.mrb[12].mxu0 %vm277_vm2, %v18609_v20  ;;  %12645 = vmatmul.mubr.msk.bf16.gmra.mrb[12].mxu1 %vm277_vm2, %v18609_v20 }
 0x513   : > { %10280 = vmatprep.mubr.bf16.mxu0 %v18603_v18  ;;  %10506 = vmatprep.mubr.bf16.mxu1 %v18603_v18 }
 0x51a   : > { %12638 = vmatmul.mubr.msk.bf16.gmra.mrb[16].mxu0 %vm277_vm2, %v18610_v21  ;;  %12646 = vmatmul.mubr.msk.bf16.gmra.mrb[16].mxu1 %vm277_vm2, %v18610_v21 }
 0x51b   : > { %10290 = vmatprep.mubr.bf16.mxu0 %v18603_v18  ;;  %10516 = vmatprep.mubr.bf16.mxu1 %v18603_v18 }
 0x522   : > { %12639 = vmatmul.mubr.msk.bf16.gmra.mrb[20].mxu0 %vm277_vm2, %v15821_v6  ;;  %12647 = vmatmul.mubr.msk.bf16.gmra.mrb[20].mxu1 %vm277_vm2, %v15821_v6 }
 0x523   : > { %10300 = vmatprep.mubr.bf16.mxu0 %v18603_v18  ;;  %10526 = vmatprep.mubr.bf16.mxu1 %v18603_v18 }
 0x52a   : > { %12640 = vmatmul.mubr.msk.bf16.gmra.mrb[24].mxu0 %vm277_vm2, %v16578_v42  ;;  %12648 = vmatmul.mubr.msk.bf16.gmra.mrb[24].mxu1 %vm277_vm2, %v16578_v42 }
 0x52b   : > { %10310 = vmatprep.mubr.bf16.mxu0 %v18603_v18  ;;  %10536 = vmatprep.mubr.bf16.mxu1 %v18603_v18 }
 0x532   : > { %12641 = vmatmul.mubr.msk.bf16.gmra.mrb[28].mxu0 %vm277_vm2, %v18269_v28  ;;  %12649 = vmatmul.mubr.msk.bf16.gmra.mrb[28].mxu1 %vm277_vm2, %v18269_v28 }
 0x5cd   : > { %v10242_v6 = vpop.f32.mrb[0].mxu0  ;;  %v10468_v46 = vpop.f32.mrb[0].mxu1 }
 0x5ce   : > { %v10695_v15 = vmul.f32 %v10242_v6, %v10242_v6  ;;  %v10697_v24 = vmul.f32 %v10468_v46, %v10468_v46  ;;  %v10244_v42 = vpop.f32.mrb[1].mxu0  ;;  %v10470_v18 = vpop.f32.mrb[1].mxu1 }
 0x5cf   : > { %v10696_v20 = vmul.f32 %v10244_v42, %v10244_v42  ;;  %v12687_v21 = vpack.c.bf16 %v10244_v42, %v10242_v6  ;;  %v10698_v10 = vmul.f32 %v10470_v18, %v10470_v18  ;;  %v12688_v51 = vpack.c.bf16 %v10470_v18, %v10468_v46  ;;  %v10246_v2 = vpop.f32.mrb[2].mxu0  ;;  %v10472_v52 = vpop.f32.mrb[2].mxu1 }
 0x5d0   : > { %v10611_v43 = vadd.f32 %v10246_v2, %v10242_v6  ;;  %v10699_v0 = vmul.f32 %v10246_v2, %v10246_v2  ;;  %v10653_v12 = vadd.f32 %v10472_v52, %v10468_v46  ;;  %v10701_v9 = vmul.f32 %v10472_v52, %v10472_v52  ;;  %v10248_v13 = vpop.f32.mrb[3].mxu0  ;;  %v10474_v11 = vpop.f32.mrb[3].mxu1 }
 0x5d1   : > { %11063 = vst [vmem:[%s18402_s11] sm:$0xff] %v12687_v21  ;;  %11064 = vst [vmem:[%s18402_s11 + $0x8] sm:$0xff] %v12688_v51  ;;  %v10632_v32 = vadd.f32 %v10248_v13, %v10244_v42  ;;  %v10700_v5 = vmul.f32 %v10248_v13, %v10248_v13  ;;  %v12689_v22 = vpack.c.bf16 %v10248_v13, %v10246_v2 }
 0x5d2   : > { %v10674_v45 = vadd.f32 %v10474_v11, %v10470_v18  ;;  %v10759_v49 = vadd.f32 %v10699_v0, %v10695_v15  ;;  %v10801_v7 = vadd.f32 %v10701_v9, %v10697_v24  ;;  %v10702_v3 = vmul.f32 %v10474_v11, %v10474_v11 }
 0x5d3   : > { %v12690_v53 = vpack.c.bf16 %v10474_v11, %v10472_v52  ;;  %v10780_v63 = vadd.f32 %v10700_v5, %v10696_v20  ;;  %11065 = vst [vmem:[%s18402_s11 + $0x10] sm:$0xff] %v12689_v22 }
 0x5d4   : > { %v10822_v4 = vadd.f32 %v10702_v3, %v10698_v10 }
 0x5d5   : > { %11066 = vst [vmem:[%s18402_s11 + $0x18] sm:$0xff] %v12690_v53  ;;  %v10252_v33 = vpop.f32.mrb[4].mxu0  ;;  %v10478_v41 = vpop.f32.mrb[4].mxu1 }
 0x5d6   : > { %v10612_v40 = vadd.f32 %v10611_v43, %v10252_v33  ;;  %v10703_v35 = vmul.f32 %v10252_v33, %v10252_v33  ;;  %v10654_v8 = vadd.f32 %v10653_v12, %v10478_v41  ;;  %v10705_v50 = vmul.f32 %v10478_v41, %v10478_v41  ;;  %v10254_v28 = vpop.f32.mrb[5].mxu0  ;;  %v10480_v25 = vpop.f32.mrb[5].mxu1 }
 0x5d7   : > { %v10633_v17 = vadd.f32 %v10632_v32, %v10254_v28  ;;  %v10704_v36 = vmul.f32 %v10254_v28, %v10254_v28  ;;  %v12691_v60 = vpack.c.bf16 %v10254_v28, %v10252_v33  ;;  %v10675_v14 = vadd.f32 %v10674_v45, %v10480_v25  ;;  %v10256_v44 = vpop.f32.mrb[6].mxu0  ;;  %v10482_v62 = vpop.f32.mrb[6].mxu1 }
 0x5d8   : > { %v10760_v37 = vadd.f32 %v10759_v49, %v10703_v35  ;;  %v10802_v29 = vadd.f32 %v10801_v7, %v10705_v50  ;;  %v10706_v30 = vmul.f32 %v10480_v25, %v10480_v25  ;;  %v12692_v19 = vpack.c.bf16 %v10480_v25, %v10478_v41  ;;  %v10258_v1 = vpop.f32.mrb[7].mxu0  ;;  %v10484_v61 = vpop.f32.mrb[7].mxu1 }
 0x5d9   : > { %v10781_v48 = vadd.f32 %v10780_v63, %v10704_v36  ;;  %11067 = vst [vmem:[%s18402_s11 + $0x20] sm:$0xff] %v12691_v60  ;;  %v10613_v38 = vadd.f32 %v10612_v40, %v10256_v44  ;;  %v10707_v23 = vmul.f32 %v10256_v44, %v10256_v44  ;;  %v10655_v59 = vadd.f32 %v10654_v8, %v10482_v62 }
 0x5da   : > { %v10823_v58 = vadd.f32 %v10822_v4, %v10706_v30  ;;  %11068 = vst [vmem:[%s18402_s11 + $0x28] sm:$0xff] %v12692_v19  ;;  %v10709_v34 = vmul.f32 %v10482_v62, %v10482_v62  ;;  %v10634_v57 = vadd.f32 %v10633_v17, %v10258_v1  ;;  %v10708_v26 = vmul.f32 %v10258_v1, %v10258_v1 }
 0x5db   : > { %v10761_v54 = vadd.f32 %v10760_v37, %v10707_v23  ;;  %v12693_v27 = vpack.c.bf16 %v10258_v1, %v10256_v44  ;;  %v10676_v55 = vadd.f32 %v10675_v14, %v10484_v61  ;;  %v10710_v47 = vmul.f32 %v10484_v61, %v10484_v61 }
 0x5dc   : > { %v10803_v56 = vadd.f32 %v10802_v29, %v10709_v34  ;;  %v10782_v31 = vadd.f32 %v10781_v48, %v10708_v26  ;;  %v12694_v39 = vpack.c.bf16 %v10484_v61, %v10482_v62 }
 0x5dd   : > { %11069 = vst [vmem:[%s18402_s11 + $0x30] sm:$0xff] %v12693_v27  ;;  %v10824_v16 = vadd.f32 %v10823_v58, %v10710_v47  ;;  %v10262_v6 = vpop.f32.mrb[8].mxu0  ;;  %v10488_v46 = vpop.f32.mrb[8].mxu1 }
 0x5de   : > { %11070 = vst [vmem:[%s18402_s11 + $0x38] sm:$0xff] %v12694_v39  ;;  %v10614_v15 = vadd.f32 %v10613_v38, %v10262_v6  ;;  %v10711_v24 = vmul.f32 %v10262_v6, %v10262_v6  ;;  %v10656_v42 = vadd.f32 %v10655_v59, %v10488_v46  ;;  %v10713_v18 = vmul.f32 %v10488_v46, %v10488_v46  ;;  %v10264_v20 = vpop.f32.mrb[9].mxu0  ;;  %v10490_v21 = vpop.f32.mrb[9].mxu1 }
 0x5df   : > { %v10635_v10 = vadd.f32 %v10634_v57, %v10264_v20  ;;  %v10712_v51 = vmul.f32 %v10264_v20, %v10264_v20  ;;  %v12695_v2 = vpack.c.bf16 %v10264_v20, %v10262_v6  ;;  %v10677_v52 = vadd.f32 %v10676_v55, %v10490_v21  ;;  %v10266_v43 = vpop.f32.mrb[10].mxu0  ;;  %v10492_v0 = vpop.f32.mrb[10].mxu1 }
 0x5e0   : > { %v10762_v12 = vadd.f32 %v10761_v54, %v10711_v24  ;;  %v10804_v9 = vadd.f32 %v10803_v56, %v10713_v18  ;;  %v10714_v13 = vmul.f32 %v10490_v21, %v10490_v21  ;;  %v12696_v11 = vpack.c.bf16 %v10490_v21, %v10488_v46  ;;  %v10268_v32 = vpop.f32.mrb[11].mxu0  ;;  %v10494_v5 = vpop.f32.mrb[11].mxu1 }
 0x5e1   : > { %v10783_v22 = vadd.f32 %v10782_v31, %v10712_v51  ;;  %11071 = vst [vmem:[%s18402_s11 + $0x40] sm:$0xff] %v12695_v2  ;;  %v10615_v45 = vadd.f32 %v10614_v15, %v10266_v43  ;;  %v10715_v49 = vmul.f32 %v10266_v43, %v10266_v43  ;;  %v10657_v7 = vadd.f32 %v10656_v42, %v10492_v0 }
 0x5e2   : > { %v10825_v3 = vadd.f32 %v10824_v16, %v10714_v13  ;;  %11072 = vst [vmem:[%s18402_s11 + $0x48] sm:$0xff] %v12696_v11  ;;  %v10717_v53 = vmul.f32 %v10492_v0, %v10492_v0  ;;  %v10636_v63 = vadd.f32 %v10635_v10, %v10268_v32  ;;  %v10716_v4 = vmul.f32 %v10268_v32, %v10268_v32 }
 0x5e3   : > { %v10763_v33 = vadd.f32 %v10762_v12, %v10715_v49  ;;  %v12697_v41 = vpack.c.bf16 %v10268_v32, %v10266_v43  ;;  %v10678_v40 = vadd.f32 %v10677_v52, %v10494_v5  ;;  %v10718_v35 = vmul.f32 %v10494_v5, %v10494_v5 }
 0x5e4   : > { %v10805_v8 = vadd.f32 %v10804_v9, %v10717_v53  ;;  %v10784_v50 = vadd.f32 %v10783_v22, %v10716_v4  ;;  %v12698_v28 = vpack.c.bf16 %v10494_v5, %v10492_v0 }
 0x5e5   : > { %11073 = vst [vmem:[%s18402_s11 + $0x50] sm:$0xff] %v12697_v41  ;;  %v10826_v25 = vadd.f32 %v10825_v3, %v10718_v35  ;;  %v10272_v17 = vpop.f32.mrb[12].mxu0  ;;  %v10498_v36 = vpop.f32.mrb[12].mxu1 }
 0x5e6   : > { %11074 = vst [vmem:[%s18402_s11 + $0x58] sm:$0xff] %v12698_v28  ;;  %v10616_v60 = vadd.f32 %v10615_v45, %v10272_v17  ;;  %v10719_v14 = vmul.f32 %v10272_v17, %v10272_v17  ;;  %v10658_v44 = vadd.f32 %v10657_v7, %v10498_v36  ;;  %v10721_v62 = vmul.f32 %v10498_v36, %v10498_v36  ;;  %v10274_v37 = vpop.f32.mrb[13].mxu0  ;;  %v10500_v29 = vpop.f32.mrb[13].mxu1 }
 0x5e7   : > { %v10637_v30 = vadd.f32 %v10636_v63, %v10274_v37  ;;  %v10720_v19 = vmul.f32 %v10274_v37, %v10274_v37  ;;  %v12699_v1 = vpack.c.bf16 %v10274_v37, %v10272_v17  ;;  %v10679_v61 = vadd.f32 %v10678_v40, %v10500_v29  ;;  %v10276_v48 = vpop.f32.mrb[14].mxu0  ;;  %v10502_v38 = vpop.f32.mrb[14].mxu1 }
 0x5e8   : > { %v10764_v23 = vadd.f32 %v10763_v33, %v10719_v14  ;;  %v10806_v59 = vadd.f32 %v10805_v8, %v10721_v62  ;;  %v10722_v58 = vmul.f32 %v10500_v29, %v10500_v29  ;;  %v12700_v34 = vpack.c.bf16 %v10500_v29, %v10498_v36  ;;  %v10278_v57 = vpop.f32.mrb[15].mxu0  ;;  %v10504_v26 = vpop.f32.mrb[15].mxu1 }
 0x5e9   : > { %v10785_v54 = vadd.f32 %v10784_v50, %v10720_v19  ;;  %11075 = vst [vmem:[%s18402_s11 + $0x60] sm:$0xff] %v12699_v1  ;;  %v10617_v27 = vadd.f32 %v10616_v60, %v10276_v48  ;;  %v10723_v55 = vmul.f32 %v10276_v48, %v10276_v48  ;;  %v10659_v47 = vadd.f32 %v10658_v44, %v10502_v38 }
 0x5ea   : > { %v10827_v56 = vadd.f32 %v10826_v25, %v10722_v58  ;;  %11076 = vst [vmem:[%s18402_s11 + $0x68] sm:$0xff] %v12700_v34  ;;  %v10725_v31 = vmul.f32 %v10502_v38, %v10502_v38  ;;  %v10638_v39 = vadd.f32 %v10637_v30, %v10278_v57  ;;  %v10724_v16 = vmul.f32 %v10278_v57, %v10278_v57 }
 0x5eb   : > { %v10765_v6 = vadd.f32 %v10764_v23, %v10723_v55  ;;  %v12701_v46 = vpack.c.bf16 %v10278_v57, %v10276_v48  ;;  %v10680_v15 = vadd.f32 %v10679_v61, %v10504_v26  ;;  %v10726_v24 = vmul.f32 %v10504_v26, %v10504_v26 }
 0x5ec   : > { %v10807_v42 = vadd.f32 %v10806_v59, %v10725_v31  ;;  %v10786_v18 = vadd.f32 %v10785_v54, %v10724_v16  ;;  %v12702_v20 = vpack.c.bf16 %v10504_v26, %v10502_v38 }
 0x5ed   : > { %11077 = vst [vmem:[%s18402_s11 + $0x70] sm:$0xff] %v12701_v46  ;;  %v10828_v21 = vadd.f32 %v10827_v56, %v10726_v24  ;;  %v10282_v10 = vpop.f32.mrb[16].mxu0  ;;  %v10508_v51 = vpop.f32.mrb[16].mxu1 }
 0x5ee   : > { %11078 = vst [vmem:[%s18402_s11 + $0x78] sm:$0xff] %v12702_v20  ;;  %v10618_v2 = vadd.f32 %v10617_v27, %v10282_v10  ;;  %v10727_v52 = vmul.f32 %v10282_v10, %v10282_v10  ;;  %v10660_v43 = vadd.f32 %v10659_v47, %v10508_v51  ;;  %v10729_v0 = vmul.f32 %v10508_v51, %v10508_v51  ;;  %v10284_v12 = vpop.f32.mrb[17].mxu0  ;;  %v10510_v9 = vpop.f32.mrb[17].mxu1 }
 0x5ef   : > { %v10639_v13 = vadd.f32 %v10638_v39, %v10284_v12  ;;  %v10728_v11 = vmul.f32 %v10284_v12, %v10284_v12  ;;  %v12703_v32 = vpack.c.bf16 %v10284_v12, %v10282_v10  ;;  %v10681_v5 = vadd.f32 %v10680_v15, %v10510_v9  ;;  %v10286_v22 = vpop.f32.mrb[18].mxu0  ;;  %v10512_v45 = vpop.f32.mrb[18].mxu1 }
 0x5f0   : > { %v10766_v49 = vadd.f32 %v10765_v6, %v10727_v52  ;;  %v10808_v7 = vadd.f32 %v10807_v42, %v10729_v0  ;;  %v10730_v3 = vmul.f32 %v10510_v9, %v10510_v9  ;;  %v12704_v53 = vpack.c.bf16 %v10510_v9, %v10508_v51  ;;  %v10288_v63 = vpop.f32.mrb[19].mxu0  ;;  %v10514_v4 = vpop.f32.mrb[19].mxu1 }
 0x5f1   : > { %v10787_v33 = vadd.f32 %v10786_v18, %v10728_v11  ;;  %11079 = vst [vmem:[%s18402_s11 + $0x80] sm:$0xff] %v12703_v32  ;;  %v10619_v41 = vadd.f32 %v10618_v2, %v10286_v22  ;;  %v10731_v40 = vmul.f32 %v10286_v22, %v10286_v22  ;;  %v10661_v35 = vadd.f32 %v10660_v43, %v10512_v45 }
 0x5f2   : > { %v10829_v8 = vadd.f32 %v10828_v21, %v10730_v3  ;;  %11080 = vst [vmem:[%s18402_s11 + $0x88] sm:$0xff] %v12704_v53  ;;  %v10733_v50 = vmul.f32 %v10512_v45, %v10512_v45  ;;  %v10640_v28 = vadd.f32 %v10639_v13, %v10288_v63  ;;  %v10732_v25 = vmul.f32 %v10288_v63, %v10288_v63 }
 0x5f3   : > { %v10767_v17 = vadd.f32 %v10766_v49, %v10731_v40  ;;  %v12705_v36 = vpack.c.bf16 %v10288_v63, %v10286_v22  ;;  %v10682_v60 = vadd.f32 %v10681_v5, %v10514_v4  ;;  %v10734_v14 = vmul.f32 %v10514_v4, %v10514_v4 }
 0x5f4   : > { %v10809_v44 = vadd.f32 %v10808_v7, %v10733_v50  ;;  %v10788_v62 = vadd.f32 %v10787_v33, %v10732_v25  ;;  %v12706_v37 = vpack.c.bf16 %v10514_v4, %v10512_v45 }
 0x5f5   : > { %11081 = vst [vmem:[%s18402_s11 + $0x90] sm:$0xff] %v12705_v36  ;;  %v10830_v29 = vadd.f32 %v10829_v8, %v10734_v14  ;;  %v10292_v30 = vpop.f32.mrb[20].mxu0  ;;  %v10518_v19 = vpop.f32.mrb[20].mxu1 }
 0x5f6   : > { %11082 = vst [vmem:[%s18402_s11 + $0x98] sm:$0xff] %v12706_v37  ;;  %v10620_v1 = vadd.f32 %v10619_v41, %v10292_v30  ;;  %v10735_v61 = vmul.f32 %v10292_v30, %v10292_v30  ;;  %v10662_v48 = vadd.f32 %v10661_v35, %v10518_v19  ;;  %v10737_v38 = vmul.f32 %v10518_v19, %v10518_v19  ;;  %v10294_v23 = vpop.f32.mrb[21].mxu0  ;;  %v10520_v59 = vpop.f32.mrb[21].mxu1 }
 0x5f7   : > { %v10641_v58 = vadd.f32 %v10640_v28, %v10294_v23  ;;  %v10736_v34 = vmul.f32 %v10294_v23, %v10294_v23  ;;  %v12707_v57 = vpack.c.bf16 %v10294_v23, %v10292_v30  ;;  %v10683_v26 = vadd.f32 %v10682_v60, %v10520_v59  ;;  %v10296_v54 = vpop.f32.mrb[22].mxu0  ;;  %v10522_v27 = vpop.f32.mrb[22].mxu1 }
 0x5f8   : > { %v10768_v55 = vadd.f32 %v10767_v17, %v10735_v61  ;;  %v10810_v47 = vadd.f32 %v10809_v44, %v10737_v38  ;;  %v10738_v56 = vmul.f32 %v10520_v59, %v10520_v59  ;;  %v12708_v31 = vpack.c.bf16 %v10520_v59, %v10518_v19  ;;  %v10298_v39 = vpop.f32.mrb[23].mxu0  ;;  %v10524_v16 = vpop.f32.mrb[23].mxu1 }
 0x5f9   : > { %v10789_v6 = vadd.f32 %v10788_v62, %v10736_v34  ;;  %11083 = vst [vmem:[%s18402_s11 + $0xa0] sm:$0xff] %v12707_v57  ;;  %v10621_v46 = vadd.f32 %v10620_v1, %v10296_v54  ;;  %v10739_v15 = vmul.f32 %v10296_v54, %v10296_v54  ;;  %v10663_v24 = vadd.f32 %v10662_v48, %v10522_v27 }
 0x5fa   : > { %v10831_v42 = vadd.f32 %v10830_v29, %v10738_v56  ;;  %11084 = vst [vmem:[%s18402_s11 + $0xa8] sm:$0xff] %v12708_v31  ;;  %v10741_v18 = vmul.f32 %v10522_v27, %v10522_v27  ;;  %v10642_v20 = vadd.f32 %v10641_v58, %v10298_v39  ;;  %v10740_v21 = vmul.f32 %v10298_v39, %v10298_v39 }
 0x5fb   : > { %v10769_v10 = vadd.f32 %v10768_v55, %v10739_v15  ;;  %v12709_v51 = vpack.c.bf16 %v10298_v39, %v10296_v54  ;;  %v10684_v2 = vadd.f32 %v10683_v26, %v10524_v16  ;;  %v10742_v52 = vmul.f32 %v10524_v16, %v10524_v16 }
 0x5fc   : > { %v10811_v43 = vadd.f32 %v10810_v47, %v10741_v18  ;;  %v10790_v0 = vadd.f32 %v10789_v6, %v10740_v21  ;;  %v12710_v12 = vpack.c.bf16 %v10524_v16, %v10522_v27  ;;  %v14839_v57 = vmov 1983009808  }
 0x5fd   : > { %11085 = vst [vmem:[%s18402_s11 + $0xb0] sm:$0xff] %v12709_v51  ;;  %v10832_v9 = vadd.f32 %v10831_v42, %v10742_v52  ;;  %v10302_v13 = vpop.f32.mrb[24].mxu0  ;;  %v10528_v11 = vpop.f32.mrb[24].mxu1  ;;  %v18431_v26 = vunpack.c.l.s4 %v14839_v57 }
 0x5fe   : > { %11086 = vst [vmem:[%s18402_s11 + $0xb8] sm:$0xff] %v12710_v12  ;;  %v10622_v32 = vadd.f32 %v10621_v46, %v10302_v13  ;;  %v10743_v5 = vmul.f32 %v10302_v13, %v10302_v13  ;;  %v10664_v22 = vadd.f32 %v10663_v24, %v10528_v11  ;;  %v10745_v45 = vmul.f32 %v10528_v11, %v10528_v11  ;;  %v10304_v49 = vpop.f32.mrb[25].mxu0  ;;  %v10530_v7 = vpop.f32.mrb[25].mxu1 }
 0x5ff   : > { %v10643_v3 = vadd.f32 %v10642_v20, %v10304_v49  ;;  %v10744_v53 = vmul.f32 %v10304_v49, %v10304_v49  ;;  %v12711_v63 = vpack.c.bf16 %v10304_v49, %v10302_v13  ;;  %v10685_v4 = vadd.f32 %v10684_v2, %v10530_v7  ;;  %v10306_v33 = vpop.f32.mrb[26].mxu0  ;;  %v10532_v41 = vpop.f32.mrb[26].mxu1 }
 0x600   : > { %v10770_v40 = vadd.f32 %v10769_v10, %v10743_v5  ;;  %v10812_v35 = vadd.f32 %v10811_v43, %v10745_v45  ;;  %v10746_v8 = vmul.f32 %v10530_v7, %v10530_v7  ;;  %v12712_v50 = vpack.c.bf16 %v10530_v7, %v10528_v11  ;;  %v10308_v28 = vpop.f32.mrb[27].mxu0  ;;  %v10534_v25 = vpop.f32.mrb[27].mxu1 }
 0x601   : > { %v10791_v17 = vadd.f32 %v10790_v0, %v10744_v53  ;;  %11087 = vst [vmem:[%s18402_s11 + $0xc0] sm:$0xff] %v12711_v63  ;;  %v10623_v36 = vadd.f32 %v10622_v32, %v10306_v33  ;;  %v10747_v60 = vmul.f32 %v10306_v33, %v10306_v33  ;;  %v10665_v14 = vadd.f32 %v10664_v22, %v10532_v41 }
 0x602   : > { %v10833_v44 = vadd.f32 %v10832_v9, %v10746_v8  ;;  %11088 = vst [vmem:[%s18402_s11 + $0xc8] sm:$0xff] %v12712_v50  ;;  %v10749_v62 = vmul.f32 %v10532_v41, %v10532_v41  ;;  %v10644_v37 = vadd.f32 %v10643_v3, %v10308_v28  ;;  %v10748_v29 = vmul.f32 %v10308_v28, %v10308_v28 }
 0x603   : > { %v10771_v30 = vadd.f32 %v10770_v40, %v10747_v60  ;;  %v12713_v19 = vpack.c.bf16 %v10308_v28, %v10306_v33  ;;  %v10686_v1 = vadd.f32 %v10685_v4, %v10534_v25  ;;  %v10750_v61 = vmul.f32 %v10534_v25, %v10534_v25 }
 0x604   : > { %v10813_v48 = vadd.f32 %v10812_v35, %v10749_v62  ;;  %v10792_v38 = vadd.f32 %v10791_v17, %v10748_v29  ;;  %v12714_v23 = vpack.c.bf16 %v10534_v25, %v10532_v41 }
 0x605   : > { %11089 = vst [vmem:[%s18402_s11 + $0xd0] sm:$0xff] %v12713_v19  ;;  %v10834_v59 = vadd.f32 %v10833_v44, %v10750_v61  ;;  %v10312_v58 = vpop.f32.mrb[28].mxu0  ;;  %v10538_v34 = vpop.f32.mrb[28].mxu1 }
 0x606   : > { %11090 = vst [vmem:[%s18402_s11 + $0xd8] sm:$0xff] %v12714_v23  ;;  %v10624_v54 = vadd.f32 %v10623_v36, %v10312_v58  ;;  %v10751_v27 = vmul.f32 %v10312_v58, %v10312_v58  ;;  %v10666_v55 = vadd.f32 %v10665_v14, %v10538_v34  ;;  %v10753_v47 = vmul.f32 %v10538_v34, %v10538_v34  ;;  %v10314_v56 = vpop.f32.mrb[29].mxu0  ;;  %v10540_v31 = vpop.f32.mrb[29].mxu1 }
 0x607   : > { %v10645_v39 = vadd.f32 %v10644_v37, %v10314_v56  ;;  %v10752_v16 = vmul.f32 %v10314_v56, %v10314_v56  ;;  %v12715_v6 = vpack.c.bf16 %v10314_v56, %v10312_v58  ;;  %v10687_v46 = vadd.f32 %v10686_v1, %v10540_v31  ;;  %v10316_v15 = vpop.f32.mrb[30].mxu0  ;;  %v18434_v24 = vpop.f32.mrb[30].mxu1 }
 0x608   : > { %v10772_v42 = vadd.f32 %v10771_v30, %v10751_v27  ;;  %v10814_v18 = vadd.f32 %v10813_v48, %v10753_v47  ;;  %v10754_v20 = vmul.f32 %v10540_v31, %v10540_v31  ;;  %v12716_v21 = vpack.c.bf16 %v10540_v31, %v10538_v34  ;;  %v10318_v10 = vpop.f32.mrb[31].mxu0  ;;  %v18436_v51 = vpop.f32.mrb[31].mxu1 }
 0x609   : > { %v10793_v2 = vadd.f32 %v10792_v38, %v10752_v16  ;;  %11091 = vst [vmem:[%s18402_s11 + $0xe0] sm:$0xff] %v12715_v6  ;;  %v10625_v52 = vadd.f32 %v10624_v54, %v10316_v15  ;;  %v10755_v43 = vmul.f32 %v10316_v15, %v10316_v15  ;;  %v10667_v0 = vadd.f32 %v10666_v55, %v18434_v24 }
 0x60a   : > { %v10835_v12 = vadd.f32 %v10834_v59, %v10754_v20  ;;  %11092 = vst [vmem:[%s18402_s11 + $0xe8] sm:$0xff] %v12716_v21  ;;  %v10757_v9 = vmul.f32 %v18434_v24, %v18434_v24  ;;  %v10646_v13 = vadd.f32 %v10645_v39, %v10318_v10  ;;  %v10756_v11 = vmul.f32 %v10318_v10, %v10318_v10 }
 0x60b   : > { %v10626_v32 = vrot.slane %v10625_v52, 4  ;;  %v10773_v5 = vadd.f32 %v10772_v42, %v10755_v43  ;;  %v10668_v22 = vrot.slane %v10667_v0, 4  ;;  %v12717_v45 = vpack.c.bf16 %v10318_v10, %v10316_v15 }
 0x60c   : > { %v10815_v49 = vadd.f32 %v10814_v18, %v10757_v9  ;;  %v10647_v7 = vrot.slane %v10646_v13, 4  ;;  %v10794_v3 = vadd.f32 %v10793_v2, %v10756_v11  ;;  %v10688_v53 = vadd.f32 %v10687_v46, %v18436_v51 }
 0x60d   : > { %v10627_v63 = vadd.f32 %v10626_v32, %v10625_v52  ;;  %v10774_v4 = vrot.slane %v10773_v5, 4  ;;  %v10669_v33 = vadd.f32 %v10668_v22, %v10667_v0  ;;  %11093 = vst [vmem:[%s18402_s11 + $0xf0] sm:$0xff] %v12717_v45  ;;  %v10758_v41 = vmul.f32 %v18436_v51, %v18436_v51 }
 0x60e   : > { %v10816_v40 = vrot.slane %v10815_v49, 4  ;;  %v10648_v35 = vadd.f32 %v10647_v7, %v10646_v13  ;;  %v10795_v8 = vrot.slane %v10794_v3, 4  ;;  %v10689_v50 = vrot.slane %v10688_v53, 4 }
 0x60f   : > { %v10628_v28 = vrot.slane %v10627_v63, 2  ;;  %v10775_v25 = vadd.f32 %v10774_v4, %v10773_v5  ;;  %v10670_v17 = vrot.slane %v10669_v33, 2  ;;  %v10836_v36 = vadd.f32 %v10835_v12, %v10758_v41 }
 0x610   : > { %v10817_v60 = vadd.f32 %v10816_v40, %v10815_v49  ;;  %v10649_v14 = vrot.slane %v10648_v35, 2  ;;  %v10796_v44 = vadd.f32 %v10795_v8, %v10794_v3  ;;  %v10690_v62 = vadd.f32 %v10689_v50, %v10688_v53 }
 0x611   : > { %v10629_v37 = vadd.f32 %v10628_v28, %v10627_v63  ;;  %v10776_v29 = vrot.slane %v10775_v25, 2  ;;  %v10671_v30 = vadd.f32 %v10670_v17, %v10669_v33  ;;  %v10837_v19 = vrot.slane %v10836_v36, 4 }
 0x612   : > { %v10818_v1 = vrot.slane %v10817_v60, 2  ;;  %v10650_v61 = vadd.f32 %v10649_v14, %v10648_v35  ;;  %v10797_v48 = vrot.slane %v10796_v44, 2  ;;  %v10691_v38 = vrot.slane %v10690_v62, 2 }
 0x613   : > { %v10630_v23 = vrot.slane %v10629_v37, 1  ;;  %v10777_v59 = vadd.f32 %v10776_v29, %v10775_v25  ;;  %v10672_v58 = vrot.slane %v10671_v30, 1  ;;  %v10838_v34 = vadd.f32 %v10837_v19, %v10836_v36 }
 0x614   : > { %v10819_v57 = vadd.f32 %v10818_v1, %v10817_v60  ;;  %v10651_v54 = vrot.slane %v10650_v61, 1  ;;  %v10798_v27 = vadd.f32 %v10797_v48, %v10796_v44  ;;  %v10692_v55 = vadd.f32 %v10691_v38, %v10690_v62 }
 0x615   : > { %v10778_v47 = vrot.slane %v10777_v59, 1  ;;  %v10839_v56 = vrot.slane %v10838_v34, 2  ;;  %v10631_v31 = vadd.f32 %v10630_v23, %v10629_v37  ;;  %v10856_v6 = vunpack.c.0.s8 %v18431_v26  ;;  %v18645_v26 = vld [vmem:[#allocation3_spill] sm:$0xff] }
 0x616   : > { %v10820_v39 = vrot.slane %v10819_v57, 1  ;;  %v10799_v16 = vrot.slane %v10798_v27, 1  ;;  %v10693_v15 = vrot.slane %v10692_v55, 1  ;;  %v12718_v18 = vpack.c.bf16 %v18436_v51, %v18434_v24 }
 0x617   : > { %v10779_v46 = vadd.f32 %v10778_v47, %v10777_v59  ;;  %v10840_v42 = vadd.f32 %v10839_v56, %v10838_v34  ;;  %v10673_v20 = vadd.f32 %v10672_v58, %v10671_v30  ;;  %v10652_v10 = vadd.f32 %v10651_v54, %v10650_v61 }
 0x618   : > { %v10821_v21 = vadd.f32 %v10820_v39, %v10819_v57  ;;  %v10800_v2 = vadd.f32 %v10799_v16, %v10798_v27  ;;  %11094 = vst [vmem:[%s18402_s11 + $0xf8] sm:$0xff] %v12718_v18  ;;  %v10859_v9 = vsub.s32 %v10856_v6, %v18645_v26  ;;  %v10694_v11 = vadd.f32 %v10693_v15, %v10692_v55 }
 0x619   : > { %v10844_v52 = vsel %vm530_vm1, %v10631_v31, %v10779_v46  ;;  %v10841_v43 = vrot.slane %v10840_v42, 1 }
 0x61a   : > { %v10846_v0 = vsel %vm530_vm1, %v10673_v20, %v10821_v21  ;;  %v10845_v12 = vsel %vm530_vm1, %v10652_v10, %v10800_v2 }
 0x61b   : > { %v10852_v13 = vcombine.low %v10844_v52, %v10845_v12  ;;  %v10842_v32 = vadd.f32 %v10841_v43, %v10840_v42 }
 0x61d   : > { %v10847_v24 = vsel %vm530_vm1, %v10694_v11, %v10842_v32  ;;  %v10860_v51 = vrot.slane %v10852_v13, %v10859_v9 }
 0x61e   : > { %v10853_v5 = vcombine.low %v10846_v0, %v10847_v24 }
 0x620   : > { %v10867_v22 = vrot.slane %v10853_v5, %v10859_v9 }
 0x622   : > { %v10868_v45 = vcombine.low %v10860_v51, %v10867_v22 }
 0x624   : > { %10870 = vst [vmem:[%s272_s15] sm:$0xff] %v10868_v45 }
 0x625 PF: > { %s16_s20 = sadd.s32 1, %s14834_s20   ;;  %s18646_s18 = smov %s14830_s19 }
 0x626   : > { %p13_p5 = scmp.ge.s32.totalorder %s16_s20, 4   ;;  %s18647_s19 = smov %s18649_s21 }
 0x628   :  { %15 = sbr.rel (!%p13_p5) target bundleno = 2 (0x2), region = 145 }

// kernel: squeeze.9
= control target key start
LH: loop header
LB: loop body
LE: loop exit
PB: predicated region body
PF: predicated region fallthrough
CT: control target
= control target key end

     0   :  { %vm41_vm0 = vcmask 1047556   ;;  %vm21_vm1 = vcmask 261120   ;;  %s82_s19 = smov 96   ;;  %s83_s20 = smov 32   ;;  %s138_s0 = inlined_call_operand.vmem [shape: f32[2,512], index: 0, kind: input, shape index: {}]   ;;  %s139_s1 = inlined_call_operand.vmem [shape: f32[2,16,32], index: 1, kind: output, shape index: {}]  }
   0x1   :  { %v70_v0 = vld [vmem:[%s138_s0 + $0x6] sm:$0x3]  ;;  %v71_v1 = vld [vmem:[%s138_s0 + $0x4] sm:$0x3]  ;;  %v72_v2 = vld [vmem:[%s138_s0 + $0x2] sm:$0x3] }
   0x2   :  { %8 = vst [vmem:[#allocation0 + $0x18] sm:$0x3] %v70_v0  ;;  %13 = vst [vmem:[#allocation0 + $0x10] sm:$0x3] %v71_v1  ;;  %v18_v3 = vld [vmem:[%s138_s0] sm:$0x3] }
   0x3   :  { %17 = vst [vmem:[#allocation0 + $0x8] sm:$0x3] %v72_v2  ;;  %19 = vst [vmem:[#allocation0] sm:$0x3] %v18_v3  ;;  %s84_s23 = smov 64  }
   0x9   :  { %v29_v5 = vld [vmem:[#allocation0 + $0x10] sm:$0x3]   ;;  %v34_v6 = vld [vmem:[#allocation0 + $0x18] sm:$0x3]  }
   0xa   :  { %v24_v4 = vld [vmem:[#allocation0 + $0x8] sm:$0x3]   ;;  %74 = vst.msk [vmem:[%s139_s1 + $0x8] ss:$16 sm:$0x3] %vm21_vm1, %v29_v5  }
   0xb   :  { %v38_v7 = vld [vmem:[#allocation0] ss:$8 sm:$0xf]   ;;  %v40_v8 = vld [vmem:[#allocation0 - $0x1f] ss:$8 sm:$0xf0]  }
   0xc   :  { %73 = vst.msk [vmem:[%s139_s1 + $0x4] ss:$16 sm:$0x3] %vm21_vm1, %v24_v4   ;;  %75 = vst.msk [vmem:[%s139_s1 + $0xc] ss:$16 sm:$0x3] %vm21_vm1, %v34_v6   ;;  %v42_v9 = vsel %vm41_vm0, %v40_v8, %v38_v7 }
   0xd   :  { %v58_v10 = vld [vmem:[#allocation0] ss:$8 sm:$0xf]   ;;  %v60_v11 = vld [vmem:[#allocation0 - $0x1f] ss:$8 sm:$0xf0]   ;;  %43 = vrot.lane.b32.xlu0 %v42_v9, %s82_s19 }
   0xe   :  { %v62_v12 = vsel %vm41_vm0, %v60_v11, %v58_v10  ;;  %v48_v13 = vld [vmem:[#allocation0] ss:$8 sm:$0xf]   ;;  %v50_v14 = vld [vmem:[#allocation0 - $0x1f] ss:$8 sm:$0xf0]  }
   0xf   :  { %63 = vrot.lane.b32.xlu1 %v62_v12, %s83_s20  ;;  %v52_v15 = vsel %vm41_vm0, %v50_v14, %v48_v13  ;;  %v20_v16 = vld [vmem:[#allocation0] sm:$0x3]  }
  0x10   :  { %22 = vst.msk [vmem:[%s139_s1] ss:$16 sm:$0x3] %vm21_vm1, %v20_v16  }
  0x11   :  { %53 = vrot.lane.b32.xlu0 %v52_v15, %s84_s23 }
  0x7f   :  { %v44_v17 = vpop.permute.xlu0 %43  }
  0x80   :  { %76 = vst.msk [vmem:[%s139_s1 + $0x1] ss:$4 sm:$0xff] %vm21_vm1, %v44_v17  }
  0x81   :  { %v64_v18 = vpop.permute.xlu1 %63  }
  0x82   :  { %78 = vst.msk [vmem:[%s139_s1 + $0x3] ss:$4 sm:$0xff] %vm21_vm1, %v64_v18  }
  0x83   :  { %v54_v19 = vpop.permute.xlu0 %53  }
  0x84   :  { %77 = vst.msk [vmem:[%s139_s1 + $0x2] ss:$4 sm:$0xff] %vm21_vm1, %v54_v19  }

</bundles_post_ra>
